<compile_context>
chip_gen: v5e
topology: v5e:2x2
jax: 0.10.0
libtpu: 0.0.40
codegen_flags: <defaults>
</compile_context>

<pallas_src>
import math

import jax
import jax.numpy as jnp
from jax.experimental import pallas as pl
from jax.experimental.pallas import tpu as pltpu


NUM_CLASSES = 10
CFG = [32, "M", 64, "M", 128, "M", 512, "M"]   # reduced VGG feature config
CPAD = 128                                      # channel lane padding
CLS_PAD = 128                                   # logits padded 10 -> 128


def _round_up(x, m):
    return (x + m - 1) // m * m


# ----------------------------------------------------------------------------
# In-kernel fused stage: 3x3 conv (pad=1) + bias + ReLU + 2x2/2 max-pool
# ----------------------------------------------------------------------------
def _conv_pool_stage(xin_ref, w_ref, b_ref, xout_ref, *, out_row_off, out_col_off):
    """xin_ref : (H+2, W+2, Cin) bf16, zero border = conv padding
       w_ref   : (9, Cin, Cout)  bf16, taps ordered (ky, kx)
       b_ref   : (1, Cout)       f32
       xout_ref: pooled rows written at [out_row_off+i, out_col_off:+W//2, :]."""
    Hp, Wp, _ = xin_ref.shape
    H, W = Hp - 2, Wp - 2
    cout = w_ref.shape[-1]
    Ho, Wo = H // 2, W // 2

    # Even/odd column selection matrices: W-direction pooling becomes two tiny
    # exact (1.0/0.0) matmuls instead of strided sublane gathers.
    rows = jax.lax.broadcasted_iota(jnp.int32, (Wo, W), 0)
    cols = jax.lax.broadcasted_iota(jnp.int32, (Wo, W), 1)
    sel_even = (cols == 2 * rows).astype(jnp.float32)
    sel_odd = (cols == 2 * rows + 1).astype(jnp.float32)

    def conv_row(r):
        # One conv output row r = sum of 9 shifted-window tap matmuls.
        acc = jnp.zeros((W, cout), jnp.float32)
        for ky in range(3):
            for kx in range(3):
                patch = xin_ref[r + ky, pl.ds(kx, W), :]          # (W, Cin) bf16
                acc = acc + jnp.dot(patch, w_ref[3 * ky + kx],
                                    preferred_element_type=jnp.float32)
        return jnp.maximum(acc + b_ref[...], 0.0)                 # (W, Cout) f32

    def body(i, carry):
        rmax = jnp.maximum(conv_row(2 * i), conv_row(2 * i + 1))  # H-pool
        pooled = jnp.maximum(                                     # W-pool
            jnp.dot(sel_even, rmax, preferred_element_type=jnp.float32),
            jnp.dot(sel_odd, rmax, preferred_element_type=jnp.float32))
        xout_ref[out_row_off + i, pl.ds(out_col_off, Wo), :] = (
            pooled.astype(xout_ref.dtype))
        return carry

    jax.lax.fori_loop(0, Ho, body, 0)


# ----------------------------------------------------------------------------
# Whole-network kernel (one grid step == one batch element)
# ----------------------------------------------------------------------------
def _vgg_kernel(x_ref, w1, b1, w2, b2, w3, b3, w4, b4,
                fw1, fb1, fw2, fb2, out_ref,
                xp2, xp3, xp4, feat):
    # Zero the padded intermediate activation buffers (border = conv padding).
    xp2[...] = jnp.zeros(xp2.shape, xp2.dtype)
    xp3[...] = jnp.zeros(xp3.shape, xp3.dtype)
    xp4[...] = jnp.zeros(xp4.shape, xp4.dtype)

    # Feature stack, fully VMEM resident.
    _conv_pool_stage(x_ref, w1, b1, xp2, out_row_off=1, out_col_off=1)   # 16->8
    _conv_pool_stage(xp2, w2, b2, xp3, out_row_off=1, out_col_off=1)     # 8 ->4
    _conv_pool_stage(xp3, w3, b3, xp4, out_row_off=1, out_col_off=1)     # 4 ->2
    _conv_pool_stage(xp4, w4, b4, feat, out_row_off=0, out_col_off=0)    # 2 ->1

    # Classifier: Linear(512,512) + ReLU (+ Dropout as identity) + Linear(512,10)
    h = feat[0]                                                   # (1, 512) bf16
    h1 = jnp.dot(h, fw1[...], preferred_element_type=jnp.float32) + fb1[...]
    h1 = jnp.maximum(h1, 0.0)
    # TODO(synk): nn.Dropout treated as identity (inference semantics).
    logits = jnp.dot(h1.astype(jnp.bfloat16), fw2[...],
                     preferred_element_type=jnp.float32) + fb2[...]
    out_ref[...] = logits.astype(out_ref.dtype)                   # (1, 128)


# ----------------------------------------------------------------------------
# Parameter init (mirrors VGG._initialize_weights) + lane-dense packing
# ----------------------------------------------------------------------------
def init_params(key, in_channels=3):
    convs = []
    c_in = in_channels
    for v in CFG:
        if v == "M":
            continue
        key, k1 = jax.random.split(key)
        std = math.sqrt(2.0 / (3 * 3 * v))                 # Conv2d: N(0, sqrt(2/n))
        w = jax.random.normal(k1, (3, 3, c_in, v), jnp.float32) * std
        b = jnp.zeros((v,), jnp.float32)                   # conv bias zeroed
        convs.append((w, b))
        c_in = v
    key, k1, k2 = jax.random.split(key, 3)
    fc1_w = jax.random.normal(k1, (512, 512), jnp.float32) * 0.01   # Linear: N(0,0.01)
    fc1_b = jnp.zeros((512,), jnp.float32)
    fc2_w = jax.random.normal(k2, (512, NUM_CLASSES), jnp.float32) * 0.01
    fc2_b = jnp.zeros((NUM_CLASSES,), jnp.float32)
    return {"convs": convs, "fc1": (fc1_w, fc1_b), "fc2": (fc2_w, fc2_b)}


def pack_params(params):
    """Pad channel dims to multiples of 128 lanes, reshape taps, cast to bf16."""
    packed_convs = []
    for w, b in params["convs"]:
        kh, kw, cin, cout = w.shape
        cin_p, cout_p = _round_up(cin, CPAD), _round_up(cout, CPAD)
        wp = jnp.zeros((kh * kw, cin_p, cout_p), jnp.float32)
        wp = wp.at[:, :cin, :cout].set(w.reshape(kh * kw, cin, cout))
        bp = jnp.zeros((1, cout_p), jnp.float32).at[0, :cout].set(b)
        packed_convs.append((wp.astype(jnp.bfloat16), bp))
    fc1_w, fc1_b = params["fc1"]
    fc2_w, fc2_b = params["fc2"]
    fw1 = fc1_w.astype(jnp.bfloat16)
    fb1 = fc1_b.reshape(1, -1).astype(jnp.float32)
    fw2 = (jnp.zeros((512, CLS_PAD), jnp.float32)
           .at[:, :NUM_CLASSES].set(fc2_w).astype(jnp.bfloat16))
    fb2 = jnp.zeros((1, CLS_PAD), jnp.float32).at[0, :NUM_CLASSES].set(fc2_b)
    return {"convs": packed_convs, "fc1": (fw1, fb1), "fc2": (fw2, fb2)}


# ----------------------------------------------------------------------------
# Forward wrapper
# ----------------------------------------------------------------------------
def vgg_forward(packed, x_nchw):
    N, cin, H, W = x_nchw.shape
    assert (H, W) == (16, 16) and cin <= CPAD
    x = jnp.transpose(x_nchw, (0, 2, 3, 1))                         # NCHW -> NHWC
    x = jnp.pad(x, ((0, 0), (1, 1), (1, 1), (0, CPAD - cin)))       # conv + lane pad
    x = x.astype(jnp.bfloat16)

    (w1, b1), (w2, b2), (w3, b3), (w4, b4) = packed["convs"]
    fw1, fb1 = packed["fc1"]
    fw2, fb2 = packed["fc2"]

    def full(arr):  # whole-array block, resident across the batch grid
        return pl.BlockSpec(arr.shape, lambda i, _nd=arr.ndim: (0,) * _nd)

    out = pl.pallas_call(
        _vgg_kernel,
        out_shape=jax.ShapeDtypeStruct((N, 1, CLS_PAD), jnp.float32),
        grid=(N,),
        in_specs=[
            pl.BlockSpec((None, H + 2, W + 2, CPAD), lambda i: (i, 0, 0, 0)),
            full(w1), full(b1), full(w2), full(b2),
            full(w3), full(b3), full(w4), full(b4),
            full(fw1), full(fb1), full(fw2), full(fb2),
        ],
        out_specs=pl.BlockSpec((None, 1, CLS_PAD), lambda i: (i, 0, 0)),
        scratch_shapes=[
            pltpu.VMEM((10, 10, CPAD), jnp.bfloat16),   # stage-2 padded input
            pltpu.VMEM((6, 6, CPAD), jnp.bfloat16),     # stage-3 padded input
            pltpu.VMEM((4, 4, CPAD), jnp.bfloat16),     # stage-4 padded input
            pltpu.VMEM((1, 1, 512), jnp.bfloat16),      # flattened features
        ],
        compiler_params=pltpu.CompilerParams(
            dimension_semantics=("parallel",)),
    )(x, w1, b1, w2, b2, w3, b3, w4, b4, fw1, fb1, fw2, fb2)

    return out[:, 0, :NUM_CLASSES]


if __name__ == "__main__":
    key = jax.random.PRNGKey(0)
    key, kx, kp = jax.random.split(key, 3)
    x = jax.random.normal(kx, (2, 3, 16, 16), jnp.float32)   # NCHW, like PyTorch
    params = init_params(kp)
    packed = pack_params(params)
    fwd = jax.jit(vgg_forward)
    out = fwd(packed, x)
    out = jax.block_until_ready(out)
    assert out.shape == (2, NUM_CLASSES), out.shape
    print("KERNEL_OK")
</pallas_src>

<mosaic_0001>
module attributes {stable_mosaic.version = 11 : i64} {
  func.func @_vgg_kernel(%arg0: i32, %arg1: memref<1x18x18x128xbf16, #tpu.memory_space<vmem>>, %arg2: memref<9x128x128xbf16, #tpu.memory_space<vmem>>, %arg3: memref<1x128xf32, #tpu.memory_space<vmem>>, %arg4: memref<9x128x128xbf16, #tpu.memory_space<vmem>>, %arg5: memref<1x128xf32, #tpu.memory_space<vmem>>, %arg6: memref<9x128x128xbf16, #tpu.memory_space<vmem>>, %arg7: memref<1x128xf32, #tpu.memory_space<vmem>>, %arg8: memref<9x128x512xbf16, #tpu.memory_space<vmem>>, %arg9: memref<1x512xf32, #tpu.memory_space<vmem>>, %arg10: memref<512x512xbf16, #tpu.memory_space<vmem>>, %arg11: memref<1x512xf32, #tpu.memory_space<vmem>>, %arg12: memref<512x128xbf16, #tpu.memory_space<vmem>>, %arg13: memref<1x128xf32, #tpu.memory_space<vmem>>, %arg14: memref<1x1x128xf32, #tpu.memory_space<vmem>>, %arg15: memref<10x10x128xbf16, #tpu.memory_space<vmem>>, %arg16: memref<6x6x128xbf16, #tpu.memory_space<vmem>>, %arg17: memref<4x4x128xbf16, #tpu.memory_space<vmem>>, %arg18: memref<1x1x512xbf16, #tpu.memory_space<vmem>>) attributes {dimension_semantics = [#tpu.dimension_semantics<parallel>], iteration_bounds = array<i64: 2>, scalar_prefetch = 0 : i64, scratch_operands = 4 : i64, tpu.core_type = #tpu.core_type<tc>, window_params = [{transform_indices = @transform_0, window_bounds = array<i64: 1, 18, 18, 128>}, {pipeline_mode = #tpu.pipeline_mode<synchronous>, transform_indices = @transform_1, window_bounds = array<i64: 9, 128, 128>}, {pipeline_mode = #tpu.pipeline_mode<synchronous>, transform_indices = @transform_2, window_bounds = array<i64: 1, 128>}, {pipeline_mode = #tpu.pipeline_mode<synchronous>, transform_indices = @transform_3, window_bounds = array<i64: 9, 128, 128>}, {pipeline_mode = #tpu.pipeline_mode<synchronous>, transform_indices = @transform_4, window_bounds = array<i64: 1, 128>}, {pipeline_mode = #tpu.pipeline_mode<synchronous>, transform_indices = @transform_5, window_bounds = array<i64: 9, 128, 128>}, {pipeline_mode = #tpu.pipeline_mode<synchronous>, transform_indices = @transform_6, window_bounds = array<i64: 1, 128>}, {pipeline_mode = #tpu.pipeline_mode<synchronous>, transform_indices = @transform_7, window_bounds = array<i64: 9, 128, 512>}, {pipeline_mode = #tpu.pipeline_mode<synchronous>, transform_indices = @transform_8, window_bounds = array<i64: 1, 512>}, {pipeline_mode = #tpu.pipeline_mode<synchronous>, transform_indices = @transform_9, window_bounds = array<i64: 512, 512>}, {pipeline_mode = #tpu.pipeline_mode<synchronous>, transform_indices = @transform_10, window_bounds = array<i64: 1, 512>}, {pipeline_mode = #tpu.pipeline_mode<synchronous>, transform_indices = @transform_11, window_bounds = array<i64: 512, 128>}, {pipeline_mode = #tpu.pipeline_mode<synchronous>, transform_indices = @transform_12, window_bounds = array<i64: 1, 128>}, {transform_indices = @transform_13, window_bounds = array<i64: 1, 1, 128>}]} {
    %cst = arith.constant 0.000000e+00 : bf16
    %0 = vector.broadcast %cst : bf16 to vector<10x10x128xbf16>
    %c0 = arith.constant 0 : index
    %c0_0 = arith.constant 0 : index
    %c0_1 = arith.constant 0 : index
    %1 = vector.load %arg15[%c0, %c0_0, %c0_1] : memref<10x10x128xbf16, #tpu.memory_space<vmem>>, vector<10x10x128xbf16>
    tpu.vector_store %arg15[%c0, %c0_0, %c0_1], %0 {strides = array<i32>} : memref<10x10x128xbf16, #tpu.memory_space<vmem>>, vector<10x10x128xbf16>,
    %cst_2 = arith.constant 0.000000e+00 : bf16
    %2 = vector.broadcast %cst_2 : bf16 to vector<6x6x128xbf16>
    %c0_3 = arith.constant 0 : index
    %c0_4 = arith.constant 0 : index
    %c0_5 = arith.constant 0 : index
    %3 = vector.load %arg16[%c0_3, %c0_4, %c0_5] : memref<6x6x128xbf16, #tpu.memory_space<vmem>>, vector<6x6x128xbf16>
    tpu.vector_store %arg16[%c0_3, %c0_4, %c0_5], %2 {strides = array<i32>} : memref<6x6x128xbf16, #tpu.memory_space<vmem>>, vector<6x6x128xbf16>,
    %cst_6 = arith.constant 0.000000e+00 : bf16
    %4 = vector.broadcast %cst_6 : bf16 to vector<4x4x128xbf16>
    %c0_7 = arith.constant 0 : index
    %c0_8 = arith.constant 0 : index
    %c0_9 = arith.constant 0 : index
    %5 = vector.load %arg17[%c0_7, %c0_8, %c0_9] : memref<4x4x128xbf16, #tpu.memory_space<vmem>>, vector<4x4x128xbf16>
    tpu.vector_store %arg17[%c0_7, %c0_8, %c0_9], %4 {strides = array<i32>} : memref<4x4x128xbf16, #tpu.memory_space<vmem>>, vector<4x4x128xbf16>,
    %6 = tpu.iota {dimensions = array<i32: 0>} : vector<8x16xi32>
    %7 = tpu.iota {dimensions = array<i32: 1>} : vector<8x16xi32>
    %c2_i32 = arith.constant 2 : i32
    %8 = vector.broadcast %c2_i32 : i32 to vector<8x16xi32>
    %9 = arith.muli %8, %6 : vector<8x16xi32>
    %10 = arith.cmpi eq, %7, %9 : vector<8x16xi32>
    %11 = arith.extui %10 : vector<8x16xi1> to vector<8x16xi32>
    %12 = arith.sitofp %11 : vector<8x16xi32> to vector<8x16xf32>
    %c2_i32_10 = arith.constant 2 : i32
    %13 = vector.broadcast %c2_i32_10 : i32 to vector<8x16xi32>
    %14 = arith.muli %13, %6 : vector<8x16xi32>
    %c1_i32 = arith.constant 1 : i32
    %15 = vector.broadcast %c1_i32 : i32 to vector<8x16xi32>
    %16 = arith.addi %14, %15 : vector<8x16xi32>
    %17 = arith.cmpi eq, %7, %16 : vector<8x16xi32>
    %18 = arith.extui %17 : vector<8x16xi1> to vector<8x16xi32>
    %19 = arith.sitofp %18 : vector<8x16xi32> to vector<8x16xf32>
    %c0_i32 = arith.constant 0 : i32
    %c8_i32 = arith.constant 8 : i32
    %20 = arith.addi %c0_i32, %c8_i32 : i32
    %c1_i32_11 = arith.constant 1 : i32
    scf.for %arg19 = %c0_i32 to %20 step %c1_i32_11  : i32 {
      %c2_i32_182 = arith.constant 2 : i32
      %250 = arith.muli %c2_i32_182, %arg19 : i32
      %cst_183 = arith.constant 0.000000e+00 : f32
      %251 = vector.broadcast %cst_183 : f32 to vector<16x128xf32>
      %c0_i32_184 = arith.constant 0 : i32
      %252 = arith.addi %250, %c0_i32_184 : i32
      %c0_185 = arith.constant 0 : index
      %253 = arith.index_cast %252 : i32 to index
      %c0_186 = arith.constant 0 : index
      %c0_187 = arith.constant 0 : index
      %254 = vector.load %arg1[%c0_185, %253, %c0_186, %c0_187] : memref<1x18x18x128xbf16, #tpu.memory_space<vmem>>, vector<1x1x16x128xbf16>
      %255 = vector.shape_cast %254 : vector<1x1x16x128xbf16> to vector<16x128xbf16>
      %c0_188 = arith.constant 0 : index
      %c0_189 = arith.constant 0 : index
      %c0_190 = arith.constant 0 : index
      %256 = vector.load %arg2[%c0_188, %c0_189, %c0_190] : memref<9x128x128xbf16, #tpu.memory_space<vmem>>, vector<1x128x128xbf16>
      %257 = vector.shape_cast %256 : vector<1x128x128xbf16> to vector<128x128xbf16>
      %cst_191 = arith.constant dense<0.000000e+00> : vector<16x128xf32>
      %258 = tpu.matmul %255, %257, %cst_191 {dimension_numbers = #tpu.dot_dimension_numbers<[1], [0], [0], [1], [0, 0, 1, 1], [], []>} : vector<16x128xbf16>, vector<128x128xbf16>, vector<16x128xf32> -> vector<16x128xf32>
      %259 = arith.addf %251, %258 : vector<16x128xf32>
      %c0_i32_192 = arith.constant 0 : i32
      %260 = arith.addi %250, %c0_i32_192 : i32
      %c0_193 = arith.constant 0 : index
      %261 = arith.index_cast %260 : i32 to index
      %c1_194 = arith.constant 1 : index
      %c0_195 = arith.constant 0 : index
      %262 = vector.load %arg1[%c0_193, %261, %c1_194, %c0_195] : memref<1x18x18x128xbf16, #tpu.memory_space<vmem>>, vector<1x1x16x128xbf16>
      %263 = vector.shape_cast %262 : vector<1x1x16x128xbf16> to vector<16x128xbf16>
      %c1_196 = arith.constant 1 : index
      %c0_197 = arith.constant 0 : index
      %c0_198 = arith.constant 0 : index
      %264 = vector.load %arg2[%c1_196, %c0_197, %c0_198] : memref<9x128x128xbf16, #tpu.memory_space<vmem>>, vector<1x128x128xbf16>
      %265 = vector.shape_cast %264 : vector<1x128x128xbf16> to vector<128x128xbf16>
      %cst_199 = arith.constant dense<0.000000e+00> : vector<16x128xf32>
      %266 = tpu.matmul %263, %265, %cst_199 {dimension_numbers = #tpu.dot_dimension_numbers<[1], [0], [0], [1], [0, 0, 1, 1], [], []>} : vector<16x128xbf16>, vector<128x128xbf16>, vector<16x128xf32> -> vector<16x128xf32>
      %267 = arith.addf %259, %266 : vector<16x128xf32>
      %c0_i32_200 = arith.constant 0 : i32
      %268 = arith.addi %250, %c0_i32_200 : i32
      %c0_201 = arith.constant 0 : index
      %269 = arith.index_cast %268 : i32 to index
      %c2_202 = arith.constant 2 : index
      %c0_203 = arith.constant 0 : index
      %270 = vector.load %arg1[%c0_201, %269, %c2_202, %c0_203] : memref<1x18x18x128xbf16, #tpu.memory_space<vmem>>, vector<1x1x16x128xbf16>
      %271 = vector.shape_cast %270 : vector<1x1x16x128xbf16> to vector<16x128xbf16>
      %c2_204 = arith.constant 2 : index
      %c0_205 = arith.constant 0 : index
      %c0_206 = arith.constant 0 : index
      %272 = vector.load %arg2[%c2_204, %c0_205, %c0_206] : memref<9x128x128xbf16, #tpu.memory_space<vmem>>, vector<1x128x128xbf16>
      %273 = vector.shape_cast %272 : vector<1x128x128xbf16> to vector<128x128xbf16>
      %cst_207 = arith.constant dense<0.000000e+00> : vector<16x128xf32>
      %274 = tpu.matmul %271, %273, %cst_207 {dimension_numbers = #tpu.dot_dimension_numbers<[1], [0], [0], [1], [0, 0, 1, 1], [], []>} : vector<16x128xbf16>, vector<128x128xbf16>, vector<16x128xf32> -> vector<16x128xf32>
      %275 = arith.addf %267, %274 : vector<16x128xf32>
      %c1_i32_208 = arith.constant 1 : i32
      %276 = arith.addi %250, %c1_i32_208 : i32
      %c0_209 = arith.constant 0 : index
      %277 = arith.index_cast %276 : i32 to index
      %c0_210 = arith.constant 0 : index
      %c0_211 = arith.constant 0 : index
      %278 = vector.load %arg1[%c0_209, %277, %c0_210, %c0_211] : memref<1x18x18x128xbf16, #tpu.memory_space<vmem>>, vector<1x1x16x128xbf16>
      %279 = vector.shape_cast %278 : vector<1x1x16x128xbf16> to vector<16x128xbf16>
      %c3_212 = arith.constant 3 : index
      %c0_213 = arith.constant 0 : index
      %c0_214 = arith.constant 0 : index
      %280 = vector.load %arg2[%c3_212, %c0_213, %c0_214] : memref<9x128x128xbf16, #tpu.memory_space<vmem>>, vector<1x128x128xbf16>
      %281 = vector.shape_cast %280 : vector<1x128x128xbf16> to vector<128x128xbf16>
      %cst_215 = arith.constant dense<0.000000e+00> : vector<16x128xf32>
      %282 = tpu.matmul %279, %281, %cst_215 {dimension_numbers = #tpu.dot_dimension_numbers<[1], [0], [0], [1], [0, 0, 1, 1], [], []>} : vector<16x128xbf16>, vector<128x128xbf16>, vector<16x128xf32> -> vector<16x128xf32>
      %283 = arith.addf %275, %282 : vector<16x128xf32>
      %c1_i32_216 = arith.constant 1 : i32
      %284 = arith.addi %250, %c1_i32_216 : i32
      %c0_217 = arith.constant 0 : index
      %285 = arith.index_cast %284 : i32 to index
      %c1_218 = arith.constant 1 : index
      %c0_219 = arith.constant 0 : index
      %286 = vector.load %arg1[%c0_217, %285, %c1_218, %c0_219] : memref<1x18x18x128xbf16, #tpu.memory_space<vmem>>, vector<1x1x16x128xbf16>
      %287 = vector.shape_cast %286 : vector<1x1x16x128xbf16> to vector<16x128xbf16>
      %c4_220 = arith.constant 4 : index
      %c0_221 = arith.constant 0 : index
      %c0_222 = arith.constant 0 : index
      %288 = vector.load %arg2[%c4_220, %c0_221, %c0_222] : memref<9x128x128xbf16, #tpu.memory_space<vmem>>, vector<1x128x128xbf16>
      %289 = vector.shape_cast %288 : vector<1x128x128xbf16> to vector<128x128xbf16>
      %cst_223 = arith.constant dense<0.000000e+00> : vector<16x128xf32>
      %290 = tpu.matmul %287, %289, %cst_223 {dimension_numbers = #tpu.dot_dimension_numbers<[1], [0], [0], [1], [0, 0, 1, 1], [], []>} : vector<16x128xbf16>, vector<128x128xbf16>, vector<16x128xf32> -> vector<16x128xf32>
      %291 = arith.addf %283, %290 : vector<16x128xf32>
      %c1_i32_224 = arith.constant 1 : i32
      %292 = arith.addi %250, %c1_i32_224 : i32
      %c0_225 = arith.constant 0 : index
      %293 = arith.index_cast %292 : i32 to index
      %c2_226 = arith.constant 2 : index
      %c0_227 = arith.constant 0 : index
      %294 = vector.load %arg1[%c0_225, %293, %c2_226, %c0_227] : memref<1x18x18x128xbf16, #tpu.memory_space<vmem>>, vector<1x1x16x128xbf16>
      %295 = vector.shape_cast %294 : vector<1x1x16x128xbf16> to vector<16x128xbf16>
      %c5_228 = arith.constant 5 : index
      %c0_229 = arith.constant 0 : index
      %c0_230 = arith.constant 0 : index
      %296 = vector.load %arg2[%c5_228, %c0_229, %c0_230] : memref<9x128x128xbf16, #tpu.memory_space<vmem>>, vector<1x128x128xbf16>
      %297 = vector.shape_cast %296 : vector<1x128x128xbf16> to vector<128x128xbf16>
      %cst_231 = arith.constant dense<0.000000e+00> : vector<16x128xf32>
      %298 = tpu.matmul %295, %297, %cst_231 {dimension_numbers = #tpu.dot_dimension_numbers<[1], [0], [0], [1], [0, 0, 1, 1], [], []>} : vector<16x128xbf16>, vector<128x128xbf16>, vector<16x128xf32> -> vector<16x128xf32>
      %299 = arith.addf %291, %298 : vector<16x128xf32>
      %c2_i32_232 = arith.constant 2 : i32
      %300 = arith.addi %250, %c2_i32_232 : i32
      %c0_233 = arith.constant 0 : index
      %301 = arith.index_cast %300 : i32 to index
      %c0_234 = arith.constant 0 : index
      %c0_235 = arith.constant 0 : index
      %302 = vector.load %arg1[%c0_233, %301, %c0_234, %c0_235] : memref<1x18x18x128xbf16, #tpu.memory_space<vmem>>, vector<1x1x16x128xbf16>
      %303 = vector.shape_cast %302 : vector<1x1x16x128xbf16> to vector<16x128xbf16>
      %c6_236 = arith.constant 6 : index
      %c0_237 = arith.constant 0 : index
      %c0_238 = arith.constant 0 : index
      %304 = vector.load %arg2[%c6_236, %c0_237, %c0_238] : memref<9x128x128xbf16, #tpu.memory_space<vmem>>, vector<1x128x128xbf16>
      %305 = vector.shape_cast %304 : vector<1x128x128xbf16> to vector<128x128xbf16>
      %cst_239 = arith.constant dense<0.000000e+00> : vector<16x128xf32>
      %306 = tpu.matmul %303, %305, %cst_239 {dimension_numbers = #tpu.dot_dimension_numbers<[1], [0], [0], [1], [0, 0, 1, 1], [], []>} : vector<16x128xbf16>, vector<128x128xbf16>, vector<16x128xf32> -> vector<16x128xf32>
      %307 = arith.addf %299, %306 : vector<16x128xf32>
      %c2_i32_240 = arith.constant 2 : i32
      %308 = arith.addi %250, %c2_i32_240 : i32
      %c0_241 = arith.constant 0 : index
      %309 = arith.index_cast %308 : i32 to index
      %c1_242 = arith.constant 1 : index
      %c0_243 = arith.constant 0 : index
      %310 = vector.load %arg1[%c0_241, %309, %c1_242, %c0_243] : memref<1x18x18x128xbf16, #tpu.memory_space<vmem>>, vector<1x1x16x128xbf16>
      %311 = vector.shape_cast %310 : vector<1x1x16x128xbf16> to vector<16x128xbf16>
      %c7_244 = arith.constant 7 : index
      %c0_245 = arith.constant 0 : index
      %c0_246 = arith.constant 0 : index
      %312 = vector.load %arg2[%c7_244, %c0_245, %c0_246] : memref<9x128x128xbf16, #tpu.memory_space<vmem>>, vector<1x128x128xbf16>
      %313 = vector.shape_cast %312 : vector<1x128x128xbf16> to vector<128x128xbf16>
      %cst_247 = arith.constant dense<0.000000e+00> : vector<16x128xf32>
      %314 = tpu.matmul %311, %313, %cst_247 {dimension_numbers = #tpu.dot_dimension_numbers<[1], [0], [0], [1], [0, 0, 1, 1], [], []>} : vector<16x128xbf16>, vector<128x128xbf16>, vector<16x128xf32> -> vector<16x128xf32>
      %315 = arith.addf %307, %314 : vector<16x128xf32>
      %c2_i32_248 = arith.constant 2 : i32
      %316 = arith.addi %250, %c2_i32_248 : i32
      %c0_249 = arith.constant 0 : index
      %317 = arith.index_cast %316 : i32 to index
      %c2_250 = arith.constant 2 : index
      %c0_251 = arith.constant 0 : index
      %318 = vector.load %arg1[%c0_249, %317, %c2_250, %c0_251] : memref<1x18x18x128xbf16, #tpu.memory_space<vmem>>, vector<1x1x16x128xbf16>
      %319 = vector.shape_cast %318 : vector<1x1x16x128xbf16> to vector<16x128xbf16>
      %c8_252 = arith.constant 8 : index
      %c0_253 = arith.constant 0 : index
      %c0_254 = arith.constant 0 : index
      %320 = vector.load %arg2[%c8_252, %c0_253, %c0_254] : memref<9x128x128xbf16, #tpu.memory_space<vmem>>, vector<1x128x128xbf16>
      %321 = vector.shape_cast %320 : vector<1x128x128xbf16> to vector<128x128xbf16>
      %cst_255 = arith.constant dense<0.000000e+00> : vector<16x128xf32>
      %322 = tpu.matmul %319, %321, %cst_255 {dimension_numbers = #tpu.dot_dimension_numbers<[1], [0], [0], [1], [0, 0, 1, 1], [], []>} : vector<16x128xbf16>, vector<128x128xbf16>, vector<16x128xf32> -> vector<16x128xf32>
      %323 = arith.addf %315, %322 : vector<16x128xf32>
      %c0_256 = arith.constant 0 : index
      %c0_257 = arith.constant 0 : index
      %324 = vector.load %arg3[%c0_256, %c0_257] : memref<1x128xf32, #tpu.memory_space<vmem>>, vector<1x128xf32>
      %325 = vector.broadcast %324 : vector<1x128xf32> to vector<16x128xf32>
      %326 = arith.addf %323, %325 : vector<16x128xf32>
      %cst_258 = arith.constant 0.000000e+00 : f32
      %327 = vector.broadcast %cst_258 : f32 to vector<16x128xf32>
      %328 = arith.maximumf %326, %327 : vector<16x128xf32>
      %c2_i32_259 = arith.constant 2 : i32
      %329 = arith.muli %c2_i32_259, %arg19 : i32
      %c1_i32_260 = arith.constant 1 : i32
      %330 = arith.addi %329, %c1_i32_260 : i32
      %cst_261 = arith.constant 0.000000e+00 : f32
      %331 = vector.broadcast %cst_261 : f32 to vector<16x128xf32>
      %c0_i32_262 = arith.constant 0 : i32
      %332 = arith.addi %330, %c0_i32_262 : i32
      %c0_263 = arith.constant 0 : index
      %333 = arith.index_cast %332 : i32 to index
      %c0_264 = arith.constant 0 : index
      %c0_265 = arith.constant 0 : index
      %334 = vector.load %arg1[%c0_263, %333, %c0_264, %c0_265] : memref<1x18x18x128xbf16, #tpu.memory_space<vmem>>, vector<1x1x16x128xbf16>
      %335 = vector.shape_cast %334 : vector<1x1x16x128xbf16> to vector<16x128xbf16>
      %c0_266 = arith.constant 0 : index
      %c0_267 = arith.constant 0 : index
      %c0_268 = arith.constant 0 : index
      %336 = vector.load %arg2[%c0_266, %c0_267, %c0_268] : memref<9x128x128xbf16, #tpu.memory_space<vmem>>, vector<1x128x128xbf16>
      %337 = vector.shape_cast %336 : vector<1x128x128xbf16> to vector<128x128xbf16>
      %cst_269 = arith.constant dense<0.000000e+00> : vector<16x128xf32>
      %338 = tpu.matmul %335, %337, %cst_269 {dimension_numbers = #tpu.dot_dimension_numbers<[1], [0], [0], [1], [0, 0, 1, 1], [], []>} : vector<16x128xbf16>, vector<128x128xbf16>, vector<16x128xf32> -> vector<16x128xf32>
      %339 = arith.addf %331, %338 : vector<16x128xf32>
      %c0_i32_270 = arith.constant 0 : i32
      %340 = arith.addi %330, %c0_i32_270 : i32
      %c0_271 = arith.constant 0 : index
      %341 = arith.index_cast %340 : i32 to index
      %c1_272 = arith.constant 1 : index
      %c0_273 = arith.constant 0 : index
      %342 = vector.load %arg1[%c0_271, %341, %c1_272, %c0_273] : memref<1x18x18x128xbf16, #tpu.memory_space<vmem>>, vector<1x1x16x128xbf16>
      %343 = vector.shape_cast %342 : vector<1x1x16x128xbf16> to vector<16x128xbf16>
      %c1_274 = arith.constant 1 : index
      %c0_275 = arith.constant 0 : index
      %c0_276 = arith.constant 0 : index
      %344 = vector.load %arg2[%c1_274, %c0_275, %c0_276] : memref<9x128x128xbf16, #tpu.memory_space<vmem>>, vector<1x128x128xbf16>
      %345 = vector.shape_cast %344 : vector<1x128x128xbf16> to vector<128x128xbf16>
      %cst_277 = arith.constant dense<0.000000e+00> : vector<16x128xf32>
      %346 = tpu.matmul %343, %345, %cst_277 {dimension_numbers = #tpu.dot_dimension_numbers<[1], [0], [0], [1], [0, 0, 1, 1], [], []>} : vector<16x128xbf16>, vector<128x128xbf16>, vector<16x128xf32> -> vector<16x128xf32>
      %347 = arith.addf %339, %346 : vector<16x128xf32>
      %c0_i32_278 = arith.constant 0 : i32
      %348 = arith.addi %330, %c0_i32_278 : i32
      %c0_279 = arith.constant 0 : index
      %349 = arith.index_cast %348 : i32 to index
      %c2_280 = arith.constant 2 : index
      %c0_281 = arith.constant 0 : index
      %350 = vector.load %arg1[%c0_279, %349, %c2_280, %c0_281] : memref<1x18x18x128xbf16, #tpu.memory_space<vmem>>, vector<1x1x16x128xbf16>
      %351 = vector.shape_cast %350 : vector<1x1x16x128xbf16> to vector<16x128xbf16>
      %c2_282 = arith.constant 2 : index
      %c0_283 = arith.constant 0 : index
      %c0_284 = arith.constant 0 : index
      %352 = vector.load %arg2[%c2_282, %c0_283, %c0_284] : memref<9x128x128xbf16, #tpu.memory_space<vmem>>, vector<1x128x128xbf16>
      %353 = vector.shape_cast %352 : vector<1x128x128xbf16> to vector<128x128xbf16>
      %cst_285 = arith.constant dense<0.000000e+00> : vector<16x128xf32>
      %354 = tpu.matmul %351, %353, %cst_285 {dimension_numbers = #tpu.dot_dimension_numbers<[1], [0], [0], [1], [0, 0, 1, 1], [], []>} : vector<16x128xbf16>, vector<128x128xbf16>, vector<16x128xf32> -> vector<16x128xf32>
      %355 = arith.addf %347, %354 : vector<16x128xf32>
      %c1_i32_286 = arith.constant 1 : i32
      %356 = arith.addi %330, %c1_i32_286 : i32
      %c0_287 = arith.constant 0 : index
      %357 = arith.index_cast %356 : i32 to index
      %c0_288 = arith.constant 0 : index
      %c0_289 = arith.constant 0 : index
      %358 = vector.load %arg1[%c0_287, %357, %c0_288, %c0_289] : memref<1x18x18x128xbf16, #tpu.memory_space<vmem>>, vector<1x1x16x128xbf16>
      %359 = vector.shape_cast %358 : vector<1x1x16x128xbf16> to vector<16x128xbf16>
      %c3_290 = arith.constant 3 : index
      %c0_291 = arith.constant 0 : index
      %c0_292 = arith.constant 0 : index
      %360 = vector.load %arg2[%c3_290, %c0_291, %c0_292] : memref<9x128x128xbf16, #tpu.memory_space<vmem>>, vector<1x128x128xbf16>
      %361 = vector.shape_cast %360 : vector<1x128x128xbf16> to vector<128x128xbf16>
      %cst_293 = arith.constant dense<0.000000e+00> : vector<16x128xf32>
      %362 = tpu.matmul %359, %361, %cst_293 {dimension_numbers = #tpu.dot_dimension_numbers<[1], [0], [0], [1], [0, 0, 1, 1], [], []>} : vector<16x128xbf16>, vector<128x128xbf16>, vector<16x128xf32> -> vector<16x128xf32>
      %363 = arith.addf %355, %362 : vector<16x128xf32>
      %c1_i32_294 = arith.constant 1 : i32
      %364 = arith.addi %330, %c1_i32_294 : i32
      %c0_295 = arith.constant 0 : index
      %365 = arith.index_cast %364 : i32 to index
      %c1_296 = arith.constant 1 : index
      %c0_297 = arith.constant 0 : index
      %366 = vector.load %arg1[%c0_295, %365, %c1_296, %c0_297] : memref<1x18x18x128xbf16, #tpu.memory_space<vmem>>, vector<1x1x16x128xbf16>
      %367 = vector.shape_cast %366 : vector<1x1x16x128xbf16> to vector<16x128xbf16>
      %c4_298 = arith.constant 4 : index
      %c0_299 = arith.constant 0 : index
      %c0_300 = arith.constant 0 : index
      %368 = vector.load %arg2[%c4_298, %c0_299, %c0_300] : memref<9x128x128xbf16, #tpu.memory_space<vmem>>, vector<1x128x128xbf16>
      %369 = vector.shape_cast %368 : vector<1x128x128xbf16> to vector<128x128xbf16>
      %cst_301 = arith.constant dense<0.000000e+00> : vector<16x128xf32>
      %370 = tpu.matmul %367, %369, %cst_301 {dimension_numbers = #tpu.dot_dimension_numbers<[1], [0], [0], [1], [0, 0, 1, 1], [], []>} : vector<16x128xbf16>, vector<128x128xbf16>, vector<16x128xf32> -> vector<16x128xf32>
      %371 = arith.addf %363, %370 : vector<16x128xf32>
      %c1_i32_302 = arith.constant 1 : i32
      %372 = arith.addi %330, %c1_i32_302 : i32
      %c0_303 = arith.constant 0 : index
      %373 = arith.index_cast %372 : i32 to index
      %c2_304 = arith.constant 2 : index
      %c0_305 = arith.constant 0 : index
      %374 = vector.load %arg1[%c0_303, %373, %c2_304, %c0_305] : memref<1x18x18x128xbf16, #tpu.memory_space<vmem>>, vector<1x1x16x128xbf16>
      %375 = vector.shape_cast %374 : vector<1x1x16x128xbf16> to vector<16x128xbf16>
      %c5_306 = arith.constant 5 : index
      %c0_307 = arith.constant 0 : index
      %c0_308 = arith.constant 0 : index
      %376 = vector.load %arg2[%c5_306, %c0_307, %c0_308] : memref<9x128x128xbf16, #tpu.memory_space<vmem>>, vector<1x128x128xbf16>
      %377 = vector.shape_cast %376 : vector<1x128x128xbf16> to vector<128x128xbf16>
      %cst_309 = arith.constant dense<0.000000e+00> : vector<16x128xf32>
      %378 = tpu.matmul %375, %377, %cst_309 {dimension_numbers = #tpu.dot_dimension_numbers<[1], [0], [0], [1], [0, 0, 1, 1], [], []>} : vector<16x128xbf16>, vector<128x128xbf16>, vector<16x128xf32> -> vector<16x128xf32>
      %379 = arith.addf %371, %378 : vector<16x128xf32>
      %c2_i32_310 = arith.constant 2 : i32
      %380 = arith.addi %330, %c2_i32_310 : i32
      %c0_311 = arith.constant 0 : index
      %381 = arith.index_cast %380 : i32 to index
      %c0_312 = arith.constant 0 : index
      %c0_313 = arith.constant 0 : index
      %382 = vector.load %arg1[%c0_311, %381, %c0_312, %c0_313] : memref<1x18x18x128xbf16, #tpu.memory_space<vmem>>, vector<1x1x16x128xbf16>
      %383 = vector.shape_cast %382 : vector<1x1x16x128xbf16> to vector<16x128xbf16>
      %c6_314 = arith.constant 6 : index
      %c0_315 = arith.constant 0 : index
      %c0_316 = arith.constant 0 : index
      %384 = vector.load %arg2[%c6_314, %c0_315, %c0_316] : memref<9x128x128xbf16, #tpu.memory_space<vmem>>, vector<1x128x128xbf16>
      %385 = vector.shape_cast %384 : vector<1x128x128xbf16> to vector<128x128xbf16>
      %cst_317 = arith.constant dense<0.000000e+00> : vector<16x128xf32>
      %386 = tpu.matmul %383, %385, %cst_317 {dimension_numbers = #tpu.dot_dimension_numbers<[1], [0], [0], [1], [0, 0, 1, 1], [], []>} : vector<16x128xbf16>, vector<128x128xbf16>, vector<16x128xf32> -> vector<16x128xf32>
      %387 = arith.addf %379, %386 : vector<16x128xf32>
      %c2_i32_318 = arith.constant 2 : i32
      %388 = arith.addi %330, %c2_i32_318 : i32
      %c0_319 = arith.constant 0 : index
      %389 = arith.index_cast %388 : i32 to index
      %c1_320 = arith.constant 1 : index
      %c0_321 = arith.constant 0 : index
      %390 = vector.load %arg1[%c0_319, %389, %c1_320, %c0_321] : memref<1x18x18x128xbf16, #tpu.memory_space<vmem>>, vector<1x1x16x128xbf16>
      %391 = vector.shape_cast %390 : vector<1x1x16x128xbf16> to vector<16x128xbf16>
      %c7_322 = arith.constant 7 : index
      %c0_323 = arith.constant 0 : index
      %c0_324 = arith.constant 0 : index
      %392 = vector.load %arg2[%c7_322, %c0_323, %c0_324] : memref<9x128x128xbf16, #tpu.memory_space<vmem>>, vector<1x128x128xbf16>
      %393 = vector.shape_cast %392 : vector<1x128x128xbf16> to vector<128x128xbf16>
      %cst_325 = arith.constant dense<0.000000e+00> : vector<16x128xf32>
      %394 = tpu.matmul %391, %393, %cst_325 {dimension_numbers = #tpu.dot_dimension_numbers<[1], [0], [0], [1], [0, 0, 1, 1], [], []>} : vector<16x128xbf16>, vector<128x128xbf16>, vector<16x128xf32> -> vector<16x128xf32>
      %395 = arith.addf %387, %394 : vector<16x128xf32>
      %c2_i32_326 = arith.constant 2 : i32
      %396 = arith.addi %330, %c2_i32_326 : i32
      %c0_327 = arith.constant 0 : index
      %397 = arith.index_cast %396 : i32 to index
      %c2_328 = arith.constant 2 : index
      %c0_329 = arith.constant 0 : index
      %398 = vector.load %arg1[%c0_327, %397, %c2_328, %c0_329] : memref<1x18x18x128xbf16, #tpu.memory_space<vmem>>, vector<1x1x16x128xbf16>
      %399 = vector.shape_cast %398 : vector<1x1x16x128xbf16> to vector<16x128xbf16>
      %c8_330 = arith.constant 8 : index
      %c0_331 = arith.constant 0 : index
      %c0_332 = arith.constant 0 : index
      %400 = vector.load %arg2[%c8_330, %c0_331, %c0_332] : memref<9x128x128xbf16, #tpu.memory_space<vmem>>, vector<1x128x128xbf16>
      %401 = vector.shape_cast %400 : vector<1x128x128xbf16> to vector<128x128xbf16>
      %cst_333 = arith.constant dense<0.000000e+00> : vector<16x128xf32>
      %402 = tpu.matmul %399, %401, %cst_333 {dimension_numbers = #tpu.dot_dimension_numbers<[1], [0], [0], [1], [0, 0, 1, 1], [], []>} : vector<16x128xbf16>, vector<128x128xbf16>, vector<16x128xf32> -> vector<16x128xf32>
      %403 = arith.addf %395, %402 : vector<16x128xf32>
      %c0_334 = arith.constant 0 : index
      %c0_335 = arith.constant 0 : index
      %404 = vector.load %arg3[%c0_334, %c0_335] : memref<1x128xf32, #tpu.memory_space<vmem>>, vector<1x128xf32>
      %405 = vector.broadcast %404 : vector<1x128xf32> to vector<16x128xf32>
      %406 = arith.addf %403, %405 : vector<16x128xf32>
      %cst_336 = arith.constant 0.000000e+00 : f32
      %407 = vector.broadcast %cst_336 : f32 to vector<16x128xf32>
      %408 = arith.maximumf %406, %407 : vector<16x128xf32>
      %409 = arith.maximumf %328, %408 : vector<16x128xf32>
      %cst_337 = arith.constant dense<0.000000e+00> : vector<8x128xf32>
      %410 = tpu.matmul %12, %409, %cst_337 {dimension_numbers = #tpu.dot_dimension_numbers<[1], [0], [0], [1], [0, 0, 1, 1], [], []>} : vector<8x16xf32>, vector<16x128xf32>, vector<8x128xf32> -> vector<8x128xf32>
      %cst_338 = arith.constant dense<0.000000e+00> : vector<8x128xf32>
      %411 = tpu.matmul %19, %409, %cst_338 {dimension_numbers = #tpu.dot_dimension_numbers<[1], [0], [0], [1], [0, 0, 1, 1], [], []>} : vector<8x16xf32>, vector<16x128xf32>, vector<8x128xf32> -> vector<8x128xf32>
      %412 = arith.maximumf %410, %411 : vector<8x128xf32>
      %413 = arith.truncf %412 : vector<8x128xf32> to vector<8x128xbf16>
      %c1_i32_339 = arith.constant 1 : i32
      %414 = arith.addi %c1_i32_339, %arg19 : i32
      %415 = arith.index_cast %414 : i32 to index
      %c1_340 = arith.constant 1 : index
      %c0_341 = arith.constant 0 : index
      %416 = vector.load %arg15[%415, %c1_340, %c0_341] : memref<10x10x128xbf16, #tpu.memory_space<vmem>>, vector<1x8x128xbf16>
      %417 = vector.shape_cast %416 : vector<1x8x128xbf16> to vector<8x128xbf16>
      %418 = vector.shape_cast %413 : vector<8x128xbf16> to vector<1x8x128xbf16>
      tpu.vector_store %arg15[%415, %c1_340, %c0_341], %418 {strides = array<i32>} : memref<10x10x128xbf16, #tpu.memory_space<vmem>>, vector<1x8x128xbf16>,
    }
    %c8_i32_12 = arith.constant 8 : i32
    %21 = tpu.iota {dimensions = array<i32: 0>} : vector<4x8xi32>
    %22 = tpu.iota {dimensions = array<i32: 1>} : vector<4x8xi32>
    %c2_i32_13 = arith.constant 2 : i32
    %23 = vector.broadcast %c2_i32_13 : i32 to vector<4x8xi32>
    %24 = arith.muli %23, %21 : vector<4x8xi32>
    %25 = arith.cmpi eq, %22, %24 : vector<4x8xi32>
    %26 = arith.extui %25 : vector<4x8xi1> to vector<4x8xi32>
    %27 = arith.sitofp %26 : vector<4x8xi32> to vector<4x8xf32>
    %c2_i32_14 = arith.constant 2 : i32
    %28 = vector.broadcast %c2_i32_14 : i32 to vector<4x8xi32>
    %29 = arith.muli %28, %21 : vector<4x8xi32>
    %c1_i32_15 = arith.constant 1 : i32
    %30 = vector.broadcast %c1_i32_15 : i32 to vector<4x8xi32>
    %31 = arith.addi %29, %30 : vector<4x8xi32>
    %32 = arith.cmpi eq, %22, %31 : vector<4x8xi32>
    %33 = arith.extui %32 : vector<4x8xi1> to vector<4x8xi32>
    %34 = arith.sitofp %33 : vector<4x8xi32> to vector<4x8xf32>
    %c0_i32_16 = arith.constant 0 : i32
    %c4_i32 = arith.constant 4 : i32
    %35 = arith.addi %c0_i32_16, %c4_i32 : i32
    %c1_i32_17 = arith.constant 1 : i32
    scf.for %arg19 = %c0_i32_16 to %35 step %c1_i32_17  : i32 {
      %c2_i32_182 = arith.constant 2 : i32
      %250 = arith.muli %c2_i32_182, %arg19 : i32
      %cst_183 = arith.constant 0.000000e+00 : f32
      %251 = vector.broadcast %cst_183 : f32 to vector<8x128xf32>
      %c0_i32_184 = arith.constant 0 : i32
      %252 = arith.addi %250, %c0_i32_184 : i32
      %253 = arith.index_cast %252 : i32 to index
      %c0_185 = arith.constant 0 : index
      %c0_186 = arith.constant 0 : index
      %254 = vector.load %arg15[%253, %c0_185, %c0_186] : memref<10x10x128xbf16, #tpu.memory_space<vmem>>, vector<1x8x128xbf16>
      %255 = vector.shape_cast %254 : vector<1x8x128xbf16> to vector<8x128xbf16>
      %c0_187 = arith.constant 0 : index
      %c0_188 = arith.constant 0 : index
      %c0_189 = arith.constant 0 : index
      %256 = vector.load %arg4[%c0_187, %c0_188, %c0_189] : memref<9x128x128xbf16, #tpu.memory_space<vmem>>, vector<1x128x128xbf16>
      %257 = vector.shape_cast %256 : vector<1x128x128xbf16> to vector<128x128xbf16>
      %cst_190 = arith.constant dense<0.000000e+00> : vector<8x128xf32>
      %258 = tpu.matmul %255, %257, %cst_190 {dimension_numbers = #tpu.dot_dimension_numbers<[1], [0], [0], [1], [0, 0, 1, 1], [], []>} : vector<8x128xbf16>, vector<128x128xbf16>, vector<8x128xf32> -> vector<8x128xf32>
      %259 = arith.addf %251, %258 : vector<8x128xf32>
      %c0_i32_191 = arith.constant 0 : i32
      %260 = arith.addi %250, %c0_i32_191 : i32
      %261 = arith.index_cast %260 : i32 to index
      %c1_192 = arith.constant 1 : index
      %c0_193 = arith.constant 0 : index
      %262 = vector.load %arg15[%261, %c1_192, %c0_193] : memref<10x10x128xbf16, #tpu.memory_space<vmem>>, vector<1x8x128xbf16>
      %263 = vector.shape_cast %262 : vector<1x8x128xbf16> to vector<8x128xbf16>
      %c1_194 = arith.constant 1 : index
      %c0_195 = arith.constant 0 : index
      %c0_196 = arith.constant 0 : index
      %264 = vector.load %arg4[%c1_194, %c0_195, %c0_196] : memref<9x128x128xbf16, #tpu.memory_space<vmem>>, vector<1x128x128xbf16>
      %265 = vector.shape_cast %264 : vector<1x128x128xbf16> to vector<128x128xbf16>
      %cst_197 = arith.constant dense<0.000000e+00> : vector<8x128xf32>
      %266 = tpu.matmul %263, %265, %cst_197 {dimension_numbers = #tpu.dot_dimension_numbers<[1], [0], [0], [1], [0, 0, 1, 1], [], []>} : vector<8x128xbf16>, vector<128x128xbf16>, vector<8x128xf32> -> vector<8x128xf32>
      %267 = arith.addf %259, %266 : vector<8x128xf32>
      %c0_i32_198 = arith.constant 0 : i32
      %268 = arith.addi %250, %c0_i32_198 : i32
      %269 = arith.index_cast %268 : i32 to index
      %c2_199 = arith.constant 2 : index
      %c0_200 = arith.constant 0 : index
      %270 = vector.load %arg15[%269, %c2_199, %c0_200] : memref<10x10x128xbf16, #tpu.memory_space<vmem>>, vector<1x8x128xbf16>
      %271 = vector.shape_cast %270 : vector<1x8x128xbf16> to vector<8x128xbf16>
      %c2_201 = arith.constant 2 : index
      %c0_202 = arith.constant 0 : index
      %c0_203 = arith.constant 0 : index
      %272 = vector.load %arg4[%c2_201, %c0_202, %c0_203] : memref<9x128x128xbf16, #tpu.memory_space<vmem>>, vector<1x128x128xbf16>
      %273 = vector.shape_cast %272 : vector<1x128x128xbf16> to vector<128x128xbf16>
      %cst_204 = arith.constant dense<0.000000e+00> : vector<8x128xf32>
      %274 = tpu.matmul %271, %273, %cst_204 {dimension_numbers = #tpu.dot_dimension_numbers<[1], [0], [0], [1], [0, 0, 1, 1], [], []>} : vector<8x128xbf16>, vector<128x128xbf16>, vector<8x128xf32> -> vector<8x128xf32>
      %275 = arith.addf %267, %274 : vector<8x128xf32>
      %c1_i32_205 = arith.constant 1 : i32
      %276 = arith.addi %250, %c1_i32_205 : i32
      %277 = arith.index_cast %276 : i32 to index
      %c0_206 = arith.constant 0 : index
      %c0_207 = arith.constant 0 : index
      %278 = vector.load %arg15[%277, %c0_206, %c0_207] : memref<10x10x128xbf16, #tpu.memory_space<vmem>>, vector<1x8x128xbf16>
      %279 = vector.shape_cast %278 : vector<1x8x128xbf16> to vector<8x128xbf16>
      %c3_208 = arith.constant 3 : index
      %c0_209 = arith.constant 0 : index
      %c0_210 = arith.constant 0 : index
      %280 = vector.load %arg4[%c3_208, %c0_209, %c0_210] : memref<9x128x128xbf16, #tpu.memory_space<vmem>>, vector<1x128x128xbf16>
      %281 = vector.shape_cast %280 : vector<1x128x128xbf16> to vector<128x128xbf16>
      %cst_211 = arith.constant dense<0.000000e+00> : vector<8x128xf32>
      %282 = tpu.matmul %279, %281, %cst_211 {dimension_numbers = #tpu.dot_dimension_numbers<[1], [0], [0], [1], [0, 0, 1, 1], [], []>} : vector<8x128xbf16>, vector<128x128xbf16>, vector<8x128xf32> -> vector<8x128xf32>
      %283 = arith.addf %275, %282 : vector<8x128xf32>
      %c1_i32_212 = arith.constant 1 : i32
      %284 = arith.addi %250, %c1_i32_212 : i32
      %285 = arith.index_cast %284 : i32 to index
      %c1_213 = arith.constant 1 : index
      %c0_214 = arith.constant 0 : index
      %286 = vector.load %arg15[%285, %c1_213, %c0_214] : memref<10x10x128xbf16, #tpu.memory_space<vmem>>, vector<1x8x128xbf16>
      %287 = vector.shape_cast %286 : vector<1x8x128xbf16> to vector<8x128xbf16>
      %c4_215 = arith.constant 4 : index
      %c0_216 = arith.constant 0 : index
      %c0_217 = arith.constant 0 : index
      %288 = vector.load %arg4[%c4_215, %c0_216, %c0_217] : memref<9x128x128xbf16, #tpu.memory_space<vmem>>, vector<1x128x128xbf16>
      %289 = vector.shape_cast %288 : vector<1x128x128xbf16> to vector<128x128xbf16>
      %cst_218 = arith.constant dense<0.000000e+00> : vector<8x128xf32>
      %290 = tpu.matmul %287, %289, %cst_218 {dimension_numbers = #tpu.dot_dimension_numbers<[1], [0], [0], [1], [0, 0, 1, 1], [], []>} : vector<8x128xbf16>, vector<128x128xbf16>, vector<8x128xf32> -> vector<8x128xf32>
      %291 = arith.addf %283, %290 : vector<8x128xf32>
      %c1_i32_219 = arith.constant 1 : i32
      %292 = arith.addi %250, %c1_i32_219 : i32
      %293 = arith.index_cast %292 : i32 to index
      %c2_220 = arith.constant 2 : index
      %c0_221 = arith.constant 0 : index
      %294 = vector.load %arg15[%293, %c2_220, %c0_221] : memref<10x10x128xbf16, #tpu.memory_space<vmem>>, vector<1x8x128xbf16>
      %295 = vector.shape_cast %294 : vector<1x8x128xbf16> to vector<8x128xbf16>
      %c5_222 = arith.constant 5 : index
      %c0_223 = arith.constant 0 : index
      %c0_224 = arith.constant 0 : index
      %296 = vector.load %arg4[%c5_222, %c0_223, %c0_224] : memref<9x128x128xbf16, #tpu.memory_space<vmem>>, vector<1x128x128xbf16>
      %297 = vector.shape_cast %296 : vector<1x128x128xbf16> to vector<128x128xbf16>
      %cst_225 = arith.constant dense<0.000000e+00> : vector<8x128xf32>
      %298 = tpu.matmul %295, %297, %cst_225 {dimension_numbers = #tpu.dot_dimension_numbers<[1], [0], [0], [1], [0, 0, 1, 1], [], []>} : vector<8x128xbf16>, vector<128x128xbf16>, vector<8x128xf32> -> vector<8x128xf32>
      %299 = arith.addf %291, %298 : vector<8x128xf32>
      %c2_i32_226 = arith.constant 2 : i32
      %300 = arith.addi %250, %c2_i32_226 : i32
      %301 = arith.index_cast %300 : i32 to index
      %c0_227 = arith.constant 0 : index
      %c0_228 = arith.constant 0 : index
      %302 = vector.load %arg15[%301, %c0_227, %c0_228] : memref<10x10x128xbf16, #tpu.memory_space<vmem>>, vector<1x8x128xbf16>
      %303 = vector.shape_cast %302 : vector<1x8x128xbf16> to vector<8x128xbf16>
      %c6_229 = arith.constant 6 : index
      %c0_230 = arith.constant 0 : index
      %c0_231 = arith.constant 0 : index
      %304 = vector.load %arg4[%c6_229, %c0_230, %c0_231] : memref<9x128x128xbf16, #tpu.memory_space<vmem>>, vector<1x128x128xbf16>
      %305 = vector.shape_cast %304 : vector<1x128x128xbf16> to vector<128x128xbf16>
      %cst_232 = arith.constant dense<0.000000e+00> : vector<8x128xf32>
      %306 = tpu.matmul %303, %305, %cst_232 {dimension_numbers = #tpu.dot_dimension_numbers<[1], [0], [0], [1], [0, 0, 1, 1], [], []>} : vector<8x128xbf16>, vector<128x128xbf16>, vector<8x128xf32> -> vector<8x128xf32>
      %307 = arith.addf %299, %306 : vector<8x128xf32>
      %c2_i32_233 = arith.constant 2 : i32
      %308 = arith.addi %250, %c2_i32_233 : i32
      %309 = arith.index_cast %308 : i32 to index
      %c1_234 = arith.constant 1 : index
      %c0_235 = arith.constant 0 : index
      %310 = vector.load %arg15[%309, %c1_234, %c0_235] : memref<10x10x128xbf16, #tpu.memory_space<vmem>>, vector<1x8x128xbf16>
      %311 = vector.shape_cast %310 : vector<1x8x128xbf16> to vector<8x128xbf16>
      %c7_236 = arith.constant 7 : index
      %c0_237 = arith.constant 0 : index
      %c0_238 = arith.constant 0 : index
      %312 = vector.load %arg4[%c7_236, %c0_237, %c0_238] : memref<9x128x128xbf16, #tpu.memory_space<vmem>>, vector<1x128x128xbf16>
      %313 = vector.shape_cast %312 : vector<1x128x128xbf16> to vector<128x128xbf16>
      %cst_239 = arith.constant dense<0.000000e+00> : vector<8x128xf32>
      %314 = tpu.matmul %311, %313, %cst_239 {dimension_numbers = #tpu.dot_dimension_numbers<[1], [0], [0], [1], [0, 0, 1, 1], [], []>} : vector<8x128xbf16>, vector<128x128xbf16>, vector<8x128xf32> -> vector<8x128xf32>
      %315 = arith.addf %307, %314 : vector<8x128xf32>
      %c2_i32_240 = arith.constant 2 : i32
      %316 = arith.addi %250, %c2_i32_240 : i32
      %317 = arith.index_cast %316 : i32 to index
      %c2_241 = arith.constant 2 : index
      %c0_242 = arith.constant 0 : index
      %318 = vector.load %arg15[%317, %c2_241, %c0_242] : memref<10x10x128xbf16, #tpu.memory_space<vmem>>, vector<1x8x128xbf16>
      %319 = vector.shape_cast %318 : vector<1x8x128xbf16> to vector<8x128xbf16>
      %c8_243 = arith.constant 8 : index
      %c0_244 = arith.constant 0 : index
      %c0_245 = arith.constant 0 : index
      %320 = vector.load %arg4[%c8_243, %c0_244, %c0_245] : memref<9x128x128xbf16, #tpu.memory_space<vmem>>, vector<1x128x128xbf16>
      %321 = vector.shape_cast %320 : vector<1x128x128xbf16> to vector<128x128xbf16>
      %cst_246 = arith.constant dense<0.000000e+00> : vector<8x128xf32>
      %322 = tpu.matmul %319, %321, %cst_246 {dimension_numbers = #tpu.dot_dimension_numbers<[1], [0], [0], [1], [0, 0, 1, 1], [], []>} : vector<8x128xbf16>, vector<128x128xbf16>, vector<8x128xf32> -> vector<8x128xf32>
      %323 = arith.addf %315, %322 : vector<8x128xf32>
      %c0_247 = arith.constant 0 : index
      %c0_248 = arith.constant 0 : index
      %324 = vector.load %arg5[%c0_247, %c0_248] : memref<1x128xf32, #tpu.memory_space<vmem>>, vector<1x128xf32>
      %325 = vector.broadcast %324 : vector<1x128xf32> to vector<8x128xf32>
      %326 = arith.addf %323, %325 : vector<8x128xf32>
      %cst_249 = arith.constant 0.000000e+00 : f32
      %327 = vector.broadcast %cst_249 : f32 to vector<8x128xf32>
      %328 = arith.maximumf %326, %327 : vector<8x128xf32>
      %c2_i32_250 = arith.constant 2 : i32
      %329 = arith.muli %c2_i32_250, %arg19 : i32
      %c1_i32_251 = arith.constant 1 : i32
      %330 = arith.addi %329, %c1_i32_251 : i32
      %cst_252 = arith.constant 0.000000e+00 : f32
      %331 = vector.broadcast %cst_252 : f32 to vector<8x128xf32>
      %c0_i32_253 = arith.constant 0 : i32
      %332 = arith.addi %330, %c0_i32_253 : i32
      %333 = arith.index_cast %332 : i32 to index
      %c0_254 = arith.constant 0 : index
      %c0_255 = arith.constant 0 : index
      %334 = vector.load %arg15[%333, %c0_254, %c0_255] : memref<10x10x128xbf16, #tpu.memory_space<vmem>>, vector<1x8x128xbf16>
      %335 = vector.shape_cast %334 : vector<1x8x128xbf16> to vector<8x128xbf16>
      %c0_256 = arith.constant 0 : index
      %c0_257 = arith.constant 0 : index
      %c0_258 = arith.constant 0 : index
      %336 = vector.load %arg4[%c0_256, %c0_257, %c0_258] : memref<9x128x128xbf16, #tpu.memory_space<vmem>>, vector<1x128x128xbf16>
      %337 = vector.shape_cast %336 : vector<1x128x128xbf16> to vector<128x128xbf16>
      %cst_259 = arith.constant dense<0.000000e+00> : vector<8x128xf32>
      %338 = tpu.matmul %335, %337, %cst_259 {dimension_numbers = #tpu.dot_dimension_numbers<[1], [0], [0], [1], [0, 0, 1, 1], [], []>} : vector<8x128xbf16>, vector<128x128xbf16>, vector<8x128xf32> -> vector<8x128xf32>
      %339 = arith.addf %331, %338 : vector<8x128xf32>
      %c0_i32_260 = arith.constant 0 : i32
      %340 = arith.addi %330, %c0_i32_260 : i32
      %341 = arith.index_cast %340 : i32 to index
      %c1_261 = arith.constant 1 : index
      %c0_262 = arith.constant 0 : index
      %342 = vector.load %arg15[%341, %c1_261, %c0_262] : memref<10x10x128xbf16, #tpu.memory_space<vmem>>, vector<1x8x128xbf16>
      %343 = vector.shape_cast %342 : vector<1x8x128xbf16> to vector<8x128xbf16>
      %c1_263 = arith.constant 1 : index
      %c0_264 = arith.constant 0 : index
      %c0_265 = arith.constant 0 : index
      %344 = vector.load %arg4[%c1_263, %c0_264, %c0_265] : memref<9x128x128xbf16, #tpu.memory_space<vmem>>, vector<1x128x128xbf16>
      %345 = vector.shape_cast %344 : vector<1x128x128xbf16> to vector<128x128xbf16>
      %cst_266 = arith.constant dense<0.000000e+00> : vector<8x128xf32>
      %346 = tpu.matmul %343, %345, %cst_266 {dimension_numbers = #tpu.dot_dimension_numbers<[1], [0], [0], [1], [0, 0, 1, 1], [], []>} : vector<8x128xbf16>, vector<128x128xbf16>, vector<8x128xf32> -> vector<8x128xf32>
      %347 = arith.addf %339, %346 : vector<8x128xf32>
      %c0_i32_267 = arith.constant 0 : i32
      %348 = arith.addi %330, %c0_i32_267 : i32
      %349 = arith.index_cast %348 : i32 to index
      %c2_268 = arith.constant 2 : index
      %c0_269 = arith.constant 0 : index
      %350 = vector.load %arg15[%349, %c2_268, %c0_269] : memref<10x10x128xbf16, #tpu.memory_space<vmem>>, vector<1x8x128xbf16>
      %351 = vector.shape_cast %350 : vector<1x8x128xbf16> to vector<8x128xbf16>
      %c2_270 = arith.constant 2 : index
      %c0_271 = arith.constant 0 : index
      %c0_272 = arith.constant 0 : index
      %352 = vector.load %arg4[%c2_270, %c0_271, %c0_272] : memref<9x128x128xbf16, #tpu.memory_space<vmem>>, vector<1x128x128xbf16>
      %353 = vector.shape_cast %352 : vector<1x128x128xbf16> to vector<128x128xbf16>
      %cst_273 = arith.constant dense<0.000000e+00> : vector<8x128xf32>
      %354 = tpu.matmul %351, %353, %cst_273 {dimension_numbers = #tpu.dot_dimension_numbers<[1], [0], [0], [1], [0, 0, 1, 1], [], []>} : vector<8x128xbf16>, vector<128x128xbf16>, vector<8x128xf32> -> vector<8x128xf32>
      %355 = arith.addf %347, %354 : vector<8x128xf32>
      %c1_i32_274 = arith.constant 1 : i32
      %356 = arith.addi %330, %c1_i32_274 : i32
      %357 = arith.index_cast %356 : i32 to index
      %c0_275 = arith.constant 0 : index
      %c0_276 = arith.constant 0 : index
      %358 = vector.load %arg15[%357, %c0_275, %c0_276] : memref<10x10x128xbf16, #tpu.memory_space<vmem>>, vector<1x8x128xbf16>
      %359 = vector.shape_cast %358 : vector<1x8x128xbf16> to vector<8x128xbf16>
      %c3_277 = arith.constant 3 : index
      %c0_278 = arith.constant 0 : index
      %c0_279 = arith.constant 0 : index
      %360 = vector.load %arg4[%c3_277, %c0_278, %c0_279] : memref<9x128x128xbf16, #tpu.memory_space<vmem>>, vector<1x128x128xbf16>
      %361 = vector.shape_cast %360 : vector<1x128x128xbf16> to vector<128x128xbf16>
      %cst_280 = arith.constant dense<0.000000e+00> : vector<8x128xf32>
      %362 = tpu.matmul %359, %361, %cst_280 {dimension_numbers = #tpu.dot_dimension_numbers<[1], [0], [0], [1], [0, 0, 1, 1], [], []>} : vector<8x128xbf16>, vector<128x128xbf16>, vector<8x128xf32> -> vector<8x128xf32>
      %363 = arith.addf %355, %362 : vector<8x128xf32>
      %c1_i32_281 = arith.constant 1 : i32
      %364 = arith.addi %330, %c1_i32_281 : i32
      %365 = arith.index_cast %364 : i32 to index
      %c1_282 = arith.constant 1 : index
      %c0_283 = arith.constant 0 : index
      %366 = vector.load %arg15[%365, %c1_282, %c0_283] : memref<10x10x128xbf16, #tpu.memory_space<vmem>>, vector<1x8x128xbf16>
      %367 = vector.shape_cast %366 : vector<1x8x128xbf16> to vector<8x128xbf16>
      %c4_284 = arith.constant 4 : index
      %c0_285 = arith.constant 0 : index
      %c0_286 = arith.constant 0 : index
      %368 = vector.load %arg4[%c4_284, %c0_285, %c0_286] : memref<9x128x128xbf16, #tpu.memory_space<vmem>>, vector<1x128x128xbf16>
      %369 = vector.shape_cast %368 : vector<1x128x128xbf16> to vector<128x128xbf16>
      %cst_287 = arith.constant dense<0.000000e+00> : vector<8x128xf32>
      %370 = tpu.matmul %367, %369, %cst_287 {dimension_numbers = #tpu.dot_dimension_numbers<[1], [0], [0], [1], [0, 0, 1, 1], [], []>} : vector<8x128xbf16>, vector<128x128xbf16>, vector<8x128xf32> -> vector<8x128xf32>
      %371 = arith.addf %363, %370 : vector<8x128xf32>
      %c1_i32_288 = arith.constant 1 : i32
      %372 = arith.addi %330, %c1_i32_288 : i32
      %373 = arith.index_cast %372 : i32 to index
      %c2_289 = arith.constant 2 : index
      %c0_290 = arith.constant 0 : index
      %374 = vector.load %arg15[%373, %c2_289, %c0_290] : memref<10x10x128xbf16, #tpu.memory_space<vmem>>, vector<1x8x128xbf16>
      %375 = vector.shape_cast %374 : vector<1x8x128xbf16> to vector<8x128xbf16>
      %c5_291 = arith.constant 5 : index
      %c0_292 = arith.constant 0 : index
      %c0_293 = arith.constant 0 : index
      %376 = vector.load %arg4[%c5_291, %c0_292, %c0_293] : memref<9x128x128xbf16, #tpu.memory_space<vmem>>, vector<1x128x128xbf16>
      %377 = vector.shape_cast %376 : vector<1x128x128xbf16> to vector<128x128xbf16>
      %cst_294 = arith.constant dense<0.000000e+00> : vector<8x128xf32>
      %378 = tpu.matmul %375, %377, %cst_294 {dimension_numbers = #tpu.dot_dimension_numbers<[1], [0], [0], [1], [0, 0, 1, 1], [], []>} : vector<8x128xbf16>, vector<128x128xbf16>, vector<8x128xf32> -> vector<8x128xf32>
      %379 = arith.addf %371, %378 : vector<8x128xf32>
      %c2_i32_295 = arith.constant 2 : i32
      %380 = arith.addi %330, %c2_i32_295 : i32
      %381 = arith.index_cast %380 : i32 to index
      %c0_296 = arith.constant 0 : index
      %c0_297 = arith.constant 0 : index
      %382 = vector.load %arg15[%381, %c0_296, %c0_297] : memref<10x10x128xbf16, #tpu.memory_space<vmem>>, vector<1x8x128xbf16>
      %383 = vector.shape_cast %382 : vector<1x8x128xbf16> to vector<8x128xbf16>
      %c6_298 = arith.constant 6 : index
      %c0_299 = arith.constant 0 : index
      %c0_300 = arith.constant 0 : index
      %384 = vector.load %arg4[%c6_298, %c0_299, %c0_300] : memref<9x128x128xbf16, #tpu.memory_space<vmem>>, vector<1x128x128xbf16>
      %385 = vector.shape_cast %384 : vector<1x128x128xbf16> to vector<128x128xbf16>
      %cst_301 = arith.constant dense<0.000000e+00> : vector<8x128xf32>
      %386 = tpu.matmul %383, %385, %cst_301 {dimension_numbers = #tpu.dot_dimension_numbers<[1], [0], [0], [1], [0, 0, 1, 1], [], []>} : vector<8x128xbf16>, vector<128x128xbf16>, vector<8x128xf32> -> vector<8x128xf32>
      %387 = arith.addf %379, %386 : vector<8x128xf32>
      %c2_i32_302 = arith.constant 2 : i32
      %388 = arith.addi %330, %c2_i32_302 : i32
      %389 = arith.index_cast %388 : i32 to index
      %c1_303 = arith.constant 1 : index
      %c0_304 = arith.constant 0 : index
      %390 = vector.load %arg15[%389, %c1_303, %c0_304] : memref<10x10x128xbf16, #tpu.memory_space<vmem>>, vector<1x8x128xbf16>
      %391 = vector.shape_cast %390 : vector<1x8x128xbf16> to vector<8x128xbf16>
      %c7_305 = arith.constant 7 : index
      %c0_306 = arith.constant 0 : index
      %c0_307 = arith.constant 0 : index
      %392 = vector.load %arg4[%c7_305, %c0_306, %c0_307] : memref<9x128x128xbf16, #tpu.memory_space<vmem>>, vector<1x128x128xbf16>
      %393 = vector.shape_cast %392 : vector<1x128x128xbf16> to vector<128x128xbf16>
      %cst_308 = arith.constant dense<0.000000e+00> : vector<8x128xf32>
      %394 = tpu.matmul %391, %393, %cst_308 {dimension_numbers = #tpu.dot_dimension_numbers<[1], [0], [0], [1], [0, 0, 1, 1], [], []>} : vector<8x128xbf16>, vector<128x128xbf16>, vector<8x128xf32> -> vector<8x128xf32>
      %395 = arith.addf %387, %394 : vector<8x128xf32>
      %c2_i32_309 = arith.constant 2 : i32
      %396 = arith.addi %330, %c2_i32_309 : i32
      %397 = arith.index_cast %396 : i32 to index
      %c2_310 = arith.constant 2 : index
      %c0_311 = arith.constant 0 : index
      %398 = vector.load %arg15[%397, %c2_310, %c0_311] : memref<10x10x128xbf16, #tpu.memory_space<vmem>>, vector<1x8x128xbf16>
      %399 = vector.shape_cast %398 : vector<1x8x128xbf16> to vector<8x128xbf16>
      %c8_312 = arith.constant 8 : index
      %c0_313 = arith.constant 0 : index
      %c0_314 = arith.constant 0 : index
      %400 = vector.load %arg4[%c8_312, %c0_313, %c0_314] : memref<9x128x128xbf16, #tpu.memory_space<vmem>>, vector<1x128x128xbf16>
      %401 = vector.shape_cast %400 : vector<1x128x128xbf16> to vector<128x128xbf16>
      %cst_315 = arith.constant dense<0.000000e+00> : vector<8x128xf32>
      %402 = tpu.matmul %399, %401, %cst_315 {dimension_numbers = #tpu.dot_dimension_numbers<[1], [0], [0], [1], [0, 0, 1, 1], [], []>} : vector<8x128xbf16>, vector<128x128xbf16>, vector<8x128xf32> -> vector<8x128xf32>
      %403 = arith.addf %395, %402 : vector<8x128xf32>
      %c0_316 = arith.constant 0 : index
      %c0_317 = arith.constant 0 : index
      %404 = vector.load %arg5[%c0_316, %c0_317] : memref<1x128xf32, #tpu.memory_space<vmem>>, vector<1x128xf32>
      %405 = vector.broadcast %404 : vector<1x128xf32> to vector<8x128xf32>
      %406 = arith.addf %403, %405 : vector<8x128xf32>
      %cst_318 = arith.constant 0.000000e+00 : f32
      %407 = vector.broadcast %cst_318 : f32 to vector<8x128xf32>
      %408 = arith.maximumf %406, %407 : vector<8x128xf32>
      %409 = arith.maximumf %328, %408 : vector<8x128xf32>
      %cst_319 = arith.constant dense<0.000000e+00> : vector<4x128xf32>
      %410 = tpu.matmul %27, %409, %cst_319 {dimension_numbers = #tpu.dot_dimension_numbers<[1], [0], [0], [1], [0, 0, 1, 1], [], []>} : vector<4x8xf32>, vector<8x128xf32>, vector<4x128xf32> -> vector<4x128xf32>
      %cst_320 = arith.constant dense<0.000000e+00> : vector<4x128xf32>
      %411 = tpu.matmul %34, %409, %cst_320 {dimension_numbers = #tpu.dot_dimension_numbers<[1], [0], [0], [1], [0, 0, 1, 1], [], []>} : vector<4x8xf32>, vector<8x128xf32>, vector<4x128xf32> -> vector<4x128xf32>
      %412 = arith.maximumf %410, %411 : vector<4x128xf32>
      %413 = arith.truncf %412 : vector<4x128xf32> to vector<4x128xbf16>
      %c1_i32_321 = arith.constant 1 : i32
      %414 = arith.addi %c1_i32_321, %arg19 : i32
      %415 = arith.index_cast %414 : i32 to index
      %c1_322 = arith.constant 1 : index
      %c0_323 = arith.constant 0 : index
      %416 = vector.load %arg16[%415, %c1_322, %c0_323] : memref<6x6x128xbf16, #tpu.memory_space<vmem>>, vector<1x4x128xbf16>
      %417 = vector.shape_cast %416 : vector<1x4x128xbf16> to vector<4x128xbf16>
      %418 = vector.shape_cast %413 : vector<4x128xbf16> to vector<1x4x128xbf16>
      tpu.vector_store %arg16[%415, %c1_322, %c0_323], %418 {strides = array<i32>} : memref<6x6x128xbf16, #tpu.memory_space<vmem>>, vector<1x4x128xbf16>,
    }
    %c4_i32_18 = arith.constant 4 : i32
    %36 = tpu.iota {dimensions = array<i32: 0>} : vector<2x4xi32>
    %37 = tpu.iota {dimensions = array<i32: 1>} : vector<2x4xi32>
    %c2_i32_19 = arith.constant 2 : i32
    %38 = vector.broadcast %c2_i32_19 : i32 to vector<2x4xi32>
    %39 = arith.muli %38, %36 : vector<2x4xi32>
    %40 = arith.cmpi eq, %37, %39 : vector<2x4xi32>
    %41 = arith.extui %40 : vector<2x4xi1> to vector<2x4xi32>
    %42 = arith.sitofp %41 : vector<2x4xi32> to vector<2x4xf32>
    %c2_i32_20 = arith.constant 2 : i32
    %43 = vector.broadcast %c2_i32_20 : i32 to vector<2x4xi32>
    %44 = arith.muli %43, %36 : vector<2x4xi32>
    %c1_i32_21 = arith.constant 1 : i32
    %45 = vector.broadcast %c1_i32_21 : i32 to vector<2x4xi32>
    %46 = arith.addi %44, %45 : vector<2x4xi32>
    %47 = arith.cmpi eq, %37, %46 : vector<2x4xi32>
    %48 = arith.extui %47 : vector<2x4xi1> to vector<2x4xi32>
    %49 = arith.sitofp %48 : vector<2x4xi32> to vector<2x4xf32>
    %c0_i32_22 = arith.constant 0 : i32
    %c2_i32_23 = arith.constant 2 : i32
    %50 = arith.addi %c0_i32_22, %c2_i32_23 : i32
    %c1_i32_24 = arith.constant 1 : i32
    scf.for %arg19 = %c0_i32_22 to %50 step %c1_i32_24  : i32 {
      %c2_i32_182 = arith.constant 2 : i32
      %250 = arith.muli %c2_i32_182, %arg19 : i32
      %cst_183 = arith.constant 0.000000e+00 : f32
      %251 = vector.broadcast %cst_183 : f32 to vector<4x128xf32>
      %c0_i32_184 = arith.constant 0 : i32
      %252 = arith.addi %250, %c0_i32_184 : i32
      %253 = arith.index_cast %252 : i32 to index
      %c0_185 = arith.constant 0 : index
      %c0_186 = arith.constant 0 : index
      %254 = vector.load %arg16[%253, %c0_185, %c0_186] : memref<6x6x128xbf16, #tpu.memory_space<vmem>>, vector<1x4x128xbf16>
      %255 = vector.shape_cast %254 : vector<1x4x128xbf16> to vector<4x128xbf16>
      %c0_187 = arith.constant 0 : index
      %c0_188 = arith.constant 0 : index
      %c0_189 = arith.constant 0 : index
      %256 = vector.load %arg6[%c0_187, %c0_188, %c0_189] : memref<9x128x128xbf16, #tpu.memory_space<vmem>>, vector<1x128x128xbf16>
      %257 = vector.shape_cast %256 : vector<1x128x128xbf16> to vector<128x128xbf16>
      %cst_190 = arith.constant dense<0.000000e+00> : vector<4x128xf32>
      %258 = tpu.matmul %255, %257, %cst_190 {dimension_numbers = #tpu.dot_dimension_numbers<[1], [0], [0], [1], [0, 0, 1, 1], [], []>} : vector<4x128xbf16>, vector<128x128xbf16>, vector<4x128xf32> -> vector<4x128xf32>
      %259 = arith.addf %251, %258 : vector<4x128xf32>
      %c0_i32_191 = arith.constant 0 : i32
      %260 = arith.addi %250, %c0_i32_191 : i32
      %261 = arith.index_cast %260 : i32 to index
      %c1_192 = arith.constant 1 : index
      %c0_193 = arith.constant 0 : index
      %262 = vector.load %arg16[%261, %c1_192, %c0_193] : memref<6x6x128xbf16, #tpu.memory_space<vmem>>, vector<1x4x128xbf16>
      %263 = vector.shape_cast %262 : vector<1x4x128xbf16> to vector<4x128xbf16>
      %c1_194 = arith.constant 1 : index
      %c0_195 = arith.constant 0 : index
      %c0_196 = arith.constant 0 : index
      %264 = vector.load %arg6[%c1_194, %c0_195, %c0_196] : memref<9x128x128xbf16, #tpu.memory_space<vmem>>, vector<1x128x128xbf16>
      %265 = vector.shape_cast %264 : vector<1x128x128xbf16> to vector<128x128xbf16>
      %cst_197 = arith.constant dense<0.000000e+00> : vector<4x128xf32>
      %266 = tpu.matmul %263, %265, %cst_197 {dimension_numbers = #tpu.dot_dimension_numbers<[1], [0], [0], [1], [0, 0, 1, 1], [], []>} : vector<4x128xbf16>, vector<128x128xbf16>, vector<4x128xf32> -> vector<4x128xf32>
      %267 = arith.addf %259, %266 : vector<4x128xf32>
      %c0_i32_198 = arith.constant 0 : i32
      %268 = arith.addi %250, %c0_i32_198 : i32
      %269 = arith.index_cast %268 : i32 to index
      %c2_199 = arith.constant 2 : index
      %c0_200 = arith.constant 0 : index
      %270 = vector.load %arg16[%269, %c2_199, %c0_200] : memref<6x6x128xbf16, #tpu.memory_space<vmem>>, vector<1x4x128xbf16>
      %271 = vector.shape_cast %270 : vector<1x4x128xbf16> to vector<4x128xbf16>
      %c2_201 = arith.constant 2 : index
      %c0_202 = arith.constant 0 : index
      %c0_203 = arith.constant 0 : index
      %272 = vector.load %arg6[%c2_201, %c0_202, %c0_203] : memref<9x128x128xbf16, #tpu.memory_space<vmem>>, vector<1x128x128xbf16>
      %273 = vector.shape_cast %272 : vector<1x128x128xbf16> to vector<128x128xbf16>
      %cst_204 = arith.constant dense<0.000000e+00> : vector<4x128xf32>
      %274 = tpu.matmul %271, %273, %cst_204 {dimension_numbers = #tpu.dot_dimension_numbers<[1], [0], [0], [1], [0, 0, 1, 1], [], []>} : vector<4x128xbf16>, vector<128x128xbf16>, vector<4x128xf32> -> vector<4x128xf32>
      %275 = arith.addf %267, %274 : vector<4x128xf32>
      %c1_i32_205 = arith.constant 1 : i32
      %276 = arith.addi %250, %c1_i32_205 : i32
      %277 = arith.index_cast %276 : i32 to index
      %c0_206 = arith.constant 0 : index
      %c0_207 = arith.constant 0 : index
      %278 = vector.load %arg16[%277, %c0_206, %c0_207] : memref<6x6x128xbf16, #tpu.memory_space<vmem>>, vector<1x4x128xbf16>
      %279 = vector.shape_cast %278 : vector<1x4x128xbf16> to vector<4x128xbf16>
      %c3_208 = arith.constant 3 : index
      %c0_209 = arith.constant 0 : index
      %c0_210 = arith.constant 0 : index
      %280 = vector.load %arg6[%c3_208, %c0_209, %c0_210] : memref<9x128x128xbf16, #tpu.memory_space<vmem>>, vector<1x128x128xbf16>
      %281 = vector.shape_cast %280 : vector<1x128x128xbf16> to vector<128x128xbf16>
      %cst_211 = arith.constant dense<0.000000e+00> : vector<4x128xf32>
      %282 = tpu.matmul %279, %281, %cst_211 {dimension_numbers = #tpu.dot_dimension_numbers<[1], [0], [0], [1], [0, 0, 1, 1], [], []>} : vector<4x128xbf16>, vector<128x128xbf16>, vector<4x128xf32> -> vector<4x128xf32>
      %283 = arith.addf %275, %282 : vector<4x128xf32>
      %c1_i32_212 = arith.constant 1 : i32
      %284 = arith.addi %250, %c1_i32_212 : i32
      %285 = arith.index_cast %284 : i32 to index
      %c1_213 = arith.constant 1 : index
      %c0_214 = arith.constant 0 : index
      %286 = vector.load %arg16[%285, %c1_213, %c0_214] : memref<6x6x128xbf16, #tpu.memory_space<vmem>>, vector<1x4x128xbf16>
      %287 = vector.shape_cast %286 : vector<1x4x128xbf16> to vector<4x128xbf16>
      %c4_215 = arith.constant 4 : index
      %c0_216 = arith.constant 0 : index
      %c0_217 = arith.constant 0 : index
      %288 = vector.load %arg6[%c4_215, %c0_216, %c0_217] : memref<9x128x128xbf16, #tpu.memory_space<vmem>>, vector<1x128x128xbf16>
      %289 = vector.shape_cast %288 : vector<1x128x128xbf16> to vector<128x128xbf16>
      %cst_218 = arith.constant dense<0.000000e+00> : vector<4x128xf32>
      %290 = tpu.matmul %287, %289, %cst_218 {dimension_numbers = #tpu.dot_dimension_numbers<[1], [0], [0], [1], [0, 0, 1, 1], [], []>} : vector<4x128xbf16>, vector<128x128xbf16>, vector<4x128xf32> -> vector<4x128xf32>
      %291 = arith.addf %283, %290 : vector<4x128xf32>
      %c1_i32_219 = arith.constant 1 : i32
      %292 = arith.addi %250, %c1_i32_219 : i32
      %293 = arith.index_cast %292 : i32 to index
      %c2_220 = arith.constant 2 : index
      %c0_221 = arith.constant 0 : index
      %294 = vector.load %arg16[%293, %c2_220, %c0_221] : memref<6x6x128xbf16, #tpu.memory_space<vmem>>, vector<1x4x128xbf16>
      %295 = vector.shape_cast %294 : vector<1x4x128xbf16> to vector<4x128xbf16>
      %c5_222 = arith.constant 5 : index
      %c0_223 = arith.constant 0 : index
      %c0_224 = arith.constant 0 : index
      %296 = vector.load %arg6[%c5_222, %c0_223, %c0_224] : memref<9x128x128xbf16, #tpu.memory_space<vmem>>, vector<1x128x128xbf16>
      %297 = vector.shape_cast %296 : vector<1x128x128xbf16> to vector<128x128xbf16>
      %cst_225 = arith.constant dense<0.000000e+00> : vector<4x128xf32>
      %298 = tpu.matmul %295, %297, %cst_225 {dimension_numbers = #tpu.dot_dimension_numbers<[1], [0], [0], [1], [0, 0, 1, 1], [], []>} : vector<4x128xbf16>, vector<128x128xbf16>, vector<4x128xf32> -> vector<4x128xf32>
      %299 = arith.addf %291, %298 : vector<4x128xf32>
      %c2_i32_226 = arith.constant 2 : i32
      %300 = arith.addi %250, %c2_i32_226 : i32
      %301 = arith.index_cast %300 : i32 to index
      %c0_227 = arith.constant 0 : index
      %c0_228 = arith.constant 0 : index
      %302 = vector.load %arg16[%301, %c0_227, %c0_228] : memref<6x6x128xbf16, #tpu.memory_space<vmem>>, vector<1x4x128xbf16>
      %303 = vector.shape_cast %302 : vector<1x4x128xbf16> to vector<4x128xbf16>
      %c6_229 = arith.constant 6 : index
      %c0_230 = arith.constant 0 : index
      %c0_231 = arith.constant 0 : index
      %304 = vector.load %arg6[%c6_229, %c0_230, %c0_231] : memref<9x128x128xbf16, #tpu.memory_space<vmem>>, vector<1x128x128xbf16>
      %305 = vector.shape_cast %304 : vector<1x128x128xbf16> to vector<128x128xbf16>
      %cst_232 = arith.constant dense<0.000000e+00> : vector<4x128xf32>
      %306 = tpu.matmul %303, %305, %cst_232 {dimension_numbers = #tpu.dot_dimension_numbers<[1], [0], [0], [1], [0, 0, 1, 1], [], []>} : vector<4x128xbf16>, vector<128x128xbf16>, vector<4x128xf32> -> vector<4x128xf32>
      %307 = arith.addf %299, %306 : vector<4x128xf32>
      %c2_i32_233 = arith.constant 2 : i32
      %308 = arith.addi %250, %c2_i32_233 : i32
      %309 = arith.index_cast %308 : i32 to index
      %c1_234 = arith.constant 1 : index
      %c0_235 = arith.constant 0 : index
      %310 = vector.load %arg16[%309, %c1_234, %c0_235] : memref<6x6x128xbf16, #tpu.memory_space<vmem>>, vector<1x4x128xbf16>
      %311 = vector.shape_cast %310 : vector<1x4x128xbf16> to vector<4x128xbf16>
      %c7_236 = arith.constant 7 : index
      %c0_237 = arith.constant 0 : index
      %c0_238 = arith.constant 0 : index
      %312 = vector.load %arg6[%c7_236, %c0_237, %c0_238] : memref<9x128x128xbf16, #tpu.memory_space<vmem>>, vector<1x128x128xbf16>
      %313 = vector.shape_cast %312 : vector<1x128x128xbf16> to vector<128x128xbf16>
      %cst_239 = arith.constant dense<0.000000e+00> : vector<4x128xf32>
      %314 = tpu.matmul %311, %313, %cst_239 {dimension_numbers = #tpu.dot_dimension_numbers<[1], [0], [0], [1], [0, 0, 1, 1], [], []>} : vector<4x128xbf16>, vector<128x128xbf16>, vector<4x128xf32> -> vector<4x128xf32>
      %315 = arith.addf %307, %314 : vector<4x128xf32>
      %c2_i32_240 = arith.constant 2 : i32
      %316 = arith.addi %250, %c2_i32_240 : i32
      %317 = arith.index_cast %316 : i32 to index
      %c2_241 = arith.constant 2 : index
      %c0_242 = arith.constant 0 : index
      %318 = vector.load %arg16[%317, %c2_241, %c0_242] : memref<6x6x128xbf16, #tpu.memory_space<vmem>>, vector<1x4x128xbf16>
      %319 = vector.shape_cast %318 : vector<1x4x128xbf16> to vector<4x128xbf16>
      %c8_243 = arith.constant 8 : index
      %c0_244 = arith.constant 0 : index
      %c0_245 = arith.constant 0 : index
      %320 = vector.load %arg6[%c8_243, %c0_244, %c0_245] : memref<9x128x128xbf16, #tpu.memory_space<vmem>>, vector<1x128x128xbf16>
      %321 = vector.shape_cast %320 : vector<1x128x128xbf16> to vector<128x128xbf16>
      %cst_246 = arith.constant dense<0.000000e+00> : vector<4x128xf32>
      %322 = tpu.matmul %319, %321, %cst_246 {dimension_numbers = #tpu.dot_dimension_numbers<[1], [0], [0], [1], [0, 0, 1, 1], [], []>} : vector<4x128xbf16>, vector<128x128xbf16>, vector<4x128xf32> -> vector<4x128xf32>
      %323 = arith.addf %315, %322 : vector<4x128xf32>
      %c0_247 = arith.constant 0 : index
      %c0_248 = arith.constant 0 : index
      %324 = vector.load %arg7[%c0_247, %c0_248] : memref<1x128xf32, #tpu.memory_space<vmem>>, vector<1x128xf32>
      %325 = vector.broadcast %324 : vector<1x128xf32> to vector<4x128xf32>
      %326 = arith.addf %323, %325 : vector<4x128xf32>
      %cst_249 = arith.constant 0.000000e+00 : f32
      %327 = vector.broadcast %cst_249 : f32 to vector<4x128xf32>
      %328 = arith.maximumf %326, %327 : vector<4x128xf32>
      %c2_i32_250 = arith.constant 2 : i32
      %329 = arith.muli %c2_i32_250, %arg19 : i32
      %c1_i32_251 = arith.constant 1 : i32
      %330 = arith.addi %329, %c1_i32_251 : i32
      %cst_252 = arith.constant 0.000000e+00 : f32
      %331 = vector.broadcast %cst_252 : f32 to vector<4x128xf32>
      %c0_i32_253 = arith.constant 0 : i32
      %332 = arith.addi %330, %c0_i32_253 : i32
      %333 = arith.index_cast %332 : i32 to index
      %c0_254 = arith.constant 0 : index
      %c0_255 = arith.constant 0 : index
      %334 = vector.load %arg16[%333, %c0_254, %c0_255] : memref<6x6x128xbf16, #tpu.memory_space<vmem>>, vector<1x4x128xbf16>
      %335 = vector.shape_cast %334 : vector<1x4x128xbf16> to vector<4x128xbf16>
      %c0_256 = arith.constant 0 : index
      %c0_257 = arith.constant 0 : index
      %c0_258 = arith.constant 0 : index
      %336 = vector.load %arg6[%c0_256, %c0_257, %c0_258] : memref<9x128x128xbf16, #tpu.memory_space<vmem>>, vector<1x128x128xbf16>
      %337 = vector.shape_cast %336 : vector<1x128x128xbf16> to vector<128x128xbf16>
      %cst_259 = arith.constant dense<0.000000e+00> : vector<4x128xf32>
      %338 = tpu.matmul %335, %337, %cst_259 {dimension_numbers = #tpu.dot_dimension_numbers<[1], [0], [0], [1], [0, 0, 1, 1], [], []>} : vector<4x128xbf16>, vector<128x128xbf16>, vector<4x128xf32> -> vector<4x128xf32>
      %339 = arith.addf %331, %338 : vector<4x128xf32>
      %c0_i32_260 = arith.constant 0 : i32
      %340 = arith.addi %330, %c0_i32_260 : i32
      %341 = arith.index_cast %340 : i32 to index
      %c1_261 = arith.constant 1 : index
      %c0_262 = arith.constant 0 : index
      %342 = vector.load %arg16[%341, %c1_261, %c0_262] : memref<6x6x128xbf16, #tpu.memory_space<vmem>>, vector<1x4x128xbf16>
      %343 = vector.shape_cast %342 : vector<1x4x128xbf16> to vector<4x128xbf16>
      %c1_263 = arith.constant 1 : index
      %c0_264 = arith.constant 0 : index
      %c0_265 = arith.constant 0 : index
      %344 = vector.load %arg6[%c1_263, %c0_264, %c0_265] : memref<9x128x128xbf16, #tpu.memory_space<vmem>>, vector<1x128x128xbf16>
      %345 = vector.shape_cast %344 : vector<1x128x128xbf16> to vector<128x128xbf16>
      %cst_266 = arith.constant dense<0.000000e+00> : vector<4x128xf32>
      %346 = tpu.matmul %343, %345, %cst_266 {dimension_numbers = #tpu.dot_dimension_numbers<[1], [0], [0], [1], [0, 0, 1, 1], [], []>} : vector<4x128xbf16>, vector<128x128xbf16>, vector<4x128xf32> -> vector<4x128xf32>
      %347 = arith.addf %339, %346 : vector<4x128xf32>
      %c0_i32_267 = arith.constant 0 : i32
      %348 = arith.addi %330, %c0_i32_267 : i32
      %349 = arith.index_cast %348 : i32 to index
      %c2_268 = arith.constant 2 : index
      %c0_269 = arith.constant 0 : index
      %350 = vector.load %arg16[%349, %c2_268, %c0_269] : memref<6x6x128xbf16, #tpu.memory_space<vmem>>, vector<1x4x128xbf16>
      %351 = vector.shape_cast %350 : vector<1x4x128xbf16> to vector<4x128xbf16>
      %c2_270 = arith.constant 2 : index
      %c0_271 = arith.constant 0 : index
      %c0_272 = arith.constant 0 : index
      %352 = vector.load %arg6[%c2_270, %c0_271, %c0_272] : memref<9x128x128xbf16, #tpu.memory_space<vmem>>, vector<1x128x128xbf16>
      %353 = vector.shape_cast %352 : vector<1x128x128xbf16> to vector<128x128xbf16>
      %cst_273 = arith.constant dense<0.000000e+00> : vector<4x128xf32>
      %354 = tpu.matmul %351, %353, %cst_273 {dimension_numbers = #tpu.dot_dimension_numbers<[1], [0], [0], [1], [0, 0, 1, 1], [], []>} : vector<4x128xbf16>, vector<128x128xbf16>, vector<4x128xf32> -> vector<4x128xf32>
      %355 = arith.addf %347, %354 : vector<4x128xf32>
      %c1_i32_274 = arith.constant 1 : i32
      %356 = arith.addi %330, %c1_i32_274 : i32
      %357 = arith.index_cast %356 : i32 to index
      %c0_275 = arith.constant 0 : index
      %c0_276 = arith.constant 0 : index
      %358 = vector.load %arg16[%357, %c0_275, %c0_276] : memref<6x6x128xbf16, #tpu.memory_space<vmem>>, vector<1x4x128xbf16>
      %359 = vector.shape_cast %358 : vector<1x4x128xbf16> to vector<4x128xbf16>
      %c3_277 = arith.constant 3 : index
      %c0_278 = arith.constant 0 : index
      %c0_279 = arith.constant 0 : index
      %360 = vector.load %arg6[%c3_277, %c0_278, %c0_279] : memref<9x128x128xbf16, #tpu.memory_space<vmem>>, vector<1x128x128xbf16>
      %361 = vector.shape_cast %360 : vector<1x128x128xbf16> to vector<128x128xbf16>
      %cst_280 = arith.constant dense<0.000000e+00> : vector<4x128xf32>
      %362 = tpu.matmul %359, %361, %cst_280 {dimension_numbers = #tpu.dot_dimension_numbers<[1], [0], [0], [1], [0, 0, 1, 1], [], []>} : vector<4x128xbf16>, vector<128x128xbf16>, vector<4x128xf32> -> vector<4x128xf32>
      %363 = arith.addf %355, %362 : vector<4x128xf32>
      %c1_i32_281 = arith.constant 1 : i32
      %364 = arith.addi %330, %c1_i32_281 : i32
      %365 = arith.index_cast %364 : i32 to index
      %c1_282 = arith.constant 1 : index
      %c0_283 = arith.constant 0 : index
      %366 = vector.load %arg16[%365, %c1_282, %c0_283] : memref<6x6x128xbf16, #tpu.memory_space<vmem>>, vector<1x4x128xbf16>
      %367 = vector.shape_cast %366 : vector<1x4x128xbf16> to vector<4x128xbf16>
      %c4_284 = arith.constant 4 : index
      %c0_285 = arith.constant 0 : index
      %c0_286 = arith.constant 0 : index
      %368 = vector.load %arg6[%c4_284, %c0_285, %c0_286] : memref<9x128x128xbf16, #tpu.memory_space<vmem>>, vector<1x128x128xbf16>
      %369 = vector.shape_cast %368 : vector<1x128x128xbf16> to vector<128x128xbf16>
      %cst_287 = arith.constant dense<0.000000e+00> : vector<4x128xf32>
      %370 = tpu.matmul %367, %369, %cst_287 {dimension_numbers = #tpu.dot_dimension_numbers<[1], [0], [0], [1], [0, 0, 1, 1], [], []>} : vector<4x128xbf16>, vector<128x128xbf16>, vector<4x128xf32> -> vector<4x128xf32>
      %371 = arith.addf %363, %370 : vector<4x128xf32>
      %c1_i32_288 = arith.constant 1 : i32
      %372 = arith.addi %330, %c1_i32_288 : i32
      %373 = arith.index_cast %372 : i32 to index
      %c2_289 = arith.constant 2 : index
      %c0_290 = arith.constant 0 : index
      %374 = vector.load %arg16[%373, %c2_289, %c0_290] : memref<6x6x128xbf16, #tpu.memory_space<vmem>>, vector<1x4x128xbf16>
      %375 = vector.shape_cast %374 : vector<1x4x128xbf16> to vector<4x128xbf16>
      %c5_291 = arith.constant 5 : index
      %c0_292 = arith.constant 0 : index
      %c0_293 = arith.constant 0 : index
      %376 = vector.load %arg6[%c5_291, %c0_292, %c0_293] : memref<9x128x128xbf16, #tpu.memory_space<vmem>>, vector<1x128x128xbf16>
      %377 = vector.shape_cast %376 : vector<1x128x128xbf16> to vector<128x128xbf16>
      %cst_294 = arith.constant dense<0.000000e+00> : vector<4x128xf32>
      %378 = tpu.matmul %375, %377, %cst_294 {dimension_numbers = #tpu.dot_dimension_numbers<[1], [0], [0], [1], [0, 0, 1, 1], [], []>} : vector<4x128xbf16>, vector<128x128xbf16>, vector<4x128xf32> -> vector<4x128xf32>
      %379 = arith.addf %371, %378 : vector<4x128xf32>
      %c2_i32_295 = arith.constant 2 : i32
      %380 = arith.addi %330, %c2_i32_295 : i32
      %381 = arith.index_cast %380 : i32 to index
      %c0_296 = arith.constant 0 : index
      %c0_297 = arith.constant 0 : index
      %382 = vector.load %arg16[%381, %c0_296, %c0_297] : memref<6x6x128xbf16, #tpu.memory_space<vmem>>, vector<1x4x128xbf16>
      %383 = vector.shape_cast %382 : vector<1x4x128xbf16> to vector<4x128xbf16>
      %c6_298 = arith.constant 6 : index
      %c0_299 = arith.constant 0 : index
      %c0_300 = arith.constant 0 : index
      %384 = vector.load %arg6[%c6_298, %c0_299, %c0_300] : memref<9x128x128xbf16, #tpu.memory_space<vmem>>, vector<1x128x128xbf16>
      %385 = vector.shape_cast %384 : vector<1x128x128xbf16> to vector<128x128xbf16>
      %cst_301 = arith.constant dense<0.000000e+00> : vector<4x128xf32>
      %386 = tpu.matmul %383, %385, %cst_301 {dimension_numbers = #tpu.dot_dimension_numbers<[1], [0], [0], [1], [0, 0, 1, 1], [], []>} : vector<4x128xbf16>, vector<128x128xbf16>, vector<4x128xf32> -> vector<4x128xf32>
      %387 = arith.addf %379, %386 : vector<4x128xf32>
      %c2_i32_302 = arith.constant 2 : i32
      %388 = arith.addi %330, %c2_i32_302 : i32
      %389 = arith.index_cast %388 : i32 to index
      %c1_303 = arith.constant 1 : index
      %c0_304 = arith.constant 0 : index
      %390 = vector.load %arg16[%389, %c1_303, %c0_304] : memref<6x6x128xbf16, #tpu.memory_space<vmem>>, vector<1x4x128xbf16>
      %391 = vector.shape_cast %390 : vector<1x4x128xbf16> to vector<4x128xbf16>
      %c7_305 = arith.constant 7 : index
      %c0_306 = arith.constant 0 : index
      %c0_307 = arith.constant 0 : index
      %392 = vector.load %arg6[%c7_305, %c0_306, %c0_307] : memref<9x128x128xbf16, #tpu.memory_space<vmem>>, vector<1x128x128xbf16>
      %393 = vector.shape_cast %392 : vector<1x128x128xbf16> to vector<128x128xbf16>
      %cst_308 = arith.constant dense<0.000000e+00> : vector<4x128xf32>
      %394 = tpu.matmul %391, %393, %cst_308 {dimension_numbers = #tpu.dot_dimension_numbers<[1], [0], [0], [1], [0, 0, 1, 1], [], []>} : vector<4x128xbf16>, vector<128x128xbf16>, vector<4x128xf32> -> vector<4x128xf32>
      %395 = arith.addf %387, %394 : vector<4x128xf32>
      %c2_i32_309 = arith.constant 2 : i32
      %396 = arith.addi %330, %c2_i32_309 : i32
      %397 = arith.index_cast %396 : i32 to index
      %c2_310 = arith.constant 2 : index
      %c0_311 = arith.constant 0 : index
      %398 = vector.load %arg16[%397, %c2_310, %c0_311] : memref<6x6x128xbf16, #tpu.memory_space<vmem>>, vector<1x4x128xbf16>
      %399 = vector.shape_cast %398 : vector<1x4x128xbf16> to vector<4x128xbf16>
      %c8_312 = arith.constant 8 : index
      %c0_313 = arith.constant 0 : index
      %c0_314 = arith.constant 0 : index
      %400 = vector.load %arg6[%c8_312, %c0_313, %c0_314] : memref<9x128x128xbf16, #tpu.memory_space<vmem>>, vector<1x128x128xbf16>
      %401 = vector.shape_cast %400 : vector<1x128x128xbf16> to vector<128x128xbf16>
      %cst_315 = arith.constant dense<0.000000e+00> : vector<4x128xf32>
      %402 = tpu.matmul %399, %401, %cst_315 {dimension_numbers = #tpu.dot_dimension_numbers<[1], [0], [0], [1], [0, 0, 1, 1], [], []>} : vector<4x128xbf16>, vector<128x128xbf16>, vector<4x128xf32> -> vector<4x128xf32>
      %403 = arith.addf %395, %402 : vector<4x128xf32>
      %c0_316 = arith.constant 0 : index
      %c0_317 = arith.constant 0 : index
      %404 = vector.load %arg7[%c0_316, %c0_317] : memref<1x128xf32, #tpu.memory_space<vmem>>, vector<1x128xf32>
      %405 = vector.broadcast %404 : vector<1x128xf32> to vector<4x128xf32>
      %406 = arith.addf %403, %405 : vector<4x128xf32>
      %cst_318 = arith.constant 0.000000e+00 : f32
      %407 = vector.broadcast %cst_318 : f32 to vector<4x128xf32>
      %408 = arith.maximumf %406, %407 : vector<4x128xf32>
      %409 = arith.maximumf %328, %408 : vector<4x128xf32>
      %cst_319 = arith.constant dense<0.000000e+00> : vector<2x128xf32>
      %410 = tpu.matmul %42, %409, %cst_319 {dimension_numbers = #tpu.dot_dimension_numbers<[1], [0], [0], [1], [0, 0, 1, 1], [], []>} : vector<2x4xf32>, vector<4x128xf32>, vector<2x128xf32> -> vector<2x128xf32>
      %cst_320 = arith.constant dense<0.000000e+00> : vector<2x128xf32>
      %411 = tpu.matmul %49, %409, %cst_320 {dimension_numbers = #tpu.dot_dimension_numbers<[1], [0], [0], [1], [0, 0, 1, 1], [], []>} : vector<2x4xf32>, vector<4x128xf32>, vector<2x128xf32> -> vector<2x128xf32>
      %412 = arith.maximumf %410, %411 : vector<2x128xf32>
      %413 = arith.truncf %412 : vector<2x128xf32> to vector<2x128xbf16>
      %c1_i32_321 = arith.constant 1 : i32
      %414 = arith.addi %c1_i32_321, %arg19 : i32
      %415 = arith.index_cast %414 : i32 to index
      %c1_322 = arith.constant 1 : index
      %c0_323 = arith.constant 0 : index
      %416 = vector.load %arg17[%415, %c1_322, %c0_323] : memref<4x4x128xbf16, #tpu.memory_space<vmem>>, vector<1x2x128xbf16>
      %417 = vector.shape_cast %416 : vector<1x2x128xbf16> to vector<2x128xbf16>
      %418 = vector.shape_cast %413 : vector<2x128xbf16> to vector<1x2x128xbf16>
      tpu.vector_store %arg17[%415, %c1_322, %c0_323], %418 {strides = array<i32>} : memref<4x4x128xbf16, #tpu.memory_space<vmem>>, vector<1x2x128xbf16>,
    }
    %c2_i32_25 = arith.constant 2 : i32
    %51 = tpu.iota {dimensions = array<i32: 0>} : vector<1x2xi32>
    %52 = tpu.iota {dimensions = array<i32: 1>} : vector<1x2xi32>
    %c2_i32_26 = arith.constant 2 : i32
    %53 = vector.broadcast %c2_i32_26 : i32 to vector<1x2xi32>
    %54 = arith.muli %53, %51 : vector<1x2xi32>
    %55 = arith.cmpi eq, %52, %54 : vector<1x2xi32>
    %56 = arith.extui %55 : vector<1x2xi1> to vector<1x2xi32>
    %57 = arith.sitofp %56 : vector<1x2xi32> to vector<1x2xf32>
    %c2_i32_27 = arith.constant 2 : i32
    %58 = vector.broadcast %c2_i32_27 : i32 to vector<1x2xi32>
    %59 = arith.muli %58, %51 : vector<1x2xi32>
    %c1_i32_28 = arith.constant 1 : i32
    %60 = vector.broadcast %c1_i32_28 : i32 to vector<1x2xi32>
    %61 = arith.addi %59, %60 : vector<1x2xi32>
    %62 = arith.cmpi eq, %52, %61 : vector<1x2xi32>
    %63 = arith.extui %62 : vector<1x2xi1> to vector<1x2xi32>
    %64 = arith.sitofp %63 : vector<1x2xi32> to vector<1x2xf32>
    %c0_i32_29 = arith.constant 0 : i32
    %c2_i32_30 = arith.constant 2 : i32
    %65 = arith.muli %c2_i32_30, %c0_i32_29 : i32
    %cst_31 = arith.constant 0.000000e+00 : f32
    %66 = vector.broadcast %cst_31 : f32 to vector<2x512xf32>
    %c0_i32_32 = arith.constant 0 : i32
    %67 = arith.addi %65, %c0_i32_32 : i32
    %68 = arith.index_cast %67 : i32 to index
    %c0_33 = arith.constant 0 : index
    %c0_34 = arith.constant 0 : index
    %69 = vector.load %arg17[%68, %c0_33, %c0_34] : memref<4x4x128xbf16, #tpu.memory_space<vmem>>, vector<1x2x128xbf16>
    %70 = vector.shape_cast %69 : vector<1x2x128xbf16> to vector<2x128xbf16>
    %c0_35 = arith.constant 0 : index
    %c0_36 = arith.constant 0 : index
    %c0_37 = arith.constant 0 : index
    %71 = vector.load %arg8[%c0_35, %c0_36, %c0_37] : memref<9x128x512xbf16, #tpu.memory_space<vmem>>, vector<1x128x512xbf16>
    %72 = vector.shape_cast %71 : vector<1x128x512xbf16> to vector<128x512xbf16>
    %cst_38 = arith.constant dense<0.000000e+00> : vector<2x512xf32>
    %73 = tpu.matmul %70, %72, %cst_38 {dimension_numbers = #tpu.dot_dimension_numbers<[1], [0], [0], [1], [0, 0, 1, 1], [], []>} : vector<2x128xbf16>, vector<128x512xbf16>, vector<2x512xf32> -> vector<2x512xf32>
    %74 = arith.addf %66, %73 : vector<2x512xf32>
    %c0_i32_39 = arith.constant 0 : i32
    %75 = arith.addi %65, %c0_i32_39 : i32
    %76 = arith.index_cast %75 : i32 to index
    %c1 = arith.constant 1 : index
    %c0_40 = arith.constant 0 : index
    %77 = vector.load %arg17[%76, %c1, %c0_40] : memref<4x4x128xbf16, #tpu.memory_space<vmem>>, vector<1x2x128xbf16>
    %78 = vector.shape_cast %77 : vector<1x2x128xbf16> to vector<2x128xbf16>
    %c1_41 = arith.constant 1 : index
    %c0_42 = arith.constant 0 : index
    %c0_43 = arith.constant 0 : index
    %79 = vector.load %arg8[%c1_41, %c0_42, %c0_43] : memref<9x128x512xbf16, #tpu.memory_space<vmem>>, vector<1x128x512xbf16>
    %80 = vector.shape_cast %79 : vector<1x128x512xbf16> to vector<128x512xbf16>
    %cst_44 = arith.constant dense<0.000000e+00> : vector<2x512xf32>
    %81 = tpu.matmul %78, %80, %cst_44 {dimension_numbers = #tpu.dot_dimension_numbers<[1], [0], [0], [1], [0, 0, 1, 1], [], []>} : vector<2x128xbf16>, vector<128x512xbf16>, vector<2x512xf32> -> vector<2x512xf32>
    %82 = arith.addf %74, %81 : vector<2x512xf32>
    %c0_i32_45 = arith.constant 0 : i32
    %83 = arith.addi %65, %c0_i32_45 : i32
    %84 = arith.index_cast %83 : i32 to index
    %c2 = arith.constant 2 : index
    %c0_46 = arith.constant 0 : index
    %85 = vector.load %arg17[%84, %c2, %c0_46] : memref<4x4x128xbf16, #tpu.memory_space<vmem>>, vector<1x2x128xbf16>
    %86 = vector.shape_cast %85 : vector<1x2x128xbf16> to vector<2x128xbf16>
    %c2_47 = arith.constant 2 : index
    %c0_48 = arith.constant 0 : index
    %c0_49 = arith.constant 0 : index
    %87 = vector.load %arg8[%c2_47, %c0_48, %c0_49] : memref<9x128x512xbf16, #tpu.memory_space<vmem>>, vector<1x128x512xbf16>
    %88 = vector.shape_cast %87 : vector<1x128x512xbf16> to vector<128x512xbf16>
    %cst_50 = arith.constant dense<0.000000e+00> : vector<2x512xf32>
    %89 = tpu.matmul %86, %88, %cst_50 {dimension_numbers = #tpu.dot_dimension_numbers<[1], [0], [0], [1], [0, 0, 1, 1], [], []>} : vector<2x128xbf16>, vector<128x512xbf16>, vector<2x512xf32> -> vector<2x512xf32>
    %90 = arith.addf %82, %89 : vector<2x512xf32>
    %c1_i32_51 = arith.constant 1 : i32
    %91 = arith.addi %65, %c1_i32_51 : i32
    %92 = arith.index_cast %91 : i32 to index
    %c0_52 = arith.constant 0 : index
    %c0_53 = arith.constant 0 : index
    %93 = vector.load %arg17[%92, %c0_52, %c0_53] : memref<4x4x128xbf16, #tpu.memory_space<vmem>>, vector<1x2x128xbf16>
    %94 = vector.shape_cast %93 : vector<1x2x128xbf16> to vector<2x128xbf16>
    %c3 = arith.constant 3 : index
    %c0_54 = arith.constant 0 : index
    %c0_55 = arith.constant 0 : index
    %95 = vector.load %arg8[%c3, %c0_54, %c0_55] : memref<9x128x512xbf16, #tpu.memory_space<vmem>>, vector<1x128x512xbf16>
    %96 = vector.shape_cast %95 : vector<1x128x512xbf16> to vector<128x512xbf16>
    %cst_56 = arith.constant dense<0.000000e+00> : vector<2x512xf32>
    %97 = tpu.matmul %94, %96, %cst_56 {dimension_numbers = #tpu.dot_dimension_numbers<[1], [0], [0], [1], [0, 0, 1, 1], [], []>} : vector<2x128xbf16>, vector<128x512xbf16>, vector<2x512xf32> -> vector<2x512xf32>
    %98 = arith.addf %90, %97 : vector<2x512xf32>
    %c1_i32_57 = arith.constant 1 : i32
    %99 = arith.addi %65, %c1_i32_57 : i32
    %100 = arith.index_cast %99 : i32 to index
    %c1_58 = arith.constant 1 : index
    %c0_59 = arith.constant 0 : index
    %101 = vector.load %arg17[%100, %c1_58, %c0_59] : memref<4x4x128xbf16, #tpu.memory_space<vmem>>, vector<1x2x128xbf16>
    %102 = vector.shape_cast %101 : vector<1x2x128xbf16> to vector<2x128xbf16>
    %c4 = arith.constant 4 : index
    %c0_60 = arith.constant 0 : index
    %c0_61 = arith.constant 0 : index
    %103 = vector.load %arg8[%c4, %c0_60, %c0_61] : memref<9x128x512xbf16, #tpu.memory_space<vmem>>, vector<1x128x512xbf16>
    %104 = vector.shape_cast %103 : vector<1x128x512xbf16> to vector<128x512xbf16>
    %cst_62 = arith.constant dense<0.000000e+00> : vector<2x512xf32>
    %105 = tpu.matmul %102, %104, %cst_62 {dimension_numbers = #tpu.dot_dimension_numbers<[1], [0], [0], [1], [0, 0, 1, 1], [], []>} : vector<2x128xbf16>, vector<128x512xbf16>, vector<2x512xf32> -> vector<2x512xf32>
    %106 = arith.addf %98, %105 : vector<2x512xf32>
    %c1_i32_63 = arith.constant 1 : i32
    %107 = arith.addi %65, %c1_i32_63 : i32
    %108 = arith.index_cast %107 : i32 to index
    %c2_64 = arith.constant 2 : index
    %c0_65 = arith.constant 0 : index
    %109 = vector.load %arg17[%108, %c2_64, %c0_65] : memref<4x4x128xbf16, #tpu.memory_space<vmem>>, vector<1x2x128xbf16>
    %110 = vector.shape_cast %109 : vector<1x2x128xbf16> to vector<2x128xbf16>
    %c5 = arith.constant 5 : index
    %c0_66 = arith.constant 0 : index
    %c0_67 = arith.constant 0 : index
    %111 = vector.load %arg8[%c5, %c0_66, %c0_67] : memref<9x128x512xbf16, #tpu.memory_space<vmem>>, vector<1x128x512xbf16>
    %112 = vector.shape_cast %111 : vector<1x128x512xbf16> to vector<128x512xbf16>
    %cst_68 = arith.constant dense<0.000000e+00> : vector<2x512xf32>
    %113 = tpu.matmul %110, %112, %cst_68 {dimension_numbers = #tpu.dot_dimension_numbers<[1], [0], [0], [1], [0, 0, 1, 1], [], []>} : vector<2x128xbf16>, vector<128x512xbf16>, vector<2x512xf32> -> vector<2x512xf32>
    %114 = arith.addf %106, %113 : vector<2x512xf32>
    %c2_i32_69 = arith.constant 2 : i32
    %115 = arith.addi %65, %c2_i32_69 : i32
    %116 = arith.index_cast %115 : i32 to index
    %c0_70 = arith.constant 0 : index
    %c0_71 = arith.constant 0 : index
    %117 = vector.load %arg17[%116, %c0_70, %c0_71] : memref<4x4x128xbf16, #tpu.memory_space<vmem>>, vector<1x2x128xbf16>
    %118 = vector.shape_cast %117 : vector<1x2x128xbf16> to vector<2x128xbf16>
    %c6 = arith.constant 6 : index
    %c0_72 = arith.constant 0 : index
    %c0_73 = arith.constant 0 : index
    %119 = vector.load %arg8[%c6, %c0_72, %c0_73] : memref<9x128x512xbf16, #tpu.memory_space<vmem>>, vector<1x128x512xbf16>
    %120 = vector.shape_cast %119 : vector<1x128x512xbf16> to vector<128x512xbf16>
    %cst_74 = arith.constant dense<0.000000e+00> : vector<2x512xf32>
    %121 = tpu.matmul %118, %120, %cst_74 {dimension_numbers = #tpu.dot_dimension_numbers<[1], [0], [0], [1], [0, 0, 1, 1], [], []>} : vector<2x128xbf16>, vector<128x512xbf16>, vector<2x512xf32> -> vector<2x512xf32>
    %122 = arith.addf %114, %121 : vector<2x512xf32>
    %c2_i32_75 = arith.constant 2 : i32
    %123 = arith.addi %65, %c2_i32_75 : i32
    %124 = arith.index_cast %123 : i32 to index
    %c1_76 = arith.constant 1 : index
    %c0_77 = arith.constant 0 : index
    %125 = vector.load %arg17[%124, %c1_76, %c0_77] : memref<4x4x128xbf16, #tpu.memory_space<vmem>>, vector<1x2x128xbf16>
    %126 = vector.shape_cast %125 : vector<1x2x128xbf16> to vector<2x128xbf16>
    %c7 = arith.constant 7 : index
    %c0_78 = arith.constant 0 : index
    %c0_79 = arith.constant 0 : index
    %127 = vector.load %arg8[%c7, %c0_78, %c0_79] : memref<9x128x512xbf16, #tpu.memory_space<vmem>>, vector<1x128x512xbf16>
    %128 = vector.shape_cast %127 : vector<1x128x512xbf16> to vector<128x512xbf16>
    %cst_80 = arith.constant dense<0.000000e+00> : vector<2x512xf32>
    %129 = tpu.matmul %126, %128, %cst_80 {dimension_numbers = #tpu.dot_dimension_numbers<[1], [0], [0], [1], [0, 0, 1, 1], [], []>} : vector<2x128xbf16>, vector<128x512xbf16>, vector<2x512xf32> -> vector<2x512xf32>
    %130 = arith.addf %122, %129 : vector<2x512xf32>
    %c2_i32_81 = arith.constant 2 : i32
    %131 = arith.addi %65, %c2_i32_81 : i32
    %132 = arith.index_cast %131 : i32 to index
    %c2_82 = arith.constant 2 : index
    %c0_83 = arith.constant 0 : index
    %133 = vector.load %arg17[%132, %c2_82, %c0_83] : memref<4x4x128xbf16, #tpu.memory_space<vmem>>, vector<1x2x128xbf16>
    %134 = vector.shape_cast %133 : vector<1x2x128xbf16> to vector<2x128xbf16>
    %c8 = arith.constant 8 : index
    %c0_84 = arith.constant 0 : index
    %c0_85 = arith.constant 0 : index
    %135 = vector.load %arg8[%c8, %c0_84, %c0_85] : memref<9x128x512xbf16, #tpu.memory_space<vmem>>, vector<1x128x512xbf16>
    %136 = vector.shape_cast %135 : vector<1x128x512xbf16> to vector<128x512xbf16>
    %cst_86 = arith.constant dense<0.000000e+00> : vector<2x512xf32>
    %137 = tpu.matmul %134, %136, %cst_86 {dimension_numbers = #tpu.dot_dimension_numbers<[1], [0], [0], [1], [0, 0, 1, 1], [], []>} : vector<2x128xbf16>, vector<128x512xbf16>, vector<2x512xf32> -> vector<2x512xf32>
    %138 = arith.addf %130, %137 : vector<2x512xf32>
    %c0_87 = arith.constant 0 : index
    %c0_88 = arith.constant 0 : index
    %139 = vector.load %arg9[%c0_87, %c0_88] : memref<1x512xf32, #tpu.memory_space<vmem>>, vector<1x512xf32>
    %140 = vector.broadcast %139 : vector<1x512xf32> to vector<2x512xf32>
    %141 = arith.addf %138, %140 : vector<2x512xf32>
    %cst_89 = arith.constant 0.000000e+00 : f32
    %142 = vector.broadcast %cst_89 : f32 to vector<2x512xf32>
    %143 = arith.maximumf %141, %142 : vector<2x512xf32>
    %c2_i32_90 = arith.constant 2 : i32
    %144 = arith.muli %c2_i32_90, %c0_i32_29 : i32
    %c1_i32_91 = arith.constant 1 : i32
    %145 = arith.addi %144, %c1_i32_91 : i32
    %cst_92 = arith.constant 0.000000e+00 : f32
    %146 = vector.broadcast %cst_92 : f32 to vector<2x512xf32>
    %c0_i32_93 = arith.constant 0 : i32
    %147 = arith.addi %145, %c0_i32_93 : i32
    %148 = arith.index_cast %147 : i32 to index
    %c0_94 = arith.constant 0 : index
    %c0_95 = arith.constant 0 : index
    %149 = vector.load %arg17[%148, %c0_94, %c0_95] : memref<4x4x128xbf16, #tpu.memory_space<vmem>>, vector<1x2x128xbf16>
    %150 = vector.shape_cast %149 : vector<1x2x128xbf16> to vector<2x128xbf16>
    %c0_96 = arith.constant 0 : index
    %c0_97 = arith.constant 0 : index
    %c0_98 = arith.constant 0 : index
    %151 = vector.load %arg8[%c0_96, %c0_97, %c0_98] : memref<9x128x512xbf16, #tpu.memory_space<vmem>>, vector<1x128x512xbf16>
    %152 = vector.shape_cast %151 : vector<1x128x512xbf16> to vector<128x512xbf16>
    %cst_99 = arith.constant dense<0.000000e+00> : vector<2x512xf32>
    %153 = tpu.matmul %150, %152, %cst_99 {dimension_numbers = #tpu.dot_dimension_numbers<[1], [0], [0], [1], [0, 0, 1, 1], [], []>} : vector<2x128xbf16>, vector<128x512xbf16>, vector<2x512xf32> -> vector<2x512xf32>
    %154 = arith.addf %146, %153 : vector<2x512xf32>
    %c0_i32_100 = arith.constant 0 : i32
    %155 = arith.addi %145, %c0_i32_100 : i32
    %156 = arith.index_cast %155 : i32 to index
    %c1_101 = arith.constant 1 : index
    %c0_102 = arith.constant 0 : index
    %157 = vector.load %arg17[%156, %c1_101, %c0_102] : memref<4x4x128xbf16, #tpu.memory_space<vmem>>, vector<1x2x128xbf16>
    %158 = vector.shape_cast %157 : vector<1x2x128xbf16> to vector<2x128xbf16>
    %c1_103 = arith.constant 1 : index
    %c0_104 = arith.constant 0 : index
    %c0_105 = arith.constant 0 : index
    %159 = vector.load %arg8[%c1_103, %c0_104, %c0_105] : memref<9x128x512xbf16, #tpu.memory_space<vmem>>, vector<1x128x512xbf16>
    %160 = vector.shape_cast %159 : vector<1x128x512xbf16> to vector<128x512xbf16>
    %cst_106 = arith.constant dense<0.000000e+00> : vector<2x512xf32>
    %161 = tpu.matmul %158, %160, %cst_106 {dimension_numbers = #tpu.dot_dimension_numbers<[1], [0], [0], [1], [0, 0, 1, 1], [], []>} : vector<2x128xbf16>, vector<128x512xbf16>, vector<2x512xf32> -> vector<2x512xf32>
    %162 = arith.addf %154, %161 : vector<2x512xf32>
    %c0_i32_107 = arith.constant 0 : i32
    %163 = arith.addi %145, %c0_i32_107 : i32
    %164 = arith.index_cast %163 : i32 to index
    %c2_108 = arith.constant 2 : index
    %c0_109 = arith.constant 0 : index
    %165 = vector.load %arg17[%164, %c2_108, %c0_109] : memref<4x4x128xbf16, #tpu.memory_space<vmem>>, vector<1x2x128xbf16>
    %166 = vector.shape_cast %165 : vector<1x2x128xbf16> to vector<2x128xbf16>
    %c2_110 = arith.constant 2 : index
    %c0_111 = arith.constant 0 : index
    %c0_112 = arith.constant 0 : index
    %167 = vector.load %arg8[%c2_110, %c0_111, %c0_112] : memref<9x128x512xbf16, #tpu.memory_space<vmem>>, vector<1x128x512xbf16>
    %168 = vector.shape_cast %167 : vector<1x128x512xbf16> to vector<128x512xbf16>
    %cst_113 = arith.constant dense<0.000000e+00> : vector<2x512xf32>
    %169 = tpu.matmul %166, %168, %cst_113 {dimension_numbers = #tpu.dot_dimension_numbers<[1], [0], [0], [1], [0, 0, 1, 1], [], []>} : vector<2x128xbf16>, vector<128x512xbf16>, vector<2x512xf32> -> vector<2x512xf32>
    %170 = arith.addf %162, %169 : vector<2x512xf32>
    %c1_i32_114 = arith.constant 1 : i32
    %171 = arith.addi %145, %c1_i32_114 : i32
    %172 = arith.index_cast %171 : i32 to index
    %c0_115 = arith.constant 0 : index
    %c0_116 = arith.constant 0 : index
    %173 = vector.load %arg17[%172, %c0_115, %c0_116] : memref<4x4x128xbf16, #tpu.memory_space<vmem>>, vector<1x2x128xbf16>
    %174 = vector.shape_cast %173 : vector<1x2x128xbf16> to vector<2x128xbf16>
    %c3_117 = arith.constant 3 : index
    %c0_118 = arith.constant 0 : index
    %c0_119 = arith.constant 0 : index
    %175 = vector.load %arg8[%c3_117, %c0_118, %c0_119] : memref<9x128x512xbf16, #tpu.memory_space<vmem>>, vector<1x128x512xbf16>
    %176 = vector.shape_cast %175 : vector<1x128x512xbf16> to vector<128x512xbf16>
    %cst_120 = arith.constant dense<0.000000e+00> : vector<2x512xf32>
    %177 = tpu.matmul %174, %176, %cst_120 {dimension_numbers = #tpu.dot_dimension_numbers<[1], [0], [0], [1], [0, 0, 1, 1], [], []>} : vector<2x128xbf16>, vector<128x512xbf16>, vector<2x512xf32> -> vector<2x512xf32>
    %178 = arith.addf %170, %177 : vector<2x512xf32>
    %c1_i32_121 = arith.constant 1 : i32
    %179 = arith.addi %145, %c1_i32_121 : i32
    %180 = arith.index_cast %179 : i32 to index
    %c1_122 = arith.constant 1 : index
    %c0_123 = arith.constant 0 : index
    %181 = vector.load %arg17[%180, %c1_122, %c0_123] : memref<4x4x128xbf16, #tpu.memory_space<vmem>>, vector<1x2x128xbf16>
    %182 = vector.shape_cast %181 : vector<1x2x128xbf16> to vector<2x128xbf16>
    %c4_124 = arith.constant 4 : index
    %c0_125 = arith.constant 0 : index
    %c0_126 = arith.constant 0 : index
    %183 = vector.load %arg8[%c4_124, %c0_125, %c0_126] : memref<9x128x512xbf16, #tpu.memory_space<vmem>>, vector<1x128x512xbf16>
    %184 = vector.shape_cast %183 : vector<1x128x512xbf16> to vector<128x512xbf16>
    %cst_127 = arith.constant dense<0.000000e+00> : vector<2x512xf32>
    %185 = tpu.matmul %182, %184, %cst_127 {dimension_numbers = #tpu.dot_dimension_numbers<[1], [0], [0], [1], [0, 0, 1, 1], [], []>} : vector<2x128xbf16>, vector<128x512xbf16>, vector<2x512xf32> -> vector<2x512xf32>
    %186 = arith.addf %178, %185 : vector<2x512xf32>
    %c1_i32_128 = arith.constant 1 : i32
    %187 = arith.addi %145, %c1_i32_128 : i32
    %188 = arith.index_cast %187 : i32 to index
    %c2_129 = arith.constant 2 : index
    %c0_130 = arith.constant 0 : index
    %189 = vector.load %arg17[%188, %c2_129, %c0_130] : memref<4x4x128xbf16, #tpu.memory_space<vmem>>, vector<1x2x128xbf16>
    %190 = vector.shape_cast %189 : vector<1x2x128xbf16> to vector<2x128xbf16>
    %c5_131 = arith.constant 5 : index
    %c0_132 = arith.constant 0 : index
    %c0_133 = arith.constant 0 : index
    %191 = vector.load %arg8[%c5_131, %c0_132, %c0_133] : memref<9x128x512xbf16, #tpu.memory_space<vmem>>, vector<1x128x512xbf16>
    %192 = vector.shape_cast %191 : vector<1x128x512xbf16> to vector<128x512xbf16>
    %cst_134 = arith.constant dense<0.000000e+00> : vector<2x512xf32>
    %193 = tpu.matmul %190, %192, %cst_134 {dimension_numbers = #tpu.dot_dimension_numbers<[1], [0], [0], [1], [0, 0, 1, 1], [], []>} : vector<2x128xbf16>, vector<128x512xbf16>, vector<2x512xf32> -> vector<2x512xf32>
    %194 = arith.addf %186, %193 : vector<2x512xf32>
    %c2_i32_135 = arith.constant 2 : i32
    %195 = arith.addi %145, %c2_i32_135 : i32
    %196 = arith.index_cast %195 : i32 to index
    %c0_136 = arith.constant 0 : index
    %c0_137 = arith.constant 0 : index
    %197 = vector.load %arg17[%196, %c0_136, %c0_137] : memref<4x4x128xbf16, #tpu.memory_space<vmem>>, vector<1x2x128xbf16>
    %198 = vector.shape_cast %197 : vector<1x2x128xbf16> to vector<2x128xbf16>
    %c6_138 = arith.constant 6 : index
    %c0_139 = arith.constant 0 : index
    %c0_140 = arith.constant 0 : index
    %199 = vector.load %arg8[%c6_138, %c0_139, %c0_140] : memref<9x128x512xbf16, #tpu.memory_space<vmem>>, vector<1x128x512xbf16>
    %200 = vector.shape_cast %199 : vector<1x128x512xbf16> to vector<128x512xbf16>
    %cst_141 = arith.constant dense<0.000000e+00> : vector<2x512xf32>
    %201 = tpu.matmul %198, %200, %cst_141 {dimension_numbers = #tpu.dot_dimension_numbers<[1], [0], [0], [1], [0, 0, 1, 1], [], []>} : vector<2x128xbf16>, vector<128x512xbf16>, vector<2x512xf32> -> vector<2x512xf32>
    %202 = arith.addf %194, %201 : vector<2x512xf32>
    %c2_i32_142 = arith.constant 2 : i32
    %203 = arith.addi %145, %c2_i32_142 : i32
    %204 = arith.index_cast %203 : i32 to index
    %c1_143 = arith.constant 1 : index
    %c0_144 = arith.constant 0 : index
    %205 = vector.load %arg17[%204, %c1_143, %c0_144] : memref<4x4x128xbf16, #tpu.memory_space<vmem>>, vector<1x2x128xbf16>
    %206 = vector.shape_cast %205 : vector<1x2x128xbf16> to vector<2x128xbf16>
    %c7_145 = arith.constant 7 : index
    %c0_146 = arith.constant 0 : index
    %c0_147 = arith.constant 0 : index
    %207 = vector.load %arg8[%c7_145, %c0_146, %c0_147] : memref<9x128x512xbf16, #tpu.memory_space<vmem>>, vector<1x128x512xbf16>
    %208 = vector.shape_cast %207 : vector<1x128x512xbf16> to vector<128x512xbf16>
    %cst_148 = arith.constant dense<0.000000e+00> : vector<2x512xf32>
    %209 = tpu.matmul %206, %208, %cst_148 {dimension_numbers = #tpu.dot_dimension_numbers<[1], [0], [0], [1], [0, 0, 1, 1], [], []>} : vector<2x128xbf16>, vector<128x512xbf16>, vector<2x512xf32> -> vector<2x512xf32>
    %210 = arith.addf %202, %209 : vector<2x512xf32>
    %c2_i32_149 = arith.constant 2 : i32
    %211 = arith.addi %145, %c2_i32_149 : i32
    %212 = arith.index_cast %211 : i32 to index
    %c2_150 = arith.constant 2 : index
    %c0_151 = arith.constant 0 : index
    %213 = vector.load %arg17[%212, %c2_150, %c0_151] : memref<4x4x128xbf16, #tpu.memory_space<vmem>>, vector<1x2x128xbf16>
    %214 = vector.shape_cast %213 : vector<1x2x128xbf16> to vector<2x128xbf16>
    %c8_152 = arith.constant 8 : index
    %c0_153 = arith.constant 0 : index
    %c0_154 = arith.constant 0 : index
    %215 = vector.load %arg8[%c8_152, %c0_153, %c0_154] : memref<9x128x512xbf16, #tpu.memory_space<vmem>>, vector<1x128x512xbf16>
    %216 = vector.shape_cast %215 : vector<1x128x512xbf16> to vector<128x512xbf16>
    %cst_155 = arith.constant dense<0.000000e+00> : vector<2x512xf32>
    %217 = tpu.matmul %214, %216, %cst_155 {dimension_numbers = #tpu.dot_dimension_numbers<[1], [0], [0], [1], [0, 0, 1, 1], [], []>} : vector<2x128xbf16>, vector<128x512xbf16>, vector<2x512xf32> -> vector<2x512xf32>
    %218 = arith.addf %210, %217 : vector<2x512xf32>
    %c0_156 = arith.constant 0 : index
    %c0_157 = arith.constant 0 : index
    %219 = vector.load %arg9[%c0_156, %c0_157] : memref<1x512xf32, #tpu.memory_space<vmem>>, vector<1x512xf32>
    %220 = vector.broadcast %219 : vector<1x512xf32> to vector<2x512xf32>
    %221 = arith.addf %218, %220 : vector<2x512xf32>
    %cst_158 = arith.constant 0.000000e+00 : f32
    %222 = vector.broadcast %cst_158 : f32 to vector<2x512xf32>
    %223 = arith.maximumf %221, %222 : vector<2x512xf32>
    %224 = arith.maximumf %143, %223 : vector<2x512xf32>
    %cst_159 = arith.constant dense<0.000000e+00> : vector<1x512xf32>
    %225 = tpu.matmul %57, %224, %cst_159 {dimension_numbers = #tpu.dot_dimension_numbers<[1], [0], [0], [1], [0, 0, 1, 1], [], []>} : vector<1x2xf32>, vector<2x512xf32>, vector<1x512xf32> -> vector<1x512xf32>
    %cst_160 = arith.constant dense<0.000000e+00> : vector<1x512xf32>
    %226 = tpu.matmul %64, %224, %cst_160 {dimension_numbers = #tpu.dot_dimension_numbers<[1], [0], [0], [1], [0, 0, 1, 1], [], []>} : vector<1x2xf32>, vector<2x512xf32>, vector<1x512xf32> -> vector<1x512xf32>
    %227 = arith.maximumf %225, %226 : vector<1x512xf32>
    %228 = arith.truncf %227 : vector<1x512xf32> to vector<1x512xbf16>
    %c0_i32_161 = arith.constant 0 : i32
    %229 = arith.addi %c0_i32_161, %c0_i32_29 : i32
    %230 = arith.index_cast %229 : i32 to index
    %c0_162 = arith.constant 0 : index
    %c0_163 = arith.constant 0 : index
    %231 = vector.load %arg18[%230, %c0_162, %c0_163] : memref<1x1x512xbf16, #tpu.memory_space<vmem>>, vector<1x1x512xbf16>
    %232 = vector.shape_cast %231 : vector<1x1x512xbf16> to vector<1x512xbf16>
    %233 = vector.shape_cast %228 : vector<1x512xbf16> to vector<1x1x512xbf16>
    tpu.vector_store %arg18[%230, %c0_162, %c0_163], %233 {strides = array<i32>} : memref<1x1x512xbf16, #tpu.memory_space<vmem>>, vector<1x1x512xbf16>,
    %c1_i32_164 = arith.constant 1 : i32
    %c0_165 = arith.constant 0 : index
    %c0_166 = arith.constant 0 : index
    %c0_167 = arith.constant 0 : index
    %234 = vector.load %arg18[%c0_165, %c0_166, %c0_167] : memref<1x1x512xbf16, #tpu.memory_space<vmem>>, vector<1x1x512xbf16>
    %235 = vector.shape_cast %234 : vector<1x1x512xbf16> to vector<1x512xbf16>
    %c0_168 = arith.constant 0 : index
    %c0_169 = arith.constant 0 : index
    %236 = vector.load %arg10[%c0_168, %c0_169] : memref<512x512xbf16, #tpu.memory_space<vmem>>, vector<512x512xbf16>
    %cst_170 = arith.constant dense<0.000000e+00> : vector<1x512xf32>
    %237 = tpu.matmul %235, %236, %cst_170 {dimension_numbers = #tpu.dot_dimension_numbers<[1], [0], [0], [1], [0, 0, 1, 1], [], []>} : vector<1x512xbf16>, vector<512x512xbf16>, vector<1x512xf32> -> vector<1x512xf32>
    %c0_171 = arith.constant 0 : index
    %c0_172 = arith.constant 0 : index
    %238 = vector.load %arg11[%c0_171, %c0_172] : memref<1x512xf32, #tpu.memory_space<vmem>>, vector<1x512xf32>
    %239 = arith.addf %237, %238 : vector<1x512xf32>
    %cst_173 = arith.constant 0.000000e+00 : f32
    %240 = vector.broadcast %cst_173 : f32 to vector<1x512xf32>
    %241 = arith.maximumf %239, %240 : vector<1x512xf32>
    %242 = arith.truncf %241 : vector<1x512xf32> to vector<1x512xbf16>
    %c0_174 = arith.constant 0 : index
    %c0_175 = arith.constant 0 : index
    %243 = vector.load %arg12[%c0_174, %c0_175] : memref<512x128xbf16, #tpu.memory_space<vmem>>, vector<512x128xbf16>
    %cst_176 = arith.constant dense<0.000000e+00> : vector<1x128xf32>
    %244 = tpu.matmul %242, %243, %cst_176 {dimension_numbers = #tpu.dot_dimension_numbers<[1], [0], [0], [1], [0, 0, 1, 1], [], []>} : vector<1x512xbf16>, vector<512x128xbf16>, vector<1x128xf32> -> vector<1x128xf32>
    %c0_177 = arith.constant 0 : index
    %c0_178 = arith.constant 0 : index
    %245 = vector.load %arg13[%c0_177, %c0_178] : memref<1x128xf32, #tpu.memory_space<vmem>>, vector<1x128xf32>
    %246 = arith.addf %244, %245 : vector<1x128xf32>
    %c0_179 = arith.constant 0 : index
    %c0_180 = arith.constant 0 : index
    %c0_181 = arith.constant 0 : index
    %247 = vector.load %arg14[%c0_179, %c0_180, %c0_181] : memref<1x1x128xf32, #tpu.memory_space<vmem>>, vector<1x1x128xf32>
    %248 = vector.shape_cast %247 : vector<1x1x128xf32> to vector<1x128xf32>
    %249 = vector.shape_cast %246 : vector<1x128xf32> to vector<1x1x128xf32>
    tpu.vector_store %arg14[%c0_179, %c0_180, %c0_181], %249 {strides = array<i32>} : memref<1x1x128xf32, #tpu.memory_space<vmem>>, vector<1x1x128xf32>,
    return
  }
  func.func @transform_0(%arg0: i32) -> (i32, i32, i32, i32) {
    %c0_i32 = arith.constant 0 : i32
    %c0_i32_0 = arith.constant 0 : i32
    %c0_i32_1 = arith.constant 0 : i32
    %c0_i32_2 = arith.constant 0 : i32
    return %arg0, %c0_i32, %c0_i32_0, %c0_i32_1 : i32, i32, i32, i32
  }
  func.func @transform_1(%arg0: i32) -> (i32, i32, i32) {
    %c0_i32 = arith.constant 0 : i32
    %c0_i32_0 = arith.constant 0 : i32
    %c0_i32_1 = arith.constant 0 : i32
    %c0_i32_2 = arith.constant 0 : i32
    return %c0_i32, %c0_i32_0, %c0_i32_1 : i32, i32, i32
  }
  func.func @transform_2(%arg0: i32) -> (i32, i32) {
    %c0_i32 = arith.constant 0 : i32
    %c0_i32_0 = arith.constant 0 : i32
    %c0_i32_1 = arith.constant 0 : i32
    return %c0_i32, %c0_i32_0 : i32, i32
  }
  func.func @transform_3(%arg0: i32) -> (i32, i32, i32) {
    %c0_i32 = arith.constant 0 : i32
    %c0_i32_0 = arith.constant 0 : i32
    %c0_i32_1 = arith.constant 0 : i32
    %c0_i32_2 = arith.constant 0 : i32
    return %c0_i32, %c0_i32_0, %c0_i32_1 : i32, i32, i32
  }
  func.func @transform_4(%arg0: i32) -> (i32, i32) {
    %c0_i32 = arith.constant 0 : i32
    %c0_i32_0 = arith.constant 0 : i32
    %c0_i32_1 = arith.constant 0 : i32
    return %c0_i32, %c0_i32_0 : i32, i32
  }
  func.func @transform_5(%arg0: i32) -> (i32, i32, i32) {
    %c0_i32 = arith.constant 0 : i32
    %c0_i32_0 = arith.constant 0 : i32
    %c0_i32_1 = arith.constant 0 : i32
    %c0_i32_2 = arith.constant 0 : i32
    return %c0_i32, %c0_i32_0, %c0_i32_1 : i32, i32, i32
  }
  func.func @transform_6(%arg0: i32) -> (i32, i32) {
    %c0_i32 = arith.constant 0 : i32
    %c0_i32_0 = arith.constant 0 : i32
    %c0_i32_1 = arith.constant 0 : i32
    return %c0_i32, %c0_i32_0 : i32, i32
  }
  func.func @transform_7(%arg0: i32) -> (i32, i32, i32) {
    %c0_i32 = arith.constant 0 : i32
    %c0_i32_0 = arith.constant 0 : i32
    %c0_i32_1 = arith.constant 0 : i32
    %c0_i32_2 = arith.constant 0 : i32
    return %c0_i32, %c0_i32_0, %c0_i32_1 : i32, i32, i32
  }
  func.func @transform_8(%arg0: i32) -> (i32, i32) {
    %c0_i32 = arith.constant 0 : i32
    %c0_i32_0 = arith.constant 0 : i32
    %c0_i32_1 = arith.constant 0 : i32
    return %c0_i32, %c0_i32_0 : i32, i32
  }
  func.func @transform_9(%arg0: i32) -> (i32, i32) {
    %c0_i32 = arith.constant 0 : i32
    %c0_i32_0 = arith.constant 0 : i32
    %c0_i32_1 = arith.constant 0 : i32
    return %c0_i32, %c0_i32_0 : i32, i32
  }
  func.func @transform_10(%arg0: i32) -> (i32, i32) {
    %c0_i32 = arith.constant 0 : i32
    %c0_i32_0 = arith.constant 0 : i32
    %c0_i32_1 = arith.constant 0 : i32
    return %c0_i32, %c0_i32_0 : i32, i32
  }
  func.func @transform_11(%arg0: i32) -> (i32, i32) {
    %c0_i32 = arith.constant 0 : i32
    %c0_i32_0 = arith.constant 0 : i32
    %c0_i32_1 = arith.constant 0 : i32
    return %c0_i32, %c0_i32_0 : i32, i32
  }
  func.func @transform_12(%arg0: i32) -> (i32, i32) {
    %c0_i32 = arith.constant 0 : i32
    %c0_i32_0 = arith.constant 0 : i32
    %c0_i32_1 = arith.constant 0 : i32
    return %c0_i32, %c0_i32_0 : i32, i32
  }
  func.func @transform_13(%arg0: i32) -> (i32, i32, i32) {
    %c0_i32 = arith.constant 0 : i32
    %c0_i32_0 = arith.constant 0 : i32
    %c0_i32_1 = arith.constant 0 : i32
    return %arg0, %c0_i32, %c0_i32_0 : i32, i32, i32
  }
}

</mosaic_0001>

<bundles_post_ra>
// kernel: vgg_forward.1
= control target key start
LH: loop header
LB: loop body
LE: loop exit
PB: predicated region body
PF: predicated region fallthrough
CT: control target
= control target key end

     0   :  { %s15305_s0 = inlined_call_operand.vmem [shape: bf16[2,18,18,128], index: 0, kind: input, shape index: {}]   ;;  %s15306_s1 = inlined_call_operand.hbm [shape: bf16[9,128,128], index: 1, kind: input, shape index: {}]   ;;  %s15307_s2 = inlined_call_operand.hbm [shape: f32[1,128], index: 2, kind: input, shape index: {}]   ;;  %s15308_s3 = inlined_call_operand.hbm [shape: bf16[9,128,128], index: 3, kind: input, shape index: {}]   ;;  %s15309_s4 = inlined_call_operand.hbm [shape: f32[1,128], index: 4, kind: input, shape index: {}]   ;;  %s15310_s5 = inlined_call_operand.hbm [shape: bf16[9,128,128], index: 5, kind: input, shape index: {}]   ;;  %s15311_s6 = inlined_call_operand.hbm [shape: f32[1,128], index: 6, kind: input, shape index: {}]   ;;  %s15312_s7 = inlined_call_operand.hbm [shape: bf16[9,128,512], index: 7, kind: input, shape index: {}]   ;;  %s15313_s8 = inlined_call_operand.hbm [shape: f32[1,512], index: 8, kind: input, shape index: {}]   ;;  %s15314_s9 = inlined_call_operand.hbm [shape: bf16[512,512], index: 9, kind: input, shape index: {}]   ;;  %s15315_s10 = inlined_call_operand.hbm [shape: f32[1,512], index: 10, kind: input, shape index: {}]   ;;  %s15316_s11 = inlined_call_operand.hbm [shape: bf16[512,128], index: 11, kind: input, shape index: {}]   ;;  %s15317_s12 = inlined_call_operand.hbm [shape: f32[1,128], index: 12, kind: input, shape index: {}]   ;;  %s15318_s13 = inlined_call_operand.hbm [shape: f32[2,1,128], index: 13, kind: output, shape index: {}]  }
   0x1   :  { %15621 = sst [smem:[#allocation334_spill]] %s15306_s1 }
   0x2   :  { %15622 = sst [smem:[#allocation335_spill]] %s15307_s2 }
   0x3   :  { %15623 = sst [smem:[#allocation336_spill]] %s15308_s3 }
   0x4   :  { %15624 = sst [smem:[#allocation337_spill]] %s15309_s4 }
   0x5   :  { %15625 = sst [smem:[#allocation338_spill]] %s15311_s6 }
   0x6   :  { %18 = vsyncpa [#allocation7], 0 }
   0x7   :  { %19 = vsyncpa [#allocation10], 0 }
   0x8   :  { %20 = vsyncpa [#allocation13], 0 }
   0x9   :  { %21 = vsyncpa [#allocation16], 0 }
   0xa   :  { %22 = vsyncpa [#allocation19], 0 }
   0xb   :  { %23 = vsyncpa [#allocation22], 0 }
   0xc   :  { %24 = vsyncpa [#allocation25], 0 }
   0xd   :  { %25 = vsyncpa [#allocation8], 0 }
   0xe   :  { %27 = vsyncpa [#allocation8 + $0x1], 0  ;;  %s12732_s25 = smov 0   ;;  %s12734_s26 = smov 0  }
   0xf   :  { %s12736_s27 = smov 0   ;;  %s12738_s28 = smov 0  }
  0x10 LB: > { %15626 = sst [smem:[#allocation35_spill]] %s12618_s25  ;;  %s12753_s29 = sadd.s32 4294967295, %s12630_s28   ;;  %s12630_s28 = sphi %s12738_s28, %s16242_s28   ;;  %s12626_s27 = sphi %s12736_s27, %s16244_s27   ;;  %s12622_s26 = sphi %s12734_s26, %s16246_s26   ;;  %s12618_s25 = sphi %s12732_s25, %s16245_s25  }
  0x11   : > { %15627 = sst [smem:[#allocation36_spill]] %s12626_s27  ;;  %s8474_s30 = sadd.s32 4294967294, %s12630_s28  }
  0x12   : > { %s12757_s14 = sadd.s32 1, %s12630_s28   ;;  %s318_s15 = sadd.s32 1, %s12626_s27 }
  0x13   : > { %15628 = sst [smem:[#allocation37_spill]] %s12757_s14  ;;  %s315_s16 = ssub.s32 %s12630_s28, %s12757_s14 }
  0x14   : > { %p328_p0 = scmp.ne.s32.totalorder %s12626_s27, %s12622_s26  ;;  %p316_p1 = scmp.eq.s32.totalorder %s315_s16, 0 }
  0x15   : > { %p329_p2 = scmp.eq.s32.totalorder %s12753_s29, 1  ;;  %p334_p3 = scmp.ne.s32.totalorder %s12622_s26, %s12618_s25 }
  0x16   : > { %p335_p4 = scmp.eq.s32.totalorder %s8474_s30, 1  ;;  %p8475_p7 = scmp.ge.s32.totalorder %s12630_s28, 1 }
  0x17   : > { %s12768_s17 = scalar_select %p316_p1, %s12626_s27, %s318_s15  }
  0x18   : > { %p12770_p5 = por %p329_p2, %p328_p0  ;;  %p12774_p6 = por %p335_p4, %p334_p3 }
  0x19   : > { %15629 = sst [smem:[#allocation38_spill]] %s12768_s17  ;;  %p342_p8 = scmp.lt.s32.totalorder %s12630_s28, 3 }
  0x1a   : > { %s15631_s19 = scalar_select %p12774_p6, 1, 0 }
  0x1b   : > { %p12059_p9 = scmp.eq.s32.totalorder %s12753_s29, 0  ;;  %p12781_p10 = pnand %p8475_p7, %p342_p8 }
  0x1c   : > { %15632 = sst [smem:[#allocation39_spill]] %s15631_s19  ;;  %s12644_s24 = smov [#allocation9]  }
  0x1d   : > { %s15634_s2 = sld [smem:[#allocation335_spill]]  ;;  %p12018_p11 = pneg %p12781_p10 }
  0x1e   : > { %s370_s30 = sshll.u32 %s12644_s24, 4  ;;  %s15635_s4 = sld [smem:[#allocation337_spill]]  ;;  %s371_s30 = int_to_ptr.vmem [resolvable:$true] %s370_s30 }
  0x1f   : > { %p12795_p12 = pnand %p12059_p9, %p12018_p11  ;;  %s15637_s6 = sld [smem:[#allocation338_spill]] }
  0x20   : > { %s12645_s14 = smov [#allocation12]   ;;  %s12646_s19 = smov [#allocation15]  }
  0x21   : > { %s396_s24 = sshll.u32 %s12645_s14, 4  ;;  %s422_s25 = sshll.u32 %s12646_s19, 4  ;;  %s397_s24 = int_to_ptr.vmem [resolvable:$true] %s396_s24  ;;  %s423_s25 = int_to_ptr.vmem [resolvable:$true] %s422_s25 }
  0x22   : > { %s12647_s21 = smov [#allocation18]   ;;  %s15638_s1 = sld [smem:[#allocation334_spill]] }
  0x23   : > { %s368_s23 = sshll.u32 %s15634_s2, 4  ;;  %s448_s14 = sshll.u32 %s12647_s21, 4  ;;  %s369_s23 = int_to_ptr.hbm [resolvable:$true] %s368_s23  ;;  %s449_s14 = int_to_ptr.vmem [resolvable:$true] %s448_s14 }
  0x24   : > { %s394_s17 = sshll.u32 %s15635_s4, 4  ;;  %s446_s4 = sshll.u32 %s15313_s8, 4  ;;  %s395_s17 = int_to_ptr.hbm [resolvable:$true] %s394_s17  ;;  %s447_s4 = int_to_ptr.hbm [resolvable:$true] %s446_s4 }
  0x25   : > { %s420_s2 = sshll.u32 %s15637_s6, 4  ;;  %s12648_s19 = smov [#allocation21]   ;;  %s421_s2 = int_to_ptr.hbm [resolvable:$true] %s420_s2 }
  0x26   : > { %12024 = dma.hbm_to_vmem [thread:$0]  (!%p12795_p12), %s369_s23, 16, %s371_s30, [#allocation10]  }
  0x27   : > { %12030 = dma.hbm_to_vmem [thread:$0]  (!%p12795_p12), %s395_s17, 16, %s397_s24, [#allocation13]  }
  0x28   : > { %12036 = dma.hbm_to_vmem [thread:$0]  (!%p12795_p12), %s421_s2, 16, %s423_s25, [#allocation16]  }
  0x29   : > { %s472_s23 = sshll.u32 %s15315_s10, 4  ;;  %s353_s24 = sshll.u32 %s15638_s1, 4  ;;  %s473_s23 = int_to_ptr.hbm [resolvable:$true] %s472_s23  ;;  %s354_s24 = int_to_ptr.hbm [resolvable:$true] %s353_s24 }
  0x2a   : > { %12042 = dma.hbm_to_vmem [thread:$0]  (!%p12795_p12), %s447_s4, 64, %s449_s14, [#allocation19]  }
  0x2b   : > { %s474_s15 = sshll.u32 %s12648_s19, 4  ;;  %s12649_s2 = smov [#allocation6]   ;;  %s475_s15 = int_to_ptr.vmem [resolvable:$true] %s474_s15 }
  0x2c   : > { %12048 = dma.hbm_to_vmem [thread:$0]  (!%p12795_p12), %s473_s23, 64, %s475_s15, [#allocation22]  }
  0x2d   : > { %s355_s25 = sshll.u32 %s12649_s2, 4  ;;  %s15324_s6 = smov 64   ;;  %s356_s25 = int_to_ptr.vmem [resolvable:$true] %s355_s25 }
  0x2e   : > { %s12651_s16 = smov 4   ;;  %s15639_s3 = sld [smem:[#allocation336_spill]] }
  0x2f   : > { %12021 = dma.hbm_to_vmem [thread:$0]  (!%p12795_p12), %s354_s24, 9216, %s356_s25, [#allocation7], %s15324_s6, %s15324_s6, %s12651_s16  }
  0x30   : > { %s12652_s22 = smov [#allocation11]   ;;  %s405_s19 = sshll.u32 %s15310_s5, 4  ;;  %s406_s19 = int_to_ptr.hbm [resolvable:$true] %s405_s19 }
  0x31   : > { %s381_s17 = sshll.u32 %s12652_s22, 4  ;;  %s12653_s24 = smov [#allocation14]   ;;  %s382_s17 = int_to_ptr.vmem [resolvable:$true] %s381_s17 }
  0x32   : > { %s407_s15 = sshll.u32 %s12653_s24, 4  ;;  %s431_s4 = sshll.u32 %s15312_s7, 4  ;;  %s408_s15 = int_to_ptr.vmem [resolvable:$true] %s407_s15  ;;  %s432_s4 = int_to_ptr.hbm [resolvable:$true] %s431_s4 }
  0x33   : > { %12033 = dma.hbm_to_vmem [thread:$0]  (!%p12795_p12), %s406_s19, 9216, %s408_s15, [#allocation13], %s15324_s6, %s15324_s6, %s12651_s16  }
  0x34   : > { %s379_s14 = sshll.u32 %s15639_s3, 4  ;;  %s12654_s21 = smov [#allocation17]   ;;  %s380_s14 = int_to_ptr.hbm [resolvable:$true] %s379_s14 }
  0x35   : > { %12027 = dma.hbm_to_vmem [thread:$0]  (!%p12795_p12), %s380_s14, 9216, %s382_s17, [#allocation10], %s15324_s6, %s15324_s6, %s12651_s16  }
  0x36   : > { %s433_s22 = sshll.u32 %s12654_s21, 4  ;;  %s457_s17 = sshll.u32 %s15314_s9, 4  ;;  %s434_s22 = int_to_ptr.vmem [resolvable:$true] %s433_s22  ;;  %s458_s17 = int_to_ptr.hbm [resolvable:$true] %s457_s17 }
  0x37   : > { %s12655_s30 = smov 256   ;;  %s12656_s24 = smov 16  }
  0x38   : > { %12039 = dma.hbm_to_vmem [thread:$0]  (!%p12795_p12), %s432_s4, 36864, %s434_s22, [#allocation16], %s12655_s30, %s12655_s30, %s12656_s24  }
  0x39   : > { %s12657_s2 = smov [#allocation20]   ;;  %s483_s19 = sshll.u32 %s15316_s11, 4  ;;  %s484_s19 = int_to_ptr.hbm [resolvable:$true] %s483_s19 }
  0x3a   : > { %s459_s25 = sshll.u32 %s12657_s2, 4  ;;  %s498_s23 = sshll.u32 %s15317_s12, 4  ;;  %s460_s25 = int_to_ptr.vmem [resolvable:$true] %s459_s25  ;;  %s499_s23 = int_to_ptr.hbm [resolvable:$true] %s498_s23 }
  0x3b   : > { %12045 = dma.hbm_to_vmem [thread:$0]  (!%p12795_p12), %s458_s17, 16384, %s460_s25, [#allocation19], %s12655_s30, %s12655_s30, %s12656_s24  }
  0x3c   : > { %s12658_s14 = smov [#allocation23]   ;;  %s15640_s4 = smov 64  }
  0x3d   : > { %s485_s6 = sshll.u32 %s12658_s14, 4  ;;  %s12659_s22 = smov [#allocation24]   ;;  %s486_s6 = int_to_ptr.vmem [resolvable:$true] %s485_s6 }
  0x3e   : > { %12051 = dma.hbm_to_vmem [thread:$0]  (!%p12795_p12), %s484_s19, 4096, %s486_s6, [#allocation22], %s15640_s4, %s15640_s4, %s12651_s16  }
  0x3f   : > { %s500_s1 = sshll.u32 %s12659_s22, 4  ;;  %521 = sbr.rel (%p12781_p10) target bundleno = 2662 (0xa66), region = 72  ;;  %s501_s1 = int_to_ptr.vmem [resolvable:$true] %s500_s1 }
  0x40   : > { %12054 = dma.hbm_to_vmem [thread:$0]  (!%p12795_p12), %s499_s23, 16, %s501_s1, [#allocation25]  }
  0x44   : > { %12585 = dma.done.wait (%p12059_p9), [#allocation7], 9216  }
  0x45   : > { %12587 = vsyncadd (%p12059_p9), [#allocation7], 4294958080 }
  0x46   : > { %12589 = dma.done.wait (%p12059_p9), [#allocation10], 9232  }
  0x47   : > { %12591 = vsyncadd (%p12059_p9), [#allocation10], 4294958064 }
  0x48   : > { %12593 = dma.done.wait (%p12059_p9), [#allocation13], 9232  }
  0x49   : > { %12595 = vsyncadd (%p12059_p9), [#allocation13], 4294958064 }
  0x4a   : > { %12597 = dma.done.wait (%p12059_p9), [#allocation16], 36880  }
  0x4b   : > { %12599 = vsyncadd (%p12059_p9), [#allocation16], 4294930416 }
  0x4c   : > { %12601 = dma.done.wait (%p12059_p9), [#allocation19], 16448  }
  0x4d   : > { %12603 = vsyncadd (%p12059_p9), [#allocation19], 4294950848 }
  0x4e   : > { %12605 = dma.done.wait (%p12059_p9), [#allocation22], 4160  }
  0x4f   : > { %12607 = vsyncadd (%p12059_p9), [#allocation22], 4294963136 }
  0x50   : > { %12609 = dma.done.wait (%p12059_p9), [#allocation25], 16  }
  0x51   : > { %12611 = vsyncadd (%p12059_p9), [#allocation25], 4294967280  ;;  %s618_s3 = sand.u32 1, %s12622_s26   ;;  %p620_p13 = scmp.lt.s32.totalorder %s12753_s29, 1  ;;  %v656_v0 = vlaneseq  ;;  %v12660_v1 = vmov 0   ;;  %v12661_v6 = vmov 0.0  }
  0x52   : > { %626 = vst [vmem:[#allocation2] sm:$0xf] %v12660_v1  ;;  %s12909_s30 = scalar_lea.vmem [#allocation26], %s618_s3  ;;  %s12911_s24 = smov 0  }
  0x53   : > { %s621_s27 = scalar_select %p620_p13, %s12753_s29, 1  ;;  %627 = vst [vmem:[#allocation2 + $0x4] sm:$0x1] %v12660_v1  ;;  %v657_v2 = vshrl.u32 %v656_v0, 7  ;;  %v659_v3 = vand.u32 127, %v656_v0 }
  0x54   : > { %628 = vst [vmem:[#allocation2 + $0x8] sm:$0xf] %v12660_v1 }
  0x55   : > { %s11967_s20 = smul.u32 216, %s621_s27  ;;  %629 = vst [vmem:[#allocation2 + $0xc] sm:$0x1] %v12660_v1  ;;  %v660_v4 = vmul.u32 2, %v657_v2 }
  0x56   : > { %630 = vst [vmem:[#allocation2 + $0x10] sm:$0xf] %v12660_v1 }
  0x57   : > { %s12901_s17 = scalar_lea.vmem %s15305_s0, %s11967_s20  ;;  %631 = vst [vmem:[#allocation2 + $0x14] sm:$0x1] %v12660_v1  ;;  %vm661_vm0 = vcmp.eq.s32.totalorder %v659_v3, %v660_v4  ;;  %v664_v5 = vadd.s32 1, %v660_v4 }
  0x58   : > { %632 = vst [vmem:[#allocation2 + $0x18] sm:$0xf] %v12660_v1  ;;  %v12903_v7 = vsel %vm661_vm0, 1.0, %v12661_v6 }
  0x59   : > { %15641 = vst [vmem:[#allocation40_spill] sm:$0xff] %v12903_v7  ;;  %vm665_vm1 = vcmp.eq.s32.totalorder %v659_v3, %v664_v5 }
  0x5a   : > { %633 = vst [vmem:[#allocation2 + $0x1c] sm:$0x1] %v12660_v1  ;;  %v12905_v8 = vsel %vm665_vm1, 1.0, %v12661_v6 }
  0x5b   : > { %634 = vst [vmem:[#allocation2 + $0x20] sm:$0xf] %v12660_v1 }
  0x5c   : > { %15642 = vst [vmem:[#allocation41_spill] sm:$0xff] %v12905_v8 }
  0x5d   : > { %635 = vst [vmem:[#allocation2 + $0x24] sm:$0x1] %v12660_v1 }
  0x5e   : > { %636 = vst [vmem:[#allocation2 + $0x28] sm:$0xf] %v12660_v1 }
  0x5f   : > { %637 = vst [vmem:[#allocation2 + $0x2c] sm:$0x1] %v12660_v1 }
  0x60   : > { %638 = vst [vmem:[#allocation2 + $0x30] sm:$0xf] %v12660_v1 }
  0x61   : > { %639 = vst [vmem:[#allocation2 + $0x34] sm:$0x1] %v12660_v1 }
  0x62   : > { %640 = vst [vmem:[#allocation2 + $0x38] sm:$0xf] %v12660_v1 }
  0x63   : > { %641 = vst [vmem:[#allocation2 + $0x3c] sm:$0x1] %v12660_v1 }
  0x64   : > { %642 = vst [vmem:[#allocation2 + $0x40] sm:$0xf] %v12660_v1 }
  0x65   : > { %643 = vst [vmem:[#allocation2 + $0x44] sm:$0x1] %v12660_v1 }
  0x66   : > { %644 = vst [vmem:[#allocation2 + $0x48] sm:$0xf] %v12660_v1 }
  0x67   : > { %645 = vst [vmem:[#allocation2 + $0x4c] sm:$0x1] %v12660_v1 }
  0x68   : > { %646 = vst [vmem:[#allocation3] sm:$0x7] %v12660_v1 }
  0x69   : > { %647 = vst [vmem:[#allocation3 + $0x4] sm:$0x7] %v12660_v1 }
  0x6a   : > { %648 = vst [vmem:[#allocation3 + $0x8] sm:$0x7] %v12660_v1 }
  0x6b   : > { %649 = vst [vmem:[#allocation3 + $0xc] sm:$0x7] %v12660_v1 }
  0x6c   : > { %650 = vst [vmem:[#allocation3 + $0x10] sm:$0x7] %v12660_v1 }
  0x6d   : > { %651 = vst [vmem:[#allocation3 + $0x14] sm:$0x7] %v12660_v1 }
  0x6e   : > { %652 = vst [vmem:[#allocation4] sm:$0x3] %v12660_v1 }
  0x6f   : > { %653 = vst [vmem:[#allocation4 + $0x2] sm:$0x3] %v12660_v1 }
  0x70   : > { %654 = vst [vmem:[#allocation4 + $0x4] sm:$0x3] %v12660_v1 }
  0x71   : > { %655 = vst [vmem:[#allocation4 + $0x6] sm:$0x3] %v12660_v1 }
  0x72 LB: >> { %v12916_v9 = vld [vmem:[#allocation6 + $0x78] sm:$0xff]  ;;  %v12926_v13 = vld [vmem:[#allocation6 + $0x70] sm:$0xff]  ;;  %v12938_v17 = vld [vmem:[#allocation6 + $0x68] sm:$0xff]  ;;  %s11275_s2 = smul.u32 24, %s12634_s24  ;;  %vm722_vm2 = vsmask.f32 7424  ;;  %s12634_s24 = sphi %s12911_s24, %s673_s24  }
  0x73   : >> { %v12918_v10 = vld [vmem:[#allocation6 + $0x38] sm:$0xff]  ;;  %784 = vmatpush.bf16.msra.mxu0 %v12916_v9  ;;  %v12928_v14 = vld [vmem:[#allocation6 + $0x30] sm:$0xff]  ;;  %v12940_v18 = vld [vmem:[#allocation6 + $0x28] sm:$0xff]  ;;  %vm882_vm3 = vcmask 1046528   ;;  %vm1723_vm4 = vcmask 130048   ;;  %s8834_s19 = sshll.u32 %s12634_s24, 3 }
  0x74   : >> { %v12920_v11 = vld [vmem:[#allocation6 + $0xb8] sm:$0xff]  ;;  %847 = vmatpush.bf16.msra.mxu1 %v12918_v10  ;;  %v12932_v15 = vld [vmem:[#allocation6 + $0xb0] sm:$0xff]  ;;  %v12944_v19 = vld [vmem:[#allocation6 + $0xa8] sm:$0xff]  ;;  %s12962_s25 = scalar_lea.vmem %s12901_s17, %s11275_s2  ;;  %vm1786_vm5 = vcmask 1043456   ;;  %vm1787_vm6 = vsmask.f32 7938 }
  0x75   : >> { %v12922_v12 = vld [vmem:[#allocation6 + $0xf8] sm:$0xff]  ;;  %935 = vmatpush.bf16.msra.mxu2 %v12920_v11  ;;  %v12934_v16 = vld [vmem:[#allocation6 + $0xf0] sm:$0xff]  ;;  %v12946_v20 = vld [vmem:[#allocation6 + $0xe8] sm:$0xff]  ;;  %vm1792_vm7 = vcmask 1040384   ;;  %vm1793_vm8 = vsmask.f32 256 }
  0x76   : >> { %1028 = vmatpush.bf16.msra.mxu3 %v12922_v12  ;;  %v12951_v21 = vld [vmem:[#allocation6 + $0x60] sm:$0xff]  ;;  %v12966_v25 = vld [vmem:[#allocation6 + $0x58] sm:$0xff]  ;;  %v696_v30 = vld [vmem:[%s12962_s25 + $0x8] sm:$0x1]  ;;  %s8289_s15 = scalar_lea.vmem [#allocation2], %s8834_s19  ;;  %s673_s24 = sadd.s32 1, %s12634_s24  }
  0x77   : >> { %785 = vmatpush.bf16.msra.mxu0 %v12926_v13  ;;  %v12953_v22 = vld [vmem:[#allocation6 + $0x20] sm:$0xff]  ;;  %v12968_v26 = vld [vmem:[#allocation6 + $0x18] sm:$0xff]  ;;  %v719_v31 = vunpack.c.l.b16 %v696_v30  ;;  %v12982_v32 = vld [vmem:[#allocation6 + $0x50] sm:$0xff]  ;;  %p670_p0 = scmp.ge.s32.totalorder %s673_s24, 8  }
  0x78   : >> { %848 = vmatpush.bf16.msra.mxu1 %v12928_v14  ;;  %v12957_v23 = vld [vmem:[#allocation6 + $0xa0] sm:$0xff]  ;;  %v12972_v27 = vld [vmem:[#allocation6 + $0x98] sm:$0xff]  ;;  %v12984_v33 = vld [vmem:[#allocation6 + $0x10] sm:$0xff]  ;;  %s13270_s21 = smov (%p670_p0), 0  }
  0x79   : >> { %936 = vmatpush.bf16.msra.mxu2 %v12932_v15  ;;  %v12959_v24 = vld [vmem:[#allocation6 + $0xe0] sm:$0xff]  ;;  %v12974_v28 = vld [vmem:[#allocation6 + $0xd8] sm:$0xff]  ;;  %v12989_v35 = vld [vmem:[#allocation6 + $0x90] sm:$0xff]  ;;  %v721_v37 = vpack.c.b16 %v719_v31, %v719_v31 }
  0x7a   : >> { %1029 = vmatpush.bf16.msra.mxu3 %v12934_v16  ;;  %15643 = vst [vmem:[#allocation42_spill] sm:$0xff] %v12974_v28  ;;  %v12977_v29 = vld [vmem:[%s12962_s25] sm:$0xff]   ;;  %v12991_v36 = vld [vmem:[#allocation6 + $0xd0] sm:$0xff]  ;;  %v13018_v53 = vld [vmem:[#allocation6 + $0x138] sm:$0xff] }
  0x7b   : >> { %786 = vmatpush.bf16.msra.mxu0 %v12938_v17  ;;  %v726_v34 = vshll.u32 %v12977_v29, 16  ;;  %15644 = vst [vmem:[#allocation43_spill] sm:$0xff] %v12991_v36  ;;  %v11960_v38 = vld [vmem:[%s12962_s25] sm:$0xf0]  ;;  %v11961_v39 = vld [vmem:[%s12962_s25] sm:$0xe]  ;;  %vm1788_vm9 = vmand %vm1786_vm5, %vm1787_vm6 }
  0x7c   : >> { %849 = vmatpush.bf16.msra.mxu1 %v12940_v18  ;;  %v12997_v40 = vld [vmem:[#allocation6 + $0x48] sm:$0xff]  ;;  %v724_v42 = vshrl.u32 %v12977_v29, 16  ;;  %v731_v44 = vshll.u32 %v721_v37, 16  ;;  %v11962_v47 = vor.u32 %v11961_v39, %v11960_v38  ;;  %v13010_v48 = vld [vmem:[#allocation6 + $0x40] sm:$0xff]  ;;  %v884_v55 = vrot.slane %v721_v37, 1  ;;  %v13020_v56 = vld [vmem:[#allocation6 + $0x178] sm:$0xff] }
  0x7d   : >> { %937 = vmatpush.bf16.msra.mxu2 %v12944_v19  ;;  %v12999_v41 = vld [vmem:[#allocation6 + $0x8] sm:$0xff]  ;;  %v728_v43 = vrot.slane %v726_v34, 1  ;;  %v13012_v49 = vld [vmem:[#allocation6] sm:$0xff]  ;;  %v13022_v57 = vld [vmem:[#allocation6 + $0x1b8] sm:$0xff] }
  0x7e   : >> { %1030 = vmatpush.bf16.msra.mxu3 %v12946_v20  ;;  %v13004_v45 = vld [vmem:[#allocation6 + $0x88] sm:$0xff]  ;;  %v733_v51 = vrot.slane %v731_v44, 1  ;;  %v13016_v52 = vld [vmem:[#allocation6 + $0x80] sm:$0xff]  ;;  %v883_v54 = vrot.slane %v11962_v47, 1  ;;  %v13028_v59 = vld [vmem:[#allocation6 + $0x1f8] sm:$0xff] }
  0x7f   : >> { %787 = vmatpush.bf16.msra.mxu0 %v12951_v21  ;;  %v13006_v46 = vld [vmem:[#allocation6 + $0xc8] sm:$0xff]  ;;  %v729_v50 = vor.u32 %v728_v43, %v724_v42  ;;  %v13024_v58 = vld [vmem:[#allocation6 + $0xc0] sm:$0xff]  ;;  %15647 = vst [vmem:[#allocation46_spill] sm:$0xff] %v13028_v59  ;;  %v13033_v61 = vld [vmem:[#allocation6 + $0x130] sm:$0xff] }
  0x80   : >> { %850 = vmatpush.bf16.msra.mxu1 %v12953_v22  ;;  %15645 = vst [vmem:[#allocation44_spill] sm:$0xff] %v13006_v46  ;;  %v885_v62 = vsel %vm882_vm3, %v883_v54, %v884_v55  ;;  %v13038_v63 = vld [vmem:[#allocation6 + $0x170] sm:$0xff]  ;;  %v13050_v3 = vld [vmem:[#allocation6 + $0x128] sm:$0xff]  ;;  %v13070_v34 = vld [vmem:[#allocation6 + $0x160] sm:$0xff] }
  0x81   : >> { %938 = vmatpush.bf16.msra.mxu2 %v12957_v23  ;;  %15646 = vst [vmem:[#allocation45_spill] sm:$0xff] %v13024_v58  ;;  %v734_v60 = vsel %vm722_vm2, %v729_v50, %v733_v51  ;;  %v13040_v0 = vld [vmem:[#allocation6 + $0x1b0] sm:$0xff]  ;;  %v13055_v4 = vld [vmem:[#allocation6 + $0x168] sm:$0xff]  ;;  %v13072_v37 = vld [vmem:[#allocation6 + $0x1a0] sm:$0xff] }
  0x82   : >> { %1031 = vmatpush.bf16.msra.mxu3 %v12959_v24  ;;  %v13044_v1 = vld [vmem:[%s12962_s25 + $0xc] sm:$0xff]  ;;  %v13057_v5 = vld [vmem:[#allocation6 + $0x1a8] sm:$0xff]  ;;  %v8646_v38 = vld [vmem:[%s12962_s25 + $0x14] sm:$0x1] }
  0x83   : >> { %788 = vmatpush.bf16.msra.mxu0 %v12966_v25  ;;  %v13047_v2 = vld [vmem:[#allocation6 + $0x1f0] sm:$0xff]  ;;  %v13063_v31 = vld [vmem:[#allocation6 + $0x1e8] sm:$0xff]  ;;  %v13076_v39 = vld [vmem:[#allocation6 + $0x1e0] sm:$0xff]  ;;  %v1069_v50 = vunpack.c.l.b16 %v8646_v38 }
  0x84   : >> { %851 = vmatpush.bf16.msra.mxu1 %v12968_v26  ;;  %15648 = vst [vmem:[#allocation47_spill] sm:$0xff] %v13047_v2  ;;  %v8644_v6 = vld [vmem:[%s12962_s25 + $0xc] sm:$0xff]   ;;  %v13079_v42 = vld [vmem:[#allocation6 + $0x118] sm:$0xff]  ;;  %v8754_v43 = vld [vmem:[%s12962_s25 + $0x20] sm:$0x1] }
  0x85   : >> { %939 = vmatpush.bf16.msra.mxu2 %v12972_v27  ;;  %v12162_v30 = vld [vmem:[%s12962_s25 + $0xc] sm:$0xf0]  ;;  %15649 = vst [vmem:[#allocation48_spill] sm:$0xff] %v13063_v31  ;;  %v13084_v44 = vld [vmem:[#allocation6 + $0x158] sm:$0xff]  ;;  %v12163_v54 = vld [vmem:[%s12962_s25 + $0xc] sm:$0xe]  ;;  %v1356_v55 = vunpack.c.l.b16 %v8754_v43  ;;  %v1071_v38 = vpack.c.b16 %v1069_v50, %v1069_v50 }
  0x86   : >> { %1032 = vmatpush.bf16.msra.mxu3 %v12974_v28  ;;  %15650 = vst [vmem:[#allocation49_spill] sm:$0xff] %v13076_v39  ;;  %v13086_v47 = vld [vmem:[#allocation6 + $0x198] sm:$0xff]  ;;  %v13098_v8 = vld [vmem:[#allocation6 + $0x150] sm:$0xff]  ;;  %v1073_v50 = vshrl.u32 %v8644_v6, 16  ;;  %vm13261_vm10 = vmand %vm1792_vm7, %vm1793_vm8 }
  0x87   : >> { %789 = vmatpush.bf16.msra.mxu0 %v12982_v32  ;;  %15651 = vst [vmem:[#allocation50_spill] sm:$0xff] %v13079_v42  ;;  %v13089_v51 = vld [vmem:[#allocation6 + $0x1d8] sm:$0xff]  ;;  %v13100_v7 = vld [vmem:[#allocation6 + $0x190] sm:$0xff]  ;;  %v13105_v43 = vpack.c.b16 %v1356_v55, %v1356_v55  ;;  %v13117_v55 = vld [vmem:[#allocation6 + $0x1c8] sm:$0xff] }
  0x88   : >> { %852 = vmatpush.bf16.msra.mxu1 %v12984_v33  ;;  %15652 = vst [vmem:[#allocation51_spill] sm:$0xff] %v13084_v44 }
  0x89   : >> { %940 = vmatpush.bf16.msra.mxu2 %v12989_v35  ;;  %15653 = vst [vmem:[#allocation52_spill] sm:$0xff] %v13086_v47 }
  0x8a   : >> { %1033 = vmatpush.bf16.msra.mxu3 %v12991_v36  ;;  %15654 = vst [vmem:[#allocation53_spill] sm:$0xff] %v13089_v51 }
  0x8b   : >> { %790 = vmatpush.bf16.msra.mxu0 %v12997_v40  ;;  %15656 = vst [vmem:[#allocation55_spill] sm:$0xff] %v13098_v8 }
  0x8c   : >> { %853 = vmatpush.bf16.msra.mxu1 %v12999_v41  ;;  %15657 = vst [vmem:[#allocation56_spill] sm:$0xff] %v13100_v7 }
  0x8d   : >> { %941 = vmatpush.bf16.msra.mxu2 %v13004_v45 }
  0x8e   : >> { %1034 = vmatpush.bf16.msra.mxu3 %v13006_v46  ;;  %v13114_v46 = vld [vmem:[#allocation6 + $0x188] sm:$0xff] }
  0x8f   : >> { %791 = vmatpush.bf16.msra.mxu0 %v13010_v48 }
  0x90   : >> { %854 = vmatpush.bf16.msra.mxu1 %v13012_v49 }
  0x91   : >> { %942 = vmatpush.bf16.msra.mxu2 %v13016_v52 }
  0x92   : >> { %1035 = vmatpush.bf16.msra.mxu3 %v13024_v58  ;;  %792 = vmatmul.bf16.vlgmr.msra.gmra.mxu0 %v734_v60  ;;  %v13093_v60 = vld [vmem:[#allocation6 + $0x110] sm:$0xff]  ;;  %v13112_v58 = vld [vmem:[#allocation6 + $0x148] sm:$0xff] }
  0x93   : >> { %1133 = vmatpush.bf16.msrb.mxu0 %v13018_v53  ;;  %855 = vmatmul.bf16.vlgmr.msra.gmra.mxu1 %v12977_v29  ;;  %v13066_v29 = vld [vmem:[#allocation6 + $0x120] sm:$0xff]  ;;  %15655 = vst [vmem:[#allocation54_spill] sm:$0xff] %v13093_v60 }
  0x94   : >> { %1222 = vmatpush.bf16.msrb.mxu1 %v13020_v56  ;;  %943 = vmatmul.bf16.vlgmr.msra.gmra.mxu2 %v885_v62  ;;  %v11963_v62 = vld [vmem:[%s12962_s25 + $0x18] sm:$0xff]   ;;  %15660 = vst [vmem:[#allocation59_spill] sm:$0xff] %v13112_v58 }
  0x95   : >> { %1315 = vmatpush.bf16.msrb.mxu2 %v13022_v57  ;;  %1036 = vmatmul.bf16.vlgmr.msra.gmra.mxu3 %v13044_v1 }
  0x96   : >> { %1420 = vmatpush.bf16.msrb.mxu3 %v13028_v59  ;;  %v13108_v59 = vld [vmem:[#allocation6 + $0x108] sm:$0xff] }
  0x97   : >> { %1134 = vmatpush.bf16.msrb.mxu0 %v13033_v61  ;;  %15659 = vst [vmem:[#allocation58_spill] sm:$0xff] %v13108_v59 }
  0x98   : >> { %1223 = vmatpush.bf16.msrb.mxu1 %v13038_v63 }
  0x99   : >> { %1316 = vmatpush.bf16.msrb.mxu2 %v13040_v0 }
  0x9a   : >> { %1421 = vmatpush.bf16.msrb.mxu3 %v13047_v2  ;;  %v1362_v2 = vshll.u32 %v11963_v62, 16 }
  0x9b   : >> { %1135 = vmatpush.bf16.msrb.mxu0 %v13050_v3 }
  0x9c   : >> { %1224 = vmatpush.bf16.msrb.mxu1 %v13055_v4 }
  0x9d   : >> { %1317 = vmatpush.bf16.msrb.mxu2 %v13057_v5 }
  0x9e   : >> { %1422 = vmatpush.bf16.msrb.mxu3 %v13063_v31  ;;  %v1075_v31 = vshll.u32 %v8644_v6, 16  ;;  %v13125_v6 = vld [vmem:[#allocation6 + $0x140] sm:$0xff] }
  0x9f   : >> { %1136 = vmatpush.bf16.msrb.mxu0 %v13066_v29 }
  0xa0   : >> { %1225 = vmatpush.bf16.msrb.mxu1 %v13070_v34  ;;  %v1077_v36 = vrot.slane %v1075_v31, 1 }
  0xa1   : >> { %1318 = vmatpush.bf16.msrb.mxu2 %v13072_v37 }
  0xa2   : >> { %1423 = vmatpush.bf16.msrb.mxu3 %v13076_v39  ;;  %v13103_v39 = vld [vmem:[#allocation6 + $0x1d0] sm:$0xff]  ;;  %v1078_v31 = vor.u32 %v1077_v36, %v1073_v50 }
  0xa3   : >> { %1137 = vmatpush.bf16.msrb.mxu0 %v13079_v42  ;;  %15658 = vst [vmem:[#allocation57_spill] sm:$0xff] %v13103_v39  ;;  %v1367_v42 = vshll.u32 %v13105_v43, 16 }
  0xa4   : >> { %1226 = vmatpush.bf16.msrb.mxu1 %v13084_v44  ;;  %v1360_v44 = vshrl.u32 %v11963_v62, 16  ;;  %v1171_v62 = vrot.slane %v1071_v38, 1 }
  0xa5   : >> { %1319 = vmatpush.bf16.msrb.mxu2 %v13086_v47  ;;  %v12164_v47 = vor.u32 %v12163_v54, %v12162_v30  ;;  %v13127_v30 = vld [vmem:[#allocation6 + $0x180] sm:$0xff]  ;;  %v1369_v28 = vrot.slane %v1367_v42, 1 }
  0xa6   : >> { %1424 = vmatpush.bf16.msrb.mxu3 %v13089_v51  ;;  %v1080_v51 = vshll.u32 %v1071_v38, 16 }
  0xa7   : >> { %1138 = vmatpush.bf16.msrb.mxu0 %v13093_v60  ;;  %v1364_v60 = vrot.slane %v1362_v2, 1  ;;  %v1170_v2 = vrot.slane %v12164_v47, 1 }
  0xa8   : >> { %1227 = vmatpush.bf16.msrb.mxu1 %v13098_v8  ;;  %v1082_v54 = vrot.slane %v1080_v51, 1  ;;  %v13144_v51 = vld [vmem:[#allocation6 + $0x230] sm:$0xff] }
  0xa9   : >> { %1320 = vmatpush.bf16.msrb.mxu2 %v13100_v7  ;;  %v13121_v7 = vld [vmem:[#allocation6 + $0x100] sm:$0xff]  ;;  %v1365_v8 = vor.u32 %v1364_v60, %v1360_v44  ;;  %v1172_v47 = vsel %vm882_vm3, %v1170_v2, %v1171_v62 }
  0xaa   : >> { %1425 = vmatpush.bf16.msrb.mxu3 %v13103_v39  ;;  %v13129_v39 = vld [vmem:[#allocation6 + $0x238] sm:$0xff]  ;;  %v1083_v36 = vsel %vm722_vm2, %v1078_v31, %v1082_v54 }
  0xab   : >> { %1139 = vmatpush.bf16.msrb.mxu0 %v13108_v59  ;;  %v13132_v59 = vld [vmem:[#allocation6 + $0x1c0] sm:$0xff]  ;;  %v13149_v42 = vsel %vm722_vm2, %v1365_v8, %v1369_v28 }
  0xac   : >> { %1228 = vmatpush.bf16.msrb.mxu1 %v13112_v58  ;;  %v13136_v58 = vld [vmem:[%s12962_s25 + $0x18] sm:$0xff] }
  0xad   : >> { %1321 = vmatpush.bf16.msrb.mxu2 %v13114_v46  ;;  %v13161_v8 = vld [vmem:[#allocation6 + $0x220] sm:$0xff] }
  0xae   : >> { %1426 = vmatpush.bf16.msrb.mxu3 %v13117_v55  ;;  %v15669_v28 = vld [vmem:[#allocation44_spill] sm:$0xff] }
  0xaf   : >> { %1140 = vmatpush.bf16.msrb.mxu0 %v13121_v7 }
  0xb0   : >> { %1229 = vmatpush.bf16.msrb.mxu1 %v13125_v6 }
  0xb1   : >> { %1322 = vmatpush.bf16.msrb.mxu2 %v13127_v30 }
  0xb2   : >> { %1427 = vmatpush.bf16.msrb.mxu3 %v13132_v59  ;;  %1141 = vmatmul.bf16.vlgmr.msrb.gmra.mxu0 %v1083_v36 }
  0xb3   : >> { %1509 = vmatpush.bf16.msra.mxu0 %v13129_v39  ;;  %1230 = vmatmul.bf16.vlgmr.msrb.gmra.mxu1 %v1172_v47 }
  0xb4   : >> { %1533 = vmatpush.bf16.msra.mxu1 %v12916_v9  ;;  %1323 = vmatmul.bf16.vlgmr.msrb.gmra.mxu2 %v13136_v58  ;;  %v13155_v9 = vld [vmem:[#allocation6 + $0x228] sm:$0xff] }
  0xb5   : >> { %1547 = vmatpush.bf16.msra.mxu2 %v12918_v10  ;;  %1428 = vmatmul.bf16.vlgmr.msrb.gmra.mxu3 %v13149_v42  ;;  %v13167_v10 = vld [vmem:[#allocation6 + $0x218] sm:$0xff] }
  0xb6   : >> { %1561 = vmatpush.bf16.msra.mxu3 %v12920_v11  ;;  %v13173_v11 = vld [vmem:[#allocation6 + $0x210] sm:$0xff] }
  0xb7   : >> { %1510 = vmatpush.bf16.msra.mxu0 %v13144_v51 }
  0xb8   : >> { %1534 = vmatpush.bf16.msra.mxu1 %v12926_v13  ;;  %v11964_v13 = vld [vmem:[%s12962_s25 + $0x18] sm:$0xf0] }
  0xb9   : >> { %1548 = vmatpush.bf16.msra.mxu2 %v12928_v14  ;;  %v11965_v14 = vld [vmem:[%s12962_s25 + $0x18] sm:$0xe] }
  0xba   : >> { %1562 = vmatpush.bf16.msra.mxu3 %v12932_v15  ;;  %v13181_v15 = vld [vmem:[#allocation6 + $0x208] sm:$0xff] }
  0xbb   : >> { %1511 = vmatpush.bf16.msra.mxu0 %v13155_v9 }
  0xbc   : >> { %1535 = vmatpush.bf16.msra.mxu1 %v12938_v17  ;;  %v11966_v17 = vor.u32 %v11965_v14, %v11964_v13 }
  0xbd   : >> { %1549 = vmatpush.bf16.msra.mxu2 %v12940_v18  ;;  %v13187_v18 = vld [vmem:[#allocation6 + $0x200] sm:$0xff] }
  0xbe   : >> { %1563 = vmatpush.bf16.msra.mxu3 %v12944_v19  ;;  %v1457_v19 = vrot.slane %v11966_v17, 1 }
  0xbf   : >> { %1512 = vmatpush.bf16.msra.mxu0 %v13161_v8 }
  0xc0   : >> { %1536 = vmatpush.bf16.msra.mxu1 %v12951_v21  ;;  %v1458_v21 = vrot.slane %v13105_v43, 1 }
  0xc1   : >> { %1550 = vmatpush.bf16.msra.mxu2 %v12953_v22 }
  0xc2   : >> { %1564 = vmatpush.bf16.msra.mxu3 %v12957_v23  ;;  %v1459_v22 = vsel %vm882_vm3, %v1457_v19, %v1458_v21  ;;  %v15664_v23 = vld [vmem:[#allocation52_spill] sm:$0xff] }
  0xc3   : >> { %1513 = vmatpush.bf16.msra.mxu0 %v13167_v10 }
  0xc4   : >> { %1537 = vmatpush.bf16.msra.mxu1 %v12966_v25  ;;  %v15665_v25 = vld [vmem:[#allocation43_spill] sm:$0xff] }
  0xc5   : >> { %1551 = vmatpush.bf16.msra.mxu2 %v12968_v26  ;;  %v15666_v26 = vld [vmem:[#allocation54_spill] sm:$0xff] }
  0xc6   : >> { %1565 = vmatpush.bf16.msra.mxu3 %v12972_v27  ;;  %v15668_v27 = vld [vmem:[#allocation56_spill] sm:$0xff] }
  0xc7   : >> { %1514 = vmatpush.bf16.msra.mxu0 %v13173_v11 }
  0xc8   : >> { %1538 = vmatpush.bf16.msra.mxu1 %v12982_v32  ;;  %v15670_v32 = vld [vmem:[#allocation58_spill] sm:$0xff] }
  0xc9   : >> { %1552 = vmatpush.bf16.msra.mxu2 %v12984_v33  ;;  %v15671_v33 = vld [vmem:[#allocation59_spill] sm:$0xff] }
  0xca   : >> { %1566 = vmatpush.bf16.msra.mxu3 %v12989_v35  ;;  %v15672_v35 = vld [vmem:[#allocation45_spill] sm:$0xff] }
  0xcb   : >> { %1515 = vmatpush.bf16.msra.mxu0 %v13181_v15 }
  0xcc   : >> { %1539 = vmatpush.bf16.msra.mxu1 %v12997_v40  ;;  %v15673_v40 = vld [vmem:[#allocation46_spill] sm:$0xff] }
  0xcd   : >> { %1553 = vmatpush.bf16.msra.mxu2 %v12999_v41  ;;  %v11350_v41 = vld [vmem:[%s12962_s25 + $0x24] sm:$0xff] }
  0xce   : >> { %1567 = vmatpush.bf16.msra.mxu3 %v13004_v45  ;;  %v15674_v45 = vld [vmem:[#allocation47_spill] sm:$0xff] }
  0xcf   : >> { %1516 = vmatpush.bf16.msra.mxu0 %v13187_v18 }
  0xd0   : >> { %1540 = vmatpush.bf16.msra.mxu1 %v13010_v48  ;;  %v15675_v48 = vld [vmem:[#allocation48_spill] sm:$0xff] }
  0xd1   : >> { %1554 = vmatpush.bf16.msra.mxu2 %v13012_v49  ;;  %v8830_v49 = vld [vmem:[%s12962_s25 + $0x2c] sm:$0x1] }
  0xd2   : >> { %1568 = vmatpush.bf16.msra.mxu3 %v13016_v52  ;;  %1517 = vmatmul.bf16.vlgmr.msra.gmra.mxu0 %v1459_v22  ;;  %v15676_v52 = vld [vmem:[#allocation49_spill] sm:$0xff] }
  0xd3   : >> { %1577 = vmatpush.bf16.msrb.mxu0 %v12922_v12  ;;  %1541 = vmatmul.bf16.vlgmr.msra.gmra.mxu1 %v1083_v36  ;;  %v15661_v12 = vld [vmem:[#allocation42_spill] sm:$0xff] }
  0xd4   : >> { %1593 = vmatpush.bf16.msrb.mxu1 %v13018_v53  ;;  %1555 = vmatmul.bf16.vlgmr.msra.gmra.mxu2 %v13044_v1  ;;  %v1661_v53 = vunpack.c.l.b16 %v8830_v49 }
  0xd5   : >> { %1609 = vmatpush.bf16.msrb.mxu2 %v13020_v56  ;;  %1569 = vmatmul.bf16.vlgmr.msra.gmra.mxu3 %v1172_v47  ;;  %v12166_v56 = vld [vmem:[%s12962_s25 + $0x24] sm:$0xe] }
  0xd6   : >> { %1637 = vmatpush.bf16.msrb.mxu3 %v13022_v57  ;;  %v15677_v57 = vld [vmem:[#allocation53_spill] sm:$0xff] }
  0xd7   : >> { %1578 = vmatpush.bf16.msrb.mxu0 %v12934_v16  ;;  %v15662_v16 = vld [vmem:[#allocation50_spill] sm:$0xff] }
  0xd8   : >> { %1594 = vmatpush.bf16.msrb.mxu1 %v13033_v61 }
  0xd9   : >> { %1610 = vmatpush.bf16.msrb.mxu2 %v13038_v63  ;;  %v15678_v63 = vld [vmem:[#allocation57_spill] sm:$0xff] }
  0xda   : >> { %1638 = vmatpush.bf16.msrb.mxu3 %v13040_v0 }
  0xdb   : >> { %1579 = vmatpush.bf16.msrb.mxu0 %v12946_v20  ;;  %v15663_v20 = vld [vmem:[#allocation51_spill] sm:$0xff] }
  0xdc   : >> { %1595 = vmatpush.bf16.msrb.mxu1 %v13050_v3 }
  0xdd   : >> { %1611 = vmatpush.bf16.msrb.mxu2 %v13055_v4 }
  0xde   : >> { %1639 = vmatpush.bf16.msrb.mxu3 %v13057_v5 }
  0xdf   : >> { %1580 = vmatpush.bf16.msrb.mxu0 %v12959_v24  ;;  %v15667_v24 = vld [vmem:[#allocation55_spill] sm:$0xff] }
  0xe0   : >> { %1596 = vmatpush.bf16.msrb.mxu1 %v13066_v29 }
  0xe1   : >> { %1612 = vmatpush.bf16.msrb.mxu2 %v13070_v34 }
  0xe2   : >> { %1640 = vmatpush.bf16.msrb.mxu3 %v13072_v37 }
  0xe3   : >> { %1581 = vmatpush.bf16.msrb.mxu0 %v15661_v12 }
  0xe4   : >> { %1597 = vmatpush.bf16.msrb.mxu1 %v15662_v16 }
  0xe5   : >> { %1613 = vmatpush.bf16.msrb.mxu2 %v15663_v20 }
  0xe6   : >> { %1641 = vmatpush.bf16.msrb.mxu3 %v15664_v23 }
  0xe7   : >> { %1582 = vmatpush.bf16.msrb.mxu0 %v15665_v25 }
  0xe8   : >> { %1598 = vmatpush.bf16.msrb.mxu1 %v15666_v26 }
  0xe9   : >> { %1614 = vmatpush.bf16.msrb.mxu2 %v15667_v24 }
  0xea   : >> { %1642 = vmatpush.bf16.msrb.mxu3 %v15668_v27 }
  0xeb   : >> { %1583 = vmatpush.bf16.msrb.mxu0 %v15669_v28 }
  0xec   : >> { %1599 = vmatpush.bf16.msrb.mxu1 %v15670_v32 }
  0xed   : >> { %1615 = vmatpush.bf16.msrb.mxu2 %v15671_v33 }
  0xee   : >> { %1643 = vmatpush.bf16.msrb.mxu3 %v13114_v46  ;;  %v12165_v46 = vld [vmem:[%s12962_s25 + $0x24] sm:$0xf0] }
  0xef   : >> { %1584 = vmatpush.bf16.msrb.mxu0 %v15672_v35  ;;  %v12167_v4 = vor.u32 %v12166_v56, %v12165_v46 }
  0xf0   : >> { %1600 = vmatpush.bf16.msrb.mxu1 %v13121_v7  ;;  %v8828_v7 = vld [vmem:[%s12962_s25 + $0x24] sm:$0xff]  }
  0xf1   : >> { %1616 = vmatpush.bf16.msrb.mxu2 %v13125_v6  ;;  %v1667_v61 = vshll.u32 %v8828_v7, 16  ;;  %v1665_v0 = vshrl.u32 %v8828_v7, 16  ;;  %v1697_v34 = vrot.slane %v12167_v4, 1 }
  0xf2   : >> { %1644 = vmatpush.bf16.msrb.mxu3 %v13127_v30  ;;  %1585 = vmatmul.bf16.vlgmr.msrb.gmra.mxu0 %v13136_v58  ;;  %v1663_v58 = vpack.c.b16 %v1661_v53, %v1661_v53 }
  0xf3   : >> { %1677 = vmatpush.bf16.msra.mxu0 %v15673_v40  ;;  %1601 = vmatmul.bf16.vlgmr.msrb.gmra.mxu1 %v13149_v42  ;;  %v1669_v1 = vrot.slane %v1667_v61, 1 }
  0xf4   : >> { %1701 = vmatpush.bf16.msra.mxu1 %v13129_v39  ;;  %1617 = vmatmul.bf16.vlgmr.msrb.gmra.mxu2 %v1459_v22  ;;  %v1672_v3 = vshll.u32 %v1663_v58, 16  ;;  %v1698_v37 = vrot.slane %v1663_v58, 1 }
  0xf5   : >> { %1645 = vmatmul.bf16.vlgmr.msrb.gmra.mxu3 %v11350_v41  ;;  %v1670_v5 = vor.u32 %v1669_v1, %v1665_v0 }
  0xf6   : >> { %v1674_v29 = vrot.slane %v1672_v3, 1  ;;  %v1699_v44 = vsel %vm882_vm3, %v1697_v34, %v1698_v37 }
  0xf7   : >> { %1678 = vmatpush.bf16.msra.mxu0 %v15674_v45 }
  0xf8   : >> { %1702 = vmatpush.bf16.msra.mxu1 %v13144_v51  ;;  %v1675_v39 = vsel %vm722_vm2, %v1670_v5, %v1674_v29 }
  0xfb   : >> { %1679 = vmatpush.bf16.msra.mxu0 %v15675_v48 }
  0xfc   : >> { %1703 = vmatpush.bf16.msra.mxu1 %v13155_v9 }
  0xff   : >> { %1680 = vmatpush.bf16.msra.mxu0 %v15676_v52 }
 0x100   : >> { %1704 = vmatpush.bf16.msra.mxu1 %v13161_v8 }
 0x103   : >> { %1681 = vmatpush.bf16.msra.mxu0 %v15677_v57 }
 0x104   : >> { %1705 = vmatpush.bf16.msra.mxu1 %v13167_v10 }
 0x107   : >> { %1682 = vmatpush.bf16.msra.mxu0 %v15678_v63 }
 0x108   : >> { %1706 = vmatpush.bf16.msra.mxu1 %v13173_v11 }
 0x10b   : >> { %1683 = vmatpush.bf16.msra.mxu0 %v13117_v55 }
 0x10c   : >> { %1707 = vmatpush.bf16.msra.mxu1 %v13181_v15 }
 0x10f   : >> { %1684 = vmatpush.bf16.msra.mxu0 %v13132_v59  ;;  %v793_v38 = vpop.f32.mrf.mxu0 }
 0x110   : >> { %1708 = vmatpush.bf16.msra.mxu1 %v13187_v18  ;;  %v856_v60 = vpop.f32.mrf.mxu1 }
 0x111   : >> { %v857_v19 = vadd.f32 %v856_v60, %v793_v38  ;;  %v12158_v38 = vld [vmem:[#allocation9] ss:$0 sm:$0xff] }
 0x112   : >> { %1685 = vmatmul.bf16.vlgmr.msra.gmra.mxu0 %v1675_v39 }
 0x113   : >> { %1709 = vmatmul.bf16.vlgmr.msra.gmra.mxu1 %v1699_v44 }
 0x117   : >> { %v944_v43 = vpop.f32.mrf.mxu2  ;;  %v795_v55 = vpop.f32.mrf.mxu0 }
 0x118   : >> { %v858_v50 = vpop.f32.mrf.mxu1  ;;  %v1037_v6 = vpop.f32.mrf.mxu3  ;;  %v949_v20 = vadd.f32 %v944_v43, %v857_v19  ;;  %v15681_v19 = vmov 0 }
 0x119   : >> { %v859_v12 = vadd.f32 %v858_v50, %v795_v55  ;;  %v15682_v19 = vsel %vm13261_vm10, 4294967295, %v15681_v19 }
 0x11a   : >> { %v1042_v24 = vadd.f32 %v1037_v6, %v949_v20  ;;  %15683 = vst [vmem:[#allocation60_spill] sm:$0xff] %v15682_v19 }
 0x11f   : >> { %v946_v30 = vpop.f32.mrf.mxu2 }
 0x120   : >> { %v1039_v54 = vpop.f32.mrf.mxu3  ;;  %v950_v23 = vadd.f32 %v946_v30, %v859_v12 }
 0x122   : >> { %v1043_v32 = vadd.f32 %v1039_v54, %v950_v23 }
 0x12f   : >> { %v1142_v2 = vpop.f32.mrf.mxu0 }
 0x130   : >> { %v1231_v31 = vpop.f32.mrf.mxu1  ;;  %v1147_v41 = vadd.f32 %v1142_v2, %v1042_v24 }
 0x132   : >> { %v1236_v49 = vadd.f32 %v1231_v31, %v1147_v41 }
 0x137   : >> { %v1324_v62 = vpop.f32.mrf.mxu2  ;;  %v1144_v36 = vpop.f32.mrf.mxu0 }
 0x138   : >> { %v1233_v59 = vpop.f32.mrf.mxu1  ;;  %v1429_v47 = vpop.f32.mrf.mxu3  ;;  %v1148_v45 = vadd.f32 %v1144_v36, %v1043_v32  ;;  %v1329_v0 = vadd.f32 %v1324_v62, %v1236_v49 }
 0x13a   : >> { %v1237_v52 = vadd.f32 %v1233_v59, %v1148_v45  ;;  %v1434_v29 = vadd.f32 %v1429_v47, %v1329_v0 }
 0x13f   : >> { %v1326_v51 = vpop.f32.mrf.mxu2 }
 0x140   : >> { %v1431_v8 = vpop.f32.mrf.mxu3  ;;  %v1330_v57 = vadd.f32 %v1326_v51, %v1237_v52 }
 0x142   : >> { %v1435_v5 = vadd.f32 %v1431_v8, %v1330_v57 }
 0x14f   : >> { %v1518_v9 = vpop.f32.mrf.mxu0 }
 0x150   : >> { %v1542_v42 = vpop.f32.mrf.mxu1  ;;  %v1523_v60 = vadd.f32 %v1518_v9, %v1434_v29  ;;  %v15680_v9 = vld [vmem:[#allocation41_spill] sm:$0xff] }
 0x152   : >> { %v1529_v31 = vadd.f32 %v12158_v38, %v1523_v60 }
 0x154   : >> { %v1531_v36 = vmax.f32 %v1529_v31, 0.0 }
 0x157   : >> { %v1556_v10 = vpop.f32.mrf.mxu2  ;;  %v1520_v13 = vpop.f32.mrf.mxu0 }
 0x158   : >> { %v1544_v11 = vpop.f32.mrf.mxu1  ;;  %v1570_v14 = vpop.f32.mrf.mxu3  ;;  %v1557_v17 = vadd.f32 %v1556_v10, %v1542_v42  ;;  %v1524_v34 = vadd.f32 %v1520_v13, %v1435_v5  ;;  %v15679_v42 = vld [vmem:[#allocation40_spill] sm:$0xff] }
 0x15a   : >> { %v1575_v16 = vadd.f32 %v1570_v14, %v1557_v17  ;;  %v1530_v55 = vadd.f32 %v12158_v38, %v1524_v34 }
 0x15c   : >> { %v1532_v2 = vmax.f32 %v1530_v55, 0.0 }
 0x15f   : >> { %v1558_v15 = vpop.f32.mrf.mxu2 }
 0x160   : >> { %v1572_v22 = vpop.f32.mrf.mxu3  ;;  %v1559_v27 = vadd.f32 %v1558_v15, %v1544_v11 }
 0x162   : >> { %v1576_v7 = vadd.f32 %v1572_v22, %v1559_v27 }
 0x16f   : >> { %v1586_v18 = vpop.f32.mrf.mxu0 }
 0x170   : >> { %v1602_v21 = vpop.f32.mrf.mxu1  ;;  %v1591_v25 = vadd.f32 %v1586_v18, %v1575_v16  ;;  %v8835_v18 = vld [vmem:[%s8289_s15 + $0x8] sm:$0xf] }
 0x172   : >> { %v1607_v33 = vadd.f32 %v1602_v21, %v1591_v25  ;;  %v8837_v21 = vld [vmem:[%s8289_s15 + $0xc] sm:$0x1] }
 0x177   : >> { %v1618_v26 = vpop.f32.mrf.mxu2  ;;  %v1588_v28 = vpop.f32.mrf.mxu0 }
 0x178   : >> { %v1604_v35 = vpop.f32.mrf.mxu1  ;;  %v1646_v40 = vpop.f32.mrf.mxu3  ;;  %v1623_v46 = vadd.f32 %v1618_v26, %v1607_v33  ;;  %v1592_v48 = vadd.f32 %v1588_v28, %v1576_v7 }
 0x17a   : >> { %v1651_v58 = vadd.f32 %v1646_v40, %v1623_v46  ;;  %v1608_v61 = vadd.f32 %v1604_v35, %v1592_v48 }
 0x17f   : >> { %v1620_v53 = vpop.f32.mrf.mxu2 }
 0x180   : >> { %v1624_v1 = vadd.f32 %v1620_v53, %v1608_v61  ;;  %v1648_v4 = vpop.f32.mrf.mxu3 }
 0x182   : >> { %v1652_v37 = vadd.f32 %v1648_v4, %v1624_v1 }
 0x18f   : >> { %v1686_v56 = vpop.f32.mrf.mxu0 }
 0x190   : >> { %v1710_v63 = vpop.f32.mrf.mxu1  ;;  %v1691_v3 = vadd.f32 %v1686_v56, %v1651_v58 }
 0x192   : >> { %v1715_v39 = vadd.f32 %v1710_v63, %v1691_v3 }
 0x194   : >> { %v1717_v6 = vadd.f32 %v12158_v38, %v1715_v39 }
 0x196   : >> { %v1719_v62 = vmax.f32 %v1717_v6, 0.0 }
 0x197   : >> { %v1688_v44 = vpop.f32.mrf.mxu0 }
 0x198   : >> { %v1692_v43 = vadd.f32 %v1688_v44, %v1652_v37  ;;  %v1712_v50 = vpop.f32.mrf.mxu1  ;;  %v1721_v47 = vmax.f32 %v1531_v36, %v1719_v62 }
 0x19a   : >> { %v1716_v30 = vadd.f32 %v1712_v50, %v1692_v43 }
 0x19c   : >> { %v1718_v54 = vadd.f32 %v12158_v38, %v1716_v30 }
 0x19e   : >> { %v1720_v59 = vmax.f32 %v1718_v54, 0.0 }
 0x1a0   : >> { %v1722_v51 = vmax.f32 %v1532_v2, %v1720_v59 }
 0x1a2   : >> { %1741 = vmatpush.msra.mxu2 %v1722_v51  ;;  %1764 = vmatpush.msra.mxu3 %v1722_v51 }
 0x1a4   : >> { %1742 = vmatpush.msra.mxu2 %v1721_v47  ;;  %1765 = vmatpush.msra.mxu3 %v1721_v47 }
 0x1a5   : >> { %8832 = vmatmul.msk.f32.vlgmr.msra.gmra.mxu2 %vm1723_vm4, %v15679_v42  ;;  %8833 = vmatmul.msk.f32.vlgmr.msra.gmra.mxu3 %vm1723_vm4, %v15680_v9 }
 0x228   : >> { %v1744_v8 = vpop.f32.mrf.mxu2  ;;  %v1767_v10 = vpop.f32.mrf.mxu3 }
 0x229   : >> { %v1770_v11 = vmax.f32 %v1744_v8, %v1767_v10 }
 0x22b   : >> { %v1771_v13 = vpack.c.bf16 %v1770_v11, %v1770_v11 }
 0x22d   : >> { %v1774_v14 = vshrl.u32 %v1771_v13, 16  ;;  %v1777_v17 = vshll.u32 %v1771_v13, 16 }
 0x22f   : >> { %v1776_v15 = vrot.slane %v1774_v14, 7 }
 0x231   : >> { %v1779_v22 = vor.u32 %v1777_v17, %v1776_v15  ;;  %v1780_v12 = vrot.slane %v1776_v15, 4  ;;  %672 = sbr.rel (!%p670_p0) target bundleno = 114 (0x72), region = 227 }
 0x233   : >> { %v1790_v16 = vsel %vm1788_vm9, %v1779_v22, %v8835_v18  ;;  %v1796_v20 = vsel %vm13261_vm10, %v1780_v12, %v8837_v21 }
 0x234   : >> { %8836 = vst [vmem:[%s8289_s15 + $0x8] sm:$0xf] %v1790_v16 }
 0x235   : >> { %8838 = vst [vmem:[%s8289_s15 + $0xc] sm:$0x1] %v1796_v20 }
 0x236 LB: >> { %v13275_v23 = vld [vmem:[#allocation11 + $0x78] sm:$0xff]  ;;  %v13285_v27 = vld [vmem:[#allocation11 + $0x70] sm:$0xff]  ;;  %v13297_v35 = vld [vmem:[#allocation11 + $0x68] sm:$0xff]  ;;  %s11352_s23 = sshll.u32 %s12638_s21, 4  ;;  %vm2748_vm11 = vcmask 64512   ;;  %s9150_s4 = sshll.u32 %s12638_s21, 2  ;;  %s12638_s21 = sphi %s13270_s21, %s1803_s21  }
 0x237   : >> { %v13277_v25 = vld [vmem:[#allocation11 + $0x38] sm:$0xff]  ;;  %1904 = vmatpush.bf16.msra.mxu0 %v13275_v23  ;;  %v13287_v28 = vld [vmem:[#allocation11 + $0x30] sm:$0xff]  ;;  %v13299_v40 = vld [vmem:[#allocation11 + $0x28] sm:$0xff]  ;;  %s13332_s14 = scalar_lea.vmem [#allocation2], %s11352_s23  ;;  %vm2808_vm12 = vcmask 1042432   ;;  %s8306_s22 = scalar_lea.vmem [#allocation3], %s9150_s4 }
 0x238   : >> { %v13279_v26 = vld [vmem:[#allocation11 + $0xb8] sm:$0xff]  ;;  %1965 = vmatpush.bf16.msra.mxu1 %v13277_v25  ;;  %v13291_v32 = vld [vmem:[#allocation11 + $0xb0] sm:$0xff]  ;;  %v13303_v41 = vld [vmem:[#allocation11 + $0xa8] sm:$0xff]  ;;  %vm2809_vm13 = vsmask.f32 2306  ;;  %s1803_s21 = sadd.s32 1, %s12638_s21  }
 0x239   : >> { %v13281_v24 = vld [vmem:[#allocation11 + $0xf8] sm:$0xff]  ;;  %2049 = vmatpush.bf16.msra.mxu2 %v13279_v26  ;;  %v13293_v33 = vld [vmem:[#allocation11 + $0xf0] sm:$0xff]  ;;  %v13305_v45 = vld [vmem:[#allocation11 + $0xe8] sm:$0xff]  ;;  %p1800_p1 = scmp.ge.s32.totalorder %s1803_s21, 4  }
 0x23a   : >> { %2133 = vmatpush.bf16.msra.mxu3 %v13281_v24  ;;  %v13309_v7 = vld [vmem:[#allocation11 + $0x60] sm:$0xff]  ;;  %v13322_v52 = vld [vmem:[#allocation11 + $0x58] sm:$0xff]  ;;  %v13338_v0 = vld [vmem:[#allocation11 + $0x50] sm:$0xff]  ;;  %s13609_s1 = smov (%p1800_p1), 0  }
 0x23b   : >> { %1905 = vmatpush.bf16.msra.mxu0 %v13285_v27  ;;  %v13311_v46 = vld [vmem:[#allocation11 + $0x20] sm:$0xff]  ;;  %v13324_v53 = vld [vmem:[#allocation11 + $0x18] sm:$0xff]  ;;  %v13340_v1 = vld [vmem:[#allocation11 + $0x10] sm:$0xff] }
 0x23c   : >> { %1966 = vmatpush.bf16.msra.mxu1 %v13287_v28  ;;  %v13316_v48 = vld [vmem:[#allocation11 + $0xa0] sm:$0xff]  ;;  %v13328_v56 = vld [vmem:[#allocation11 + $0x98] sm:$0xff]  ;;  %v13342_v3 = vld [vmem:[#allocation11 + $0x90] sm:$0xff] }
 0x23d   : >> { %2050 = vmatpush.bf16.msra.mxu2 %v13291_v32  ;;  %v13318_v49 = vld [vmem:[#allocation11 + $0xe0] sm:$0xff]  ;;  %v13330_v57 = vld [vmem:[#allocation11 + $0xd8] sm:$0xff]  ;;  %v13346_v5 = vld [vmem:[#allocation11 + $0xd0] sm:$0xff] }
 0x23e   : >> { %2134 = vmatpush.bf16.msra.mxu3 %v13293_v33  ;;  %v1825_v58 = vld [vmem:[%s13332_s14 + $0x4] sm:$0x1]  ;;  %v1808_v63 = vld [vmem:[%s13332_s14] sm:$0xf]  ;;  %15684 = vst [vmem:[#allocation61_spill] sm:$0xff] %v13346_v5  ;;  %v13351_v37 = vld [vmem:[#allocation11 + $0x48] sm:$0xff] }
 0x23f   : >> { %1906 = vmatpush.bf16.msra.mxu0 %v13297_v35  ;;  %v1846_v61 = vunpack.c.l.b16 %v1825_v58  ;;  %v1845_v4 = vunpack.c.l.b16 %v1808_v63  ;;  %v1978_v29 = vld [vmem:[%s13332_s14] sm:$0xe]  ;;  %v13353_v39 = vld [vmem:[#allocation11 + $0x8] sm:$0xff]  ;;  %v13371_v2 = vld [vmem:[#allocation11 + $0x138] sm:$0xff] }
 0x240   : >> { %1967 = vmatpush.bf16.msra.mxu1 %v13299_v40  ;;  %v1997_v44 = vunpack.c.l.b16 %v1978_v29  ;;  %v13357_v38 = vld [vmem:[#allocation11 + $0x88] sm:$0xff]  ;;  %v13363_v6 = vld [vmem:[#allocation11 + $0x40] sm:$0xff]  ;;  %v13373_v62 = vld [vmem:[#allocation11 + $0x178] sm:$0xff] }
 0x241   : >> { %2051 = vmatpush.bf16.msra.mxu2 %v13303_v41  ;;  %v1847_v34 = vpack.c.b16 %v1846_v61, %v1845_v4  ;;  %v13359_v43 = vld [vmem:[#allocation11 + $0xc8] sm:$0xff]  ;;  %v13365_v30 = vld [vmem:[#allocation11] sm:$0xff]  ;;  %v13375_v59 = vld [vmem:[#allocation11 + $0x1b8] sm:$0xff] }
 0x242   : >> { %2135 = vmatpush.bf16.msra.mxu3 %v13305_v45  ;;  %15685 = vst [vmem:[#allocation62_spill] sm:$0xff] %v13359_v43  ;;  %v1998_v31 = vpack.c.b16 %v1846_v61, %v1997_v44  ;;  %v13369_v54 = vld [vmem:[#allocation11 + $0x80] sm:$0xff]  ;;  %v13381_v47 = vld [vmem:[#allocation11 + $0x1f8] sm:$0xff]  ;;  %v13385_v9 = vld [vmem:[#allocation11 + $0x130] sm:$0xff] }
 0x243   : >> { %1907 = vmatpush.bf16.msra.mxu0 %v13309_v7  ;;  %v1851_v60 = vshll.u32 %v1847_v34, 16  ;;  %v1849_v50 = vshrl.u32 %v1847_v34, 16  ;;  %v13377_v36 = vld [vmem:[#allocation11 + $0xc0] sm:$0xff]  ;;  %15687 = vst [vmem:[#allocation64_spill] sm:$0xff] %v13381_v47  ;;  %v13389_v8 = vld [vmem:[#allocation11 + $0x170] sm:$0xff]  ;;  %v13401_v14 = vld [vmem:[#allocation11 + $0x128] sm:$0xff] }
 0x244   : >> { %1968 = vmatpush.bf16.msra.mxu1 %v13311_v46  ;;  %15686 = vst [vmem:[#allocation63_spill] sm:$0xff] %v13377_v36  ;;  %v1999_v42 = vrot.slane %v1998_v31, 1  ;;  %v13391_v10 = vld [vmem:[#allocation11 + $0x1b0] sm:$0xff]  ;;  %v13398_v13 = vld [vmem:[%s13332_s14 + $0x8] sm:$0xf]  ;;  %v13414_v21 = vld [vmem:[#allocation11 + $0x120] sm:$0xff] }
 0x245   : >> { %2052 = vmatpush.bf16.msra.mxu2 %v13316_v48  ;;  %v1853_v55 = vrot.slane %v1851_v60, 1  ;;  %v13395_v11 = vld [vmem:[#allocation11 + $0x1f0] sm:$0xff]  ;;  %v13405_v15 = vld [vmem:[#allocation11 + $0x168] sm:$0xff]  ;;  %v13418_v22 = vld [vmem:[#allocation11 + $0x160] sm:$0xff] }
 0x246   : >> { %2136 = vmatpush.bf16.msra.mxu3 %v13318_v49  ;;  %15688 = vst [vmem:[#allocation65_spill] sm:$0xff] %v13395_v11  ;;  %v13407_v17 = vld [vmem:[#allocation11 + $0x1a8] sm:$0xff]  ;;  %v13420_v12 = vld [vmem:[#allocation11 + $0x1a0] sm:$0xff]  ;;  %v13428_v61 = vld [vmem:[#allocation11 + $0x118] sm:$0xff] }
 0x247   : >> { %1908 = vmatpush.bf16.msra.mxu0 %v13322_v52  ;;  %v1854_v51 = vor.u32 %v1853_v55, %v1849_v50  ;;  %v13411_v18 = vld [vmem:[#allocation11 + $0x1e8] sm:$0xff]  ;;  %v13425_v58 = vld [vmem:[#allocation11 + $0x1e0] sm:$0xff]  ;;  %v13432_v4 = vld [vmem:[%s13332_s14 + $0x14] sm:$0x1] }
 0x248   : >> { %1969 = vmatpush.bf16.msra.mxu1 %v13324_v53  ;;  %15689 = vst [vmem:[#allocation66_spill] sm:$0xff] %v13411_v18  ;;  %v8973_v16 = vld [vmem:[%s13332_s14 + $0x8] sm:$0xf]  ;;  %v8974_v20 = vld [vmem:[%s13332_s14 + $0xc] sm:$0x1]  ;;  %v13436_v29 = vld [vmem:[#allocation11 + $0x158] sm:$0xff]  ;;  %v15353_v31 = vunpack.c.l.b16 %v13432_v4 }
 0x249   : >> { %2053 = vmatpush.bf16.msra.mxu2 %v13328_v56  ;;  %15690 = vst [vmem:[#allocation67_spill] sm:$0xff] %v13425_v58  ;;  %v13438_v34 = vld [vmem:[#allocation11 + $0x198] sm:$0xff]  ;;  %v2168_v44 = vunpack.c.l.b16 %v8973_v16  ;;  %v2169_v60 = vunpack.c.l.b16 %v8974_v20  ;;  %v13451_v19 = vld [vmem:[#allocation11 + $0x190] sm:$0xff]  ;;  %v9007_v20 = vld [vmem:[%s13332_s14 + $0x8] sm:$0xe] }
 0x24a   : >> { %2137 = vmatpush.bf16.msra.mxu3 %v13330_v57  ;;  %15691 = vst [vmem:[#allocation68_spill] sm:$0xff] %v13438_v34  ;;  %v13441_v50 = vld [vmem:[#allocation11 + $0x1d8] sm:$0xff]  ;;  %vm2810_vm14 = vmand %vm2808_vm12, %vm2809_vm13 }
 0x24b   : >> { %1909 = vmatpush.bf16.msra.mxu0 %v13338_v0  ;;  %15692 = vst [vmem:[#allocation69_spill] sm:$0xff] %v13441_v50  ;;  %v2170_v16 = vpack.c.b16 %v2169_v60, %v2168_v44 }
 0x24c   : >> { %1970 = vmatpush.bf16.msra.mxu1 %v13340_v1  ;;  %15695 = vst [vmem:[#allocation72_spill] sm:$0xff] %v13451_v19 }
 0x24d   : >> { %2054 = vmatpush.bf16.msra.mxu2 %v13342_v3  ;;  %v2174_v44 = vshll.u32 %v2170_v16, 16 }
 0x24e   : >> { %2138 = vmatpush.bf16.msra.mxu3 %v13346_v5 }
 0x24f   : >> { %1910 = vmatpush.bf16.msra.mxu0 %v13351_v37 }
 0x250   : >> { %1971 = vmatpush.bf16.msra.mxu1 %v13353_v39 }
 0x251   : >> { %2055 = vmatpush.bf16.msra.mxu2 %v13357_v38 }
 0x252   : >> { %2139 = vmatpush.bf16.msra.mxu3 %v13359_v43 }
 0x253   : >> { %1911 = vmatpush.bf16.msra.mxu0 %v13363_v6 }
 0x254   : >> { %1972 = vmatpush.bf16.msra.mxu1 %v13365_v30 }
 0x255   : >> { %2056 = vmatpush.bf16.msra.mxu2 %v13369_v54 }
 0x256   : >> { %2140 = vmatpush.bf16.msra.mxu3 %v13377_v36  ;;  %1912 = vmatmul.bf16.vlgmr.msra.gmra.mxu0 %v1854_v51  ;;  %v13445_v51 = vld [vmem:[#allocation11 + $0x110] sm:$0xff]  ;;  %v2260_v36 = vunpack.c.l.b16 %v9007_v20  ;;  %v2176_v20 = vrot.slane %v2174_v44, 1 }
 0x257   : >> { %2227 = vmatpush.bf16.msrb.mxu0 %v13371_v2  ;;  %1973 = vmatmul.bf16.vlgmr.msra.gmra.mxu1 %v1808_v63  ;;  %v9075_v63 = vld [vmem:[%s13332_s14 + $0x10] sm:$0xf]  ;;  %15693 = vst [vmem:[#allocation70_spill] sm:$0xff] %v13445_v51 }
 0x258   : >> { %2312 = vmatpush.bf16.msrb.mxu1 %v13373_v62  ;;  %2057 = vmatmul.bf16.vlgmr.msra.gmra.mxu2 %v1999_v42  ;;  %v2431_v55 = vunpack.c.l.b16 %v9075_v63  ;;  %v13449_v42 = vld [vmem:[#allocation11 + $0x150] sm:$0xff] }
 0x259   : >> { %2396 = vmatpush.bf16.msrb.mxu2 %v13375_v59  ;;  %2141 = vmatmul.bf16.vlgmr.msra.gmra.mxu3 %v13398_v13  ;;  %15694 = vst [vmem:[#allocation71_spill] sm:$0xff] %v13449_v42 }
 0x25a   : >> { %2490 = vmatpush.bf16.msrb.mxu3 %v13381_v47  ;;  %v2433_v63 = vpack.c.b16 %v15353_v31, %v2431_v55  ;;  %v13466_v47 = vld [vmem:[#allocation11 + $0x188] sm:$0xff]  ;;  %v13472_v55 = vld [vmem:[#allocation11 + $0x100] sm:$0xff] }
 0x25b   : >> { %2228 = vmatpush.bf16.msrb.mxu0 %v13385_v9  ;;  %15698 = vst [vmem:[#allocation75_spill] sm:$0xff] %v13466_v47  ;;  %v13476_v31 = vld [vmem:[#allocation11 + $0x140] sm:$0xff] }
 0x25c   : >> { %2313 = vmatpush.bf16.msrb.mxu1 %v13389_v8  ;;  %v2437_v43 = vshll.u32 %v2433_v63, 16  ;;  %v2435_v5 = vshrl.u32 %v2433_v63, 16 }
 0x25d   : >> { %2397 = vmatpush.bf16.msrb.mxu2 %v13391_v10 }
 0x25e   : >> { %2491 = vmatpush.bf16.msrb.mxu3 %v13395_v11  ;;  %v13464_v11 = vld [vmem:[#allocation11 + $0x148] sm:$0xff] }
 0x25f   : >> { %2229 = vmatpush.bf16.msrb.mxu0 %v13401_v14 }
 0x260   : >> { %2314 = vmatpush.bf16.msrb.mxu1 %v13405_v15 }
 0x261   : >> { %2398 = vmatpush.bf16.msrb.mxu2 %v13407_v17 }
 0x262   : >> { %2492 = vmatpush.bf16.msrb.mxu3 %v13411_v18  ;;  %v13460_v18 = vld [vmem:[#allocation11 + $0x108] sm:$0xff] }
 0x263   : >> { %2230 = vmatpush.bf16.msrb.mxu0 %v13414_v21  ;;  %15697 = vst [vmem:[#allocation74_spill] sm:$0xff] %v13460_v18 }
 0x264   : >> { %2315 = vmatpush.bf16.msrb.mxu1 %v13418_v22 }
 0x265   : >> { %2399 = vmatpush.bf16.msrb.mxu2 %v13420_v12 }
 0x266   : >> { %2493 = vmatpush.bf16.msrb.mxu3 %v13425_v58  ;;  %v13455_v58 = vld [vmem:[#allocation11 + $0x1d0] sm:$0xff] }
 0x267   : >> { %2231 = vmatpush.bf16.msrb.mxu0 %v13428_v61  ;;  %15696 = vst [vmem:[#allocation73_spill] sm:$0xff] %v13455_v58 }
 0x268   : >> { %2316 = vmatpush.bf16.msrb.mxu1 %v13436_v29 }
 0x269   : >> { %2400 = vmatpush.bf16.msrb.mxu2 %v13438_v34  ;;  %v2439_v34 = vrot.slane %v2437_v43, 1 }
 0x26a   : >> { %2494 = vmatpush.bf16.msrb.mxu3 %v13441_v50  ;;  %v13469_v50 = vld [vmem:[#allocation11 + $0x1c8] sm:$0xff] }
 0x26b   : >> { %2232 = vmatpush.bf16.msrb.mxu0 %v13445_v51  ;;  %v13480_v51 = vpack.c.b16 %v2169_v60, %v2260_v36  ;;  %v13496_v60 = vld [vmem:[#allocation11 + $0x230] sm:$0xff]  ;;  %v13500_v43 = vor.u32 %v2439_v34, %v2435_v5  ;;  %v9145_v5 = vld [vmem:[%s13332_s14 + $0x18] sm:$0xf] }
 0x26c   : >> { %2317 = vmatpush.bf16.msrb.mxu1 %v13449_v42  ;;  %v2172_v42 = vshrl.u32 %v2170_v16, 16 }
 0x26d   : >> { %2401 = vmatpush.bf16.msrb.mxu2 %v13451_v19  ;;  %v13478_v19 = vld [vmem:[#allocation11 + $0x180] sm:$0xff]  ;;  %v2262_v36 = vrot.slane %v13480_v51, 1  ;;  %v13506_v51 = vld [vmem:[#allocation11 + $0x228] sm:$0xff] }
 0x26e   : >> { %2495 = vmatpush.bf16.msrb.mxu3 %v13455_v58  ;;  %v13482_v58 = vld [vmem:[#allocation11 + $0x238] sm:$0xff]  ;;  %v2177_v16 = vor.u32 %v2176_v20, %v2172_v42 }
 0x26f   : >> { %2233 = vmatpush.bf16.msrb.mxu0 %v13460_v18  ;;  %v13485_v18 = vld [vmem:[#allocation11 + $0x1c0] sm:$0xff] }
 0x270   : >> { %2318 = vmatpush.bf16.msrb.mxu1 %v13464_v11 }
 0x271   : >> { %2402 = vmatpush.bf16.msrb.mxu2 %v13466_v47  ;;  %v13491_v47 = vld [vmem:[%s13332_s14 + $0x10] sm:$0xf] }
 0x272   : >> { %2496 = vmatpush.bf16.msrb.mxu3 %v13469_v50 }
 0x273   : >> { %2234 = vmatpush.bf16.msrb.mxu0 %v13472_v55 }
 0x274   : >> { %2319 = vmatpush.bf16.msrb.mxu1 %v13476_v31 }
 0x275   : >> { %2403 = vmatpush.bf16.msrb.mxu2 %v13478_v19 }
 0x276   : >> { %2497 = vmatpush.bf16.msrb.mxu3 %v13485_v18  ;;  %2235 = vmatmul.bf16.vlgmr.msrb.gmra.mxu0 %v2177_v16 }
 0x277   : >> { %2575 = vmatpush.bf16.msra.mxu0 %v13482_v58  ;;  %2320 = vmatmul.bf16.vlgmr.msrb.gmra.mxu1 %v2262_v36 }
 0x278   : >> { %2595 = vmatpush.bf16.msra.mxu1 %v13275_v23  ;;  %2404 = vmatmul.bf16.vlgmr.msrb.gmra.mxu2 %v13491_v47  ;;  %v13513_v23 = vld [vmem:[#allocation11 + $0x220] sm:$0xff] }
 0x279   : >> { %2608 = vmatpush.bf16.msra.mxu2 %v13277_v25  ;;  %2498 = vmatmul.bf16.vlgmr.msrb.gmra.mxu3 %v13500_v43  ;;  %v13519_v25 = vld [vmem:[#allocation11 + $0x218] sm:$0xff] }
 0x27a   : >> { %2621 = vmatpush.bf16.msra.mxu3 %v13279_v26  ;;  %v13525_v26 = vld [vmem:[#allocation11 + $0x210] sm:$0xff] }
 0x27b   : >> { %2576 = vmatpush.bf16.msra.mxu0 %v13496_v60 }
 0x27c   : >> { %2596 = vmatpush.bf16.msra.mxu1 %v13285_v27  ;;  %v9109_v27 = vld [vmem:[%s13332_s14 + $0x10] sm:$0xe] }
 0x27d   : >> { %2609 = vmatpush.bf16.msra.mxu2 %v13287_v28  ;;  %v2523_v28 = vunpack.c.l.b16 %v9109_v27 }
 0x27e   : >> { %2622 = vmatpush.bf16.msra.mxu3 %v13291_v32  ;;  %v13532_v32 = vld [vmem:[#allocation11 + $0x208] sm:$0xff] }
 0x27f   : >> { %2577 = vmatpush.bf16.msra.mxu0 %v13506_v51 }
 0x280   : >> { %2597 = vmatpush.bf16.msra.mxu1 %v13297_v35  ;;  %v15699_v35 = vunpack.c.l.b16 %v13432_v4 }
 0x281   : >> { %2610 = vmatpush.bf16.msra.mxu2 %v13299_v40 }
 0x282   : >> { %2623 = vmatpush.bf16.msra.mxu3 %v13303_v41  ;;  %v2524_v40 = vpack.c.b16 %v15699_v35, %v2523_v28  ;;  %v13540_v41 = vld [vmem:[#allocation11 + $0x200] sm:$0xff] }
 0x283   : >> { %2578 = vmatpush.bf16.msra.mxu0 %v13513_v23 }
 0x284   : >> { %2598 = vmatpush.bf16.msra.mxu1 %v13309_v7  ;;  %v2525_v7 = vrot.slane %v2524_v40, 1 }
 0x285   : >> { %2611 = vmatpush.bf16.msra.mxu2 %v13311_v46  ;;  %v15703_v46 = vld [vmem:[#allocation71_spill] sm:$0xff] }
 0x286   : >> { %2624 = vmatpush.bf16.msra.mxu3 %v13316_v48  ;;  %v15704_v48 = vld [vmem:[#allocation72_spill] sm:$0xff] }
 0x287   : >> { %2579 = vmatpush.bf16.msra.mxu0 %v13519_v25 }
 0x288   : >> { %2599 = vmatpush.bf16.msra.mxu1 %v13322_v52  ;;  %v15706_v52 = vld [vmem:[#allocation74_spill] sm:$0xff] }
 0x289   : >> { %2612 = vmatpush.bf16.msra.mxu2 %v13324_v53  ;;  %v15707_v53 = vld [vmem:[#allocation75_spill] sm:$0xff] }
 0x28a   : >> { %2625 = vmatpush.bf16.msra.mxu3 %v13328_v56  ;;  %v15708_v56 = vld [vmem:[#allocation63_spill] sm:$0xff] }
 0x28b   : >> { %2580 = vmatpush.bf16.msra.mxu0 %v13525_v26 }
 0x28c   : >> { %2600 = vmatpush.bf16.msra.mxu1 %v13338_v0  ;;  %v9144_v0 = vld [vmem:[%s13332_s14 + $0x18] sm:$0xf] }
 0x28d   : >> { %2613 = vmatpush.bf16.msra.mxu2 %v13340_v1  ;;  %v15710_v1 = vld [vmem:[#allocation65_spill] sm:$0xff] }
 0x28e   : >> { %2626 = vmatpush.bf16.msra.mxu3 %v13342_v3  ;;  %v15711_v3 = vld [vmem:[#allocation66_spill] sm:$0xff] }
 0x28f   : >> { %2581 = vmatpush.bf16.msra.mxu0 %v13532_v32 }
 0x290   : >> { %2601 = vmatpush.bf16.msra.mxu1 %v13351_v37  ;;  %v9146_v37 = vld [vmem:[%s13332_s14 + $0x1c] sm:$0x1] }
 0x291   : >> { %2614 = vmatpush.bf16.msra.mxu2 %v13353_v39  ;;  %v2700_v39 = vunpack.c.l.b16 %v9145_v5 }
 0x292   : >> { %2627 = vmatpush.bf16.msra.mxu3 %v13357_v38  ;;  %v15712_v38 = vld [vmem:[#allocation67_spill] sm:$0xff] }
 0x293   : >> { %2582 = vmatpush.bf16.msra.mxu0 %v13540_v41 }
 0x294   : >> { %2602 = vmatpush.bf16.msra.mxu1 %v13363_v6 }
 0x295   : >> { %2615 = vmatpush.bf16.msra.mxu2 %v13365_v30  ;;  %v15713_v30 = vld [vmem:[#allocation69_spill] sm:$0xff] }
 0x296   : >> { %2583 = vmatmul.bf16.vlgmr.msra.gmra.mxu0 %v2525_v7  ;;  %2628 = vmatpush.bf16.msra.mxu3 %v13369_v54  ;;  %v9147_v54 = vld [vmem:[%s13332_s14 + $0x18] sm:$0xe] }
 0x297   : >> { %2635 = vmatpush.bf16.msrb.mxu0 %v13281_v24  ;;  %2603 = vmatmul.bf16.vlgmr.msra.gmra.mxu1 %v2177_v16  ;;  %v15700_v24 = vld [vmem:[#allocation68_spill] sm:$0xff] }
 0x298   : >> { %2649 = vmatpush.bf16.msrb.mxu1 %v13371_v2  ;;  %2616 = vmatmul.bf16.vlgmr.msra.gmra.mxu2 %v13398_v13 }
 0x299   : >> { %2663 = vmatpush.bf16.msrb.mxu2 %v13373_v62  ;;  %2629 = vmatmul.bf16.vlgmr.msra.gmra.mxu3 %v2262_v36  ;;  %v2727_v62 = vunpack.c.l.b16 %v9147_v54 }
 0x29a   : >> { %2682 = vmatpush.bf16.msrb.mxu3 %v13375_v59  ;;  %v15714_v59 = vld [vmem:[#allocation73_spill] sm:$0xff] }
 0x29b   : >> { %2636 = vmatpush.bf16.msrb.mxu0 %v13293_v33  ;;  %v15701_v33 = vld [vmem:[#allocation61_spill] sm:$0xff] }
 0x29c   : >> { %2650 = vmatpush.bf16.msrb.mxu1 %v13385_v9 }
 0x29d   : >> { %2664 = vmatpush.bf16.msrb.mxu2 %v13389_v8 }
 0x29e   : >> { %2683 = vmatpush.bf16.msrb.mxu3 %v13391_v10 }
 0x29f   : >> { %2637 = vmatpush.bf16.msrb.mxu0 %v13305_v45  ;;  %v15702_v45 = vld [vmem:[#allocation70_spill] sm:$0xff] }
 0x2a0   : >> { %2651 = vmatpush.bf16.msrb.mxu1 %v13401_v14 }
 0x2a1   : >> { %2665 = vmatpush.bf16.msrb.mxu2 %v13405_v15 }
 0x2a2   : >> { %2684 = vmatpush.bf16.msrb.mxu3 %v13407_v17 }
 0x2a3   : >> { %2638 = vmatpush.bf16.msrb.mxu0 %v13318_v49  ;;  %v15705_v49 = vld [vmem:[#allocation62_spill] sm:$0xff] }
 0x2a4   : >> { %2652 = vmatpush.bf16.msrb.mxu1 %v13414_v21 }
 0x2a5   : >> { %2666 = vmatpush.bf16.msrb.mxu2 %v13418_v22 }
 0x2a6   : >> { %2685 = vmatpush.bf16.msrb.mxu3 %v13420_v12 }
 0x2a7   : >> { %2639 = vmatpush.bf16.msrb.mxu0 %v13330_v57  ;;  %v15709_v57 = vld [vmem:[#allocation64_spill] sm:$0xff] }
 0x2a8   : >> { %2653 = vmatpush.bf16.msrb.mxu1 %v13428_v61 }
 0x2a9   : >> { %2667 = vmatpush.bf16.msrb.mxu2 %v13436_v29 }
 0x2aa   : >> { %2686 = vmatpush.bf16.msrb.mxu3 %v15700_v24 }
 0x2ab   : >> { %2640 = vmatpush.bf16.msrb.mxu0 %v15701_v33 }
 0x2ac   : >> { %2654 = vmatpush.bf16.msrb.mxu1 %v15702_v45 }
 0x2ad   : >> { %2668 = vmatpush.bf16.msrb.mxu2 %v15703_v46 }
 0x2ae   : >> { %2687 = vmatpush.bf16.msrb.mxu3 %v15704_v48 }
 0x2af   : >> { %2641 = vmatpush.bf16.msrb.mxu0 %v15705_v49 }
 0x2b0   : >> { %2655 = vmatpush.bf16.msrb.mxu1 %v15706_v52 }
 0x2b1   : >> { %2669 = vmatpush.bf16.msrb.mxu2 %v13464_v11 }
 0x2b2   : >> { %2688 = vmatpush.bf16.msrb.mxu3 %v15707_v53 }
 0x2b3   : >> { %2642 = vmatpush.bf16.msrb.mxu0 %v15708_v56 }
 0x2b4   : >> { %2656 = vmatpush.bf16.msrb.mxu1 %v13472_v55 }
 0x2b5   : >> { %2670 = vmatpush.bf16.msrb.mxu2 %v13476_v31 }
 0x2b6   : >> { %2689 = vmatpush.bf16.msrb.mxu3 %v13478_v19  ;;  %2643 = vmatmul.bf16.vlgmr.msrb.gmra.mxu0 %v13491_v47  ;;  %v2701_v19 = vunpack.c.l.b16 %v9146_v37 }
 0x2b7   : >> { %2711 = vmatpush.bf16.msra.mxu0 %v15709_v57  ;;  %2657 = vmatmul.bf16.vlgmr.msrb.gmra.mxu1 %v13500_v43 }
 0x2b8   : >> { %2731 = vmatpush.bf16.msra.mxu1 %v13482_v58  ;;  %2671 = vmatmul.bf16.vlgmr.msrb.gmra.mxu2 %v2525_v7  ;;  %v2702_v6 = vpack.c.b16 %v2701_v19, %v2700_v39  ;;  %v2728_v8 = vpack.c.b16 %v2701_v19, %v2727_v62 }
 0x2b9   : >> { %2690 = vmatmul.bf16.vlgmr.msrb.gmra.mxu3 %v9144_v0  ;;  %v12159_v0 = vld [vmem:[#allocation12] ss:$0 sm:$0xff] }
 0x2ba   : >> { %v2706_v2 = vshll.u32 %v2702_v6, 16  ;;  %v2704_v47 = vshrl.u32 %v2702_v6, 16  ;;  %v2729_v11 = vrot.slane %v2728_v8, 1 }
 0x2bb   : >> { %2712 = vmatpush.bf16.msra.mxu0 %v15710_v1 }
 0x2bc   : >> { %2732 = vmatpush.bf16.msra.mxu1 %v13496_v60  ;;  %v2708_v9 = vrot.slane %v2706_v2, 1 }
 0x2be   : >> { %v2709_v10 = vor.u32 %v2708_v9, %v2704_v47  ;;  %v15716_v47 = vld [vmem:[#allocation41_spill] sm:$0xff] }
 0x2bf   : >> { %2713 = vmatpush.bf16.msra.mxu0 %v15711_v3 }
 0x2c0   : >> { %2733 = vmatpush.bf16.msra.mxu1 %v13506_v51 }
 0x2c3   : >> { %2714 = vmatpush.bf16.msra.mxu0 %v15712_v38 }
 0x2c4   : >> { %2734 = vmatpush.bf16.msra.mxu1 %v13513_v23 }
 0x2c7   : >> { %2715 = vmatpush.bf16.msra.mxu0 %v15713_v30 }
 0x2c8   : >> { %2735 = vmatpush.bf16.msra.mxu1 %v13519_v25 }
 0x2cb   : >> { %2716 = vmatpush.bf16.msra.mxu0 %v15714_v59  ;;  %v15715_v59 = vld [vmem:[#allocation40_spill] sm:$0xff] }
 0x2cc   : >> { %2736 = vmatpush.bf16.msra.mxu1 %v13525_v26 }
 0x2cf   : >> { %2717 = vmatpush.bf16.msra.mxu0 %v13469_v50 }
 0x2d0   : >> { %2737 = vmatpush.bf16.msra.mxu1 %v13532_v32 }
 0x2d3   : >> { %2718 = vmatpush.bf16.msra.mxu0 %v13485_v18  ;;  %v1913_v13 = vpop.f32.mrf.mxu0 }
 0x2d4   : >> { %2738 = vmatpush.bf16.msra.mxu1 %v13540_v41  ;;  %v1974_v14 = vpop.f32.mrf.mxu1 }
 0x2d5   : >> { %v1975_v15 = vadd.f32 %v1974_v14, %v1913_v13 }
 0x2d6   : >> { %2719 = vmatmul.bf16.vlgmr.msra.gmra.mxu0 %v2709_v10 }
 0x2d7   : >> { %2739 = vmatmul.bf16.vlgmr.msra.gmra.mxu1 %v2729_v11 }
 0x2db   : >> { %v2058_v17 = vpop.f32.mrf.mxu2  ;;  %v1915_v22 = vpop.f32.mrf.mxu0 }
 0x2dc   : >> { %v2062_v21 = vadd.f32 %v2058_v17, %v1975_v15  ;;  %v2142_v12 = vpop.f32.mrf.mxu3  ;;  %v1976_v58 = vpop.f32.mrf.mxu1  ;;  %v9151_v17 = vld [vmem:[%s8306_s22 + $0x4] sm:$0x7] }
 0x2de   : >> { %v2146_v61 = vadd.f32 %v2142_v12, %v2062_v21 }
 0x2e3   : >> { %v2060_v4 = vpop.f32.mrf.mxu2 }
 0x2e4   : >> { %v2144_v29 = vpop.f32.mrf.mxu3 }
 0x2f3   : >> { %v2236_v34 = vpop.f32.mrf.mxu0 }
 0x2f4   : >> { %v2321_v50 = vpop.f32.mrf.mxu1  ;;  %v2240_v31 = vadd.f32 %v2236_v34, %v2146_v61 }
 0x2f6   : >> { %v2325_v42 = vadd.f32 %v2321_v50, %v2240_v31 }
 0x2fb   : >> { %v2405_v18 = vpop.f32.mrf.mxu2  ;;  %v2238_v55 = vpop.f32.mrf.mxu0 }
 0x2fc   : >> { %v2409_v63 = vadd.f32 %v2405_v18, %v2325_v42  ;;  %v2499_v44 = vpop.f32.mrf.mxu3  ;;  %v2323_v16 = vpop.f32.mrf.mxu1 }
 0x2fe   : >> { %v2503_v20 = vadd.f32 %v2499_v44, %v2409_v63 }
 0x303   : >> { %v2407_v36 = vpop.f32.mrf.mxu2 }
 0x304   : >> { %v2501_v60 = vpop.f32.mrf.mxu3 }
 0x313   : >> { %v2584_v43 = vpop.f32.mrf.mxu0 }
 0x314   : >> { %v2604_v51 = vpop.f32.mrf.mxu1  ;;  %v2588_v57 = vadd.f32 %v2584_v43, %v2503_v20 }
 0x316   : >> { %v2593_v39 = vadd.f32 %v12159_v0, %v2588_v57 }
 0x318   : >> { %v2594_v6 = vmax.f32 %v2593_v39, 0.0 }
 0x31b   : >> { %v2617_v23 = vpop.f32.mrf.mxu2  ;;  %v2586_v25 = vpop.f32.mrf.mxu0 }
 0x31c   : >> { %v2630_v26 = vpop.f32.mrf.mxu3  ;;  %v2606_v27 = vpop.f32.mrf.mxu1  ;;  %v2618_v24 = vadd.f32 %v2617_v23, %v2604_v51 }
 0x31e   : >> { %v2634_v46 = vadd.f32 %v2630_v26, %v2618_v24 }
 0x323   : >> { %v2619_v28 = vpop.f32.mrf.mxu2 }
 0x324   : >> { %v2632_v32 = vpop.f32.mrf.mxu3 }
 0x333   : >> { %v2644_v35 = vpop.f32.mrf.mxu0 }
 0x334   : >> { %v2658_v40 = vpop.f32.mrf.mxu1  ;;  %v2648_v49 = vadd.f32 %v2644_v35, %v2634_v46 }
 0x336   : >> { %v2662_v53 = vadd.f32 %v2658_v40, %v2648_v49 }
 0x33b   : >> { %v2672_v41 = vpop.f32.mrf.mxu2  ;;  %v2646_v7 = vpop.f32.mrf.mxu0 }
 0x33c   : >> { %v2660_v33 = vpop.f32.mrf.mxu1  ;;  %v2691_v45 = vpop.f32.mrf.mxu3  ;;  %v2676_v56 = vadd.f32 %v2672_v41, %v2662_v53 }
 0x33e   : >> { %v2695_v1 = vadd.f32 %v2691_v45, %v2676_v56 }
 0x343   : >> { %v2674_v48 = vpop.f32.mrf.mxu2 }
 0x344   : >> { %v2693_v52 = vpop.f32.mrf.mxu3 }
 0x353   : >> { %v2720_v3 = vpop.f32.mrf.mxu0 }
 0x354   : >> { %v2740_v5 = vpop.f32.mrf.mxu1  ;;  %v2724_v37 = vadd.f32 %v2720_v3, %v2695_v1 }
 0x356   : >> { %v2744_v19 = vadd.f32 %v2740_v5, %v2724_v37 }
 0x358   : >> { %v2745_v38 = vadd.f32 %v12159_v0, %v2744_v19 }
 0x35a   : >> { %v2746_v30 = vmax.f32 %v2745_v38, 0.0 }
 0x35b   : >> { %v2722_v54 = vpop.f32.mrf.mxu0 }
 0x35c   : >> { %v2742_v2 = vpop.f32.mrf.mxu1  ;;  %v2747_v62 = vmax.f32 %v2594_v6, %v2746_v30 }
 0x35e   : >> { %2767 = vmatpush.msra.mxu2 %v2747_v62  ;;  %2790 = vmatpush.msra.mxu3 %v2747_v62 }
 0x35f   : >> { %9148 = vmatmul.msk.f32.vlgmr.msra.gmra.mxu2 %vm2748_vm11, %v15715_v59  ;;  %9149 = vmatmul.msk.f32.vlgmr.msra.gmra.mxu3 %vm2748_vm11, %v15716_v47 }
 0x3e2   : >> { %v2769_v9 = vpop.f32.mrf.mxu2  ;;  %v2792_v8 = vpop.f32.mrf.mxu3 }
 0x3e3   : >> { %v2795_v10 = vmax.f32 %v2769_v9, %v2792_v8 }
 0x3e5   : >> { %v2796_v11 = vpack.c.bf16 %v2795_v10, %v2795_v10 }
 0x3e7   : >> { %v2799_v13 = vshrl.u32 %v2796_v11, 16  ;;  %v2802_v15 = vshll.u32 %v2796_v11, 16 }
 0x3e9   : >> { %v2801_v14 = vrot.slane %v2799_v13, 7 }
 0x3ea   : > { %1802 = sbr.rel (!%p1800_p1) target bundleno = 566 (0x236), region = 238 }
 0x3eb   : >> { %v2804_v21 = vor.u32 %v2802_v15, %v2801_v14 }
 0x3ed   : >> { %v2812_v22 = vsel %vm2810_vm14, %v2804_v21, %v9151_v17 }
 0x3ee   : >> { %9152 = vst [vmem:[%s8306_s22 + $0x4] sm:$0x7] %v2812_v22 }
 0x3ef LB: >> { %v13614_v12 = vld [vmem:[#allocation14 + $0x78] sm:$0xff]  ;;  %v13624_v29 = vld [vmem:[#allocation14 + $0x70] sm:$0xff]  ;;  %v13636_v42 = vld [vmem:[#allocation14 + $0x68] sm:$0xff]  ;;  %s11428_s27 = sshll.u32 %s12642_s1, 3  ;;  %vm3749_vm15 = vcmask 31744   ;;  %vm3805_vm0 = vcmask 1041408   ;;  %s12642_s1 = sphi %s13609_s1, %s2819_s1  }
 0x3f0   : >> { %v13616_v58 = vld [vmem:[#allocation14 + $0x38] sm:$0xff]  ;;  %2917 = vmatpush.bf16.msra.mxu0 %v13614_v12  ;;  %v13626_v34 = vld [vmem:[#allocation14 + $0x30] sm:$0xff]  ;;  %v13638_v18 = vld [vmem:[#allocation14 + $0x28] sm:$0xff]  ;;  %s13671_s20 = scalar_lea.vmem [#allocation3], %s11428_s27  ;;  %s9462_s6 = sshll.u32 %s12642_s1, 1 }
 0x3f1   : >> { %v13618_v61 = vld [vmem:[#allocation14 + $0xb8] sm:$0xff]  ;;  %2978 = vmatpush.bf16.msra.mxu1 %v13616_v58  ;;  %v13630_v50 = vld [vmem:[#allocation14 + $0xb0] sm:$0xff]  ;;  %v13642_v63 = vld [vmem:[#allocation14 + $0xa8] sm:$0xff]  ;;  %vm3819_vm1 = vsmask.f32 1282  ;;  %s8323_s16 = scalar_lea.vmem [#allocation4], %s9462_s6 }
 0x3f2   : >> { %v13620_v4 = vld [vmem:[#allocation14 + $0xf8] sm:$0xff]  ;;  %3062 = vmatpush.bf16.msra.mxu2 %v13618_v61  ;;  %v13632_v31 = vld [vmem:[#allocation14 + $0xf0] sm:$0xff]  ;;  %v13644_v44 = vld [vmem:[#allocation14 + $0xe8] sm:$0xff]  ;;  %s2819_s1 = sadd.s32 1, %s12642_s1  }
 0x3f3   : >> { %3145 = vmatpush.bf16.msra.mxu3 %v13620_v4  ;;  %v13648_v55 = vld [vmem:[#allocation14 + $0x60] sm:$0xff]  ;;  %v13661_v60 = vld [vmem:[#allocation14 + $0x58] sm:$0xff]  ;;  %v13676_v26 = vld [vmem:[#allocation14 + $0x50] sm:$0xff]  ;;  %p2816_p2 = scmp.ge.s32.totalorder %s2819_s1, 2  }
 0x3f4   : >> { %2918 = vmatpush.bf16.msra.mxu0 %v13624_v29  ;;  %v13650_v20 = vld [vmem:[#allocation14 + $0x20] sm:$0xff]  ;;  %v13663_v43 = vld [vmem:[#allocation14 + $0x18] sm:$0xff]  ;;  %v13678_v27 = vld [vmem:[#allocation14 + $0x10] sm:$0xff]  ;;  %vm6689_vm3 = vcmask (%p2816_p2), 15360   ;;  %vm6893_vm4 = vcmask (%p2816_p2), 1041409   ;;  %vm6884_vm8 = vcmask (%p2816_p2), 1042434   ;;  %s8232_s2 = scalar_lea.hbm (%p2816_p2), %s15318_s13, %s12753_s29 }
 0x3f5   : >> { %2979 = vmatpush.bf16.msra.mxu1 %v13626_v34  ;;  %v13654_v16 = vld [vmem:[#allocation14 + $0xa0] sm:$0xff]  ;;  %v13667_v51 = vld [vmem:[#allocation14 + $0x98] sm:$0xff]  ;;  %v13680_v28 = vld [vmem:[#allocation14 + $0x90] sm:$0xff]  ;;  %vm6898_vm9 = vsmask.f32 (%p2816_p2), 2304  ;;  %vm6901_vm13 = vcmask (%p2816_p2), 1043459  }
 0x3f6   : >> { %3063 = vmatpush.bf16.msra.mxu2 %v13630_v50  ;;  %v13656_v36 = vld [vmem:[#allocation14 + $0xe0] sm:$0xff]  ;;  %v13669_v23 = vld [vmem:[#allocation14 + $0xd8] sm:$0xff]  ;;  %v13684_v35 = vld [vmem:[#allocation14 + $0xd0] sm:$0xff]  ;;  %vm6902_vm14 = vsmask.f32 (%p2816_p2), 3328  ;;  %s8234_s25 = sshll.u32 (%p2816_p2), %s12909_s30, 4  ;;  %s8235_s25 = int_to_ptr.vmem [resolvable:$true] %s8234_s25 }
 0x3f7   : >> { %3146 = vmatpush.bf16.msra.mxu3 %v13632_v31  ;;  %v2840_v25 = vld [vmem:[%s13671_s20] sm:$0x7]  ;;  %v13689_v7 = vld [vmem:[#allocation14 + $0x48] sm:$0xff]  ;;  %v13709_v1 = vld [vmem:[#allocation14 + $0x138] sm:$0xff]  ;;  %s8236_s19 = sshll.u32 (%p2816_p2), %s8232_s2, 4  ;;  %s8224_s15 = scalar_lea.sflag (%p2816_p2), [#allocation8], %s618_s3  ;;  %s8237_s19 = int_to_ptr.hbm [resolvable:$true] %s8236_s19 }
 0x3f8   : >> { %2919 = vmatpush.bf16.msra.mxu0 %v13636_v42  ;;  %v2859_v32 = vunpack.c.l.b16 %v2840_v25  ;;  %v2991_v40 = vld [vmem:[%s13671_s20] sm:$0x6]  ;;  %v13691_v24 = vld [vmem:[#allocation14 + $0x8] sm:$0xff]  ;;  %v13711_v3 = vld [vmem:[#allocation14 + $0x178] sm:$0xff]  ;;  %s12542_s21 = sshra.s32 (%p2816_p2), %s8237_s19, 4  ;;  %s12548_s4 = scalar_lea.hbm (%p2816_p2), %s15318_s13, 2  ;;  %s12543_s21 = int_to_ptr.hbm [resolvable:$true] %s12542_s21 }
 0x3f9   : >> { %2980 = vmatpush.bf16.msra.mxu1 %v13638_v18  ;;  %v3010_v33 = vunpack.c.l.b16 %v2991_v40  ;;  %v13695_v46 = vld [vmem:[#allocation14 + $0x88] sm:$0xff]  ;;  %v13701_v53 = vld [vmem:[#allocation14 + $0x40] sm:$0xff]  ;;  %v13713_v5 = vld [vmem:[#allocation14 + $0x1b8] sm:$0xff]  ;;  %s12544_s23 = scalar_lea.hbm (%p2816_p2), %s12543_s21, 1  ;;  %p12549_p8 = scmp.lt.s32.totalorder (%p2816_p2), %s12543_s21, %s15318_s13 }
 0x3fa   : >> { %3064 = vmatpush.bf16.msra.mxu2 %v13642_v63  ;;  %v2860_v41 = vpack.c.b16 %v2859_v32, %v2859_v32  ;;  %v13697_v48 = vld [vmem:[#allocation14 + $0xc8] sm:$0xff]  ;;  %v13703_v56 = vld [vmem:[#allocation14] sm:$0xff]  ;;  %v13719_v19 = vld [vmem:[#allocation14 + $0x1f8] sm:$0xff]  ;;  %p12545_p3 = scmp.ne.s32.totalorder (%p2816_p2), %s12543_s21, %s12544_s23  ;;  %p12550_p9 = scmp.lt.s32.totalorder (%p2816_p2), %s12548_s4, %s12544_s23 }
 0x3fb   : >> { %3147 = vmatpush.bf16.msra.mxu3 %v13644_v44  ;;  %15717 = vst [vmem:[#allocation76_spill] sm:$0xff] %v13697_v48  ;;  %v3011_v57 = vpack.c.b16 %v3010_v33, %v3010_v33  ;;  %v13707_v0 = vld [vmem:[#allocation14 + $0x80] sm:$0xff]  ;;  %v13723_v6 = vld [vmem:[#allocation14 + $0x130] sm:$0xff]  ;;  %v13740_v47 = vld [vmem:[#allocation14 + $0x128] sm:$0xff] }
 0x3fc   : >> { %2920 = vmatpush.bf16.msra.mxu0 %v13648_v55  ;;  %v2864_v45 = vshll.u32 %v2860_v41, 16  ;;  %v2862_v49 = vshrl.u32 %v2860_v41, 16  ;;  %v13715_v37 = vld [vmem:[#allocation14 + $0xc0] sm:$0xff]  ;;  %15719 = vst [vmem:[#allocation78_spill] sm:$0xff] %v13719_v19  ;;  %v13727_v30 = vld [vmem:[#allocation14 + $0x170] sm:$0xff]  ;;  %v13744_v9 = vld [vmem:[#allocation14 + $0x168] sm:$0xff]  ;;  %p12546_p4 = pnand (%p2816_p2), %p12545_p3, %p12770_p5  ;;  %p12551_p10 = por (%p2816_p2), %p12550_p9, %p12549_p8 }
 0x3fd   : >> { %2981 = vmatpush.bf16.msra.mxu1 %v13650_v20  ;;  %15718 = vst [vmem:[#allocation77_spill] sm:$0xff] %v13715_v37  ;;  %v3012_v38 = vrot.slane %v3011_v57, 1  ;;  %v13729_v54 = vld [vmem:[#allocation14 + $0x1b0] sm:$0xff]  ;;  %v2823_v2 = vld [vmem:[%s13671_s20] sm:$0x3]  ;;  %v13746_v8 = vld [vmem:[#allocation14 + $0x1a8] sm:$0xff] }
 0x3fe   : >> { %3065 = vmatpush.bf16.msra.mxu2 %v13654_v16  ;;  %v2866_v52 = vrot.slane %v2864_v45, 1  ;;  %v13734_v62 = vld [vmem:[#allocation14 + $0x1f0] sm:$0xff]  ;;  %v13737_v59 = vld [vmem:[%s13671_s20 + $0x4] sm:$0x3]  ;;  %v13750_v10 = vld [vmem:[#allocation14 + $0x1e8] sm:$0xff]  ;;  %p12547_p7 = pneg (%p2816_p2), %p12546_p4 }
 0x3ff   : >> { %3148 = vmatpush.bf16.msra.mxu3 %v13656_v36  ;;  %15720 = vst [vmem:[#allocation79_spill] sm:$0xff] %v13734_v62  ;;  %v13753_v11 = vld [vmem:[#allocation14 + $0x120] sm:$0xff]  ;;  %v13766_v21 = vld [vmem:[#allocation14 + $0x118] sm:$0xff]  ;;  %v9387_v22 = vld [vmem:[%s13671_s20 + $0x8] sm:$0x7] }
 0x400   : >> { %2921 = vmatpush.bf16.msra.mxu0 %v13661_v60  ;;  %v2867_v39 = vor.u32 %v2866_v52, %v2862_v49  ;;  %15721 = vst [vmem:[#allocation80_spill] sm:$0xff] %v13750_v10  ;;  %v13757_v13 = vld [vmem:[#allocation14 + $0x160] sm:$0xff]  ;;  %v13771_v25 = vld [vmem:[#allocation14 + $0x158] sm:$0xff]  ;;  %v3437_v33 = vunpack.c.l.b16 %v9387_v22  ;;  %v13779_v45 = vld [vmem:[#allocation14 + $0x110] sm:$0xff]  ;;  %p12552_p11 = pnand (%p2816_p2), %p12551_p10, %p12547_p7 }
 0x401   : >> { %2982 = vmatpush.bf16.msra.mxu1 %v13663_v43  ;;  %v13759_v14 = vld [vmem:[#allocation14 + $0x1a0] sm:$0xff]  ;;  %v13773_v32 = vld [vmem:[#allocation14 + $0x198] sm:$0xff]  ;;  %15724 = vst [vmem:[#allocation83_spill] sm:$0xff] %v13779_v45  ;;  %v13783_v49 = vld [vmem:[#allocation14 + $0x150] sm:$0xff] }
 0x402   : >> { %3066 = vmatpush.bf16.msra.mxu2 %v13667_v51  ;;  %v9286_v15 = vld [vmem:[%s13671_s20 + $0x4] sm:$0x7]  ;;  %v13776_v41 = vld [vmem:[#allocation14 + $0x1d8] sm:$0xff]  ;;  %15725 = vst [vmem:[#allocation84_spill] sm:$0xff] %v13783_v49  ;;  %v13785_v52 = vld [vmem:[#allocation14 + $0x190] sm:$0xff] }
 0x403   : >> { %3149 = vmatpush.bf16.msra.mxu3 %v13669_v23  ;;  %v13763_v17 = vld [vmem:[#allocation14 + $0x1e0] sm:$0xff]  ;;  %v3178_v40 = vunpack.c.l.b16 %v9286_v15  ;;  %15723 = vst [vmem:[#allocation82_spill] sm:$0xff] %v13776_v41  ;;  %v13792_v15 = vld [vmem:[#allocation14 + $0x108] sm:$0xff]  ;;  %vm3820_vm2 = vmand %vm3805_vm0, %vm3819_vm1 }
 0x404   : >> { %2922 = vmatpush.bf16.msra.mxu0 %v13676_v26  ;;  %15722 = vst [vmem:[#allocation81_spill] sm:$0xff] %v13763_v17  ;;  %v13796_v22 = vld [vmem:[#allocation14 + $0x148] sm:$0xff]  ;;  %vm6899_vm12 = vmand (%p2816_p2), %vm6884_vm8, %vm6898_vm9 }
 0x405   : >> { %2983 = vmatpush.bf16.msra.mxu1 %v13678_v27  ;;  %15726 = vst [vmem:[#allocation85_spill] sm:$0xff] %v13785_v52  ;;  %v3179_v57 = vpack.c.b16 %v3178_v40, %v3178_v40  ;;  %vm6903_vm1 = vmand (%p2816_p2), %vm6901_vm13, %vm6902_vm14 }
 0x406   : >> { %3067 = vmatpush.bf16.msra.mxu2 %v13680_v28  ;;  %15728 = vst [vmem:[#allocation87_spill] sm:$0xff] %v13792_v15 }
 0x407   : >> { %3150 = vmatpush.bf16.msra.mxu3 %v13684_v35 }
 0x408   : >> { %2923 = vmatpush.bf16.msra.mxu0 %v13689_v7 }
 0x409   : >> { %2984 = vmatpush.bf16.msra.mxu1 %v13691_v24 }
 0x40a   : >> { %3068 = vmatpush.bf16.msra.mxu2 %v13695_v46 }
 0x40b   : >> { %3151 = vmatpush.bf16.msra.mxu3 %v13697_v48  ;;  %v3181_v48 = vshrl.u32 %v3179_v57, 16 }
 0x40c   : >> { %2924 = vmatpush.bf16.msra.mxu0 %v13701_v53 }
 0x40d   : >> { %2985 = vmatpush.bf16.msra.mxu1 %v13703_v56 }
 0x40e   : >> { %3069 = vmatpush.bf16.msra.mxu2 %v13707_v0 }
 0x40f   : >> { %3152 = vmatpush.bf16.msra.mxu3 %v13715_v37  ;;  %2925 = vmatmul.bf16.vlgmr.msra.gmra.mxu0 %v2867_v39  ;;  %v9319_v39 = vld [vmem:[%s13671_s20 + $0x4] sm:$0x6] }
 0x410   : >> { %3236 = vmatpush.bf16.msrb.mxu0 %v13709_v1  ;;  %2986 = vmatmul.bf16.vlgmr.msra.gmra.mxu1 %v2823_v2  ;;  %v3438_v2 = vpack.c.b16 %v3437_v33, %v3437_v33  ;;  %v3269_v40 = vunpack.c.l.b16 %v9319_v39  ;;  %v13804_v33 = vld [vmem:[#allocation14 + $0x100] sm:$0xff] }
 0x411   : >> { %3321 = vmatpush.bf16.msrb.mxu1 %v13711_v3  ;;  %3070 = vmatmul.bf16.vlgmr.msra.gmra.mxu2 %v3012_v38  ;;  %v13789_v38 = vld [vmem:[#allocation14 + $0x1d0] sm:$0xff]  ;;  %v13810_v37 = vld [vmem:[#allocation14 + $0x180] sm:$0xff] }
 0x412   : >> { %3404 = vmatpush.bf16.msrb.mxu2 %v13713_v5  ;;  %3153 = vmatmul.bf16.vlgmr.msra.gmra.mxu3 %v13737_v59  ;;  %15727 = vst [vmem:[#allocation86_spill] sm:$0xff] %v13789_v38 }
 0x413   : >> { %3495 = vmatpush.bf16.msrb.mxu3 %v13719_v19  ;;  %v13808_v19 = vld [vmem:[#allocation14 + $0x140] sm:$0xff] }
 0x414   : >> { %3237 = vmatpush.bf16.msrb.mxu0 %v13723_v6 }
 0x415   : >> { %3322 = vmatpush.bf16.msrb.mxu1 %v13727_v30 }
 0x416   : >> { %3405 = vmatpush.bf16.msrb.mxu2 %v13729_v54 }
 0x417   : >> { %3496 = vmatpush.bf16.msrb.mxu3 %v13734_v62  ;;  %v3442_v62 = vshll.u32 %v3438_v2, 16 }
 0x418   : >> { %3238 = vmatpush.bf16.msrb.mxu0 %v13740_v47 }
 0x419   : >> { %3323 = vmatpush.bf16.msrb.mxu1 %v13744_v9 }
 0x41a   : >> { %3406 = vmatpush.bf16.msrb.mxu2 %v13746_v8 }
 0x41b   : >> { %3497 = vmatpush.bf16.msrb.mxu3 %v13750_v10  ;;  %v3183_v10 = vshll.u32 %v3179_v57, 16 }
 0x41c   : >> { %3239 = vmatpush.bf16.msrb.mxu0 %v13753_v11 }
 0x41d   : >> { %3324 = vmatpush.bf16.msrb.mxu1 %v13757_v13  ;;  %v3185_v39 = vrot.slane %v3183_v10, 1 }
 0x41e   : >> { %3407 = vmatpush.bf16.msrb.mxu2 %v13759_v14 }
 0x41f   : >> { %3498 = vmatpush.bf16.msrb.mxu3 %v13763_v17  ;;  %v13798_v17 = vld [vmem:[#allocation14 + $0x188] sm:$0xff]  ;;  %v3186_v57 = vor.u32 %v3185_v39, %v3181_v48 }
 0x420   : >> { %3240 = vmatpush.bf16.msrb.mxu0 %v13766_v21  ;;  %15729 = vst [vmem:[#allocation88_spill] sm:$0xff] %v13798_v17  ;;  %v13838_v48 = vld [vmem:[#allocation14 + $0x228] sm:$0xff] }
 0x421   : >> { %3325 = vmatpush.bf16.msrb.mxu1 %v13771_v25 }
 0x422   : >> { %3408 = vmatpush.bf16.msrb.mxu2 %v13773_v32 }
 0x423   : >> { %3499 = vmatpush.bf16.msrb.mxu3 %v13776_v41  ;;  %v13801_v41 = vld [vmem:[#allocation14 + $0x1c8] sm:$0xff] }
 0x424   : >> { %3241 = vmatpush.bf16.msrb.mxu0 %v13779_v45  ;;  %v3444_v45 = vrot.slane %v3442_v62, 1 }
 0x425   : >> { %3326 = vmatpush.bf16.msrb.mxu1 %v13783_v49  ;;  %v3440_v49 = vshrl.u32 %v3438_v2, 16 }
 0x426   : >> { %3409 = vmatpush.bf16.msrb.mxu2 %v13785_v52  ;;  %v13812_v52 = vpack.c.b16 %v3269_v40, %v3269_v40  ;;  %v13828_v40 = vld [vmem:[#allocation14 + $0x230] sm:$0xff] }
 0x427   : >> { %3500 = vmatpush.bf16.msrb.mxu3 %v13789_v38  ;;  %v13814_v38 = vld [vmem:[#allocation14 + $0x238] sm:$0xff]  ;;  %v13832_v62 = vor.u32 %v3444_v45, %v3440_v49 }
 0x428   : >> { %3242 = vmatpush.bf16.msrb.mxu0 %v13792_v15  ;;  %v13817_v15 = vld [vmem:[#allocation14 + $0x1c0] sm:$0xff]  ;;  %v3271_v10 = vrot.slane %v13812_v52, 1 }
 0x429   : >> { %3327 = vmatpush.bf16.msrb.mxu1 %v13796_v22 }
 0x42a   : >> { %3410 = vmatpush.bf16.msrb.mxu2 %v13798_v17  ;;  %v13823_v17 = vld [vmem:[%s13671_s20 + $0x8] sm:$0x3] }
 0x42b   : >> { %3501 = vmatpush.bf16.msrb.mxu3 %v13801_v41 }
 0x42c   : >> { %3243 = vmatpush.bf16.msrb.mxu0 %v13804_v33 }
 0x42d   : >> { %3328 = vmatpush.bf16.msrb.mxu1 %v13808_v19 }
 0x42e   : >> { %3411 = vmatpush.bf16.msrb.mxu2 %v13810_v37 }
 0x42f   : >> { %3502 = vmatpush.bf16.msrb.mxu3 %v13817_v15  ;;  %3244 = vmatmul.bf16.vlgmr.msrb.gmra.mxu0 %v3186_v57 }
 0x430   : >> { %3580 = vmatpush.bf16.msra.mxu0 %v13814_v38  ;;  %3329 = vmatmul.bf16.vlgmr.msrb.gmra.mxu1 %v3271_v10 }
 0x431   : >> { %3600 = vmatpush.bf16.msra.mxu1 %v13614_v12  ;;  %3412 = vmatmul.bf16.vlgmr.msrb.gmra.mxu2 %v13823_v17  ;;  %v13845_v12 = vld [vmem:[#allocation14 + $0x220] sm:$0xff] }
 0x432   : >> { %3613 = vmatpush.bf16.msra.mxu2 %v13616_v58  ;;  %3503 = vmatmul.bf16.vlgmr.msrb.gmra.mxu3 %v13832_v62  ;;  %v13851_v58 = vld [vmem:[#allocation14 + $0x218] sm:$0xff] }
 0x433   : >> { %3626 = vmatpush.bf16.msra.mxu3 %v13618_v61  ;;  %v13857_v61 = vld [vmem:[#allocation14 + $0x210] sm:$0xff] }
 0x434   : >> { %3581 = vmatpush.bf16.msra.mxu0 %v13828_v40 }
 0x435   : >> { %3601 = vmatpush.bf16.msra.mxu1 %v13624_v29  ;;  %v9420_v29 = vld [vmem:[%s13671_s20 + $0x8] sm:$0x6] }
 0x436   : >> { %3614 = vmatpush.bf16.msra.mxu2 %v13626_v34  ;;  %v3528_v34 = vunpack.c.l.b16 %v9420_v29 }
 0x437   : >> { %3627 = vmatpush.bf16.msra.mxu3 %v13630_v50  ;;  %v13864_v50 = vld [vmem:[#allocation14 + $0x208] sm:$0xff] }
 0x438   : >> { %3582 = vmatpush.bf16.msra.mxu0 %v13838_v48 }
 0x439   : >> { %3602 = vmatpush.bf16.msra.mxu1 %v13636_v42  ;;  %v3529_v42 = vpack.c.b16 %v3528_v34, %v3528_v34 }
 0x43a   : >> { %3615 = vmatpush.bf16.msra.mxu2 %v13638_v18  ;;  %v13870_v18 = vld [vmem:[#allocation14 + $0x200] sm:$0xff] }
 0x43b   : >> { %3628 = vmatpush.bf16.msra.mxu3 %v13642_v63  ;;  %v3530_v63 = vrot.slane %v3529_v42, 1 }
 0x43c   : >> { %3583 = vmatpush.bf16.msra.mxu0 %v13845_v12 }
 0x43d   : >> { %3603 = vmatpush.bf16.msra.mxu1 %v13648_v55  ;;  %v15733_v55 = vld [vmem:[#allocation76_spill] sm:$0xff] }
 0x43e   : >> { %3616 = vmatpush.bf16.msra.mxu2 %v13650_v20  ;;  %v15734_v20 = vld [vmem:[#allocation87_spill] sm:$0xff] }
 0x43f   : >> { %3629 = vmatpush.bf16.msra.mxu3 %v13654_v16  ;;  %v15735_v16 = vld [vmem:[#allocation88_spill] sm:$0xff] }
 0x440   : >> { %3584 = vmatpush.bf16.msra.mxu0 %v13851_v58 }
 0x441   : >> { %3604 = vmatpush.bf16.msra.mxu1 %v13661_v60  ;;  %v15737_v60 = vld [vmem:[#allocation78_spill] sm:$0xff] }
 0x442   : >> { %3617 = vmatpush.bf16.msra.mxu2 %v13663_v43  ;;  %v9455_v43 = vld [vmem:[%s13671_s20 + $0xc] sm:$0x3] }
 0x443   : >> { %3630 = vmatpush.bf16.msra.mxu3 %v13667_v51  ;;  %v15738_v51 = vld [vmem:[#allocation79_spill] sm:$0xff] }
 0x444   : >> { %3585 = vmatpush.bf16.msra.mxu0 %v13857_v61 }
 0x445   : >> { %3605 = vmatpush.bf16.msra.mxu1 %v13676_v26  ;;  %v9456_v26 = vld [vmem:[%s13671_s20 + $0xc] sm:$0x7] }
 0x446   : >> { %3618 = vmatpush.bf16.msra.mxu2 %v13678_v27  ;;  %v3702_v27 = vunpack.c.l.b16 %v9456_v26 }
 0x447   : >> { %3631 = vmatpush.bf16.msra.mxu3 %v13680_v28  ;;  %v15740_v28 = vld [vmem:[#allocation81_spill] sm:$0xff] }
 0x448   : >> { %3586 = vmatpush.bf16.msra.mxu0 %v13864_v50 }
 0x449   : >> { %3606 = vmatpush.bf16.msra.mxu1 %v13689_v7  ;;  %v15741_v7 = vld [vmem:[#allocation82_spill] sm:$0xff] }
 0x44a   : >> { %3619 = vmatpush.bf16.msra.mxu2 %v13691_v24  ;;  %v9457_v24 = vld [vmem:[%s13671_s20 + $0xc] sm:$0x6] }
 0x44b   : >> { %3632 = vmatpush.bf16.msra.mxu3 %v13695_v46 }
 0x44c   : >> { %3587 = vmatpush.bf16.msra.mxu0 %v13870_v18 }
 0x44d   : >> { %3607 = vmatpush.bf16.msra.mxu1 %v13701_v53  ;;  %v3728_v53 = vunpack.c.l.b16 %v9457_v24 }
 0x44e   : >> { %3620 = vmatpush.bf16.msra.mxu2 %v13703_v56  ;;  %v15742_v56 = vld [vmem:[#allocation86_spill] sm:$0xff] }
 0x44f   : >> { %3588 = vmatmul.bf16.vlgmr.msra.gmra.mxu0 %v3530_v63  ;;  %3633 = vmatpush.bf16.msra.mxu3 %v13707_v0 }
 0x450   : >> { %3640 = vmatpush.bf16.msrb.mxu0 %v13620_v4  ;;  %3608 = vmatmul.bf16.vlgmr.msra.gmra.mxu1 %v3186_v57  ;;  %v15730_v4 = vld [vmem:[#allocation83_spill] sm:$0xff] }
 0x451   : >> { %3654 = vmatpush.bf16.msrb.mxu1 %v13709_v1  ;;  %3621 = vmatmul.bf16.vlgmr.msra.gmra.mxu2 %v13737_v59 }
 0x452   : >> { %3668 = vmatpush.bf16.msrb.mxu2 %v13711_v3  ;;  %3634 = vmatmul.bf16.vlgmr.msra.gmra.mxu3 %v3271_v10  ;;  %v3729_v3 = vpack.c.b16 %v3728_v53, %v3728_v53 }
 0x453   : >> { %3686 = vmatpush.bf16.msrb.mxu3 %v13713_v5 }
 0x454   : >> { %3641 = vmatpush.bf16.msrb.mxu0 %v13632_v31  ;;  %v15731_v31 = vld [vmem:[#allocation84_spill] sm:$0xff] }
 0x455   : >> { %3655 = vmatpush.bf16.msrb.mxu1 %v13723_v6 }
 0x456   : >> { %3669 = vmatpush.bf16.msrb.mxu2 %v13727_v30 }
 0x457   : >> { %3687 = vmatpush.bf16.msrb.mxu3 %v13729_v54 }
 0x458   : >> { %3642 = vmatpush.bf16.msrb.mxu0 %v13644_v44  ;;  %v15732_v44 = vld [vmem:[#allocation85_spill] sm:$0xff] }
 0x459   : >> { %3656 = vmatpush.bf16.msrb.mxu1 %v13740_v47 }
 0x45a   : >> { %3670 = vmatpush.bf16.msrb.mxu2 %v13744_v9 }
 0x45b   : >> { %3688 = vmatpush.bf16.msrb.mxu3 %v13746_v8 }
 0x45c   : >> { %3643 = vmatpush.bf16.msrb.mxu0 %v13656_v36  ;;  %v15736_v36 = vld [vmem:[#allocation77_spill] sm:$0xff] }
 0x45d   : >> { %3657 = vmatpush.bf16.msrb.mxu1 %v13753_v11 }
 0x45e   : >> { %3671 = vmatpush.bf16.msrb.mxu2 %v13757_v13 }
 0x45f   : >> { %3689 = vmatpush.bf16.msrb.mxu3 %v13759_v14 }
 0x460   : >> { %3644 = vmatpush.bf16.msrb.mxu0 %v13669_v23  ;;  %v15739_v23 = vld [vmem:[#allocation80_spill] sm:$0xff] }
 0x461   : >> { %3658 = vmatpush.bf16.msrb.mxu1 %v13766_v21 }
 0x462   : >> { %3672 = vmatpush.bf16.msrb.mxu2 %v13771_v25 }
 0x463   : >> { %3690 = vmatpush.bf16.msrb.mxu3 %v13773_v32 }
 0x464   : >> { %3645 = vmatpush.bf16.msrb.mxu0 %v13684_v35  ;;  %v3703_v35 = vpack.c.b16 %v3702_v27, %v3702_v27 }
 0x465   : >> { %3659 = vmatpush.bf16.msrb.mxu1 %v15730_v4 }
 0x466   : >> { %3673 = vmatpush.bf16.msrb.mxu2 %v15731_v31  ;;  %v3707_v46 = vshll.u32 %v3703_v35, 16  ;;  %v3705_v0 = vshrl.u32 %v3703_v35, 16 }
 0x467   : >> { %3691 = vmatpush.bf16.msrb.mxu3 %v15732_v44 }
 0x468   : >> { %3646 = vmatpush.bf16.msrb.mxu0 %v15733_v55  ;;  %v3709_v1 = vrot.slane %v3707_v46, 1 }
 0x469   : >> { %3660 = vmatpush.bf16.msrb.mxu1 %v15734_v20 }
 0x46a   : >> { %3674 = vmatpush.bf16.msrb.mxu2 %v13796_v22  ;;  %v3710_v5 = vor.u32 %v3709_v1, %v3705_v0  ;;  %v15744_v0 = vld [vmem:[#allocation41_spill] sm:$0xff] }
 0x46b   : >> { %3692 = vmatpush.bf16.msrb.mxu3 %v15735_v16 }
 0x46c   : >> { %3647 = vmatpush.bf16.msrb.mxu0 %v15736_v36  ;;  %v12160_v36 = vld [vmem:[#allocation15] ss:$0 sm:$0xff] }
 0x46d   : >> { %3661 = vmatpush.bf16.msrb.mxu1 %v13804_v33 }
 0x46e   : >> { %3675 = vmatpush.bf16.msrb.mxu2 %v13808_v19 }
 0x46f   : >> { %3693 = vmatpush.bf16.msrb.mxu3 %v13810_v37  ;;  %3648 = vmatmul.bf16.vlgmr.msrb.gmra.mxu0 %v13823_v17  ;;  %v3730_v37 = vrot.slane %v3729_v3, 1 }
 0x470   : >> { %3712 = vmatpush.bf16.msra.mxu0 %v15737_v60  ;;  %3662 = vmatmul.bf16.vlgmr.msrb.gmra.mxu1 %v13832_v62 }
 0x471   : >> { %3732 = vmatpush.bf16.msra.mxu1 %v13814_v38  ;;  %3676 = vmatmul.bf16.vlgmr.msrb.gmra.mxu2 %v3530_v63 }
 0x472   : >> { %3694 = vmatmul.bf16.vlgmr.msrb.gmra.mxu3 %v9455_v43 }
 0x474   : >> { %3713 = vmatpush.bf16.msra.mxu0 %v15738_v51 }
 0x475   : >> { %3733 = vmatpush.bf16.msra.mxu1 %v13828_v40 }
 0x478   : >> { %3714 = vmatpush.bf16.msra.mxu0 %v15739_v23 }
 0x479   : >> { %3734 = vmatpush.bf16.msra.mxu1 %v13838_v48 }
 0x47c   : >> { %3715 = vmatpush.bf16.msra.mxu0 %v15740_v28 }
 0x47d   : >> { %3735 = vmatpush.bf16.msra.mxu1 %v13845_v12 }
 0x480   : >> { %3716 = vmatpush.bf16.msra.mxu0 %v15741_v7 }
 0x481   : >> { %3736 = vmatpush.bf16.msra.mxu1 %v13851_v58 }
 0x484   : >> { %3717 = vmatpush.bf16.msra.mxu0 %v15742_v56  ;;  %v15743_v56 = vld [vmem:[#allocation40_spill] sm:$0xff] }
 0x485   : >> { %3737 = vmatpush.bf16.msra.mxu1 %v13857_v61 }
 0x488   : >> { %3718 = vmatpush.bf16.msra.mxu0 %v13801_v41 }
 0x489   : >> { %3738 = vmatpush.bf16.msra.mxu1 %v13864_v50 }
 0x48c   : >> { %3719 = vmatpush.bf16.msra.mxu0 %v13817_v15  ;;  %v2926_v19 = vpop.f32.mrf.mxu0 }
 0x48d   : >> { %3739 = vmatpush.bf16.msra.mxu1 %v13870_v18  ;;  %v2987_v6 = vpop.f32.mrf.mxu1 }
 0x48e   : >> { %v2988_v30 = vadd.f32 %v2987_v6, %v2926_v19 }
 0x48f   : >> { %3720 = vmatmul.bf16.vlgmr.msra.gmra.mxu0 %v3710_v5 }
 0x490   : >> { %3740 = vmatmul.bf16.vlgmr.msra.gmra.mxu1 %v3730_v37 }
 0x494   : >> { %v3071_v54 = vpop.f32.mrf.mxu2  ;;  %v2928_v47 = vpop.f32.mrf.mxu0 }
 0x495   : >> { %v3075_v59 = vadd.f32 %v3071_v54, %v2988_v30  ;;  %v3154_v9 = vpop.f32.mrf.mxu3  ;;  %v2989_v8 = vpop.f32.mrf.mxu1  ;;  %v9463_v47 = vld [vmem:[%s8323_s16 + $0x2] sm:$0x3] }
 0x497   : >> { %v3158_v11 = vadd.f32 %v3154_v9, %v3075_v59 }
 0x49c   : >> { %v3073_v13 = vpop.f32.mrf.mxu2 }
 0x49d   : >> { %v3156_v14 = vpop.f32.mrf.mxu3  ;;  %v11566_v13 = vld [vmem:[#allocation17 + $0x1ec] sm:$0xf0] (%p2816_p2) }
 0x49e   : > { %v11564_v14 = vld [vmem:[#allocation17 + $0x1e4] sm:$0xf] (%p2816_p2) }
 0x4ac   : >> { %v3245_v17 = vpop.f32.mrf.mxu0 }
 0x4ad   : >> { %v3330_v21 = vpop.f32.mrf.mxu1  ;;  %v3249_v25 = vadd.f32 %v3245_v17, %v3158_v11  ;;  %v9579_v11 = vld [vmem:[#allocation17 + $0x1e0] sm:$0xf] (%p2816_p2) }
 0x4ae   : > { %v13942_v17 = vor.u32 (%p2816_p2), %v11566_v13, %v9579_v11  ;;  %v9507_v11 = vld [vmem:[#allocation17 + $0x148] sm:$0xf] (%p2816_p2)  ;;  %v11547_v13 = vld [vmem:[#allocation17 + $0x154] sm:$0xf0] (%p2816_p2) }
 0x4af   : >> { %v3334_v32 = vadd.f32 %v3330_v21, %v3249_v25  ;;  %v9581_v21 = vld [vmem:[#allocation17 + $0x1f0] sm:$0xf0] (%p2816_p2)  ;;  %v9587_v25 = vld [vmem:[#allocation17 + $0x1e8] sm:$0xf] (%p2816_p2) }
 0x4b0   : > { %4061 = vmatpush.bf16.msra.mxu0 (%p2816_p2), %v13942_v17 }
 0x4b4   : >> { %v3413_v41 = vpop.f32.mrf.mxu2  ;;  %v3247_v52 = vpop.f32.mrf.mxu0 }
 0x4b5   : >> { %v3417_v45 = vadd.f32 %v3413_v41, %v3334_v32  ;;  %v3504_v49 = vpop.f32.mrf.mxu3  ;;  %v3332_v2 = vpop.f32.mrf.mxu1  ;;  %v11567_v32 = vld [vmem:[#allocation17 + $0x1f4] sm:$0xf0] (%p2816_p2)  ;;  %v13944_v41 = vor.u32 (%p2816_p2), %v11564_v14, %v9581_v21  ;;  %v9589_v52 = vld [vmem:[#allocation17 + $0x1f8] sm:$0xf0] (%p2816_p2)  ;;  %v11545_v14 = vld [vmem:[#allocation17 + $0x14c] sm:$0xf] (%p2816_p2) }
 0x4b6   : > { %v9509_v21 = vld [vmem:[#allocation17 + $0x158] sm:$0xf0] (%p2816_p2) }
 0x4b7   : >> { %v3508_v38 = vadd.f32 %v3504_v49, %v3417_v45  ;;  %v13946_v45 = vor.u32 (%p2816_p2), %v11567_v32, %v9587_v25  ;;  %v11565_v49 = vld [vmem:[#allocation17 + $0x1ec] sm:$0xf] (%p2816_p2)  ;;  %4074 = vmatpush.bf16.msra.mxu1 (%p2816_p2), %v13944_v41 }
 0x4b8   : > { %v13949_v2 = vor.u32 (%p2816_p2), %v11565_v49, %v9589_v52  ;;  %v14005_v49 = vor.u32 (%p2816_p2), %v11547_v13, %v9507_v11  ;;  %v9483_v52 = vld [vmem:[#allocation17 + $0x120] sm:$0xf] (%p2816_p2)  ;;  %v11530_v11 = vld [vmem:[#allocation17 + $0xcc] sm:$0xf0] (%p2816_p2)  ;;  %v11528_v13 = vld [vmem:[#allocation17 + $0xc4] sm:$0xf] (%p2816_p2) }
 0x4bc   : >> { %v3415_v15 = vpop.f32.mrf.mxu2 }
 0x4bd   : >> { %v3506_v22 = vpop.f32.mrf.mxu3  ;;  %v11562_v15 = vld [vmem:[#allocation17 + $0x1cc] sm:$0xf0] (%p2816_p2) }
 0x4be   : > { %v11560_v22 = vld [vmem:[#allocation17 + $0x1c4] sm:$0xf] (%p2816_p2) }
 0x4cc   : >> { %v3589_v33 = vpop.f32.mrf.mxu0 }
 0x4cd   : >> { %v3609_v39 = vpop.f32.mrf.mxu1  ;;  %v3593_v16 = vadd.f32 %v3589_v33, %v3508_v38  ;;  %v9563_v38 = vld [vmem:[#allocation17 + $0x1c0] sm:$0xf] (%p2816_p2)  ;;  %v9565_v33 = vld [vmem:[#allocation17 + $0x1d0] sm:$0xf0] (%p2816_p2) }
 0x4cf   : >> { %v3598_v26 = vadd.f32 %v12160_v36, %v3593_v16  ;;  %v11554_v16 = vld [vmem:[#allocation17 + $0x18c] sm:$0xf0] (%p2816_p2) }
 0x4d1   : >> { %v3599_v35 = vmax.f32 %v3598_v26, 0.0  ;;  %v11553_v26 = vld [vmem:[#allocation17 + $0x18c] sm:$0xf] (%p2816_p2) }
 0x4d4   : >> { %v3622_v57 = vpop.f32.mrf.mxu2  ;;  %v3591_v10 = vpop.f32.mrf.mxu0 }
 0x4d5   : >> { %v3635_v40 = vpop.f32.mrf.mxu3  ;;  %v3611_v62 = vpop.f32.mrf.mxu1  ;;  %v3623_v50 = vadd.f32 %v3622_v57, %v3609_v39  ;;  %v13953_v39 = vor.u32 (%p2816_p2), %v11562_v15, %v9563_v38  ;;  %v13955_v57 = vor.u32 (%p2816_p2), %v11560_v22, %v9565_v33  ;;  %v9571_v10 = vld [vmem:[#allocation17 + $0x1c8] sm:$0xf] (%p2816_p2)  ;;  %v11542_v38 = vld [vmem:[#allocation17 + $0x12c] sm:$0xf0] (%p2816_p2)  ;;  %v11540_v15 = vld [vmem:[#allocation17 + $0x124] sm:$0xf] (%p2816_p2)  ;;  %v14008_v22 = vor.u32 (%p2816_p2), %v11545_v14, %v9509_v21 }
 0x4d6   : > { %v11561_v62 = vld [vmem:[#allocation17 + $0x1cc] sm:$0xf] (%p2816_p2)  ;;  %v9485_v33 = vld [vmem:[#allocation17 + $0x130] sm:$0xf0] (%p2816_p2) }
 0x4d7   : >> { %v3639_v63 = vadd.f32 %v3635_v40, %v3623_v50  ;;  %v11563_v40 = vld [vmem:[#allocation17 + $0x1d4] sm:$0xf0] (%p2816_p2)  ;;  %v9549_v50 = vld [vmem:[#allocation17 + $0x1b0] sm:$0xf0] (%p2816_p2)  ;;  %4062 = vmatpush.bf16.msra.mxu0 (%p2816_p2), %v13953_v39  ;;  %4075 = vmatpush.bf16.msra.mxu1 (%p2816_p2), %v13955_v57 }
 0x4d8   : > { %v9693_v21 = vld [vmem:[#allocation17 + $0xd0] sm:$0xf0] (%p2816_p2) }
 0x4dc   : >> { %v3624_v48 = vpop.f32.mrf.mxu2 }
 0x4dd   : >> { %v3637_v12 = vpop.f32.mrf.mxu3  ;;  %v13958_v48 = vor.u32 (%p2816_p2), %v11563_v40, %v9571_v10  ;;  %v9491_v10 = vld [vmem:[#allocation17 + $0x128] sm:$0xf] (%p2816_p2)  ;;  %v11543_v40 = vld [vmem:[#allocation17 + $0x134] sm:$0xf0] (%p2816_p2) }
 0x4de   : > { %v9573_v12 = vld [vmem:[#allocation17 + $0x1d8] sm:$0xf0] (%p2816_p2) }
 0x4ec   : >> { %v3649_v58 = vpop.f32.mrf.mxu0 }
 0x4ed   : >> { %v3663_v61 = vpop.f32.mrf.mxu1  ;;  %v3653_v31 = vadd.f32 %v3649_v58, %v3639_v63  ;;  %v9547_v58 = vld [vmem:[#allocation17 + $0x1a0] sm:$0xf] (%p2816_p2)  ;;  %v11559_v63 = vld [vmem:[#allocation17 + $0x1b4] sm:$0xf0] (%p2816_p2) }
 0x4ef   : >> { %v3667_v55 = vadd.f32 %v3663_v61, %v3653_v31  ;;  %v11558_v61 = vld [vmem:[#allocation17 + $0x1ac] sm:$0xf0] (%p2816_p2)  ;;  %v9557_v31 = vld [vmem:[#allocation17 + $0x1b8] sm:$0xf0] (%p2816_p2) }
 0x4f4   : >> { %v3677_v29 = vpop.f32.mrf.mxu2  ;;  %v3651_v34 = vpop.f32.mrf.mxu0 }
 0x4f5   : >> { %v3665_v42 = vpop.f32.mrf.mxu1  ;;  %v3695_v18 = vpop.f32.mrf.mxu3  ;;  %v3681_v20 = vadd.f32 %v3677_v29, %v3667_v55  ;;  %v13960_v29 = vor.u32 (%p2816_p2), %v11561_v62, %v9573_v12  ;;  %v11556_v34 = vld [vmem:[#allocation17 + $0x1a4] sm:$0xf] (%p2816_p2)  ;;  %v11541_v62 = vld [vmem:[#allocation17 + $0x12c] sm:$0xf] (%p2816_p2)  ;;  %v9493_v12 = vld [vmem:[#allocation17 + $0x138] sm:$0xf0] (%p2816_p2) }
 0x4f6   : > { %v9555_v42 = vld [vmem:[#allocation17 + $0x1a8] sm:$0xf] (%p2816_p2) }
 0x4f7   : >> { %v3699_v60 = vadd.f32 %v3695_v18, %v3681_v20  ;;  %v13963_v18 = vor.u32 (%p2816_p2), %v11558_v61, %v9547_v58  ;;  %v13969_v55 = vor.u32 (%p2816_p2), %v11559_v63, %v9555_v42  ;;  %v9531_v20 = vld [vmem:[#allocation17 + $0x180] sm:$0xf] (%p2816_p2)  ;;  %v14011_v58 = vor.u32 (%p2816_p2), %v11542_v38, %v9483_v52  ;;  %v11536_v63 = vld [vmem:[#allocation17 + $0x104] sm:$0xf] (%p2816_p2)  ;;  %v9699_v52 = vld [vmem:[#allocation17 + $0xc8] sm:$0xf] (%p2816_p2) }
 0x4f8   : > { %v9467_v61 = vld [vmem:[#allocation17 + $0x100] sm:$0xf] (%p2816_p2)  ;;  %v14017_v42 = vor.u32 (%p2816_p2), %v11543_v40, %v9491_v10  ;;  %v11531_v38 = vld [vmem:[#allocation17 + $0xd4] sm:$0xf0] (%p2816_p2) }
 0x4f9   : > { %4063 = vmatpush.bf16.msra.mxu0 (%p2816_p2), %v13963_v18 }
 0x4fc   : >> { %v3679_v4 = vpop.f32.mrf.mxu2 }
 0x4fd   : >> { %v3697_v44 = vpop.f32.mrf.mxu3  ;;  %v11557_v4 = vld [vmem:[#allocation17 + $0x1ac] sm:$0xf] (%p2816_p2) }
 0x4fe   : > { %v13967_v44 = vor.u32 (%p2816_p2), %v11556_v34, %v9549_v50  ;;  %v11538_v34 = vld [vmem:[#allocation17 + $0x10c] sm:$0xf0] (%p2816_p2)  ;;  %v14015_v50 = vor.u32 (%p2816_p2), %v11540_v15, %v9485_v33  ;;  %v11529_v15 = vld [vmem:[#allocation17 + $0xcc] sm:$0xf] (%p2816_p2)  ;;  %v9701_v33 = vld [vmem:[#allocation17 + $0xd8] sm:$0xf0] (%p2816_p2) }
 0x500   : > { %4076 = vmatpush.bf16.msra.mxu1 (%p2816_p2), %v13967_v44 }
 0x50c   : >> { %v3721_v43 = vpop.f32.mrf.mxu0 }
 0x50d   : >> { %v3741_v51 = vpop.f32.mrf.mxu1  ;;  %v3725_v23 = vadd.f32 %v3721_v43, %v3699_v60  ;;  %v13972_v60 = vor.u32 (%p2816_p2), %v11557_v4, %v9557_v31  ;;  %v9533_v43 = vld [vmem:[#allocation17 + $0x190] sm:$0xf0] (%p2816_p2)  ;;  %v9475_v31 = vld [vmem:[#allocation17 + $0x108] sm:$0xf] (%p2816_p2) }
 0x50e   : > { %v9469_v4 = vld [vmem:[#allocation17 + $0x110] sm:$0xf0] (%p2816_p2) }
 0x50f   : >> { %v3745_v27 = vadd.f32 %v3741_v51, %v3725_v23  ;;  %v9539_v51 = vld [vmem:[#allocation17 + $0x188] sm:$0xf] (%p2816_p2)  ;;  %v11555_v23 = vld [vmem:[#allocation17 + $0x194] sm:$0xf0] (%p2816_p2) }
 0x511   : >> { %v3746_v28 = vadd.f32 %v12160_v36, %v3745_v27  ;;  %v11552_v36 = vld [vmem:[#allocation17 + $0x184] sm:$0xf] (%p2816_p2)  ;;  %v9541_v27 = vld [vmem:[#allocation17 + $0x198] sm:$0xf0] (%p2816_p2) }
 0x513   : >> { %v3747_v7 = vmax.f32 %v3746_v28, 0.0  ;;  %v13975_v28 = vor.u32 (%p2816_p2), %v11554_v16, %v9531_v20  ;;  %v14020_v20 = vor.u32 (%p2816_p2), %v11541_v62, %v9493_v12  ;;  %v11539_v16 = vld [vmem:[#allocation17 + $0x114] sm:$0xf0] (%p2816_p2)  ;;  %v14051_v62 = vor.u32 (%p2816_p2), %v11528_v13, %v9693_v21  ;;  %v11521_v21 = vld [vmem:[#allocation17 + $0x8c] sm:$0xf] (%p2816_p2) }
 0x514   : >> { %v3723_v24 = vpop.f32.mrf.mxu0  ;;  %v14053_v12 = vor.u32 (%p2816_p2), %v11531_v38, %v9699_v52  ;;  %v11523_v13 = vld [vmem:[#allocation17 + $0x94] sm:$0xf0] (%p2816_p2)  ;;  %v9669_v52 = vld [vmem:[#allocation17 + $0x98] sm:$0xf0] (%p2816_p2) }
 0x515   : >> { %v3743_v46 = vpop.f32.mrf.mxu1  ;;  %v3748_v53 = vmax.f32 %v3599_v35, %v3747_v7  ;;  %v13979_v35 = vor.u32 (%p2816_p2), %v11552_v36, %v9533_v43  ;;  %v13981_v7 = vor.u32 (%p2816_p2), %v11555_v23, %v9539_v51  ;;  %v9515_v24 = vld [vmem:[#allocation17 + $0x160] sm:$0xf] (%p2816_p2)  ;;  %4064 = vmatpush.bf16.msra.mxu0 (%p2816_p2), %v13975_v28  ;;  %v11537_v36 = vld [vmem:[#allocation17 + $0x10c] sm:$0xf] (%p2816_p2)  ;;  %v9477_v43 = vld [vmem:[#allocation17 + $0x118] sm:$0xf0] (%p2816_p2) }
 0x516   : > { %v11550_v46 = vld [vmem:[#allocation17 + $0x16c] sm:$0xf0] (%p2816_p2)  ;;  %v9707_v51 = vld [vmem:[#allocation17 + $0xe0] sm:$0xf] (%p2816_p2)  ;;  %15754 = vst [vmem:[#allocation98_spill] sm:$0xff] (%p2816_p2), %v14051_v62 }
 0x517   : >> { %9458 = vmatpush.msk.msra.mxu2 %vm1786_vm5, %v3748_v53  ;;  %9460 = vmatpush.msk.msra.mxu3 %vm1786_vm5, %v3748_v53  ;;  %v11548_v53 = vld [vmem:[#allocation17 + $0x164] sm:$0xf] (%p2816_p2)  ;;  %v11534_v23 = vld [vmem:[#allocation17 + $0xec] sm:$0xf0] (%p2816_p2)  ;;  %15755 = vst [vmem:[#allocation99_spill] sm:$0xff] (%p2816_p2), %v14053_v12 }
 0x518   : >> { %9459 = vmatmul.msk.f32.vlgmr.msra.gmra.mxu2 %vm3749_vm15, %v15743_v56  ;;  %9461 = vmatmul.msk.f32.vlgmr.msra.gmra.mxu3 %vm3749_vm15, %v15744_v0  ;;  %v13984_v56 = vor.u32 (%p2816_p2), %v11553_v26, %v9541_v27  ;;  %v9517_v0 = vld [vmem:[#allocation17 + $0x170] sm:$0xf0] (%p2816_p2)  ;;  %v11532_v26 = vld [vmem:[#allocation17 + $0xe4] sm:$0xf] (%p2816_p2)  ;;  %v14023_v27 = vor.u32 (%p2816_p2), %v11538_v34, %v9467_v61  ;;  %v9675_v61 = vld [vmem:[#allocation17 + $0xa0] sm:$0xf] (%p2816_p2) }
 0x519   : > { %4087 = vmatpush.bf16.msra.mxu2 (%p2816_p2), %v13946_v45  ;;  %4100 = vmatpush.bf16.msra.mxu3 (%p2816_p2), %v13949_v2  ;;  %v11526_v34 = vld [vmem:[#allocation17 + $0xac] sm:$0xf0] (%p2816_p2)  ;;  %vm6894_vm5 = vsmask.f32 (%p2816_p2), 1280 }
 0x51a   : > { %4077 = vmatpush.bf16.msra.mxu1 (%p2816_p2), %v13979_v35  ;;  %15745 = vst [vmem:[#allocation89_spill] sm:$0xff] (%p2816_p2), %v14023_v27  ;;  %vm15228_vm6 = vmand (%p2816_p2), %vm6893_vm4, %vm6894_vm5 }
 0x51b   : > { %vm6896_vm11 = vmor (%p2816_p2), %vm15228_vm6, %vm13261_vm10 }
 0x51c   : > { %vm6900_vm15 = vmor (%p2816_p2), %vm6899_vm12, %vm6896_vm11 }
 0x51d   : > { %4088 = vmatpush.bf16.msra.mxu2 (%p2816_p2), %v13958_v48  ;;  %4101 = vmatpush.bf16.msra.mxu3 (%p2816_p2), %v13960_v29 }
 0x521   : > { %4089 = vmatpush.bf16.msra.mxu2 (%p2816_p2), %v13969_v55  ;;  %4102 = vmatpush.bf16.msra.mxu3 (%p2816_p2), %v13972_v60 }
 0x525   : > { %4090 = vmatpush.bf16.msra.mxu2 (%p2816_p2), %v13981_v7  ;;  %4103 = vmatpush.bf16.msra.mxu3 (%p2816_p2), %v13984_v56 }
 0x59b   : >> { %v3774_v1 = vpop.f32.mrf.mxu2  ;;  %v3797_v3 = vpop.f32.mrf.mxu3 }
 0x59c   : >> { %v3800_v5 = vmax.f32 %v3774_v1, %v3797_v3  ;;  %v9523_v1 = vld [vmem:[#allocation17 + $0x168] sm:$0xf] (%p2816_p2)  ;;  %v11551_v3 = vld [vmem:[#allocation17 + $0x174] sm:$0xf0] (%p2816_p2) }
 0x59e   : >> { %v3801_v37 = vpack.c.bf16 %v3800_v5, %v3800_v5  ;;  %v11549_v5 = vld [vmem:[#allocation17 + $0x16c] sm:$0xf] (%p2816_p2) }
 0x5a0   : >> { %v3804_v19 = vrot.slane %v3801_v37, 2 }
 0x5a2   : >> { %v3808_v6 = vsel %vm3805_vm0, %v3801_v37, %v3804_v19  ;;  %v9525_v37 = vld [vmem:[#allocation17 + $0x178] sm:$0xf0] (%p2816_p2)  ;;  %v13987_v19 = vor.u32 (%p2816_p2), %v11550_v46, %v9515_v24  ;;  %v9709_v24 = vld [vmem:[#allocation17 + $0xf0] sm:$0xf0] (%p2816_p2)  ;;  %v9715_v46 = vld [vmem:[#allocation17 + $0xe8] sm:$0xf] (%p2816_p2) }
 0x5a3   : >> { %v3809_v30 = vshrl.u32 %v3808_v6, 16  ;;  %v3812_v59 = vshll.u32 %v3808_v6, 16  ;;  %v13991_v6 = vor.u32 (%p2816_p2), %v11548_v53, %v9517_v0  ;;  %v11535_v53 = vld [vmem:[#allocation17 + $0xf4] sm:$0xf0] (%p2816_p2)  ;;  %v14027_v0 = vor.u32 (%p2816_p2), %v11536_v63, %v9469_v4  ;;  %v11524_v63 = vld [vmem:[#allocation17 + $0xa4] sm:$0xf] (%p2816_p2) }
 0x5a4   : > { %4065 = vmatpush.bf16.msra.mxu0 (%p2816_p2), %v13987_v19  ;;  %v14056_v4 = vor.u32 (%p2816_p2), %v11529_v15, %v9701_v33 }
 0x5a5   : >> { %v3811_v54 = vrot.slane %v3809_v30, 7  ;;  %v13993_v30 = vor.u32 (%p2816_p2), %v11551_v3, %v9523_v1  ;;  %4078 = vmatpush.bf16.msra.mxu1 (%p2816_p2), %v13991_v6  ;;  %15746 = vst [vmem:[#allocation90_spill] sm:$0xff] (%p2816_p2), %v14027_v0  ;;  %v14029_v1 = vor.u32 (%p2816_p2), %v11539_v16, %v9475_v31  ;;  %v11533_v3 = vld [vmem:[#allocation17 + $0xec] sm:$0xf] (%p2816_p2)  ;;  %v9677_v31 = vld [vmem:[#allocation17 + $0xb0] sm:$0xf0] (%p2816_p2) }
 0x5a6   : > { %2818 = sbr.rel (!%p2816_p2) target bundleno = 1007 (0x3ef), region = 249  ;;  %15756 = vst [vmem:[#allocation100_spill] sm:$0xff] (%p2816_p2), %v14056_v4  ;;  %v9683_v16 = vld [vmem:[#allocation17 + $0xa8] sm:$0xf] (%p2816_p2) }
 0x5a7   : >> { %v3814_v9 = vor.u32 %v3812_v59, %v3811_v54  ;;  %v9499_v54 = vld [vmem:[#allocation17 + $0x140] sm:$0xf] (%p2816_p2)  ;;  %v11546_v59 = vld [vmem:[#allocation17 + $0x14c] sm:$0xf0] (%p2816_p2)  ;;  %4091 = vmatpush.bf16.msra.mxu2 (%p2816_p2), %v13993_v30  ;;  %15747 = vst [vmem:[#allocation91_spill] sm:$0xff] (%p2816_p2), %v14029_v1 }
 0x5a8   : > { %v13999_v25 = vor.u32 (%p2816_p2), %v11546_v59, %v9499_v54  ;;  %v14034_v54 = vor.u32 (%p2816_p2), %v11534_v23, %v9707_v51  ;;  %v14036_v59 = vor.u32 (%p2816_p2), %v11532_v26, %v9709_v24  ;;  %v9685_v51 = vld [vmem:[#allocation17 + $0xb8] sm:$0xf0] (%p2816_p2)  ;;  %v14059_v23 = vor.u32 (%p2816_p2), %v11526_v34, %v9675_v61  ;;  %v9659_v26 = vld [vmem:[#allocation17 + $0x80] sm:$0xf] (%p2816_p2) }
 0x5a9   : >> { %v3822_v8 = vsel %vm3820_vm2, %v3814_v9, %v9463_v47  ;;  %v11544_v47 = vld [vmem:[#allocation17 + $0x144] sm:$0xf] (%p2816_p2)  ;;  %v13996_v9 = vor.u32 (%p2816_p2), %v11549_v5, %v9525_v37  ;;  %v9717_v5 = vld [vmem:[#allocation17 + $0xf8] sm:$0xf0] (%p2816_p2)  ;;  %v14032_v37 = vor.u32 (%p2816_p2), %v11537_v36, %v9477_v43  ;;  %v11527_v36 = vld [vmem:[#allocation17 + $0xb4] sm:$0xf0] (%p2816_p2)  ;;  %v14063_v24 = vor.u32 (%p2816_p2), %v11524_v63, %v9677_v31 }
 0x5aa   : >> { %9464 = vst [vmem:[%s8323_s16 + $0x2] sm:$0x3] %v3822_v8  ;;  %v9501_v8 = vld [vmem:[#allocation17 + $0x150] sm:$0xf0] (%p2816_p2)  ;;  %4066 = vmatpush.bf16.msra.mxu0 (%p2816_p2), %v13999_v25  ;;  %v14041_v14 = vor.u32 (%p2816_p2), %v11533_v3, %v9717_v5  ;;  %v11525_v43 = vld [vmem:[#allocation17 + $0xac] sm:$0xf] (%p2816_p2)  ;;  %vm6904_vm2 = vmor (%p2816_p2), %vm6903_vm1, %vm6900_vm15 }
 0x5ab   : > { %v14003_v32 = vor.u32 %v11544_v47, %v9501_v8  ;;  %4104 = vmatpush.bf16.msra.mxu3 %v13996_v9  ;;  %4092 = vmatpush.bf16.msra.mxu2 %v14005_v49  ;;  %15748 = vst [vmem:[#allocation92_spill] sm:$0xff] %v14032_v37  ;;  %v14038_v47 = vor.u32 %v11535_v53, %v9715_v46  ;;  %v9691_v8 = vld [vmem:[#allocation17 + $0xc0] sm:$0xf]  ;;  %v11522_v53 = vld [vmem:[#allocation17 + $0x8c] sm:$0xf0] }
 0x5ac   : > { %15749 = vst [vmem:[#allocation93_spill] sm:$0xff] %v14034_v54  ;;  %v14047_v40 = vor.u32 %v11530_v11, %v9691_v8  ;;  %v14065_v46 = vor.u32 %v11527_v36, %v9683_v16  ;;  %v11520_v3 = vld [vmem:[#allocation17 + $0x84] sm:$0xf]  ;;  %v9661_v5 = vld [vmem:[#allocation17 + $0x90] sm:$0xf0]  ;;  %v14068_v8 = vor.u32 %v11525_v43, %v9685_v51  ;;  %v14071_v15 = vor.u32 %v11522_v53, %v9659_v26 }
 0x5ad   : > { %4079 = vmatpush.bf16.msra.mxu1 %v14003_v32  ;;  %15750 = vst [vmem:[#allocation94_spill] sm:$0xff] %v14036_v59  ;;  %v9667_v11 = vld [vmem:[#allocation17 + $0x88] sm:$0xf]  ;;  %v9643_v61 = vld [vmem:[#allocation17 + $0x60] sm:$0xf]  ;;  %v14075_v34 = vor.u32 %v11520_v3, %v9661_v5  ;;  %v14080_v43 = vor.u32 %v11521_v21, %v9669_v52 }
 0x5ae   : > { %4067 = vmatpush.bf16.msra.mxu0 %v14011_v58  ;;  %15751 = vst [vmem:[#allocation95_spill] sm:$0xff] %v14038_v47  ;;  %v14077_v63 = vor.u32 %v11523_v13, %v9667_v11  ;;  %v11518_v31 = vld [vmem:[#allocation17 + $0x6c] sm:$0xf0]  ;;  %v11516_v16 = vld [vmem:[#allocation17 + $0x64] sm:$0xf] }
 0x5af   : > { %4105 = vmatpush.bf16.msra.mxu3 %v14008_v22  ;;  %4093 = vmatpush.bf16.msra.mxu2 %v14017_v42  ;;  %15752 = vst [vmem:[#allocation96_spill] sm:$0xff] %v14041_v14  ;;  %v9645_v36 = vld [vmem:[#allocation17 + $0x70] sm:$0xf0]  ;;  %v9651_v26 = vld [vmem:[#allocation17 + $0x68] sm:$0xf] }
 0x5b0   : > { %15753 = vst [vmem:[#allocation97_spill] sm:$0xff] %v14047_v40  ;;  %v11519_v53 = vld [vmem:[#allocation17 + $0x74] sm:$0xf0]  ;;  %v14087_v3 = vor.u32 %v11516_v16, %v9645_v36  ;;  %v9627_v11 = vld [vmem:[#allocation17 + $0x40] sm:$0xf] }
 0x5b1   : > { %4080 = vmatpush.bf16.msra.mxu1 %v14015_v50  ;;  %v3857_v10 = vld [vmem:[#allocation4] sm:$0x3]  ;;  %15757 = vst [vmem:[#allocation101_spill] sm:$0xff] %v14059_v23  ;;  %v14089_v5 = vor.u32 %v11519_v53, %v9651_v26  ;;  %v11514_v13 = vld [vmem:[#allocation17 + $0x4c] sm:$0xf0] }
 0x5b2   : > { %4068 = vmatpush.bf16.msra.mxu0 %v14023_v27  ;;  %3892 = vst [vmem:[#allocation1] ss:$4 sm:$0xff] %v3857_v10  ;;  %v11512_v21 = vld [vmem:[#allocation17 + $0x44] sm:$0xf]  ;;  %v14095_v16 = vor.u32 %v11514_v13, %v9627_v11  ;;  %v9611_v26 = vld [vmem:[#allocation17 + $0x20] sm:$0xf] }
 0x5b3   : > { %4106 = vmatpush.bf16.msra.mxu3 %v14020_v20  ;;  %4094 = vmatpush.bf16.msra.mxu2 %v14029_v1  ;;  %15758 = vst [vmem:[#allocation102_spill] sm:$0xff] %v14063_v24  ;;  %v11510_v53 = vld [vmem:[#allocation17 + $0x2c] sm:$0xf0]  ;;  %v11511_v11 = vld [vmem:[#allocation17 + $0x34] sm:$0xf0] }
 0x5b4   : > { %15759 = vst [vmem:[#allocation103_spill] sm:$0xff] %v14065_v46  ;;  %v11509_v13 = vld [vmem:[#allocation17 + $0x2c] sm:$0xf]  ;;  %v10605_v1 = vld [vmem:[#allocation17 + $0x8f0] sm:$0xf0] }
 0x5b5   : > { %4081 = vmatpush.bf16.msra.mxu1 %v14027_v0  ;;  %15760 = vst [vmem:[#allocation104_spill] sm:$0xff] %v14068_v8  ;;  %v10611_v0 = vld [vmem:[#allocation17 + $0x8e8] sm:$0xf]  ;;  %v14744_v27 = vld [vmem:[#allocation4 + $0x4] sm:$0x2] }
 0x5b6   : > { %4273 = vmatpush.bf16.msrb.mxu0 %v14034_v54  ;;  %15761 = vst [vmem:[#allocation105_spill] sm:$0xff] %v14071_v15  ;;  %v11752_v54 = vld [vmem:[#allocation17 + $0x7c4] sm:$0xf] }
 0x5b7   : > { %4107 = vmatpush.bf16.msra.mxu3 %v14032_v37  ;;  %4299 = vmatpush.bf16.msrb.mxu2 %v14038_v47  ;;  %15762 = vst [vmem:[#allocation106_spill] sm:$0xff] %v14075_v34  ;;  %v14409_v47 = vld [vmem:[#allocation4 + $0x2] sm:$0x2] }
 0x5b8   : > { %15763 = vst [vmem:[#allocation107_spill] sm:$0xff] %v14077_v63 }
 0x5b9   : > { %4286 = vmatpush.bf16.msrb.mxu1 %v14036_v59  ;;  %v3893_v38 = vld.sshfl [vmem:[#allocation1] sm:$0xff pattern:$0x73625140]  ;;  %15764 = vst [vmem:[#allocation108_spill] sm:$0xff] %v14080_v43 }
 0x5ba   : > { %4274 = vmatpush.bf16.msrb.mxu0 %v14047_v40  ;;  %v3894_v33 = vshrl.u32 %v3893_v38, 16  ;;  %v3896_v10 = vshll.u32 %v3893_v38, 16  ;;  %v11517_v38 = vld [vmem:[#allocation17 + $0x6c] sm:$0xf]  ;;  %15766 = vst [vmem:[#allocation110_spill] sm:$0xff] %v14087_v3 }
 0x5bb   : > { %4312 = vmatpush.bf16.msrb.mxu3 %v14041_v14  ;;  %4300 = vmatpush.bf16.msrb.mxu2 %v14053_v12  ;;  %15767 = vst [vmem:[#allocation111_spill] sm:$0xff] %v14089_v5  ;;  %v11592_v12 = vld [vmem:[#allocation17 + $0x2c4] sm:$0xf]  ;;  %v10221_v40 = vld [vmem:[#allocation17 + $0x5f0] sm:$0xf0] }
 0x5bc   : > { %v3898_v51 = vrot.slane %v3896_v10, 1  ;;  %v9629_v10 = vld [vmem:[#allocation17 + $0x50] sm:$0xf0]  ;;  %15769 = vst [vmem:[#allocation113_spill] sm:$0xff] %v14095_v16  ;;  %v10227_v14 = vld [vmem:[#allocation17 + $0x5e8] sm:$0xf] }
 0x5bd   : > { %4287 = vmatpush.bf16.msrb.mxu1 %v14051_v62  ;;  %v14099_v36 = vor.u32 %v11512_v21, %v9629_v10  ;;  %v9595_v21 = vld [vmem:[#allocation17] sm:$0xf]  ;;  %v11506_v10 = vld [vmem:[#allocation17 + $0xc] sm:$0xf0]  ;;  %v11624_v62 = vld [vmem:[#allocation17 + $0x3c4] sm:$0xf] }
 0x5be   : > { %4275 = vmatpush.bf16.msrb.mxu0 %v14059_v23  ;;  %v9653_v23 = vld [vmem:[#allocation17 + $0x78] sm:$0xf0]  ;;  %v11756_v59 = vld [vmem:[#allocation17 + $0x7e4] sm:$0xf] }
 0x5bf   : > { %4313 = vmatpush.bf16.msrb.mxu3 %v14056_v4  ;;  %4301 = vmatpush.bf16.msrb.mxu2 %v14065_v46  ;;  %v14083_v46 = vor.u32 %v11518_v31, %v9643_v61  ;;  %v14092_v52 = vor.u32 %v11517_v38, %v9653_v23  ;;  %v11515_v61 = vld [vmem:[#allocation17 + $0x54] sm:$0xf0]  ;;  %v11513_v31 = vld [vmem:[#allocation17 + $0x4c] sm:$0xf]  ;;  %15770 = vst [vmem:[#allocation114_spill] sm:$0xff] %v14099_v36 }
 0x5c0   : > { %v11508_v38 = vld [vmem:[#allocation17 + $0x24] sm:$0xf]  ;;  %v9819_v4 = vld [vmem:[#allocation17 + $0x2c0] sm:$0xf] }
 0x5c1   : > { %4288 = vmatpush.bf16.msrb.mxu1 %v14063_v24  ;;  %v3899_v24 = vor.u32 %v3898_v51, %v3894_v33  ;;  %15765 = vst [vmem:[#allocation109_spill] sm:$0xff] %v14083_v46  ;;  %v9635_v33 = vld [vmem:[#allocation17 + $0x48] sm:$0xf]  ;;  %v9637_v51 = vld [vmem:[#allocation17 + $0x58] sm:$0xf0] }
 0x5c2   : > { %4276 = vmatpush.bf16.msrb.mxu0 %v14071_v15  ;;  %15768 = vst [vmem:[#allocation112_spill] sm:$0xff] %v14092_v52  ;;  %v14101_v23 = vor.u32 %v11515_v61, %v9635_v33  ;;  %v11598_v15 = vld [vmem:[#allocation17 + $0x2ec] sm:$0xf0] }
 0x5c3   : > { %4314 = vmatpush.bf16.msrb.mxu3 %v14068_v8  ;;  %4302 = vmatpush.bf16.msrb.mxu2 %v14077_v63  ;;  %v9613_v63 = vld [vmem:[#allocation17 + $0x30] sm:$0xf0]  ;;  %v11596_v8 = vld [vmem:[#allocation17 + $0x2e4] sm:$0xf] }
 0x5c4   : > { %4095 = vmatmul.bf16.vlgmr.msra.gmra.mxu2 %v3899_v24  ;;  %4108 = vmatmul.bf16.vlgmr.msra.gmra.mxu3 %v3899_v24  ;;  %15771 = vst [vmem:[#allocation115_spill] sm:$0xff] %v14101_v23  ;;  %v14111_v33 = vor.u32 %v11508_v38, %v9613_v63  ;;  %v9837_v63 = vld [vmem:[#allocation17 + $0x2f0] sm:$0xf0]  ;;  %v11599_v38 = vld [vmem:[#allocation17 + $0x2f4] sm:$0xf0] }
 0x5c5   : > { %4289 = vmatpush.bf16.msrb.mxu1 %v14075_v34  ;;  %4069 = vmatmul.bf16.vlgmr.msra.gmra.mxu0 %v3899_v24  ;;  %v9835_v34 = vld [vmem:[#allocation17 + $0x2e0] sm:$0xf] }
 0x5c6   : > { %4277 = vmatpush.bf16.msrb.mxu0 %v14083_v46  ;;  %4082 = vmatmul.bf16.vlgmr.msra.gmra.mxu1 %v3899_v24  ;;  %v9619_v46 = vld [vmem:[#allocation17 + $0x28] sm:$0xf]  ;;  %v9621_v24 = vld [vmem:[#allocation17 + $0x38] sm:$0xf0]  ;;  %15774 = vst [vmem:[#allocation118_spill] sm:$0xff] %v14111_v33 }
 0x5c7   : > { %4315 = vmatpush.bf16.msrb.mxu3 %v14080_v43  ;;  %4303 = vmatpush.bf16.msrb.mxu2 %v14089_v5  ;;  %v14104_v43 = vor.u32 %v11513_v31, %v9637_v51  ;;  %v14113_v61 = vor.u32 %v11511_v11, %v9619_v46  ;;  %v11504_v31 = vld [vmem:[#allocation17 + $0x4] sm:$0xf]  ;;  %v9597_v51 = vld [vmem:[#allocation17 + $0x10] sm:$0xf0]  ;;  %v14116_v5 = vor.u32 %v11509_v13, %v9621_v24  ;;  %v9843_v46 = vld [vmem:[#allocation17 + $0x2e8] sm:$0xf] }
 0x5c8   : > { %v14123_v11 = vor.u32 %v11504_v31, %v9597_v51  ;;  %v11597_v24 = vld [vmem:[#allocation17 + $0x2ec] sm:$0xf]  ;;  %v11595_v51 = vld [vmem:[#allocation17 + $0x2d4] sm:$0xf0] }
 0x5c9   : > { %4290 = vmatpush.bf16.msrb.mxu1 %v14087_v3  ;;  %15772 = vst [vmem:[#allocation116_spill] sm:$0xff] %v14104_v43  ;;  %v14107_v3 = vor.u32 %v11510_v53, %v9611_v26  ;;  %v11505_v26 = vld [vmem:[#allocation17 + $0xc] sm:$0xf]  ;;  %v9605_v53 = vld [vmem:[#allocation17 + $0x18] sm:$0xf0] }
 0x5ca   : > { %4278 = vmatpush.bf16.msrb.mxu0 %v14095_v16  ;;  %15775 = vst [vmem:[#allocation119_spill] sm:$0xff] %v14113_v61  ;;  %v11507_v16 = vld [vmem:[#allocation17 + $0x14] sm:$0xf0] }
 0x5cb   : > { %4316 = vmatpush.bf16.msrb.mxu3 %v14092_v52  ;;  %15773 = vst [vmem:[#allocation117_spill] sm:$0xff] %v14107_v3  ;;  %4304 = vmatpush.bf16.msrb.mxu2 %v14101_v23  ;;  %v9603_v52 = vld [vmem:[#allocation17 + $0x8] sm:$0xf]  ;;  %v14119_v23 = vor.u32 %v11506_v10, %v9595_v21  ;;  %v14132_v21 = vor.u32 %v11596_v8, %v9837_v63  ;;  %v9829_v8 = vld [vmem:[#allocation17 + $0x2d8] sm:$0xf0] }
 0x5cc   : > { %15776 = vst [vmem:[#allocation120_spill] sm:$0xff] %v14116_v5  ;;  %v14125_v13 = vor.u32 %v11507_v16, %v9603_v52  ;;  %v14134_v10 = vor.u32 %v11599_v38, %v9843_v46  ;;  %v9821_v52 = vld [vmem:[#allocation17 + $0x2d0] sm:$0xf0]  ;;  %v9827_v16 = vld [vmem:[#allocation17 + $0x2c8] sm:$0xf] }
 0x5cd   : > { %4291 = vmatpush.bf16.msrb.mxu1 %v14099_v36  ;;  %15777 = vst [vmem:[#allocation121_spill] sm:$0xff] %v14119_v23  ;;  %v14128_v36 = vor.u32 %v11505_v26, %v9605_v53  ;;  %v14149_v53 = vor.u32 %v11595_v51, %v9827_v16  ;;  %v9803_v63 = vld [vmem:[#allocation17 + $0x2a0] sm:$0xf]  ;;  %v11590_v46 = vld [vmem:[#allocation17 + $0x2ac] sm:$0xf0] }
 0x5ce   : > { %4279 = vmatpush.bf16.msrb.mxu0 %v14107_v3  ;;  %15778 = vst [vmem:[#allocation122_spill] sm:$0xff] %v14123_v11  ;;  %v14130_v3 = vor.u32 %v11598_v15, %v9835_v34  ;;  %v3824_v15 = vld [vmem:[#allocation4] sm:$0x1]  ;;  %v11588_v38 = vld [vmem:[#allocation17 + $0x2a4] sm:$0xf] }
 0x5cf   : > { %4317 = vmatpush.bf16.msrb.mxu3 %v14104_v43  ;;  %4305 = vmatpush.bf16.msrb.mxu2 %v14113_v61  ;;  %15779 = vst [vmem:[#allocation123_spill] sm:$0xff] %v14125_v13  ;;  %v9845_v43 = vld [vmem:[#allocation17 + $0x2f8] sm:$0xf0]  ;;  %v11593_v34 = vld [vmem:[#allocation17 + $0x2cc] sm:$0xf] }
 0x5d0   : > { %15780 = vst [vmem:[#allocation124_spill] sm:$0xff] %v14128_v36  ;;  %v14137_v31 = vor.u32 %v11597_v24, %v9845_v43  ;;  %v14147_v43 = vor.u32 %v11592_v12, %v9821_v52  ;;  %v14152_v24 = vor.u32 %v11593_v34, %v9829_v8  ;;  %v14155_v12 = vor.u32 %v11590_v46, %v9803_v63  ;;  %v9787_v52 = vld [vmem:[#allocation17 + $0x280] sm:$0xf]  ;;  %v11586_v34 = vld [vmem:[#allocation17 + $0x28c] sm:$0xf0] }
 0x5d1   : > { %4292 = vmatpush.bf16.msrb.mxu1 %v14111_v33  ;;  %15781 = vst [vmem:[#allocation125_spill] sm:$0xff] %v14130_v3  ;;  %v11594_v33 = vld [vmem:[#allocation17 + $0x2cc] sm:$0xf0]  ;;  %v11584_v8 = vld [vmem:[#allocation17 + $0x284] sm:$0xf] }
 0x5d2   : > { %15782 = vst [vmem:[#allocation126_spill] sm:$0xff] %v14132_v21  ;;  %4280 = vmatpush.bf16.msrb.mxu0 %v14119_v23  ;;  %v14143_v26 = vor.u32 %v11594_v33, %v9819_v4  ;;  %v11591_v4 = vld [vmem:[#allocation17 + $0x2b4] sm:$0xf0]  ;;  %v11589_v33 = vld [vmem:[#allocation17 + $0x2ac] sm:$0xf] }
 0x5d3   : > { %4318 = vmatpush.bf16.msrb.mxu3 %v14116_v5  ;;  %15783 = vst [vmem:[#allocation127_spill] sm:$0xff] %v14134_v10  ;;  %4306 = vmatpush.bf16.msrb.mxu2 %v14125_v13  ;;  %v11587_v63 = vld [vmem:[#allocation17 + $0x294] sm:$0xf0]  ;;  %v4325_v46 = vld [vmem:[#allocation4] sm:$0x2] }
 0x5d4   : > { %15784 = vst [vmem:[#allocation128_spill] sm:$0xff] %v14137_v31  ;;  %v9797_v13 = vld [vmem:[#allocation17 + $0x298] sm:$0xf0]  ;;  %v11628_v23 = vld [vmem:[#allocation17 + $0x3e4] sm:$0xf] }
 0x5d5   : > { %4293 = vmatpush.bf16.msrb.mxu1 %v14123_v11  ;;  %15785 = vst [vmem:[#allocation129_spill] sm:$0xff] %v14143_v26  ;;  %4281 = vmatmul.bf16.vlgmr.msrb.gmra.mxu0 %v3824_v15  ;;  %v11630_v11 = vld [vmem:[#allocation17 + $0x3ec] sm:$0xf0]  ;;  %v9965_v5 = vld [vmem:[#allocation17 + $0x3f0] sm:$0xf0] }
 0x5d6   : > { %4525 = vmatpush.bf16.msra.mxu0 %v14130_v3  ;;  %15786 = vst [vmem:[#allocation130_spill] sm:$0xff] %v14147_v43  ;;  %4307 = vmatmul.bf16.vlgmr.msrb.gmra.mxu2 %v3824_v15  ;;  %v9811_v3 = vld [vmem:[#allocation17 + $0x2a8] sm:$0xf] }
 0x5d7   : > { %4319 = vmatpush.bf16.msrb.mxu3 %v14128_v36  ;;  %4551 = vmatpush.bf16.msra.mxu2 %v14134_v10  ;;  %15787 = vst [vmem:[#allocation131_spill] sm:$0xff] %v14149_v53  ;;  %v9805_v36 = vld [vmem:[#allocation17 + $0x2b0] sm:$0xf0]  ;;  %v14161_v51 = vor.u32 %v11591_v4, %v9811_v3  ;;  %v11580_v4 = vld [vmem:[#allocation17 + $0x264] sm:$0xf] }
 0x5d8   : > { %15788 = vst [vmem:[#allocation132_spill] sm:$0xff] %v14152_v24  ;;  %4294 = vmatmul.bf16.vlgmr.msrb.gmra.mxu1 %v3824_v15  ;;  %v14159_v16 = vor.u32 %v11588_v38, %v9805_v36  ;;  %v11582_v38 = vld [vmem:[#allocation17 + $0x26c] sm:$0xf0] }
 0x5d9   : > { %4538 = vmatpush.bf16.msra.mxu1 %v14132_v21  ;;  %v9813_v21 = vld [vmem:[#allocation17 + $0x2b8] sm:$0xf0]  ;;  %15789 = vst [vmem:[#allocation133_spill] sm:$0xff] %v14155_v12 }
 0x5da   : > { %4320 = vmatmul.bf16.vlgmr.msrb.gmra.mxu3 %v3824_v15  ;;  %4526 = vmatpush.bf16.msra.mxu0 %v14143_v26  ;;  %15790 = vst [vmem:[#allocation134_spill] sm:$0xff] %v14159_v16  ;;  %v14164_v10 = vor.u32 %v11589_v33, %v9813_v21  ;;  %v9795_v26 = vld [vmem:[#allocation17 + $0x288] sm:$0xf]  ;;  %v11585_v15 = vld [vmem:[#allocation17 + $0x28c] sm:$0xf] }
 0x5db   : > { %4564 = vmatpush.bf16.msra.mxu3 %v14137_v31  ;;  %4552 = vmatpush.bf16.msra.mxu2 %v14149_v53  ;;  %15791 = vst [vmem:[#allocation135_spill] sm:$0xff] %v14161_v51  ;;  %v9789_v31 = vld [vmem:[#allocation17 + $0x290] sm:$0xf0]  ;;  %v14167_v53 = vor.u32 %v11586_v34, %v9787_v52  ;;  %v14173_v36 = vor.u32 %v11587_v63, %v9795_v26  ;;  %v9771_v21 = vld [vmem:[#allocation17 + $0x260] sm:$0xf] }
 0x5dc   : > { %15792 = vst [vmem:[#allocation136_spill] sm:$0xff] %v14164_v10  ;;  %v14171_v3 = vor.u32 %v11584_v8, %v9789_v31  ;;  %v14176_v33 = vor.u32 %v11585_v15, %v9797_v13  ;;  %v11581_v52 = vld [vmem:[#allocation17 + $0x26c] sm:$0xf]  ;;  %v9781_v34 = vld [vmem:[#allocation17 + $0x278] sm:$0xf0] }
 0x5dd   : > { %4539 = vmatpush.bf16.msra.mxu1 %v14147_v43  ;;  %4360 = vst [vmem:[#allocation1] ss:$4 sm:$0xff] %v4325_v46  ;;  %v9773_v46 = vld [vmem:[#allocation17 + $0x270] sm:$0xf0]  ;;  %v9755_v8 = vld [vmem:[#allocation17 + $0x240] sm:$0xf]  ;;  %v14188_v15 = vor.u32 %v11581_v52, %v9781_v34 }
 0x5de   : > { %4527 = vmatpush.bf16.msra.mxu0 %v14155_v12  ;;  %15793 = vst [vmem:[#allocation137_spill] sm:$0xff] %v14167_v53  ;;  %v11583_v12 = vld [vmem:[#allocation17 + $0x274] sm:$0xf0]  ;;  %v14183_v31 = vor.u32 %v11580_v4, %v9773_v46  ;;  %v11578_v13 = vld [vmem:[#allocation17 + $0x24c] sm:$0xf0] }
 0x5df   : > { %4565 = vmatpush.bf16.msra.mxu3 %v14152_v24  ;;  %4553 = vmatpush.bf16.msra.mxu2 %v14161_v51  ;;  %15794 = vst [vmem:[#allocation138_spill] sm:$0xff] %v14171_v3  ;;  %v9779_v24 = vld [vmem:[#allocation17 + $0x268] sm:$0xf]  ;;  %v11576_v63 = vld [vmem:[#allocation17 + $0x244] sm:$0xf] }
 0x5e0   : > { %15795 = vst [vmem:[#allocation139_spill] sm:$0xff] %v14173_v36  ;;  %v14185_v26 = vor.u32 %v11583_v12, %v9779_v24  ;;  %v9763_v51 = vld [vmem:[#allocation17 + $0x248] sm:$0xf]  ;;  %v9739_v4 = vld [vmem:[#allocation17 + $0x220] sm:$0xf] }
 0x5e1   : > { %4540 = vmatpush.bf16.msra.mxu1 %v14159_v16  ;;  %15796 = vst [vmem:[#allocation140_spill] sm:$0xff] %v14176_v33  ;;  %v14179_v16 = vor.u32 %v11582_v38, %v9771_v21  ;;  %v11577_v21 = vld [vmem:[#allocation17 + $0x24c] sm:$0xf]  ;;  %v9765_v38 = vld [vmem:[#allocation17 + $0x258] sm:$0xf0] }
 0x5e2   : > { %4528 = vmatpush.bf16.msra.mxu0 %v14167_v53  ;;  %15798 = vst [vmem:[#allocation142_spill] sm:$0xff] %v14183_v31  ;;  %v11579_v53 = vld [vmem:[#allocation17 + $0x254] sm:$0xf0]  ;;  %v11574_v46 = vld [vmem:[#allocation17 + $0x22c] sm:$0xf0]  ;;  %v14200_v34 = vor.u32 %v11577_v21, %v9765_v38 }
 0x5e3   : > { %4566 = vmatpush.bf16.msra.mxu3 %v14164_v10  ;;  %15797 = vst [vmem:[#allocation141_spill] sm:$0xff] %v14179_v16  ;;  %4554 = vmatpush.bf16.msra.mxu2 %v14173_v36  ;;  %v9757_v10 = vld [vmem:[#allocation17 + $0x250] sm:$0xf0]  ;;  %v14197_v12 = vor.u32 %v11579_v53, %v9763_v51  ;;  %v11572_v52 = vld [vmem:[#allocation17 + $0x224] sm:$0xf] }
 0x5e4   : > { %15799 = vst [vmem:[#allocation143_spill] sm:$0xff] %v14185_v26  ;;  %v14195_v24 = vor.u32 %v11576_v63, %v9757_v10  ;;  %v9747_v36 = vld [vmem:[#allocation17 + $0x228] sm:$0xf]  ;;  %v9723_v10 = vld [vmem:[#allocation17 + $0x200] sm:$0xf] }
 0x5e5   : > { %4541 = vmatpush.bf16.msra.mxu1 %v14171_v3  ;;  %15800 = vst [vmem:[#allocation144_spill] sm:$0xff] %v14188_v15  ;;  %v14191_v3 = vor.u32 %v11578_v13, %v9755_v8  ;;  %v11573_v8 = vld [vmem:[#allocation17 + $0x22c] sm:$0xf]  ;;  %v9749_v13 = vld [vmem:[#allocation17 + $0x238] sm:$0xf0] }
 0x5e6   : > { %4529 = vmatpush.bf16.msra.mxu0 %v14179_v16  ;;  %15802 = vst [vmem:[#allocation146_spill] sm:$0xff] %v14195_v24  ;;  %v11575_v16 = vld [vmem:[#allocation17 + $0x234] sm:$0xf0]  ;;  %v11570_v63 = vld [vmem:[#allocation17 + $0x20c] sm:$0xf0]  ;;  %v14212_v43 = vor.u32 %v11573_v8, %v9749_v13 }
 0x5e7   : > { %4567 = vmatpush.bf16.msra.mxu3 %v14176_v33  ;;  %15801 = vst [vmem:[#allocation145_spill] sm:$0xff] %v14191_v3  ;;  %4555 = vmatpush.bf16.msra.mxu2 %v14185_v26  ;;  %v9741_v33 = vld [vmem:[#allocation17 + $0x230] sm:$0xf0]  ;;  %v11568_v53 = vld [vmem:[#allocation17 + $0x204] sm:$0xf]  ;;  %v14209_v21 = vor.u32 %v11575_v16, %v9747_v36 }
 0x5e8   : > { %15803 = vst [vmem:[#allocation147_spill] sm:$0xff] %v14197_v12  ;;  %v14207_v51 = vor.u32 %v11572_v52, %v9741_v33  ;;  %v9725_v38 = vld [vmem:[#allocation17 + $0x210] sm:$0xf0]  ;;  %v11571_v26 = vld [vmem:[#allocation17 + $0x214] sm:$0xf0] }
 0x5e9   : > { %4542 = vmatpush.bf16.msra.mxu1 %v14183_v31  ;;  %15804 = vst [vmem:[#allocation148_spill] sm:$0xff] %v14200_v34  ;;  %v14203_v31 = vor.u32 %v11574_v46, %v9739_v4  ;;  %v11569_v4 = vld [vmem:[#allocation17 + $0x20c] sm:$0xf]  ;;  %v9733_v46 = vld [vmem:[#allocation17 + $0x218] sm:$0xf0]  ;;  %v14219_v52 = vor.u32 %v11568_v53, %v9725_v38 }
 0x5ea   : > { %4530 = vmatpush.bf16.msra.mxu0 %v14191_v3  ;;  %15806 = vst [vmem:[#allocation150_spill] sm:$0xff] %v14207_v51  ;;  %v9963_v3 = vld [vmem:[#allocation17 + $0x3e0] sm:$0xf]  ;;  %v9971_v33 = vld [vmem:[#allocation17 + $0x3e8] sm:$0xf] }
 0x5eb   : > { %4568 = vmatpush.bf16.msra.mxu3 %v14188_v15  ;;  %15805 = vst [vmem:[#allocation149_spill] sm:$0xff] %v14203_v31  ;;  %4556 = vmatpush.bf16.msra.mxu2 %v14197_v12  ;;  %v9731_v15 = vld [vmem:[#allocation17 + $0x208] sm:$0xf]  ;;  %v14215_v12 = vor.u32 %v11570_v63, %v9723_v10  ;;  %v11631_v16 = vld [vmem:[#allocation17 + $0x3f4] sm:$0xf0]  ;;  %v14228_v63 = vor.u32 %v11628_v23, %v9965_v5 }
 0x5ec   : > { %15807 = vst [vmem:[#allocation151_spill] sm:$0xff] %v14209_v21  ;;  %v11629_v36 = vld [vmem:[#allocation17 + $0x3ec] sm:$0xf]  ;;  %v14221_v8 = vor.u32 %v11571_v26, %v9731_v15  ;;  %v9973_v13 = vld [vmem:[#allocation17 + $0x3f8] sm:$0xf0]  ;;  %v14230_v61 = vor.u32 %v11631_v16, %v9971_v33 }
 0x5ed   : > { %4543 = vmatpush.bf16.msra.mxu1 %v14195_v24  ;;  %15808 = vst [vmem:[#allocation152_spill] sm:$0xff] %v14212_v43  ;;  %v14224_v24 = vor.u32 %v11569_v4, %v9733_v46  ;;  %v9947_v10 = vld [vmem:[#allocation17 + $0x3c0] sm:$0xf]  ;;  %v14233_v26 = vor.u32 %v11629_v36, %v9973_v13  ;;  %v9955_v53 = vld [vmem:[#allocation17 + $0x3c8] sm:$0xf] }
 0x5ee   : > { %4531 = vmatpush.bf16.msra.mxu0 %v14203_v31  ;;  %15809 = vst [vmem:[#allocation153_spill] sm:$0xff] %v14215_v12  ;;  %v14226_v31 = vor.u32 %v11630_v11, %v9963_v3  ;;  %v11627_v38 = vld [vmem:[#allocation17 + $0x3d4] sm:$0xf0]  ;;  %v11625_v11 = vld [vmem:[#allocation17 + $0x3cc] sm:$0xf] }
 0x5ef   : > { %4569 = vmatpush.bf16.msra.mxu3 %v14200_v34  ;;  %4557 = vmatpush.bf16.msra.mxu2 %v14209_v21  ;;  %15810 = vst [vmem:[#allocation154_spill] sm:$0xff] %v14219_v52  ;;  %v4361_v34 = vld.sshfl [vmem:[#allocation1] sm:$0xff pattern:$0x73625140]  ;;  %v9949_v21 = vld [vmem:[#allocation17 + $0x3d0] sm:$0xf0] }
 0x5f0   : > { %15811 = vst [vmem:[#allocation155_spill] sm:$0xff] %v14221_v8  ;;  %v4363_v15 = vrot.slane %v4361_v34, 1  ;;  %v9957_v3 = vld [vmem:[#allocation17 + $0x3d8] sm:$0xf0]  ;;  %v14243_v23 = vor.u32 %v11624_v62, %v9949_v21  ;;  %v14245_v34 = vor.u32 %v11627_v38, %v9955_v53  ;;  %v9931_v4 = vld [vmem:[#allocation17 + $0x3a0] sm:$0xf] }
 0x5f1   : > { %4544 = vmatpush.bf16.msra.mxu1 %v14207_v51  ;;  %15812 = vst [vmem:[#allocation156_spill] sm:$0xff] %v14224_v24  ;;  %v11626_v51 = vld [vmem:[#allocation17 + $0x3cc] sm:$0xf0]  ;;  %v11620_v33 = vld [vmem:[#allocation17 + $0x3a4] sm:$0xf]  ;;  %v14248_v16 = vor.u32 %v11625_v11, %v9957_v3 }
 0x5f2   : > { %15813 = vst [vmem:[#allocation157_spill] sm:$0xff] %v14226_v31  ;;  %4532 = vmatpush.bf16.msra.mxu0 %v14215_v12  ;;  %v14239_v5 = vor.u32 %v11626_v51, %v9947_v10  ;;  %v11622_v46 = vld [vmem:[#allocation17 + $0x3ac] sm:$0xf0]  ;;  %v9933_v36 = vld [vmem:[#allocation17 + $0x3b0] sm:$0xf0] }
 0x5f3   : > { %4570 = vmatpush.bf16.msra.mxu3 %v14212_v43  ;;  %15814 = vst [vmem:[#allocation158_spill] sm:$0xff] %v14228_v63  ;;  %4558 = vmatpush.bf16.msra.mxu2 %v14221_v8  ;;  %v9939_v13 = vld [vmem:[#allocation17 + $0x3a8] sm:$0xf]  ;;  %v11623_v51 = vld [vmem:[#allocation17 + $0x3b4] sm:$0xf0]  ;;  %v14251_v62 = vor.u32 %v11622_v46, %v9931_v4  ;;  %v14255_v21 = vor.u32 %v11620_v33, %v9933_v36 }
 0x5f4   : > { %15815 = vst [vmem:[#allocation159_spill] sm:$0xff] %v14230_v61  ;;  %v11621_v10 = vld [vmem:[#allocation17 + $0x3ac] sm:$0xf]  ;;  %v14257_v53 = vor.u32 %v11623_v51, %v9939_v13  ;;  %v9915_v38 = vld [vmem:[#allocation17 + $0x380] sm:$0xf] }
 0x5f5   : > { %15816 = vst [vmem:[#allocation160_spill] sm:$0xff] %v14233_v26  ;;  %4545 = vmatpush.bf16.msra.mxu1 %v14219_v52  ;;  %4533 = vmatmul.bf16.vlgmr.msra.gmra.mxu0 %v4363_v15  ;;  %v11618_v11 = vld [vmem:[#allocation17 + $0x38c] sm:$0xf0]  ;;  %v11616_v3 = vld [vmem:[#allocation17 + $0x384] sm:$0xf] }
 0x5f6   : > { %4776 = vmatpush.bf16.msrb.mxu0 %v14226_v31  ;;  %15817 = vst [vmem:[#allocation161_spill] sm:$0xff] %v14239_v5  ;;  %4559 = vmatmul.bf16.vlgmr.msra.gmra.mxu2 %v4363_v15  ;;  %v11617_v4 = vld [vmem:[#allocation17 + $0x38c] sm:$0xf]  ;;  %v9925_v46 = vld [vmem:[#allocation17 + $0x398] sm:$0xf0] }
 0x5f7   : > { %4571 = vmatpush.bf16.msra.mxu3 %v14224_v24  ;;  %4802 = vmatpush.bf16.msrb.mxu2 %v14230_v61  ;;  %15818 = vst [vmem:[#allocation162_spill] sm:$0xff] %v14243_v23  ;;  %v9923_v61 = vld [vmem:[#allocation17 + $0x388] sm:$0xf]  ;;  %v9899_v13 = vld [vmem:[#allocation17 + $0x360] sm:$0xf] }
 0x5f8   : > { %15819 = vst [vmem:[#allocation163_spill] sm:$0xff] %v14245_v34  ;;  %4546 = vmatmul.bf16.vlgmr.msra.gmra.mxu1 %v4363_v15  ;;  %v11612_v51 = vld [vmem:[#allocation17 + $0x364] sm:$0xf]  ;;  %v14298_v31 = vld [vmem:[#allocation4 + $0x2] sm:$0x3] }
 0x5f9   : > { %4789 = vmatpush.bf16.msrb.mxu1 %v14228_v63  ;;  %15820 = vst [vmem:[#allocation164_spill] sm:$0xff] %v14248_v16  ;;  %v9941_v63 = vld [vmem:[#allocation17 + $0x3b8] sm:$0xf0]  ;;  %v10091_v24 = vld [vmem:[#allocation17 + $0x4e0] sm:$0xf] }
 0x5fa   : > { %4572 = vmatmul.bf16.vlgmr.msra.gmra.mxu3 %v4363_v15  ;;  %4777 = vmatpush.bf16.msrb.mxu0 %v14239_v5  ;;  %15821 = vst [vmem:[#allocation165_spill] sm:$0xff] %v14251_v62  ;;  %v9917_v15 = vld [vmem:[#allocation17 + $0x390] sm:$0xf0]  ;;  %v11619_v5 = vld [vmem:[#allocation17 + $0x394] sm:$0xf0] }
 0x5fb   : > { %4815 = vmatpush.bf16.msrb.mxu3 %v14233_v26  ;;  %4803 = vmatpush.bf16.msrb.mxu2 %v14245_v34  ;;  %15822 = vst [vmem:[#allocation166_spill] sm:$0xff] %v14255_v21  ;;  %v14260_v26 = vor.u32 %v11621_v10, %v9941_v63  ;;  %v14267_v33 = vor.u32 %v11616_v3, %v9917_v15  ;;  %v11614_v63 = vld [vmem:[#allocation17 + $0x36c] sm:$0xf0]  ;;  %v9907_v34 = vld [vmem:[#allocation17 + $0x368] sm:$0xf] }
 0x5fc   : > { %15823 = vst [vmem:[#allocation167_spill] sm:$0xff] %v14257_v53  ;;  %v14269_v36 = vor.u32 %v11619_v5, %v9923_v61  ;;  %v14272_v10 = vor.u32 %v11617_v4, %v9925_v46  ;;  %v9883_v3 = vld [vmem:[#allocation17 + $0x340] sm:$0xf]  ;;  %v11610_v15 = vld [vmem:[#allocation17 + $0x34c] sm:$0xf0] }
 0x5fd   : > { %4790 = vmatpush.bf16.msrb.mxu1 %v14243_v23  ;;  %15824 = vst [vmem:[#allocation168_spill] sm:$0xff] %v14260_v26  ;;  %v14263_v23 = vor.u32 %v11618_v11, %v9915_v38  ;;  %v11613_v38 = vld [vmem:[#allocation17 + $0x36c] sm:$0xf]  ;;  %v9909_v11 = vld [vmem:[#allocation17 + $0x378] sm:$0xf0] }
 0x5fe   : > { %4778 = vmatpush.bf16.msrb.mxu0 %v14251_v62  ;;  %15826 = vst [vmem:[#allocation170_spill] sm:$0xff] %v14267_v33  ;;  %v11615_v62 = vld [vmem:[#allocation17 + $0x374] sm:$0xf0]  ;;  %v11608_v4 = vld [vmem:[#allocation17 + $0x344] sm:$0xf]  ;;  %v14284_v46 = vor.u32 %v11613_v38, %v9909_v11 }
 0x5ff   : > { %4816 = vmatpush.bf16.msrb.mxu3 %v14248_v16  ;;  %15825 = vst [vmem:[#allocation169_spill] sm:$0xff] %v14263_v23  ;;  %4804 = vmatpush.bf16.msrb.mxu2 %v14257_v53  ;;  %v9901_v16 = vld [vmem:[#allocation17 + $0x370] sm:$0xf0]  ;;  %v14281_v5 = vor.u32 %v11615_v62, %v9907_v34  ;;  %v9891_v53 = vld [vmem:[#allocation17 + $0x348] sm:$0xf] }
 0x600   : > { %15827 = vst [vmem:[#allocation171_spill] sm:$0xff] %v14269_v36  ;;  %v14279_v61 = vor.u32 %v11612_v51, %v9901_v16  ;;  %v9867_v62 = vld [vmem:[#allocation17 + $0x320] sm:$0xf]  ;;  %v11606_v51 = vld [vmem:[#allocation17 + $0x32c] sm:$0xf0] }
 0x601   : > { %4791 = vmatpush.bf16.msrb.mxu1 %v14255_v21  ;;  %15828 = vst [vmem:[#allocation172_spill] sm:$0xff] %v14272_v10  ;;  %v14275_v21 = vor.u32 %v11614_v63, %v9899_v13  ;;  %v11609_v13 = vld [vmem:[#allocation17 + $0x34c] sm:$0xf]  ;;  %v9893_v63 = vld [vmem:[#allocation17 + $0x358] sm:$0xf0] }
 0x602   : > { %4779 = vmatpush.bf16.msrb.mxu0 %v14263_v23  ;;  %15830 = vst [vmem:[#allocation174_spill] sm:$0xff] %v14279_v61  ;;  %v11611_v23 = vld [vmem:[#allocation17 + $0x354] sm:$0xf0]  ;;  %v11604_v38 = vld [vmem:[#allocation17 + $0x324] sm:$0xf]  ;;  %v14296_v11 = vor.u32 %v11609_v13, %v9893_v63 }
 0x603   : > { %4817 = vmatpush.bf16.msrb.mxu3 %v14260_v26  ;;  %15829 = vst [vmem:[#allocation173_spill] sm:$0xff] %v14275_v21  ;;  %4805 = vmatpush.bf16.msrb.mxu2 %v14269_v36  ;;  %v9885_v26 = vld [vmem:[#allocation17 + $0x350] sm:$0xf0]  ;;  %v14293_v16 = vor.u32 %v11611_v23, %v9891_v53  ;;  %v9875_v36 = vld [vmem:[#allocation17 + $0x328] sm:$0xf] }
 0x604   : > { %15831 = vst [vmem:[#allocation175_spill] sm:$0xff] %v14281_v5  ;;  %v14291_v34 = vor.u32 %v11608_v4, %v9885_v26  ;;  %v14301_v26 = vor.u32 %v11606_v51, %v9867_v62  ;;  %v9851_v23 = vld [vmem:[#allocation17 + $0x300] sm:$0xf]  ;;  %v11602_v53 = vld [vmem:[#allocation17 + $0x30c] sm:$0xf0] }
 0x605   : > { %4792 = vmatpush.bf16.msrb.mxu1 %v14267_v33  ;;  %15832 = vst [vmem:[#allocation176_spill] sm:$0xff] %v14284_v46  ;;  %v14287_v33 = vor.u32 %v11610_v15, %v9883_v3  ;;  %v11605_v3 = vld [vmem:[#allocation17 + $0x32c] sm:$0xf]  ;;  %v9877_v15 = vld [vmem:[#allocation17 + $0x338] sm:$0xf0] }
 0x606   : > { %4780 = vmatpush.bf16.msrb.mxu0 %v14275_v21  ;;  %15834 = vst [vmem:[#allocation178_spill] sm:$0xff] %v14291_v34  ;;  %v11607_v21 = vld [vmem:[#allocation17 + $0x334] sm:$0xf0]  ;;  %v11600_v63 = vld [vmem:[#allocation17 + $0x304] sm:$0xf] }
 0x607   : > { %4818 = vmatpush.bf16.msrb.mxu3 %v14272_v10  ;;  %15833 = vst [vmem:[#allocation177_spill] sm:$0xff] %v14287_v33  ;;  %4806 = vmatpush.bf16.msrb.mxu2 %v14281_v5  ;;  %v9869_v10 = vld [vmem:[#allocation17 + $0x330] sm:$0xf0]  ;;  %v14308_v13 = vor.u32 %v11607_v21, %v9875_v36  ;;  %v9859_v5 = vld [vmem:[#allocation17 + $0x308] sm:$0xf] }
 0x608   : > { %15835 = vst [vmem:[#allocation179_spill] sm:$0xff] %v14293_v16  ;;  %v14306_v4 = vor.u32 %v11604_v38, %v9869_v10  ;;  %v11603_v62 = vld [vmem:[#allocation17 + $0x314] sm:$0xf0]  ;;  %v11601_v51 = vld [vmem:[#allocation17 + $0x30c] sm:$0xf] }
 0x609   : > { %4793 = vmatpush.bf16.msrb.mxu1 %v14279_v61  ;;  %15836 = vst [vmem:[#allocation180_spill] sm:$0xff] %v14296_v11  ;;  %v9861_v61 = vld [vmem:[#allocation17 + $0x318] sm:$0xf0]  ;;  %v11662_v8 = vld [vmem:[#allocation17 + $0x4ec] sm:$0xf0] }
 0x60a   : > { %4781 = vmatpush.bf16.msrb.mxu0 %v14287_v33  ;;  %15837 = vst [vmem:[#allocation181_spill] sm:$0xff] %v14301_v26  ;;  %v14311_v33 = vor.u32 %v11605_v3, %v9877_v15  ;;  %v11660_v52 = vld [vmem:[#allocation17 + $0x4e4] sm:$0xf]  ;;  %v10093_v10 = vld [vmem:[#allocation17 + $0x4f0] sm:$0xf0]  ;;  %v14320_v3 = vor.u32 %v11603_v62, %v9859_v5 }
 0x60b   : > { %4819 = vmatpush.bf16.msrb.mxu3 %v14284_v46  ;;  %4867 = vst [vmem:[#allocation1] ss:$4 sm:$0xff] %v14298_v31  ;;  %4807 = vmatpush.bf16.msrb.mxu2 %v14293_v16  ;;  %v9853_v46 = vld [vmem:[#allocation17 + $0x310] sm:$0xf0]  ;;  %v14314_v16 = vor.u32 %v11602_v53, %v9851_v23  ;;  %v10099_v21 = vld [vmem:[#allocation17 + $0x4e8] sm:$0xf]  ;;  %v14327_v23 = vor.u32 %v11660_v52, %v10093_v10 }
 0x60c   : > { %15838 = vst [vmem:[#allocation182_spill] sm:$0xff] %v14306_v4  ;;  %v11663_v36 = vld [vmem:[#allocation17 + $0x4f4] sm:$0xf0]  ;;  %v14318_v38 = vor.u32 %v11600_v63, %v9853_v46  ;;  %v11661_v15 = vld [vmem:[#allocation17 + $0x4ec] sm:$0xf] }
 0x60d   : > { %4794 = vmatpush.bf16.msrb.mxu1 %v14291_v34  ;;  %15839 = vst [vmem:[#allocation183_spill] sm:$0xff] %v14308_v13  ;;  %v14323_v34 = vor.u32 %v11601_v51, %v9861_v61  ;;  %v14329_v53 = vor.u32 %v11663_v36, %v10099_v21  ;;  %v10075_v12 = vld [vmem:[#allocation17 + $0x4c0] sm:$0xf]  ;;  %v11656_v43 = vld [vmem:[#allocation17 + $0x4c4] sm:$0xf] }
 0x60e   : > { %15840 = vst [vmem:[#allocation184_spill] sm:$0xff] %v14311_v33  ;;  %4782 = vmatpush.bf16.msrb.mxu0 %v14301_v26  ;;  %v14325_v26 = vor.u32 %v11662_v8, %v10091_v24  ;;  %v10077_v5 = vld [vmem:[#allocation17 + $0x4d0] sm:$0xf0]  ;;  %v10083_v63 = vld [vmem:[#allocation17 + $0x4c8] sm:$0xf] }
 0x60f   : > { %4820 = vmatpush.bf16.msrb.mxu3 %v14296_v11  ;;  %15841 = vst [vmem:[#allocation185_spill] sm:$0xff] %v14314_v16  ;;  %4808 = vmatpush.bf16.msrb.mxu2 %v14308_v13  ;;  %v10101_v11 = vld [vmem:[#allocation17 + $0x4f8] sm:$0xf0]  ;;  %v11659_v62 = vld [vmem:[#allocation17 + $0x4d4] sm:$0xf0] }
 0x610   : > { %15842 = vst [vmem:[#allocation186_spill] sm:$0xff] %v14318_v38  ;;  %v14332_v46 = vor.u32 %v11661_v15, %v10101_v11  ;;  %v4582_v24 = vld [vmem:[#allocation4 + $0x2] sm:$0x1]  ;;  %v11657_v8 = vld [vmem:[#allocation17 + $0x4cc] sm:$0xf]  ;;  %v14342_v11 = vor.u32 %v11656_v43, %v10077_v5  ;;  %v14344_v51 = vor.u32 %v11659_v62, %v10083_v63 }
 0x611   : > { %4795 = vmatpush.bf16.msrb.mxu1 %v14306_v4  ;;  %15843 = vst [vmem:[#allocation187_spill] sm:$0xff] %v14320_v3  ;;  %v11658_v4 = vld [vmem:[#allocation17 + $0x4cc] sm:$0xf0]  ;;  %v10085_v52 = vld [vmem:[#allocation17 + $0x4d8] sm:$0xf0] }
 0x612   : > { %15844 = vst [vmem:[#allocation188_spill] sm:$0xff] %v14323_v34  ;;  %4783 = vmatpush.bf16.msrb.mxu0 %v14314_v16  ;;  %v14338_v61 = vor.u32 %v11658_v4, %v10075_v12  ;;  %v10059_v10 = vld [vmem:[#allocation17 + $0x4a0] sm:$0xf]  ;;  %v11654_v21 = vld [vmem:[#allocation17 + $0x4ac] sm:$0xf0]  ;;  %v14347_v15 = vor.u32 %v11657_v8, %v10085_v52 }
 0x613   : > { %4821 = vmatpush.bf16.msrb.mxu3 %v14311_v33  ;;  %15845 = vst [vmem:[#allocation189_spill] sm:$0xff] %v14325_v26  ;;  %4809 = vmatpush.bf16.msrb.mxu2 %v14320_v3  ;;  %v11652_v36 = vld [vmem:[#allocation17 + $0x4a4] sm:$0xf]  ;;  %v11655_v12 = vld [vmem:[#allocation17 + $0x4b4] sm:$0xf0]  ;;  %v14350_v43 = vor.u32 %v11654_v21, %v10059_v10 }
 0x614   : > { %15846 = vst [vmem:[#allocation190_spill] sm:$0xff] %v14327_v23  ;;  %v11653_v4 = vld [vmem:[#allocation17 + $0x4ac] sm:$0xf]  ;;  %v10043_v62 = vld [vmem:[#allocation17 + $0x480] sm:$0xf] }
 0x615   : > { %15847 = vst [vmem:[#allocation191_spill] sm:$0xff] %v14329_v53  ;;  %4796 = vmatpush.bf16.msrb.mxu1 %v14318_v38  ;;  %4784 = vmatmul.bf16.vlgmr.msrb.gmra.mxu0 %v4582_v24  ;;  %v11650_v8 = vld [vmem:[#allocation17 + $0x48c] sm:$0xf0]  ;;  %v11648_v52 = vld [vmem:[#allocation17 + $0x484] sm:$0xf] }
 0x616   : > { %15848 = vst [vmem:[#allocation192_spill] sm:$0xff] %v14332_v46  ;;  %5036 = vmatpush.bf16.msra.mxu0 %v14325_v26  ;;  %v10067_v26 = vld [vmem:[#allocation17 + $0x4a8] sm:$0xf]  ;;  %4810 = vmatmul.bf16.vlgmr.msrb.gmra.mxu2 %v4582_v24  ;;  %v11649_v10 = vld [vmem:[#allocation17 + $0x48c] sm:$0xf] }
 0x617   : > { %4822 = vmatpush.bf16.msrb.mxu3 %v14323_v34  ;;  %15849 = vst [vmem:[#allocation193_spill] sm:$0xff] %v14338_v61  ;;  %5062 = vmatpush.bf16.msra.mxu2 %v14329_v53  ;;  %v10061_v34 = vld [vmem:[#allocation17 + $0x4b0] sm:$0xf0]  ;;  %v14356_v63 = vor.u32 %v11655_v12, %v10067_v26  ;;  %v10051_v53 = vld [vmem:[#allocation17 + $0x488] sm:$0xf] }
 0x618   : > { %15850 = vst [vmem:[#allocation194_spill] sm:$0xff] %v14342_v11  ;;  %4797 = vmatmul.bf16.vlgmr.msrb.gmra.mxu1 %v4582_v24  ;;  %v14354_v5 = vor.u32 %v11652_v36, %v10061_v34  ;;  %v10053_v21 = vld [vmem:[#allocation17 + $0x498] sm:$0xf0]  ;;  %v10027_v36 = vld [vmem:[#allocation17 + $0x460] sm:$0xf] }
 0x619   : > { %5049 = vmatpush.bf16.msra.mxu1 %v14327_v23  ;;  %15851 = vst [vmem:[#allocation195_spill] sm:$0xff] %v14344_v51  ;;  %v10069_v23 = vld [vmem:[#allocation17 + $0x4b8] sm:$0xf0]  ;;  %v11644_v12 = vld [vmem:[#allocation17 + $0x464] sm:$0xf] }
 0x61a   : > { %15852 = vst [vmem:[#allocation196_spill] sm:$0xff] %v14347_v15  ;;  %4823 = vmatmul.bf16.vlgmr.msrb.gmra.mxu3 %v4582_v24  ;;  %5037 = vmatpush.bf16.msra.mxu0 %v14338_v61  ;;  %v10045_v24 = vld [vmem:[#allocation17 + $0x490] sm:$0xf0]  ;;  %v11651_v61 = vld [vmem:[#allocation17 + $0x494] sm:$0xf0] }
 0x61b   : > { %5075 = vmatpush.bf16.msra.mxu3 %v14332_v46  ;;  %15853 = vst [vmem:[#allocation197_spill] sm:$0xff] %v14350_v43  ;;  %5063 = vmatpush.bf16.msra.mxu2 %v14344_v51  ;;  %v14359_v46 = vor.u32 %v11653_v4, %v10069_v23  ;;  %v14366_v34 = vor.u32 %v11648_v52, %v10045_v24  ;;  %v11646_v23 = vld [vmem:[#allocation17 + $0x46c] sm:$0xf0]  ;;  %v10035_v51 = vld [vmem:[#allocation17 + $0x468] sm:$0xf] }
 0x61c   : > { %15854 = vst [vmem:[#allocation198_spill] sm:$0xff] %v14354_v5  ;;  %v14368_v26 = vor.u32 %v11651_v61, %v10051_v53  ;;  %v14371_v4 = vor.u32 %v11649_v10, %v10053_v21  ;;  %v10011_v52 = vld [vmem:[#allocation17 + $0x440] sm:$0xf]  ;;  %v11642_v24 = vld [vmem:[#allocation17 + $0x44c] sm:$0xf0] }
 0x61d   : > { %5050 = vmatpush.bf16.msra.mxu1 %v14342_v11  ;;  %15855 = vst [vmem:[#allocation199_spill] sm:$0xff] %v14356_v63  ;;  %v14362_v11 = vor.u32 %v11650_v8, %v10043_v62  ;;  %v11645_v62 = vld [vmem:[#allocation17 + $0x46c] sm:$0xf]  ;;  %v10037_v8 = vld [vmem:[#allocation17 + $0x478] sm:$0xf0] }
 0x61e   : > { %15856 = vst [vmem:[#allocation200_spill] sm:$0xff] %v14359_v46  ;;  %5038 = vmatpush.bf16.msra.mxu0 %v14350_v43  ;;  %v11647_v43 = vld [vmem:[#allocation17 + $0x474] sm:$0xf0]  ;;  %v11640_v10 = vld [vmem:[#allocation17 + $0x444] sm:$0xf]  ;;  %v14383_v21 = vor.u32 %v11645_v62, %v10037_v8 }
 0x61f   : > { %5076 = vmatpush.bf16.msra.mxu3 %v14347_v15  ;;  %15857 = vst [vmem:[#allocation201_spill] sm:$0xff] %v14362_v11  ;;  %5064 = vmatpush.bf16.msra.mxu2 %v14356_v63  ;;  %v10029_v15 = vld [vmem:[#allocation17 + $0x470] sm:$0xf0]  ;;  %v14380_v61 = vor.u32 %v11647_v43, %v10035_v51  ;;  %v10019_v63 = vld [vmem:[#allocation17 + $0x448] sm:$0xf] }
 0x620   : > { %15858 = vst [vmem:[#allocation202_spill] sm:$0xff] %v14366_v34  ;;  %v14378_v53 = vor.u32 %v11644_v12, %v10029_v15  ;;  %v9995_v15 = vld [vmem:[#allocation17 + $0x420] sm:$0xf]  ;;  %v11638_v12 = vld [vmem:[#allocation17 + $0x42c] sm:$0xf0] }
 0x621   : > { %5051 = vmatpush.bf16.msra.mxu1 %v14354_v5  ;;  %15859 = vst [vmem:[#allocation203_spill] sm:$0xff] %v14368_v26  ;;  %v14374_v5 = vor.u32 %v11646_v23, %v10027_v36  ;;  %v11641_v36 = vld [vmem:[#allocation17 + $0x44c] sm:$0xf]  ;;  %v10021_v23 = vld [vmem:[#allocation17 + $0x458] sm:$0xf0] }
 0x622   : > { %15860 = vst [vmem:[#allocation204_spill] sm:$0xff] %v14371_v4  ;;  %5039 = vmatpush.bf16.msra.mxu0 %v14362_v11  ;;  %v11643_v11 = vld [vmem:[#allocation17 + $0x454] sm:$0xf0]  ;;  %v11636_v51 = vld [vmem:[#allocation17 + $0x424] sm:$0xf] }
 0x623   : > { %5077 = vmatpush.bf16.msra.mxu3 %v14359_v46  ;;  %15861 = vst [vmem:[#allocation205_spill] sm:$0xff] %v14374_v5  ;;  %5065 = vmatpush.bf16.msra.mxu2 %v14368_v26  ;;  %v10013_v46 = vld [vmem:[#allocation17 + $0x450] sm:$0xf0]  ;;  %v14392_v62 = vor.u32 %v11643_v11, %v10019_v63  ;;  %v14395_v26 = vor.u32 %v11641_v36, %v10021_v23  ;;  %v10005_v3 = vld [vmem:[#allocation17 + $0x438] sm:$0xf0] }
 0x624   : > { %15862 = vst [vmem:[#allocation206_spill] sm:$0xff] %v14378_v53  ;;  %v14390_v43 = vor.u32 %v11640_v10, %v10013_v46  ;;  %v9997_v8 = vld [vmem:[#allocation17 + $0x430] sm:$0xf0]  ;;  %v9979_v38 = vld [vmem:[#allocation17 + $0x400] sm:$0xf] }
 0x625   : > { %5052 = vmatpush.bf16.msra.mxu1 %v14366_v34  ;;  %15863 = vst [vmem:[#allocation207_spill] sm:$0xff] %v14380_v61  ;;  %v14386_v34 = vor.u32 %v11642_v24, %v10011_v52  ;;  %v11639_v52 = vld [vmem:[#allocation17 + $0x434] sm:$0xf0]  ;;  %v11637_v24 = vld [vmem:[#allocation17 + $0x42c] sm:$0xf]  ;;  %v14402_v36 = vor.u32 %v11636_v51, %v9997_v8 }
 0x626   : > { %15864 = vst [vmem:[#allocation208_spill] sm:$0xff] %v14383_v21  ;;  %5040 = vmatpush.bf16.msra.mxu0 %v14374_v5  ;;  %v10003_v5 = vld [vmem:[#allocation17 + $0x428] sm:$0xf]  ;;  %v11634_v16 = vld [vmem:[#allocation17 + $0x40c] sm:$0xf0] }
 0x627   : > { %5078 = vmatpush.bf16.msra.mxu3 %v14371_v4  ;;  %15865 = vst [vmem:[#allocation209_spill] sm:$0xff] %v14386_v34  ;;  %5066 = vmatpush.bf16.msra.mxu2 %v14380_v61  ;;  %v4868_v4 = vld.sshfl [vmem:[#allocation1] sm:$0xff pattern:$0x73625140]  ;;  %v9981_v10 = vld [vmem:[#allocation17 + $0x410] sm:$0xf0]  ;;  %v14404_v23 = vor.u32 %v11639_v52, %v10003_v5  ;;  %v14412_v51 = vor.u32 %v11634_v16, %v9979_v38 }
 0x628   : > { %15866 = vst [vmem:[#allocation210_spill] sm:$0xff] %v14390_v43  ;;  %v11632_v46 = vld [vmem:[#allocation17 + $0x404] sm:$0xf]  ;;  %v9987_v11 = vld [vmem:[#allocation17 + $0x408] sm:$0xf]  ;;  %v4871_v63 = vshll.u32 %v4868_v4, 16 }
 0x629   : > { %5053 = vmatpush.bf16.msra.mxu1 %v14378_v53  ;;  %15867 = vst [vmem:[#allocation211_spill] sm:$0xff] %v14392_v62  ;;  %v14398_v53 = vor.u32 %v11638_v12, %v9995_v15  ;;  %v11633_v61 = vld [vmem:[#allocation17 + $0x40c] sm:$0xf]  ;;  %v9989_v33 = vld [vmem:[#allocation17 + $0x418] sm:$0xf0]  ;;  %v4869_v8 = vshrl.u32 %v4868_v4, 16 }
 0x62a   : > { %15868 = vst [vmem:[#allocation212_spill] sm:$0xff] %v14395_v26  ;;  %5041 = vmatpush.bf16.msra.mxu0 %v14386_v34  ;;  %v14407_v34 = vor.u32 %v11637_v24, %v10005_v3  ;;  %v10219_v15 = vld [vmem:[#allocation17 + $0x5e0] sm:$0xf]  ;;  %v11694_v12 = vld [vmem:[#allocation17 + $0x5ec] sm:$0xf0]  ;;  %v4873_v52 = vrot.slane %v4871_v63, 1  ;;  %v14417_v3 = vor.u32 %v11632_v46, %v9981_v10 }
 0x62b   : > { %5079 = vmatpush.bf16.msra.mxu3 %v14383_v21  ;;  %15869 = vst [vmem:[#allocation213_spill] sm:$0xff] %v14398_v53  ;;  %5067 = vmatpush.bf16.msra.mxu2 %v14392_v62  ;;  %v11635_v21 = vld [vmem:[#allocation17 + $0x414] sm:$0xf0]  ;;  %v11692_v13 = vld [vmem:[#allocation17 + $0x5e4] sm:$0xf]  ;;  %v14424_v16 = vor.u32 %v11694_v12, %v10219_v15 }
 0x62c   : > { %15870 = vst [vmem:[#allocation214_spill] sm:$0xff] %v14402_v36  ;;  %v11695_v5 = vld [vmem:[#allocation17 + $0x5f4] sm:$0xf0]  ;;  %v14419_v24 = vor.u32 %v11635_v21, %v9987_v11  ;;  %v10229_v62 = vld [vmem:[#allocation17 + $0x5f8] sm:$0xf0]  ;;  %v14426_v38 = vor.u32 %v11692_v13, %v10221_v40  ;;  %v4874_v21 = vor.u32 %v4873_v52, %v4869_v8 }
 0x62d   : > { %5054 = vmatpush.bf16.msra.mxu1 %v14390_v43  ;;  %15871 = vst [vmem:[#allocation215_spill] sm:$0xff] %v14404_v23  ;;  %v14428_v4 = vor.u32 %v11695_v5, %v10227_v14  ;;  %v10203_v63 = vld [vmem:[#allocation17 + $0x5c0] sm:$0xf]  ;;  %v11688_v43 = vld [vmem:[#allocation17 + $0x5c4] sm:$0xf] }
 0x62e   : > { %15872 = vst [vmem:[#allocation216_spill] sm:$0xff] %v14407_v34  ;;  %5042 = vmatpush.bf16.msra.mxu0 %v14398_v53  ;;  %v14422_v53 = vor.u32 %v11633_v61, %v9989_v33  ;;  %v10205_v10 = vld [vmem:[#allocation17 + $0x5d0] sm:$0xf0]  ;;  %v10211_v11 = vld [vmem:[#allocation17 + $0x5c8] sm:$0xf] }
 0x62f   : > { %5080 = vmatpush.bf16.msra.mxu3 %v14395_v26  ;;  %15873 = vst [vmem:[#allocation217_spill] sm:$0xff] %v14412_v51  ;;  %5068 = vmatpush.bf16.msra.mxu2 %v14404_v23  ;;  %v11693_v26 = vld [vmem:[#allocation17 + $0x5ec] sm:$0xf]  ;;  %v11691_v23 = vld [vmem:[#allocation17 + $0x5d4] sm:$0xf0]  ;;  %v14443_v15 = vor.u32 %v11688_v43, %v10205_v10 }
 0x630   : > { %5127 = vst [vmem:[#allocation1] ss:$4 sm:$0xff] %v14409_v47  ;;  %v14431_v46 = vor.u32 %v11693_v26, %v10229_v62  ;;  %v11689_v33 = vld [vmem:[#allocation17 + $0x5cc] sm:$0xf]  ;;  %v10213_v40 = vld [vmem:[#allocation17 + $0x5d8] sm:$0xf0]  ;;  %v14445_v12 = vor.u32 %v11691_v23, %v10211_v11 }
 0x631   : > { %5055 = vmatpush.bf16.msra.mxu1 %v14402_v36  ;;  %15874 = vst [vmem:[#allocation218_spill] sm:$0xff] %v14417_v3  ;;  %v11690_v36 = vld [vmem:[#allocation17 + $0x5cc] sm:$0xf0]  ;;  %v10187_v13 = vld [vmem:[#allocation17 + $0x5a0] sm:$0xf] }
 0x632   : > { %15875 = vst [vmem:[#allocation219_spill] sm:$0xff] %v14419_v24  ;;  %5043 = vmatpush.bf16.msra.mxu0 %v14412_v51  ;;  %v14437_v14 = vor.u32 %v11690_v36, %v10203_v63  ;;  %v11686_v61 = vld [vmem:[#allocation17 + $0x5ac] sm:$0xf0]  ;;  %v11684_v26 = vld [vmem:[#allocation17 + $0x5a4] sm:$0xf]  ;;  %v14450_v36 = vor.u32 %v11689_v33, %v10213_v40 }
 0x633   : > { %5081 = vmatpush.bf16.msra.mxu3 %v14407_v34  ;;  %15876 = vst [vmem:[#allocation220_spill] sm:$0xff] %v14422_v53  ;;  %5069 = vmatpush.bf16.msra.mxu2 %v14419_v24  ;;  %v14439_v62 = vld [vmem:[#allocation4 + $0x4] sm:$0x3]  ;;  %v10189_v5 = vld [vmem:[#allocation17 + $0x5b0] sm:$0xf0]  ;;  %v14454_v43 = vor.u32 %v11686_v61, %v10187_v13 }
 0x634   : > { %15877 = vst [vmem:[#allocation221_spill] sm:$0xff] %v14424_v16  ;;  %v10195_v52 = vld [vmem:[#allocation17 + $0x5a8] sm:$0xf]  ;;  %v11687_v63 = vld [vmem:[#allocation17 + $0x5b4] sm:$0xf0]  ;;  %v14458_v23 = vor.u32 %v11684_v26, %v10189_v5 }
 0x635   : > { %15878 = vst [vmem:[#allocation222_spill] sm:$0xff] %v14426_v38  ;;  %5056 = vmatpush.bf16.msra.mxu1 %v14417_v3  ;;  %5044 = vmatmul.bf16.vlgmr.msra.gmra.mxu0 %v4874_v21  ;;  %v14460_v10 = vor.u32 %v11687_v63, %v10195_v52  ;;  %v10171_v11 = vld [vmem:[#allocation17 + $0x580] sm:$0xf]  ;;  %v11682_v33 = vld [vmem:[#allocation17 + $0x58c] sm:$0xf0] }
 0x636   : > { %15879 = vst [vmem:[#allocation223_spill] sm:$0xff] %v14428_v4  ;;  %5292 = vmatpush.bf16.msrb.mxu0 %v14424_v16  ;;  %5070 = vmatmul.bf16.vlgmr.msra.gmra.mxu2 %v4874_v21  ;;  %v11680_v40 = vld [vmem:[#allocation17 + $0x584] sm:$0xf]  ;;  %v10179_v16 = vld [vmem:[#allocation17 + $0x588] sm:$0xf] }
 0x637   : > { %15880 = vst [vmem:[#allocation224_spill] sm:$0xff] %v14431_v46  ;;  %5082 = vmatpush.bf16.msra.mxu3 %v14422_v53  ;;  %5318 = vmatpush.bf16.msrb.mxu2 %v14428_v4  ;;  %v14447_v8 = vld.sshfl [vmem:[#allocation1] sm:$0xff pattern:$0x73625140]  ;;  %v11681_v13 = vld [vmem:[#allocation17 + $0x58c] sm:$0xf] }
 0x638   : > { %15881 = vst [vmem:[#allocation225_spill] sm:$0xff] %v14437_v14  ;;  %5057 = vmatmul.bf16.vlgmr.msra.gmra.mxu1 %v4874_v21  ;;  %v10197_v4 = vld [vmem:[#allocation17 + $0x5b8] sm:$0xf0]  ;;  %v10155_v52 = vld [vmem:[#allocation17 + $0x560] sm:$0xf] }
 0x639   : > { %15882 = vst [vmem:[#allocation226_spill] sm:$0xff] %v14439_v62  ;;  %5305 = vmatpush.bf16.msrb.mxu1 %v14426_v38  ;;  %v11685_v38 = vld [vmem:[#allocation17 + $0x5ac] sm:$0xf]  ;;  %v10181_v61 = vld [vmem:[#allocation17 + $0x598] sm:$0xf0] }
 0x63a   : > { %15883 = vst [vmem:[#allocation227_spill] sm:$0xff] %v14443_v15  ;;  %5083 = vmatmul.bf16.vlgmr.msra.gmra.mxu3 %v4874_v21  ;;  %5293 = vmatpush.bf16.msrb.mxu0 %v14437_v14  ;;  %v10173_v21 = vld [vmem:[#allocation17 + $0x590] sm:$0xf0]  ;;  %v11683_v14 = vld [vmem:[#allocation17 + $0x594] sm:$0xf0]  ;;  %v14475_v63 = vor.u32 %v11681_v13, %v10181_v61 }
 0x63b   : > { %15884 = vst [vmem:[#allocation228_spill] sm:$0xff] %v14445_v12  ;;  %5331 = vmatpush.bf16.msrb.mxu3 %v14431_v46  ;;  %5319 = vmatpush.bf16.msrb.mxu2 %v14445_v12  ;;  %v14463_v46 = vor.u32 %v11685_v38, %v10197_v4  ;;  %v14470_v26 = vor.u32 %v11680_v40, %v10173_v21  ;;  %v11678_v38 = vld [vmem:[#allocation17 + $0x56c] sm:$0xf0]  ;;  %v11676_v4 = vld [vmem:[#allocation17 + $0x564] sm:$0xf] }
 0x63c   : > { %15885 = vst [vmem:[#allocation229_spill] sm:$0xff] %v14450_v36  ;;  %v14472_v5 = vor.u32 %v11683_v14, %v10179_v16  ;;  %v10163_v12 = vld [vmem:[#allocation17 + $0x568] sm:$0xf]  ;;  %v10139_v40 = vld [vmem:[#allocation17 + $0x540] sm:$0xf] }
 0x63d   : > { %5634 = vst [vmem:[#allocation1] ss:$4 sm:$0xff] %v14439_v62  ;;  %5306 = vmatpush.bf16.msrb.mxu1 %v14443_v15  ;;  %v14466_v15 = vor.u32 %v11682_v33, %v10171_v11  ;;  %v11677_v11 = vld [vmem:[#allocation17 + $0x56c] sm:$0xf]  ;;  %v10165_v33 = vld [vmem:[#allocation17 + $0x578] sm:$0xf0] }
 0x63e   : > { %15886 = vst [vmem:[#allocation230_spill] sm:$0xff] %v14454_v43  ;;  %5294 = vmatpush.bf16.msrb.mxu0 %v14454_v43  ;;  %v11679_v43 = vld [vmem:[#allocation17 + $0x574] sm:$0xf0]  ;;  %v11674_v21 = vld [vmem:[#allocation17 + $0x54c] sm:$0xf0]  ;;  %v14487_v61 = vor.u32 %v11677_v11, %v10165_v33 }
 0x63f   : > { %15887 = vst [vmem:[#allocation231_spill] sm:$0xff] %v14458_v23  ;;  %5332 = vmatpush.bf16.msrb.mxu3 %v14450_v36  ;;  %5320 = vmatpush.bf16.msrb.mxu2 %v14460_v10  ;;  %v10157_v36 = vld [vmem:[#allocation17 + $0x570] sm:$0xf0]  ;;  %v14484_v14 = vor.u32 %v11679_v43, %v10163_v12  ;;  %v11672_v13 = vld [vmem:[#allocation17 + $0x544] sm:$0xf] }
 0x640   : > { %15888 = vst [vmem:[#allocation232_spill] sm:$0xff] %v14460_v10  ;;  %v14482_v16 = vor.u32 %v11676_v4, %v10157_v36  ;;  %v10147_v10 = vld [vmem:[#allocation17 + $0x548] sm:$0xf]  ;;  %v10123_v43 = vld [vmem:[#allocation17 + $0x520] sm:$0xf] }
 0x641   : > { %15889 = vst [vmem:[#allocation233_spill] sm:$0xff] %v14463_v46  ;;  %5307 = vmatpush.bf16.msrb.mxu1 %v14458_v23  ;;  %v14478_v23 = vor.u32 %v11678_v38, %v10155_v52  ;;  %v11673_v52 = vld [vmem:[#allocation17 + $0x54c] sm:$0xf]  ;;  %v10149_v38 = vld [vmem:[#allocation17 + $0x558] sm:$0xf0] }
 0x642   : > { %15890 = vst [vmem:[#allocation234_spill] sm:$0xff] %v14466_v15  ;;  %5295 = vmatpush.bf16.msrb.mxu0 %v14466_v15  ;;  %v11675_v15 = vld [vmem:[#allocation17 + $0x554] sm:$0xf0]  ;;  %v11670_v4 = vld [vmem:[#allocation17 + $0x52c] sm:$0xf0]  ;;  %v14499_v33 = vor.u32 %v11673_v52, %v10149_v38 }
 0x643   : > { %15891 = vst [vmem:[#allocation235_spill] sm:$0xff] %v14470_v26  ;;  %5333 = vmatpush.bf16.msrb.mxu3 %v14463_v46  ;;  %5321 = vmatpush.bf16.msrb.mxu2 %v14472_v5  ;;  %v10141_v46 = vld [vmem:[#allocation17 + $0x550] sm:$0xf0]  ;;  %v14496_v36 = vor.u32 %v11675_v15, %v10147_v10  ;;  %v11668_v11 = vld [vmem:[#allocation17 + $0x524] sm:$0xf]  ;;  %v14504_v15 = vpop.f32.mrf.mxu0  ;;  %v14512_v53 = vpop.f32.mrf.mxu1 }
 0x644   : > { %15892 = vst [vmem:[#allocation236_spill] sm:$0xff] %v14472_v5  ;;  %v14494_v12 = vor.u32 %v11672_v13, %v10141_v46  ;;  %v10131_v5 = vld [vmem:[#allocation17 + $0x528] sm:$0xf]  ;;  %v10107_v46 = vld [vmem:[#allocation17 + $0x500] sm:$0xf] }
 0x645   : > { %15893 = vst [vmem:[#allocation237_spill] sm:$0xff] %v14475_v63  ;;  %5308 = vmatpush.bf16.msrb.mxu1 %v14470_v26  ;;  %v14490_v26 = vor.u32 %v11674_v21, %v10139_v40  ;;  %v11669_v40 = vld [vmem:[#allocation17 + $0x52c] sm:$0xf]  ;;  %v10133_v21 = vld [vmem:[#allocation17 + $0x538] sm:$0xf0] }
 0x646   : > { %15894 = vst [vmem:[#allocation238_spill] sm:$0xff] %v14478_v23  ;;  %5296 = vmatpush.bf16.msrb.mxu0 %v14478_v23  ;;  %v11671_v23 = vld [vmem:[#allocation17 + $0x534] sm:$0xf0]  ;;  %v11666_v13 = vld [vmem:[#allocation17 + $0x50c] sm:$0xf0] }
 0x647   : > { %15895 = vst [vmem:[#allocation239_spill] sm:$0xff] %v14482_v16  ;;  %5334 = vmatpush.bf16.msrb.mxu3 %v14475_v63  ;;  %5322 = vmatpush.bf16.msrb.mxu2 %v14484_v14  ;;  %v10125_v63 = vld [vmem:[#allocation17 + $0x530] sm:$0xf0]  ;;  %v14510_v52 = vor.u32 %v11671_v23, %v10131_v5  ;;  %v11664_v38 = vld [vmem:[#allocation17 + $0x504] sm:$0xf]  ;;  %v14526_v34 = vpop.f32.mrf.mxu2 }
 0x648   : > { %15896 = vst [vmem:[#allocation240_spill] sm:$0xff] %v14484_v14  ;;  %v14508_v10 = vor.u32 %v11668_v11, %v10125_v63  ;;  %v10115_v14 = vld [vmem:[#allocation17 + $0x508] sm:$0xf]  ;;  %v10117_v24 = vld [vmem:[#allocation17 + $0x518] sm:$0xf0]  ;;  %v14518_v63 = vor.u32 %v11666_v13, %v10107_v46  ;;  %v14533_v13 = vpop.f32.mrf.mxu3 }
 0x649   : > { %15897 = vst [vmem:[#allocation241_spill] sm:$0xff] %v14487_v61  ;;  %5309 = vmatpush.bf16.msrb.mxu1 %v14482_v16  ;;  %v14502_v16 = vor.u32 %v11670_v4, %v10123_v43  ;;  %v14515_v43 = vor.u32 %v11669_v40, %v10133_v21  ;;  %v11667_v4 = vld [vmem:[#allocation17 + $0x514] sm:$0xf0]  ;;  %v10347_v3 = vld [vmem:[#allocation17 + $0x6e0] sm:$0xf] }
 0x64a   : > { %15898 = vst [vmem:[#allocation242_spill] sm:$0xff] %v14490_v26  ;;  %5297 = vmatpush.bf16.msrb.mxu0 %v14490_v26  ;;  %v11665_v26 = vld [vmem:[#allocation17 + $0x50c] sm:$0xf]  ;;  %v11724_v51 = vld [vmem:[#allocation17 + $0x6e4] sm:$0xf]  ;;  %v14524_v40 = vor.u32 %v11667_v4, %v10115_v14  ;;  %v5130_v14 = vrot.slane %v14447_v8, 1 }
 0x64b   : > { %15899 = vst [vmem:[#allocation243_spill] sm:$0xff] %v14494_v12  ;;  %5335 = vmatpush.bf16.msrb.mxu3 %v14487_v61  ;;  %5323 = vmatpush.bf16.msrb.mxu2 %v14496_v36  ;;  %v10109_v61 = vld [vmem:[#allocation17 + $0x510] sm:$0xf0]  ;;  %v10355_v5 = vld [vmem:[#allocation17 + $0x6e8] sm:$0xf] }
 0x64c   : > { %15900 = vst [vmem:[#allocation244_spill] sm:$0xff] %v14496_v36  ;;  %v10349_v23 = vld [vmem:[#allocation17 + $0x6f0] sm:$0xf0]  ;;  %v11727_v11 = vld [vmem:[#allocation17 + $0x6f4] sm:$0xf0] }
 0x64d   : > { %15901 = vst [vmem:[#allocation245_spill] sm:$0xff] %v14499_v33  ;;  %5310 = vmatpush.bf16.msrb.mxu1 %v14494_v12  ;;  %v11726_v12 = vld [vmem:[#allocation17 + $0x6ec] sm:$0xf0]  ;;  %v11725_v21 = vld [vmem:[#allocation17 + $0x6ec] sm:$0xf] }
 0x64e   : > { %15902 = vst [vmem:[#allocation246_spill] sm:$0xff] %v14502_v16  ;;  %5298 = vmatpush.bf16.msrb.mxu0 %v14502_v16  ;;  %v10357_v36 = vld [vmem:[#allocation17 + $0x6f8] sm:$0xf0]  ;;  %v14529_v16 = vor.u32 %v11665_v26, %v10117_v24  ;;  %v14531_v46 = vor.u32 %v11726_v12, %v10347_v3  ;;  %v10331_v62 = vld [vmem:[#allocation17 + $0x6c0] sm:$0xf]  ;;  %v4072_v3 = vpop.f32.mrf.mxu0 }
 0x64f   : > { %15903 = vst [vmem:[#allocation247_spill] sm:$0xff] %v14508_v10  ;;  %5336 = vmatpush.bf16.msrb.mxu3 %v14499_v33  ;;  %5324 = vmatpush.bf16.msrb.mxu2 %v14510_v52  ;;  %v14522_v33 = vor.u32 %v11664_v38, %v10109_v61  ;;  %v11722_v61 = vld [vmem:[#allocation17 + $0x6cc] sm:$0xf0]  ;;  %v11720_v38 = vld [vmem:[#allocation17 + $0x6c4] sm:$0xf]  ;;  %v14541_v4 = vor.u32 %v11725_v21, %v10357_v36 }
 0x650   : > { %15904 = vst [vmem:[#allocation248_spill] sm:$0xff] %v14510_v52  ;;  %v14537_v52 = vor.u32 %v11727_v11, %v10355_v5  ;;  %v10339_v24 = vld [vmem:[#allocation17 + $0x6c8] sm:$0xf]  ;;  %v11723_v26 = vld [vmem:[#allocation17 + $0x6d4] sm:$0xf0]  ;;  %v14547_v8 = vor.u32 %v11722_v61, %v10331_v62 }
 0x651   : > { %15905 = vst [vmem:[#allocation249_spill] sm:$0xff] %v14515_v43  ;;  %5311 = vmatpush.bf16.msrb.mxu1 %v14508_v10  ;;  %v14535_v10 = vor.u32 %v11724_v51, %v10349_v23  ;;  %v11721_v51 = vld [vmem:[#allocation17 + $0x6cc] sm:$0xf]  ;;  %v10341_v12 = vld [vmem:[#allocation17 + $0x6d8] sm:$0xf0]  ;;  %v4085_v23 = vpop.f32.mrf.mxu1  ;;  %v14553_v5 = vor.u32 %v11723_v26, %v10339_v24 }
 0x652   : > { %15906 = vst [vmem:[#allocation250_spill] sm:$0xff] %v14518_v63  ;;  %5299 = vmatpush.bf16.msrb.mxu0 %v14518_v63  ;;  %v10315_v11 = vld [vmem:[#allocation17 + $0x6a0] sm:$0xf]  ;;  %v11718_v21 = vld [vmem:[#allocation17 + $0x6ac] sm:$0xf0]  ;;  %v14556_v23 = vor.u32 %v11721_v51, %v10341_v12 }
 0x653   : > { %15907 = vst [vmem:[#allocation251_spill] sm:$0xff] %v14522_v33  ;;  %5337 = vmatpush.bf16.msrb.mxu3 %v14515_v43  ;;  %v10333_v43 = vld [vmem:[#allocation17 + $0x6d0] sm:$0xf0]  ;;  %5325 = vmatpush.bf16.msrb.mxu2 %v14524_v40  ;;  %v11716_v3 = vld [vmem:[#allocation17 + $0x6a4] sm:$0xf] }
 0x654   : > { %15908 = vst [vmem:[#allocation252_spill] sm:$0xff] %v14524_v40  ;;  %v14551_v36 = vor.u32 %v11720_v38, %v10333_v43  ;;  %v11719_v62 = vld [vmem:[#allocation17 + $0x6b4] sm:$0xf0]  ;;  %v11717_v61 = vld [vmem:[#allocation17 + $0x6ac] sm:$0xf]  ;;  %v14559_v43 = vor.u32 %v11718_v21, %v10315_v11  ;;  %v4111_v38 = vpop.f32.mrf.mxu3 }
 0x655   : > { %15909 = vst [vmem:[#allocation253_spill] sm:$0xff] %v14529_v16  ;;  %5312 = vmatpush.bf16.msrb.mxu1 %v14522_v33  ;;  %5300 = vmatmul.bf16.vlgmr.msrb.gmra.mxu0 %v5130_v14  ;;  %v10299_v51 = vld [vmem:[#allocation17 + $0x680] sm:$0xf]  ;;  %v11714_v12 = vld [vmem:[#allocation17 + $0x68c] sm:$0xf0] }
 0x656   : > { %15910 = vst [vmem:[#allocation254_spill] sm:$0xff] %v14531_v46  ;;  %5543 = vmatpush.bf16.msra.mxu0 %v14531_v46  ;;  %v10323_v46 = vld [vmem:[#allocation17 + $0x6a8] sm:$0xf]  ;;  %5326 = vmatmul.bf16.vlgmr.msrb.gmra.mxu2 %v5130_v14  ;;  %v11715_v11 = vld [vmem:[#allocation17 + $0x694] sm:$0xf0] }
 0x657   : > { %15911 = vst [vmem:[#allocation255_spill] sm:$0xff] %v14535_v10  ;;  %5338 = vmatpush.bf16.msrb.mxu3 %v14529_v16  ;;  %5569 = vmatpush.bf16.msra.mxu2 %v14537_v52  ;;  %v10317_v16 = vld [vmem:[#allocation17 + $0x6b0] sm:$0xf0]  ;;  %v14565_v26 = vor.u32 %v11719_v62, %v10323_v46  ;;  %v11713_v21 = vld [vmem:[#allocation17 + $0x68c] sm:$0xf] }
 0x658   : > { %15912 = vst [vmem:[#allocation256_spill] sm:$0xff] %v14537_v52  ;;  %5313 = vmatmul.bf16.vlgmr.msrb.gmra.mxu1 %v5130_v14  ;;  %v4098_v52 = vpop.f32.mrf.mxu2  ;;  %v14563_v24 = vor.u32 %v11716_v3, %v10317_v16  ;;  %v10309_v38 = vld [vmem:[#allocation17 + $0x698] sm:$0xf0]  ;;  %v4282_v16 = vpop.f32.mrf.mxu0  ;;  %v11710_v62 = vld [vmem:[#allocation17 + $0x66c] sm:$0xf0] }
 0x659   : > { %15913 = vst [vmem:[#allocation257_spill] sm:$0xff] %v14541_v4  ;;  %5556 = vmatpush.bf16.msra.mxu1 %v14535_v10  ;;  %v10325_v10 = vld [vmem:[#allocation17 + $0x6b8] sm:$0xf0]  ;;  %v10475_v63 = vld [vmem:[#allocation17 + $0x7e0] sm:$0xf] }
 0x65a   : > { %15914 = vst [vmem:[#allocation258_spill] sm:$0xff] %v14547_v8  ;;  %5339 = vmatmul.bf16.vlgmr.msrb.gmra.mxu3 %v5130_v14  ;;  %5544 = vmatpush.bf16.msra.mxu0 %v14547_v8  ;;  %v14568_v52 = vor.u32 %v11717_v61, %v10325_v10  ;;  %v10301_v14 = vld [vmem:[#allocation17 + $0x690] sm:$0xf0]  ;;  %v10307_v8 = vld [vmem:[#allocation17 + $0x688] sm:$0xf] }
 0x65b   : > { %15915 = vst [vmem:[#allocation259_spill] sm:$0xff] %v14551_v36  ;;  %5582 = vmatpush.bf16.msra.mxu3 %v14541_v4  ;;  %5570 = vmatpush.bf16.msra.mxu2 %v14553_v5  ;;  %v11712_v4 = vld [vmem:[#allocation17 + $0x684] sm:$0xf]  ;;  %v14577_v3 = vor.u32 %v11715_v11, %v10307_v8  ;;  %v10283_v10 = vld [vmem:[#allocation17 + $0x660] sm:$0xf] }
 0x65c   : > { %15916 = vst [vmem:[#allocation260_spill] sm:$0xff] %v14553_v5  ;;  %v14575_v46 = vor.u32 %v11712_v4, %v10301_v14  ;;  %v11708_v61 = vld [vmem:[#allocation17 + $0x664] sm:$0xf]  ;;  %v4295_v5 = vpop.f32.mrf.mxu1  ;;  %v11709_v4 = vld [vmem:[#allocation17 + $0x66c] sm:$0xf]  ;;  %v14589_v14 = vor.u32 %v11710_v62, %v10283_v10 }
 0x65d   : > { %15917 = vst [vmem:[#allocation261_spill] sm:$0xff] %v14556_v23  ;;  %5557 = vmatpush.bf16.msra.mxu1 %v14551_v36  ;;  %v14571_v36 = vor.u32 %v11714_v12, %v10299_v51  ;;  %v14583_v51 = vor.u32 %v11713_v21, %v10309_v38  ;;  %v10285_v12 = vld [vmem:[#allocation17 + $0x670] sm:$0xf0]  ;;  %v10293_v8 = vld [vmem:[#allocation17 + $0x678] sm:$0xf0]  ;;  %v4321_v10 = vpop.f32.mrf.mxu3 }
 0x65e   : > { %15918 = vst [vmem:[#allocation262_spill] sm:$0xff] %v14559_v43  ;;  %5545 = vmatpush.bf16.msra.mxu0 %v14559_v43  ;;  %v10291_v43 = vld [vmem:[#allocation17 + $0x668] sm:$0xf]  ;;  %v10267_v38 = vld [vmem:[#allocation17 + $0x640] sm:$0xf] }
 0x65f   : > { %15919 = vst [vmem:[#allocation263_spill] sm:$0xff] %v14563_v24  ;;  %5583 = vmatpush.bf16.msra.mxu3 %v14556_v23  ;;  %5571 = vmatpush.bf16.msra.mxu2 %v14565_v26  ;;  %v14580_v23 = vadd.f32 %v4282_v16, %v14504_v15  ;;  %v14593_v15 = vor.u32 %v11708_v61, %v10285_v12  ;;  %v11706_v16 = vld [vmem:[#allocation17 + $0x64c] sm:$0xf0]  ;;  %v10269_v62 = vld [vmem:[#allocation17 + $0x650] sm:$0xf0] }
 0x660   : > { %15920 = vst [vmem:[#allocation264_spill] sm:$0xff] %v14565_v26  ;;  %v14586_v26 = vadd.f32 %v4295_v5, %v14512_v53  ;;  %v4308_v21 = vpop.f32.mrf.mxu2  ;;  %v14598_v53 = vor.u32 %v11709_v4, %v10293_v8  ;;  %v14604_v61 = vadd.f32 %v4321_v10, %v14533_v13  ;;  %v14607_v12 = vor.u32 %v11706_v16, %v10267_v38  ;;  %v10251_v8 = vld [vmem:[#allocation17 + $0x620] sm:$0xf]  ;;  %v10259_v38 = vld [vmem:[#allocation17 + $0x628] sm:$0xf] }
 0x661   : > { %15921 = vst [vmem:[#allocation265_spill] sm:$0xff] %v14568_v52  ;;  %5558 = vmatpush.bf16.msra.mxu1 %v14563_v24  ;;  %v11711_v24 = vld [vmem:[#allocation17 + $0x674] sm:$0xf0]  ;;  %v14601_v5 = vadd.f32 %v4308_v21, %v14526_v34  ;;  %v11702_v21 = vld [vmem:[#allocation17 + $0x62c] sm:$0xf0] }
 0x662   : > { %15922 = vst [vmem:[#allocation266_spill] sm:$0xff] %v14571_v36  ;;  %5546 = vmatpush.bf16.msra.mxu0 %v14571_v36  ;;  %v14595_v11 = vor.u32 %v11711_v24, %v10291_v43  ;;  %v11707_v36 = vld [vmem:[#allocation17 + $0x654] sm:$0xf0]  ;;  %v11705_v43 = vld [vmem:[#allocation17 + $0x64c] sm:$0xf] }
 0x663   : > { %15923 = vst [vmem:[#allocation267_spill] sm:$0xff] %v14575_v46  ;;  %5584 = vmatpush.bf16.msra.mxu3 %v14568_v52  ;;  %5572 = vmatpush.bf16.msra.mxu2 %v14577_v3  ;;  %v11704_v52 = vld [vmem:[#allocation17 + $0x644] sm:$0xf]  ;;  %v10277_v24 = vld [vmem:[#allocation17 + $0x658] sm:$0xf0] }
 0x664   : > { %15924 = vst [vmem:[#allocation268_spill] sm:$0xff] %v14577_v3  ;;  %v4284_v3 = vpop.f32.mrf.mxu0  ;;  %v14611_v34 = vor.u32 %v11704_v52, %v10269_v62  ;;  %v4297_v13 = vpop.f32.mrf.mxu1  ;;  %v14616_v10 = vor.u32 %v11705_v43, %v10277_v24  ;;  %v11703_v16 = vld [vmem:[#allocation17 + $0x634] sm:$0xf0]  ;;  %v10261_v40 = vld [vmem:[#allocation17 + $0x638] sm:$0xf0] }
 0x665   : > { %15925 = vst [vmem:[#allocation269_spill] sm:$0xff] %v14583_v51  ;;  %5559 = vmatpush.bf16.msra.mxu1 %v14575_v46  ;;  %v10275_v46 = vld [vmem:[#allocation17 + $0x648] sm:$0xf]  ;;  %v11701_v3 = vld [vmem:[#allocation17 + $0x62c] sm:$0xf]  ;;  %v14625_v62 = vor.u32 %v11703_v16, %v10259_v38  ;;  %v4323_v33 = vpop.f32.mrf.mxu3 }
 0x666   : > { %15926 = vst [vmem:[#allocation270_spill] sm:$0xff] %v14589_v14  ;;  %5547 = vmatpush.bf16.msra.mxu0 %v14589_v14  ;;  %v14613_v4 = vor.u32 %v11707_v36, %v10275_v46  ;;  %v10253_v14 = vld [vmem:[#allocation17 + $0x630] sm:$0xf0]  ;;  %v10235_v52 = vld [vmem:[#allocation17 + $0x600] sm:$0xf] }
 0x667   : > { %15927 = vst [vmem:[#allocation271_spill] sm:$0xff] %v14593_v15  ;;  %5585 = vmatpush.bf16.msra.mxu3 %v14583_v51  ;;  %5573 = vmatpush.bf16.msra.mxu2 %v14595_v11  ;;  %v11700_v51 = vld [vmem:[#allocation17 + $0x624] sm:$0xf]  ;;  %v11698_v36 = vld [vmem:[#allocation17 + $0x60c] sm:$0xf0] }
 0x668   : > { %15928 = vst [vmem:[#allocation272_spill] sm:$0xff] %v14595_v11  ;;  %v14619_v11 = vor.u32 %v11702_v21, %v10251_v8  ;;  %v14623_v46 = vor.u32 %v11700_v51, %v10253_v14  ;;  %v11696_v43 = vld [vmem:[#allocation17 + $0x604] sm:$0xf]  ;;  %v10237_v24 = vld [vmem:[#allocation17 + $0x610] sm:$0xf0]  ;;  %v14631_v51 = vor.u32 %v11698_v36, %v10235_v52 }
 0x669   : > { %15929 = vst [vmem:[#allocation273_spill] sm:$0xff] %v14598_v53  ;;  %5560 = vmatpush.bf16.msra.mxu1 %v14593_v15  ;;  %v10243_v13 = vld [vmem:[#allocation17 + $0x608] sm:$0xf]  ;;  %v14628_v15 = vor.u32 %v11701_v3, %v10261_v40  ;;  %v11699_v8 = vld [vmem:[#allocation17 + $0x614] sm:$0xf0]  ;;  %v14635_v40 = vor.u32 %v11696_v43, %v10237_v24 }
 0x66a   : > { %15930 = vst [vmem:[#allocation274_spill] sm:$0xff] %v14607_v12  ;;  %5548 = vmatpush.bf16.msra.mxu0 %v14607_v12  ;;  %v11697_v21 = vld [vmem:[#allocation17 + $0x60c] sm:$0xf]  ;;  %v10245_v12 = vld [vmem:[#allocation17 + $0x618] sm:$0xf0] }
 0x66b   : > { %15931 = vst [vmem:[#allocation275_spill] sm:$0xff] %v14611_v34  ;;  %5586 = vmatpush.bf16.msra.mxu3 %v14598_v53  ;;  %5574 = vmatpush.bf16.msra.mxu2 %v14613_v4  ;;  %v4310_v53 = vpop.f32.mrf.mxu2  ;;  %v10477_v14 = vld [vmem:[#allocation17 + $0x7f0] sm:$0xf0]  ;;  %v10483_v38 = vld [vmem:[#allocation17 + $0x7e8] sm:$0xf] }
 0x66c   : > { %15932 = vst [vmem:[#allocation276_spill] sm:$0xff] %v14613_v4  ;;  %v11759_v16 = vld [vmem:[#allocation17 + $0x7f4] sm:$0xf0]  ;;  %v14637_v53 = vor.u32 %v11699_v8, %v10243_v13  ;;  %v11757_v3 = vld [vmem:[#allocation17 + $0x7ec] sm:$0xf]  ;;  %v14644_v52 = vor.u32 %v11756_v59, %v10477_v14 }
 0x66d   : > { %15933 = vst [vmem:[#allocation277_spill] sm:$0xff] %v14616_v10  ;;  %5561 = vmatpush.bf16.msra.mxu1 %v14611_v34  ;;  %v11758_v34 = vld [vmem:[#allocation17 + $0x7ec] sm:$0xf0]  ;;  %v10485_v33 = vld [vmem:[#allocation17 + $0x7f8] sm:$0xf0]  ;;  %v14646_v36 = vor.u32 %v11759_v16, %v10483_v38 }
 0x66e   : > { %15934 = vst [vmem:[#allocation278_spill] sm:$0xff] %v14619_v11  ;;  %5549 = vmatpush.bf16.msra.mxu0 %v14619_v11  ;;  %v14642_v11 = vor.u32 %v11758_v34, %v10475_v63  ;;  %v10459_v4 = vld [vmem:[#allocation17 + $0x7c0] sm:$0xf]  ;;  %v14649_v43 = vor.u32 %v11757_v3, %v10485_v33  ;;  %v10461_v24 = vld [vmem:[#allocation17 + $0x7d0] sm:$0xf0] }
 0x66f   : > { %15935 = vst [vmem:[#allocation279_spill] sm:$0xff] %v14623_v46  ;;  %5587 = vmatpush.bf16.msra.mxu3 %v14616_v10  ;;  %5575 = vmatpush.bf16.msra.mxu2 %v14625_v62  ;;  %v14640_v10 = vor.u32 %v11697_v21, %v10245_v12  ;;  %v10467_v13 = vld [vmem:[#allocation17 + $0x7c8] sm:$0xf]  ;;  %v11755_v8 = vld [vmem:[#allocation17 + $0x7d4] sm:$0xf0]  ;;  %v14661_v21 = vor.u32 %v11752_v54, %v10461_v24 }
 0x670   : > { %15936 = vst [vmem:[#allocation280_spill] sm:$0xff] %v14625_v62  ;;  %v14653_v63 = vld [vmem:[#allocation4 + $0x4] sm:$0x1]  ;;  %v11753_v59 = vld [vmem:[#allocation17 + $0x7cc] sm:$0xf]  ;;  %v14663_v14 = vor.u32 %v11755_v8, %v10467_v13 }
 0x671   : > { %15937 = vst [vmem:[#allocation281_spill] sm:$0xff] %v14628_v15  ;;  %5562 = vmatpush.bf16.msra.mxu1 %v14623_v46  ;;  %v11754_v46 = vld [vmem:[#allocation17 + $0x7cc] sm:$0xf0]  ;;  %v10469_v12 = vld [vmem:[#allocation17 + $0x7d8] sm:$0xf0] }
 0x672   : > { %15938 = vst [vmem:[#allocation282_spill] sm:$0xff] %v14631_v51  ;;  %5550 = vmatpush.bf16.msra.mxu0 %v14631_v51  ;;  %v14657_v34 = vor.u32 %v11754_v46, %v10459_v4  ;;  %v10443_v38 = vld [vmem:[#allocation17 + $0x7a0] sm:$0xf]  ;;  %v11750_v16 = vld [vmem:[#allocation17 + $0x7ac] sm:$0xf0]  ;;  %v14667_v33 = vor.u32 %v11753_v59, %v10469_v12 }
 0x673   : > { %15939 = vst [vmem:[#allocation283_spill] sm:$0xff] %v14635_v40  ;;  %5588 = vmatpush.bf16.msra.mxu3 %v14628_v15  ;;  %5576 = vmatpush.bf16.msra.mxu2 %v14637_v53  ;;  %v11748_v3 = vld [vmem:[#allocation17 + $0x7a4] sm:$0xf]  ;;  %v10451_v4 = vld [vmem:[#allocation17 + $0x7a8] sm:$0xf]  ;;  %v14673_v13 = vor.u32 %v11750_v16, %v10443_v38  ;;  %v4534_v38 = vpop.f32.mrf.mxu0 }
 0x674   : > { %15940 = vst [vmem:[#allocation284_spill] sm:$0xff] %v14637_v53  ;;  %v11751_v46 = vld [vmem:[#allocation17 + $0x7b4] sm:$0xf0]  ;;  %v11749_v54 = vld [vmem:[#allocation17 + $0x7ac] sm:$0xf] }
 0x675   : > { %15941 = vst [vmem:[#allocation285_spill] sm:$0xff] %v14640_v10  ;;  %5563 = vmatpush.bf16.msra.mxu1 %v14635_v40  ;;  %5551 = vmatmul.bf16.vlgmr.msra.gmra.mxu0 %v14653_v63  ;;  %v10453_v24 = vld [vmem:[#allocation17 + $0x7b8] sm:$0xf0]  ;;  %v14679_v59 = vor.u32 %v11751_v46, %v10451_v4  ;;  %v10427_v12 = vld [vmem:[#allocation17 + $0x780] sm:$0xf] }
 0x676   : > { %15942 = vst [vmem:[#allocation286_spill] sm:$0xff] %v14642_v11  ;;  %5803 = vmatpush.bf16.msrb.mxu0 %v14642_v11  ;;  %v10445_v11 = vld [vmem:[#allocation17 + $0x7b0] sm:$0xf0]  ;;  %5577 = vmatmul.bf16.vlgmr.msra.gmra.mxu2 %v14653_v63  ;;  %v10435_v53 = vld [vmem:[#allocation17 + $0x788] sm:$0xf] }
 0x677   : > { %15943 = vst [vmem:[#allocation287_spill] sm:$0xff] %v14644_v52  ;;  %5589 = vmatpush.bf16.msra.mxu3 %v14640_v10  ;;  %5829 = vmatpush.bf16.msrb.mxu2 %v14646_v36  ;;  %v14677_v8 = vor.u32 %v11748_v3, %v10445_v11  ;;  %v10429_v10 = vld [vmem:[#allocation17 + $0x790] sm:$0xf0]  ;;  %v11745_v16 = vld [vmem:[#allocation17 + $0x78c] sm:$0xf]  ;;  %v14686_v11 = vadd.f32 %v4534_v38, %v14580_v23  ;;  %v4547_v3 = vpop.f32.mrf.mxu1 }
 0x678   : > { %15944 = vst [vmem:[#allocation288_spill] sm:$0xff] %v14646_v36  ;;  %5564 = vmatmul.bf16.vlgmr.msra.gmra.mxu1 %v14653_v63  ;;  %v11744_v36 = vld [vmem:[#allocation17 + $0x784] sm:$0xf]  ;;  %v10437_v40 = vld [vmem:[#allocation17 + $0x798] sm:$0xf0]  ;;  %v14693_v46 = vadd.f32 %v4547_v3, %v14586_v26 }
 0x679   : > { %15945 = vst [vmem:[#allocation289_spill] sm:$0xff] %v14649_v43  ;;  %5816 = vmatpush.bf16.msrb.mxu1 %v14644_v52  ;;  %v14682_v52 = vor.u32 %v11749_v54, %v10453_v24  ;;  %v14695_v54 = vor.u32 %v11744_v36, %v10429_v10  ;;  %v14700_v23 = vor.u32 %v11745_v16, %v10437_v40  ;;  %v11743_v38 = vld [vmem:[#allocation17 + $0x774] sm:$0xf0]  ;;  %v10395_v36 = vld [vmem:[#allocation17 + $0x740] sm:$0xf]  ;;  %v4560_v3 = vpop.f32.mrf.mxu2 }
 0x67a   : > { %15946 = vst [vmem:[#allocation290_spill] sm:$0xff] %v14653_v63  ;;  %5590 = vmatmul.bf16.vlgmr.msra.gmra.mxu3 %v14653_v63  ;;  %5804 = vmatpush.bf16.msrb.mxu0 %v14657_v34  ;;  %v11738_v40 = vld [vmem:[#allocation17 + $0x74c] sm:$0xf0]  ;;  %v5635_v51 = vld.sshfl [vmem:[#allocation1] sm:$0xff pattern:$0x73625140] }
 0x67b   : > { %15947 = vst [vmem:[#allocation291_spill] sm:$0xff] %v14657_v34  ;;  %5842 = vmatpush.bf16.msrb.mxu3 %v14649_v43  ;;  %5830 = vmatpush.bf16.msrb.mxu2 %v14663_v14  ;;  %v11746_v43 = vld [vmem:[#allocation17 + $0x78c] sm:$0xf0]  ;;  %v11747_v34 = vld [vmem:[#allocation17 + $0x794] sm:$0xf0] }
 0x67c   : > { %15948 = vst [vmem:[#allocation292_spill] sm:$0xff] %v14661_v21  ;;  %v14688_v4 = vor.u32 %v11746_v43, %v10427_v12  ;;  %v14697_v24 = vor.u32 %v11747_v34, %v10435_v53  ;;  %v10413_v43 = vld [vmem:[#allocation17 + $0x770] sm:$0xf0]  ;;  %v10419_v12 = vld [vmem:[#allocation17 + $0x768] sm:$0xf] }
 0x67d   : > { %15949 = vst [vmem:[#allocation293_spill] sm:$0xff] %v14663_v14  ;;  %5817 = vmatpush.bf16.msrb.mxu1 %v14661_v21  ;;  %v11742_v14 = vld [vmem:[#allocation17 + $0x76c] sm:$0xf0]  ;;  %v10421_v21 = vld [vmem:[#allocation17 + $0x778] sm:$0xf0]  ;;  %v14709_v53 = vor.u32 %v11743_v38, %v10419_v12  ;;  %v14721_v38 = vor.u32 %v11738_v40, %v10395_v36 }
 0x67e   : > { %15950 = vst [vmem:[#allocation294_spill] sm:$0xff] %v14667_v33  ;;  %5805 = vmatpush.bf16.msrb.mxu0 %v14673_v13  ;;  %v11736_v34 = vld [vmem:[#allocation17 + $0x744] sm:$0xf]  ;;  %v11735_v36 = vld [vmem:[#allocation17 + $0x734] sm:$0xf0] }
 0x67f   : > { %15951 = vst [vmem:[#allocation295_spill] sm:$0xff] %v14673_v13  ;;  %5843 = vmatpush.bf16.msrb.mxu3 %v14667_v33  ;;  %5831 = vmatpush.bf16.msrb.mxu2 %v14679_v59  ;;  %v10411_v33 = vld [vmem:[#allocation17 + $0x760] sm:$0xf]  ;;  %v11740_v13 = vld [vmem:[#allocation17 + $0x764] sm:$0xf] }
 0x680   : > { %15952 = vst [vmem:[#allocation296_spill] sm:$0xff] %v14677_v8  ;;  %v14703_v26 = vor.u32 %v11742_v14, %v10411_v33  ;;  %v14707_v10 = vor.u32 %v11740_v13, %v10413_v43  ;;  %v11739_v14 = vld [vmem:[#allocation17 + $0x754] sm:$0xf0]  ;;  %v14715_v33 = vadd.f32 %v4560_v3, %v14601_v5  ;;  %v10405_v13 = vld [vmem:[#allocation17 + $0x758] sm:$0xf0]  ;;  %v4536_v43 = vpop.f32.mrf.mxu0 }
 0x681   : > { %15953 = vst [vmem:[#allocation297_spill] sm:$0xff] %v14679_v59  ;;  %5818 = vmatpush.bf16.msrb.mxu1 %v14677_v8  ;;  %v11741_v8 = vld [vmem:[#allocation17 + $0x76c] sm:$0xf]  ;;  %v4549_v59 = vpop.f32.mrf.mxu1  ;;  %v10381_v43 = vld [vmem:[#allocation17 + $0x730] sm:$0xf0]  ;;  %v4562_v37 = vpop.f32.mrf.mxu2 }
 0x682   : > { %15954 = vst [vmem:[#allocation298_spill] sm:$0xff] %v14682_v52  ;;  %5806 = vmatpush.bf16.msrb.mxu0 %v14688_v4  ;;  %v14712_v16 = vor.u32 %v11741_v8, %v10421_v21  ;;  %v10379_v21 = vld [vmem:[#allocation17 + $0x720] sm:$0xf]  ;;  %v11734_v8 = vld [vmem:[#allocation17 + $0x72c] sm:$0xf0] }
 0x683   : > { %15955 = vst [vmem:[#allocation299_spill] sm:$0xff] %v14688_v4  ;;  %5844 = vmatpush.bf16.msrb.mxu3 %v14682_v52  ;;  %5832 = vmatpush.bf16.msrb.mxu2 %v14697_v24  ;;  %v10397_v52 = vld [vmem:[#allocation17 + $0x750] sm:$0xf0]  ;;  %v10403_v4 = vld [vmem:[#allocation17 + $0x748] sm:$0xf] }
 0x684   : > { %15956 = vst [vmem:[#allocation300_spill] sm:$0xff] %v14695_v54  ;;  %v14725_v5 = vor.u32 %v11736_v34, %v10397_v52  ;;  %v14727_v3 = vor.u32 %v11739_v14, %v10403_v4  ;;  %v11733_v40 = vld [vmem:[#allocation17 + $0x72c] sm:$0xf]  ;;  %v10363_v15 = vld [vmem:[#allocation17 + $0x700] sm:$0xf]  ;;  %v5638_v14 = vshll.u32 %v5635_v51, 16 }
 0x685   : > { %15957 = vst [vmem:[#allocation301_spill] sm:$0xff] %v14697_v24  ;;  %5819 = vmatpush.bf16.msrb.mxu1 %v14695_v54  ;;  %v4573_v54 = vpop.f32.mrf.mxu3  ;;  %v11737_v24 = vld [vmem:[#allocation17 + $0x74c] sm:$0xf]  ;;  %v11730_v59 = vld [vmem:[#allocation17 + $0x70c] sm:$0xf0] }
 0x686   : > { %15958 = vst [vmem:[#allocation302_spill] sm:$0xff] %v14700_v23  ;;  %5807 = vmatpush.bf16.msrb.mxu0 %v14703_v26  ;;  %v14719_v12 = vadd.f32 %v4573_v54, %v14604_v61  ;;  %v14730_v61 = vor.u32 %v11737_v24, %v10405_v13  ;;  %v10387_v54 = vld [vmem:[#allocation17 + $0x728] sm:$0xf]  ;;  %v11728_v52 = vld [vmem:[#allocation17 + $0x704] sm:$0xf] }
 0x687   : > { %15959 = vst [vmem:[#allocation303_spill] sm:$0xff] %v14703_v26  ;;  %5845 = vmatpush.bf16.msrb.mxu3 %v14700_v23  ;;  %v11732_v23 = vld [vmem:[#allocation17 + $0x724] sm:$0xf]  ;;  %5833 = vmatpush.bf16.msrb.mxu2 %v14709_v53  ;;  %v10389_v26 = vld [vmem:[#allocation17 + $0x738] sm:$0xf0]  ;;  %v14739_v13 = vor.u32 %v11735_v36, %v10387_v54  ;;  %v5636_v54 = vshrl.u32 %v5635_v51, 16 }
 0x688   : > { %15960 = vst [vmem:[#allocation304_spill] sm:$0xff] %v14707_v10  ;;  %v10365_v34 = vld [vmem:[#allocation17 + $0x710] sm:$0xf0]  ;;  %v10371_v4 = vld [vmem:[#allocation17 + $0x708] sm:$0xf]  ;;  %v14737_v24 = vor.u32 %v11732_v23, %v10381_v43  ;;  %v14747_v23 = vor.u32 %v11730_v59, %v10363_v15  ;;  %v5640_v36 = vrot.slane %v5638_v14, 1 }
 0x689   : > { %15961 = vst [vmem:[#allocation305_spill] sm:$0xff] %v14709_v53  ;;  %5820 = vmatpush.bf16.msrb.mxu1 %v14707_v10  ;;  %v14733_v10 = vor.u32 %v11734_v8, %v10379_v21  ;;  %v11729_v53 = vld [vmem:[#allocation17 + $0x70c] sm:$0xf]  ;;  %v10373_v62 = vld [vmem:[#allocation17 + $0x718] sm:$0xf0] }
 0x68a   : > { %15962 = vst [vmem:[#allocation306_spill] sm:$0xff] %v14712_v16  ;;  %5808 = vmatpush.bf16.msrb.mxu0 %v14721_v38  ;;  %v10603_v21 = vld [vmem:[#allocation17 + $0x8e0] sm:$0xf]  ;;  %v11790_v8 = vld [vmem:[#allocation17 + $0x8ec] sm:$0xf0] }
 0x68b   : > { %15963 = vst [vmem:[#allocation307_spill] sm:$0xff] %v14721_v38  ;;  %5846 = vmatpush.bf16.msrb.mxu3 %v14712_v16  ;;  %5834 = vmatpush.bf16.msrb.mxu2 %v14727_v3  ;;  %v11731_v16 = vld [vmem:[#allocation17 + $0x714] sm:$0xf0]  ;;  %v14742_v38 = vor.u32 %v11733_v40, %v10389_v26  ;;  %v11788_v63 = vld [vmem:[#allocation17 + $0x8e4] sm:$0xf]  ;;  %v14752_v26 = vor.u32 %v11728_v52, %v10365_v34 }
 0x68c   : > { %15964 = vst [vmem:[#allocation308_spill] sm:$0xff] %v14725_v5  ;;  %v11791_v43 = vld [vmem:[#allocation17 + $0x8f4] sm:$0xf0]  ;;  %v14754_v37 = vor.u32 %v11731_v16, %v10371_v4  ;;  %v10613_v40 = vld [vmem:[#allocation17 + $0x8f8] sm:$0xf0]  ;;  %v14759_v15 = vor.u32 %v11790_v8, %v10603_v21  ;;  %v14761_v51 = vor.u32 %v11788_v63, %v10605_v1  ;;  %v5641_v16 = vor.u32 %v5640_v36, %v5636_v54 }
 0x68d   : > { %15965 = vst [vmem:[#allocation309_spill] sm:$0xff] %v14730_v61  ;;  %5821 = vmatpush.bf16.msrb.mxu1 %v14725_v5  ;;  %v4575_v5 = vpop.f32.mrf.mxu3  ;;  %v14763_v59 = vor.u32 %v11791_v43, %v10611_v0  ;;  %v10587_v14 = vld [vmem:[#allocation17 + $0x8c0] sm:$0xf]  ;;  %v10589_v34 = vld [vmem:[#allocation17 + $0x8d0] sm:$0xf0] }
 0x68e   : > { %15966 = vst [vmem:[#allocation310_spill] sm:$0xff] %v14733_v10  ;;  %5809 = vmatpush.bf16.msrb.mxu0 %v14733_v10  ;;  %v11789_v5 = vld [vmem:[#allocation17 + $0x8ec] sm:$0xf]  ;;  %v14757_v10 = vor.u32 %v11729_v53, %v10373_v62  ;;  %v10595_v4 = vld [vmem:[#allocation17 + $0x8c8] sm:$0xf] }
 0x68f   : > { %15967 = vst [vmem:[#allocation311_spill] sm:$0xff] %v14737_v24  ;;  %5847 = vmatpush.bf16.msrb.mxu3 %v14730_v61  ;;  %5835 = vmatpush.bf16.msrb.mxu2 %v14739_v13  ;;  %v11784_v61 = vld [vmem:[#allocation17 + $0x8c4] sm:$0xf]  ;;  %v14766_v52 = vor.u32 %v11789_v5, %v10613_v40  ;;  %v11785_v62 = vld [vmem:[#allocation17 + $0x8cc] sm:$0xf] }
 0x690   : > { %15968 = vst [vmem:[#allocation312_spill] sm:$0xff] %v14739_v13  ;;  %v11787_v13 = vld [vmem:[#allocation17 + $0x8d4] sm:$0xf0]  ;;  %v10597_v1 = vld [vmem:[#allocation17 + $0x8d8] sm:$0xf0]  ;;  %v14776_v8 = vor.u32 %v11784_v61, %v10589_v34 }
 0x691   : > { %5894 = vst [vmem:[#allocation1] ss:$4 sm:$0xff] %v14744_v27  ;;  %5822 = vmatpush.bf16.msrb.mxu1 %v14737_v24  ;;  %v11786_v24 = vld [vmem:[#allocation17 + $0x8cc] sm:$0xf0]  ;;  %v10571_v63 = vld [vmem:[#allocation17 + $0x8a0] sm:$0xf]  ;;  %v14778_v43 = vor.u32 %v11787_v13, %v10595_v4  ;;  %v14783_v5 = vor.u32 %v11785_v62, %v10597_v1 }
 0x692   : > { %15969 = vst [vmem:[#allocation313_spill] sm:$0xff] %v14761_v51  ;;  %5810 = vmatpush.bf16.msrb.mxu0 %v14747_v23  ;;  %v14772_v0 = vor.u32 %v11786_v24, %v10587_v14  ;;  %v11782_v53 = vld [vmem:[#allocation17 + $0x8ac] sm:$0xf0]  ;;  %v11780_v21 = vld [vmem:[#allocation17 + $0x8a4] sm:$0xf] }
 0x693   : > { %5848 = vmatpush.bf16.msrb.mxu3 %v14742_v38  ;;  %15970 = vst [vmem:[#allocation314_spill] sm:$0xff] %v14763_v59  ;;  %5836 = vmatpush.bf16.msrb.mxu2 %v14754_v37  ;;  %v10573_v54 = vld [vmem:[#allocation17 + $0x8b0] sm:$0xf0]  ;;  %v10579_v24 = vld [vmem:[#allocation17 + $0x8a8] sm:$0xf]  ;;  %v14787_v61 = vor.u32 %v11782_v53, %v10571_v63  ;;  %v4785_v63 = vpop.f32.mrf.mxu0 }
 0x694   : > { %15971 = vst [vmem:[#allocation315_spill] sm:$0xff] %v14766_v52  ;;  %v11783_v40 = vld [vmem:[#allocation17 + $0x8b4] sm:$0xf0]  ;;  %v11781_v14 = vld [vmem:[#allocation17 + $0x8ac] sm:$0xf]  ;;  %v14791_v13 = vor.u32 %v11780_v21, %v10573_v54  ;;  %v14800_v21 = vadd.f32 %v4785_v63, %v14686_v11 }
 0x695   : > { %5823 = vmatpush.bf16.msrb.mxu1 %v14752_v26  ;;  %15972 = vst [vmem:[#allocation316_spill] sm:$0xff] %v14772_v0  ;;  %5811 = vmatmul.bf16.vlgmr.msrb.gmra.mxu0 %v5641_v16  ;;  %v14793_v34 = vor.u32 %v11783_v40, %v10579_v24  ;;  %v10555_v4 = vld [vmem:[#allocation17 + $0x880] sm:$0xf]  ;;  %v11778_v62 = vld [vmem:[#allocation17 + $0x88c] sm:$0xf0]  ;;  %v4798_v54 = vpop.f32.mrf.mxu1 }
 0x696   : > { %6059 = vmatpush.bf16.msra.mxu0 %v14759_v15  ;;  %15973 = vst [vmem:[#allocation317_spill] sm:$0xff] %v14776_v8  ;;  %5837 = vmatmul.bf16.vlgmr.msrb.gmra.mxu2 %v5641_v16  ;;  %v11777_v53 = vld [vmem:[#allocation17 + $0x88c] sm:$0xf]  ;;  %v14802_v24 = vor.u32 %v11778_v62, %v10555_v4  ;;  %v10541_v4 = vld [vmem:[#allocation17 + $0x870] sm:$0xf0] }
 0x697   : > { %5849 = vmatpush.bf16.msrb.mxu3 %v14757_v10  ;;  %6085 = vmatpush.bf16.msra.mxu2 %v14763_v59  ;;  %15974 = vst [vmem:[#allocation318_spill] sm:$0xff] %v14778_v43  ;;  %v10581_v59 = vld [vmem:[#allocation17 + $0x8b8] sm:$0xf0]  ;;  %v10547_v62 = vld [vmem:[#allocation17 + $0x868] sm:$0xf] }
 0x698   : > { %v14780_v36 = vld.sshfl [vmem:[#allocation1] sm:$0xff pattern:$0x73625140]  ;;  %15975 = vst [vmem:[#allocation319_spill] sm:$0xff] %v14783_v5  ;;  %5824 = vmatmul.bf16.vlgmr.msrb.gmra.mxu1 %v5641_v16  ;;  %v14796_v1 = vor.u32 %v11781_v14, %v10581_v59  ;;  %v14807_v59 = vadd.f32 %v4798_v54, %v14693_v46  ;;  %v11775_v63 = vld [vmem:[#allocation17 + $0x874] sm:$0xf0] }
 0x699   : > { %6072 = vmatpush.bf16.msra.mxu1 %v14761_v51  ;;  %6133 = vst [vmem:[#allocation1] ss:$4 sm:$0xff] %v14298_v31  ;;  %v11776_v31 = vld [vmem:[#allocation17 + $0x884] sm:$0xf]  ;;  %v10565_v51 = vld [vmem:[#allocation17 + $0x898] sm:$0xf0]  ;;  %v4811_v54 = vpop.f32.mrf.mxu2 }
 0x69a   : > { %5850 = vmatmul.bf16.vlgmr.msrb.gmra.mxu3 %v5641_v16  ;;  %6060 = vmatpush.bf16.msra.mxu0 %v14772_v0  ;;  %15976 = vst [vmem:[#allocation320_spill] sm:$0xff] %v14787_v61  ;;  %v10557_v16 = vld [vmem:[#allocation17 + $0x890] sm:$0xf0]  ;;  %v11779_v0 = vld [vmem:[#allocation17 + $0x894] sm:$0xf0]  ;;  %v14814_v11 = vor.u32 %v11777_v53, %v10565_v51 }
 0x69b   : > { %6098 = vmatpush.bf16.msra.mxu3 %v14766_v52  ;;  %6086 = vmatpush.bf16.msra.mxu2 %v14778_v43  ;;  %15977 = vst [vmem:[#allocation321_spill] sm:$0xff] %v14791_v13  ;;  %v10563_v52 = vld [vmem:[#allocation17 + $0x888] sm:$0xf]  ;;  %v14809_v40 = vor.u32 %v11776_v31, %v10557_v16  ;;  %v11774_v43 = vld [vmem:[#allocation17 + $0x86c] sm:$0xf0] }
 0x69c   : > { %15978 = vst [vmem:[#allocation322_spill] sm:$0xff] %v14793_v34  ;;  %v14811_v14 = vor.u32 %v11779_v0, %v10563_v52  ;;  %v14823_v0 = vor.u32 %v11775_v63, %v10547_v62  ;;  %v10523_v31 = vld [vmem:[#allocation17 + $0x840] sm:$0xf]  ;;  %v11770_v51 = vld [vmem:[#allocation17 + $0x84c] sm:$0xf0] }
 0x69d   : > { %6073 = vmatpush.bf16.msra.mxu1 %v14776_v8  ;;  %15979 = vst [vmem:[#allocation323_spill] sm:$0xff] %v14796_v1  ;;  %v10549_v8 = vld [vmem:[#allocation17 + $0x878] sm:$0xf0]  ;;  %v11768_v16 = vld [vmem:[#allocation17 + $0x844] sm:$0xf]  ;;  %v14835_v63 = vor.u32 %v11770_v51, %v10523_v31 }
 0x69e   : > { %6061 = vmatpush.bf16.msra.mxu0 %v14787_v61  ;;  %15980 = vst [vmem:[#allocation324_spill] sm:$0xff] %v14802_v24  ;;  %v11772_v61 = vld [vmem:[#allocation17 + $0x864] sm:$0xf]  ;;  %v11767_v31 = vld [vmem:[#allocation17 + $0x834] sm:$0xf0] }
 0x69f   : > { %6099 = vmatpush.bf16.msra.mxu3 %v14783_v5  ;;  %6087 = vmatpush.bf16.msra.mxu2 %v14793_v34  ;;  %15981 = vst [vmem:[#allocation325_spill] sm:$0xff] %v14809_v40  ;;  %v10539_v5 = vld [vmem:[#allocation17 + $0x860] sm:$0xf]  ;;  %v14821_v52 = vor.u32 %v11772_v61, %v10541_v4  ;;  %v10533_v61 = vld [vmem:[#allocation17 + $0x858] sm:$0xf0]  ;;  %v4787_v4 = vpop.f32.mrf.mxu0 }
 0x6a0   : > { %15982 = vst [vmem:[#allocation326_spill] sm:$0xff] %v14811_v14  ;;  %v14817_v46 = vor.u32 %v11774_v43, %v10539_v5  ;;  %v11771_v43 = vld [vmem:[#allocation17 + $0x854] sm:$0xf0]  ;;  %v14829_v5 = vadd.f32 %v4811_v54, %v14715_v33  ;;  %v10507_v54 = vld [vmem:[#allocation17 + $0x820] sm:$0xf] }
 0x6a1   : > { %6074 = vmatpush.bf16.msra.mxu1 %v14791_v13  ;;  %15983 = vst [vmem:[#allocation327_spill] sm:$0xff] %v14814_v11  ;;  %v11773_v13 = vld [vmem:[#allocation17 + $0x86c] sm:$0xf]  ;;  %v11764_v34 = vld [vmem:[#allocation17 + $0x824] sm:$0xf] }
 0x6a2   : > { %6062 = vmatpush.bf16.msra.mxu0 %v14802_v24  ;;  %15984 = vst [vmem:[#allocation328_spill] sm:$0xff] %v14817_v46  ;;  %v14826_v53 = vor.u32 %v11773_v13, %v10549_v8  ;;  %v10531_v24 = vld [vmem:[#allocation17 + $0x848] sm:$0xf]  ;;  %v4800_v8 = vpop.f32.mrf.mxu1  ;;  %v11765_v51 = vld [vmem:[#allocation17 + $0x82c] sm:$0xf] }
 0x6a3   : > { %6100 = vmatpush.bf16.msra.mxu3 %v14796_v1  ;;  %6088 = vmatpush.bf16.msra.mxu2 %v14811_v14  ;;  %15985 = vst [vmem:[#allocation329_spill] sm:$0xff] %v14821_v52  ;;  %v10525_v1 = vld [vmem:[#allocation17 + $0x850] sm:$0xf0]  ;;  %v11769_v14 = vld [vmem:[#allocation17 + $0x84c] sm:$0xf]  ;;  %v14841_v33 = vor.u32 %v11771_v43, %v10531_v24 }
 0x6a4   : > { %15986 = vst [vmem:[#allocation330_spill] sm:$0xff] %v14823_v0  ;;  %v14839_v13 = vor.u32 %v11768_v16, %v10525_v1  ;;  %v14844_v4 = vor.u32 %v11769_v14, %v10533_v61  ;;  %v10517_v8 = vld [vmem:[#allocation17 + $0x838] sm:$0xf0]  ;;  %v10491_v16 = vld [vmem:[#allocation17 + $0x800] sm:$0xf] }
 0x6a5   : > { %6075 = vmatpush.bf16.msra.mxu1 %v14809_v40  ;;  %15987 = vst [vmem:[#allocation331_spill] sm:$0xff] %v14826_v53  ;;  %v4824_v40 = vpop.f32.mrf.mxu3  ;;  %v11762_v14 = vld [vmem:[#allocation17 + $0x80c] sm:$0xf0]  ;;  %v11760_v43 = vld [vmem:[#allocation17 + $0x804] sm:$0xf]  ;;  %v14856_v61 = vor.u32 %v11765_v51, %v10517_v8  ;;  %v16008_v8 = vld [vmem:[#allocation107_spill] sm:$0xff] }
 0x6a6   : > { %6063 = vmatpush.bf16.msra.mxu0 %v14817_v46  ;;  %v14833_v62 = vadd.f32 %v4824_v40, %v14719_v12  ;;  %15988 = vst [vmem:[#allocation332_spill] sm:$0xff] %v14835_v63  ;;  %v10509_v12 = vld [vmem:[#allocation17 + $0x830] sm:$0xf0]  ;;  %v10515_v40 = vld [vmem:[#allocation17 + $0x828] sm:$0xf]  ;;  %v16007_v51 = vld [vmem:[#allocation106_spill] sm:$0xff] }
 0x6a7   : > { %6101 = vmatpush.bf16.msra.mxu3 %v14814_v11  ;;  %6089 = vmatpush.bf16.msra.mxu2 %v14823_v0  ;;  %15989 = vst [vmem:[#allocation333_spill] sm:$0xff] %v14839_v13  ;;  %v11766_v11 = vld [vmem:[#allocation17 + $0x82c] sm:$0xf0]  ;;  %v14851_v1 = vor.u32 %v11764_v34, %v10509_v12  ;;  %v14853_v24 = vor.u32 %v11767_v31, %v10515_v40  ;;  %v10499_v0 = vld [vmem:[#allocation17 + $0x808] sm:$0xf] }
 0x6a8   : > { %v10501_v46 = vld [vmem:[#allocation17 + $0x818] sm:$0xf0]  ;;  %v14859_v34 = vor.u32 %v11762_v14, %v10491_v16 }
 0x6a9   : > { %6076 = vmatpush.bf16.msra.mxu1 %v14821_v52  ;;  %v14847_v52 = vor.u32 %v11766_v11, %v10507_v54  ;;  %v4813_v11 = vpop.f32.mrf.mxu2  ;;  %v11761_v54 = vld [vmem:[#allocation17 + $0x80c] sm:$0xf]  ;;  %v16009_v16 = vld [vmem:[#allocation108_spill] sm:$0xff] }
 0x6aa   : > { %6064 = vmatpush.bf16.msra.mxu0 %v14835_v63  ;;  %v11763_v63 = vld [vmem:[#allocation17 + $0x814] sm:$0xf0]  ;;  %v14868_v31 = vor.u32 %v11761_v54, %v10501_v46 }
 0x6ab   : > { %6102 = vmatpush.bf16.msra.mxu3 %v14826_v53  ;;  %6090 = vmatpush.bf16.msra.mxu2 %v14841_v33  ;;  %v10493_v53 = vld [vmem:[#allocation17 + $0x810] sm:$0xf0]  ;;  %v14865_v40 = vor.u32 %v11763_v63, %v10499_v0  ;;  %v16003_v0 = vld [vmem:[#allocation102_spill] sm:$0xff]  ;;  %v16006_v63 = vld [vmem:[#allocation105_spill] sm:$0xff] }
 0x6ac   : > { %v14863_v12 = vor.u32 %v11760_v43, %v10493_v53  ;;  %v16004_v53 = vld [vmem:[#allocation103_spill] sm:$0xff] }
 0x6ad   : > { %6077 = vmatpush.bf16.msra.mxu1 %v14839_v13  ;;  %v4826_v13 = vpop.f32.mrf.mxu3 }
 0x6ae   : > { %6065 = vmatpush.bf16.msra.mxu0 %v14847_v52  ;;  %v5897_v13 = vrot.slane %v14780_v36, 1 }
 0x6af   : > { %6103 = vmatpush.bf16.msra.mxu3 %v14844_v4  ;;  %6091 = vmatpush.bf16.msra.mxu2 %v14853_v24 }
 0x6b1   : > { %6078 = vmatpush.bf16.msra.mxu1 %v14851_v1 }
 0x6b2   : > { %6066 = vmatpush.bf16.msra.mxu0 %v14859_v34  ;;  %v5045_v36 = vpop.f32.mrf.mxu0 }
 0x6b3   : > { %6104 = vmatpush.bf16.msra.mxu3 %v14856_v61  ;;  %6092 = vmatpush.bf16.msra.mxu2 %v14865_v40 }
 0x6b5   : > { %6079 = vmatpush.bf16.msra.mxu1 %v14863_v12  ;;  %6067 = vmatmul.bf16.vlgmr.msra.gmra.mxu0 %v5897_v13 }
 0x6b6   : > { %6142 = vmatpush.bf16.msrb.mxu0 %v13942_v17  ;;  %6093 = vmatmul.bf16.vlgmr.msra.gmra.mxu2 %v5897_v13  ;;  %v5088_v17 = vadd.f32 %v5045_v36, %v14800_v21  ;;  %v16002_v21 = vld [vmem:[#allocation101_spill] sm:$0xff] }
 0x6b7   : > { %6105 = vmatpush.bf16.msra.mxu3 %v14868_v31  ;;  %6168 = vmatpush.bf16.msrb.mxu2 %v13946_v45  ;;  %v6134_v45 = vld.sshfl [vmem:[#allocation1] sm:$0xff pattern:$0x73625140] }
 0x6b8   : > { %6080 = vmatmul.bf16.vlgmr.msra.gmra.mxu1 %v5897_v13  ;;  %6246 = vst [vmem:[#allocation1] ss:$4 sm:$0xff] %v14409_v47 }
 0x6b9   : > { %6155 = vmatpush.bf16.msrb.mxu1 %v13944_v41  ;;  %v5058_v41 = vpop.f32.mrf.mxu1 }
 0x6ba   : > { %6106 = vmatmul.bf16.vlgmr.msra.gmra.mxu3 %v5897_v13  ;;  %6143 = vmatpush.bf16.msrb.mxu0 %v13953_v39  ;;  %v5071_v39 = vpop.f32.mrf.mxu2  ;;  %v16010_v13 = vld [vmem:[#allocation109_spill] sm:$0xff] }
 0x6bb   : > { %6181 = vmatpush.bf16.msrb.mxu3 %v13949_v2  ;;  %6169 = vmatpush.bf16.msrb.mxu2 %v13958_v48  ;;  %v5089_v2 = vadd.f32 %v5058_v41, %v14807_v59  ;;  %v16011_v41 = vld [vmem:[#allocation110_spill] sm:$0xff] }
 0x6bd   : > { %6156 = vmatpush.bf16.msrb.mxu1 %v13955_v57  ;;  %v5090_v57 = vadd.f32 %v5071_v39, %v14829_v5  ;;  %v5084_v48 = vpop.f32.mrf.mxu3  ;;  %v16014_v39 = vld [vmem:[#allocation113_spill] sm:$0xff] }
 0x6be   : > { %6144 = vmatpush.bf16.msrb.mxu0 %v13963_v18  ;;  %v5091_v18 = vadd.f32 %v5084_v48, %v14833_v62  ;;  %v16005_v62 = vld [vmem:[#allocation104_spill] sm:$0xff]  ;;  %v16015_v48 = vld [vmem:[#allocation114_spill] sm:$0xff] }
 0x6bf   : > { %6182 = vmatpush.bf16.msrb.mxu3 %v13960_v29  ;;  %6170 = vmatpush.bf16.msrb.mxu2 %v13969_v55  ;;  %v5047_v29 = vpop.f32.mrf.mxu0  ;;  %v6137_v55 = vshll.u32 %v6134_v45, 16 }
 0x6c0   : > { %v16016_v29 = vld [vmem:[#allocation115_spill] sm:$0xff] }
 0x6c1   : > { %6157 = vmatpush.bf16.msrb.mxu1 %v13967_v44  ;;  %v5060_v44 = vpop.f32.mrf.mxu1 }
 0x6c2   : > { %6145 = vmatpush.bf16.msrb.mxu0 %v13975_v28 }
 0x6c3   : > { %6183 = vmatpush.bf16.msrb.mxu3 %v13972_v60  ;;  %6171 = vmatpush.bf16.msrb.mxu2 %v13981_v7  ;;  %v5073_v60 = vpop.f32.mrf.mxu2  ;;  %v6139_v7 = vrot.slane %v6137_v55, 1 }
 0x6c4   : > { %v16018_v60 = vld [vmem:[#allocation117_spill] sm:$0xff] }
 0x6c5   : > { %6158 = vmatpush.bf16.msrb.mxu1 %v13979_v35  ;;  %v5086_v28 = vpop.f32.mrf.mxu3  ;;  %v6135_v35 = vshrl.u32 %v6134_v45, 16  ;;  %v16012_v45 = vld [vmem:[#allocation111_spill] sm:$0xff] }
 0x6c6   : > { %6146 = vmatpush.bf16.msrb.mxu0 %v13987_v19  ;;  %v16020_v28 = vld [vmem:[#allocation119_spill] sm:$0xff] }
 0x6c7   : > { %6184 = vmatpush.bf16.msrb.mxu3 %v13984_v56  ;;  %6172 = vmatpush.bf16.msrb.mxu2 %v13993_v30  ;;  %v15990_v56 = vld [vmem:[#allocation89_spill] sm:$0xff]  ;;  %v6140_v19 = vor.u32 %v6139_v7, %v6135_v35  ;;  %v15992_v30 = vld [vmem:[#allocation91_spill] sm:$0xff]  ;;  %v16021_v35 = vld [vmem:[#allocation120_spill] sm:$0xff] }
 0x6c8   : > { %v16022_v7 = vld [vmem:[#allocation121_spill] sm:$0xff] }
 0x6c9   : > { %6159 = vmatpush.bf16.msrb.mxu1 %v13991_v6  ;;  %v15991_v6 = vld [vmem:[#allocation90_spill] sm:$0xff] }
 0x6ca   : > { %6147 = vmatpush.bf16.msrb.mxu0 %v13999_v25  ;;  %v15994_v25 = vld [vmem:[#allocation93_spill] sm:$0xff] }
 0x6cb   : > { %6185 = vmatpush.bf16.msrb.mxu3 %v13996_v9  ;;  %6173 = vmatpush.bf16.msrb.mxu2 %v14005_v49  ;;  %v15993_v9 = vld [vmem:[#allocation92_spill] sm:$0xff]  ;;  %v15996_v49 = vld [vmem:[#allocation95_spill] sm:$0xff] }
 0x6cd   : > { %6160 = vmatpush.bf16.msrb.mxu1 %v14003_v32  ;;  %v15995_v32 = vld [vmem:[#allocation94_spill] sm:$0xff] }
 0x6ce   : > { %6148 = vmatpush.bf16.msrb.mxu0 %v14011_v58  ;;  %v15998_v58 = vld [vmem:[#allocation97_spill] sm:$0xff] }
 0x6cf   : > { %6186 = vmatpush.bf16.msrb.mxu3 %v14008_v22  ;;  %6174 = vmatpush.bf16.msrb.mxu2 %v14017_v42  ;;  %v15997_v22 = vld [vmem:[#allocation96_spill] sm:$0xff]  ;;  %v16000_v42 = vld [vmem:[#allocation99_spill] sm:$0xff] }
 0x6d1   : > { %6161 = vmatpush.bf16.msrb.mxu1 %v14015_v50  ;;  %v15999_v50 = vld [vmem:[#allocation98_spill] sm:$0xff] }
 0x6d2   : > { %6149 = vmatpush.bf16.msrb.mxu0 %v15990_v56  ;;  %v5301_v47 = vpop.f32.mrf.mxu0  ;;  %v16023_v56 = vld [vmem:[#allocation122_spill] sm:$0xff] }
 0x6d3   : > { %6187 = vmatpush.bf16.msrb.mxu3 %v14020_v20  ;;  %6175 = vmatpush.bf16.msrb.mxu2 %v15992_v30  ;;  %v16001_v20 = vld [vmem:[#allocation100_spill] sm:$0xff]  ;;  %v14921_v59 = vadd.f32 %v5301_v47, %v5088_v17 }
 0x6d4   : > { %v16025_v30 = vld [vmem:[#allocation124_spill] sm:$0xff] }
 0x6d5   : > { %6162 = vmatpush.bf16.msrb.mxu1 %v15991_v6  ;;  %6150 = vmatmul.bf16.vlgmr.msrb.gmra.mxu0 %v6140_v19  ;;  %v5314_v46 = vpop.f32.mrf.mxu1  ;;  %v6247_v6 = vld.sshfl [vmem:[#allocation1] sm:$0xff pattern:$0x73625140] }
 0x6d6   : > { %6194 = vmatpush.bf16.msra.mxu0 %v15994_v25  ;;  %6176 = vmatmul.bf16.vlgmr.msrb.gmra.mxu2 %v6140_v19  ;;  %v14925_v5 = vadd.f32 %v5314_v46, %v5089_v2  ;;  %v16013_v2 = vld [vmem:[#allocation112_spill] sm:$0xff]  ;;  %v16027_v25 = vld [vmem:[#allocation226_spill] sm:$0xff]  ;;  %v16035_v46 = vld [vmem:[#allocation133_spill] sm:$0xff] }
 0x6d7   : > { %6188 = vmatpush.bf16.msrb.mxu3 %v15993_v9  ;;  %6220 = vmatpush.bf16.msra.mxu2 %v15996_v49  ;;  %v16026_v9 = vld [vmem:[#allocation125_spill] sm:$0xff]  ;;  %6363 = vst [vmem:[#allocation1] ss:$4 sm:$0xff] %v16027_v25  ;;  %v16029_v49 = vld [vmem:[#allocation127_spill] sm:$0xff]  ;;  %v16034_v47 = vld [vmem:[#allocation132_spill] sm:$0xff] }
 0x6d8   : > { %6163 = vmatmul.bf16.vlgmr.msrb.gmra.mxu1 %v6140_v19  ;;  %v16058_v25 = vld [vmem:[#allocation156_spill] sm:$0xff] }
 0x6d9   : > { %6207 = vmatpush.bf16.msra.mxu1 %v15995_v32  ;;  %v5327_v14 = vpop.f32.mrf.mxu2  ;;  %v16028_v32 = vld [vmem:[#allocation126_spill] sm:$0xff] }
 0x6da   : > { %6189 = vmatmul.bf16.vlgmr.msrb.gmra.mxu3 %v6140_v19  ;;  %6195 = vmatpush.bf16.msra.mxu0 %v15998_v58  ;;  %v14932_v43 = vadd.f32 %v5327_v14, %v5090_v57  ;;  %v5303_v54 = vpop.f32.mrf.mxu0  ;;  %v16017_v57 = vld [vmem:[#allocation116_spill] sm:$0xff]  ;;  %v16024_v19 = vld [vmem:[#allocation123_spill] sm:$0xff]  ;;  %v12161_v58 = vld [vmem:[#allocation4 + $0x2] sm:$0x1] }
 0x6db   : > { %6233 = vmatpush.bf16.msra.mxu3 %v15997_v22  ;;  %6221 = vmatpush.bf16.msra.mxu2 %v16000_v42  ;;  %v16030_v22 = vld [vmem:[#allocation128_spill] sm:$0xff]  ;;  %v16032_v42 = vld [vmem:[#allocation130_spill] sm:$0xff] }
 0x6dc   : > { %v16042_v14 = vld [vmem:[#allocation140_spill] sm:$0xff] }
 0x6dd   : > { %6208 = vmatpush.bf16.msra.mxu1 %v15999_v50  ;;  %v5340_v11 = vpop.f32.mrf.mxu3  ;;  %v5316_v17 = vpop.f32.mrf.mxu1  ;;  %v16031_v50 = vld [vmem:[#allocation129_spill] sm:$0xff] }
 0x6de   : > { %6196 = vmatpush.bf16.msra.mxu0 %v16002_v21  ;;  %v14935_v36 = vadd.f32 %v5340_v11, %v5091_v18  ;;  %v16019_v18 = vld [vmem:[#allocation118_spill] sm:$0xff]  ;;  %v16043_v17 = vld [vmem:[#allocation141_spill] sm:$0xff] }
 0x6df   : > { %6234 = vmatpush.bf16.msra.mxu3 %v16001_v20  ;;  %6222 = vmatpush.bf16.msra.mxu2 %v16004_v53  ;;  %v16033_v20 = vld [vmem:[#allocation131_spill] sm:$0xff]  ;;  %v16036_v53 = vld [vmem:[#allocation134_spill] sm:$0xff] }
 0x6e1   : > { %6209 = vmatpush.bf16.msra.mxu1 %v16003_v0  ;;  %v5329_v44 = vpop.f32.mrf.mxu2 }
 0x6e2   : > { %6197 = vmatpush.bf16.msra.mxu0 %v16006_v63  ;;  %v16038_v63 = vld [vmem:[#allocation136_spill] sm:$0xff] }
 0x6e3   : > { %6235 = vmatpush.bf16.msra.mxu3 %v16005_v62  ;;  %6223 = vmatpush.bf16.msra.mxu2 %v16008_v8  ;;  %v16037_v62 = vld [vmem:[#allocation135_spill] sm:$0xff]  ;;  %v16040_v8 = vld [vmem:[#allocation138_spill] sm:$0xff]  ;;  %v16050_v44 = vld [vmem:[#allocation148_spill] sm:$0xff] }
 0x6e5   : > { %6210 = vmatpush.bf16.msra.mxu1 %v16007_v51  ;;  %v5342_v55 = vpop.f32.mrf.mxu3  ;;  %v16039_v51 = vld [vmem:[#allocation137_spill] sm:$0xff] }
 0x6e6   : > { %6198 = vmatpush.bf16.msra.mxu0 %v16010_v13 }
 0x6e7   : > { %6236 = vmatpush.bf16.msra.mxu3 %v16009_v16  ;;  %6224 = vmatpush.bf16.msra.mxu2 %v16012_v45  ;;  %v16041_v16 = vld [vmem:[#allocation139_spill] sm:$0xff]  ;;  %v16044_v45 = vld [vmem:[#allocation142_spill] sm:$0xff] }
 0x6e9   : > { %6211 = vmatpush.bf16.msra.mxu1 %v16011_v41 }
 0x6ea   : > { %6199 = vmatpush.bf16.msra.mxu0 %v16014_v39  ;;  %v16046_v39 = vld [vmem:[#allocation144_spill] sm:$0xff] }
 0x6eb   : > { %6237 = vmatpush.bf16.msra.mxu3 %v16013_v2  ;;  %6225 = vmatpush.bf16.msra.mxu2 %v16016_v29  ;;  %v16045_v2 = vld [vmem:[#allocation143_spill] sm:$0xff]  ;;  %v16048_v29 = vld [vmem:[#allocation146_spill] sm:$0xff] }
 0x6ed   : > { %6212 = vmatpush.bf16.msra.mxu1 %v16015_v48  ;;  %v16047_v48 = vld [vmem:[#allocation145_spill] sm:$0xff] }
 0x6ee   : > { %6200 = vmatpush.bf16.msra.mxu0 %v16018_v60 }
 0x6ef   : > { %6238 = vmatpush.bf16.msra.mxu3 %v16017_v57  ;;  %6226 = vmatpush.bf16.msra.mxu2 %v16020_v28  ;;  %v16049_v57 = vld [vmem:[#allocation147_spill] sm:$0xff]  ;;  %v16052_v28 = vld [vmem:[#allocation150_spill] sm:$0xff] }
 0x6f1   : > { %6213 = vmatpush.bf16.msra.mxu1 %v16019_v18  ;;  %v16051_v18 = vld [vmem:[#allocation149_spill] sm:$0xff] }
 0x6f2   : > { %6201 = vmatpush.bf16.msra.mxu0 %v16022_v7  ;;  %v5552_v21 = vpop.f32.mrf.mxu0  ;;  %v16054_v7 = vld [vmem:[#allocation152_spill] sm:$0xff] }
 0x6f3   : > { %6239 = vmatpush.bf16.msra.mxu3 %v16021_v35  ;;  %6227 = vmatpush.bf16.msra.mxu2 %v16024_v19  ;;  %v16053_v35 = vld [vmem:[#allocation151_spill] sm:$0xff]  ;;  %v6249_v19 = vrot.slane %v6247_v6, 1  ;;  %v16064_v6 = vld [vmem:[#allocation162_spill] sm:$0xff] }
 0x6f5   : > { %6214 = vmatpush.bf16.msra.mxu1 %v16023_v56  ;;  %6202 = vmatmul.bf16.vlgmr.msra.gmra.mxu0 %v12161_v58  ;;  %v5565_v0 = vpop.f32.mrf.mxu1  ;;  %v16055_v56 = vld [vmem:[#allocation153_spill] sm:$0xff] }
 0x6f6   : > { %6251 = vmatpush.bf16.msrb.mxu0 %v16026_v9  ;;  %6228 = vmatmul.bf16.vlgmr.msra.gmra.mxu2 %v12161_v58  ;;  %v16057_v9 = vld [vmem:[#allocation155_spill] sm:$0xff] }
 0x6f7   : > { %6240 = vmatpush.bf16.msra.mxu3 %v16025_v30  ;;  %6277 = vmatpush.bf16.msrb.mxu2 %v16029_v49  ;;  %v16056_v30 = vld [vmem:[#allocation154_spill] sm:$0xff] }
 0x6f8   : > { %6215 = vmatmul.bf16.vlgmr.msra.gmra.mxu1 %v12161_v58  ;;  %v16060_v49 = vld [vmem:[#allocation158_spill] sm:$0xff] }
 0x6f9   : > { %6264 = vmatpush.bf16.msrb.mxu1 %v16028_v32  ;;  %v5578_v11 = vpop.f32.mrf.mxu2  ;;  %v16059_v32 = vld [vmem:[#allocation157_spill] sm:$0xff] }
 0x6fa   : > { %6241 = vmatmul.bf16.vlgmr.msra.gmra.mxu3 %v12161_v58  ;;  %6252 = vmatpush.bf16.msrb.mxu0 %v16031_v50  ;;  %v5554_v13 = vpop.f32.mrf.mxu0  ;;  %v16062_v58 = vld [vmem:[#allocation160_spill] sm:$0xff]  ;;  %v16063_v50 = vld [vmem:[#allocation161_spill] sm:$0xff] }
 0x6fb   : > { %6290 = vmatpush.bf16.msrb.mxu3 %v16030_v22  ;;  %6278 = vmatpush.bf16.msrb.mxu2 %v16033_v20  ;;  %v16061_v22 = vld [vmem:[#allocation159_spill] sm:$0xff]  ;;  %v5595_v20 = vadd.f32 %v5552_v21, %v14921_v59  ;;  %v16070_v13 = vld [vmem:[#allocation168_spill] sm:$0xff]  ;;  %v5597_v59 = vadd.f32 %v5578_v11, %v14932_v43  ;;  %v16072_v21 = vld [vmem:[#allocation170_spill] sm:$0xff] }
 0x6fc   : > { %v16078_v43 = vld [vmem:[#allocation176_spill] sm:$0xff]  ;;  %v16079_v11 = vld [vmem:[#allocation177_spill] sm:$0xff] }
 0x6fd   : > { %6265 = vmatpush.bf16.msrb.mxu1 %v16032_v42  ;;  %v5591_v54 = vpop.f32.mrf.mxu3  ;;  %v5567_v41 = vpop.f32.mrf.mxu1  ;;  %v16065_v42 = vld [vmem:[#allocation163_spill] sm:$0xff] }
 0x6fe   : > { %6253 = vmatpush.bf16.msrb.mxu0 %v16035_v46  ;;  %v5596_v46 = vadd.f32 %v5565_v0, %v14925_v5  ;;  %v16073_v41 = vld [vmem:[#allocation171_spill] sm:$0xff]  ;;  %v5598_v5 = vadd.f32 %v5591_v54, %v14935_v36  ;;  %v16074_v0 = vld [vmem:[#allocation172_spill] sm:$0xff] }
 0x6ff   : > { %6291 = vmatpush.bf16.msrb.mxu3 %v16034_v47  ;;  %6279 = vmatpush.bf16.msrb.mxu2 %v16037_v62  ;;  %v16066_v47 = vld [vmem:[#allocation164_spill] sm:$0xff]  ;;  %v16067_v62 = vld [vmem:[#allocation165_spill] sm:$0xff]  ;;  %v16081_v36 = vld [vmem:[#allocation179_spill] sm:$0xff] }
 0x700   : > { %v16082_v54 = vld [vmem:[#allocation180_spill] sm:$0xff] }
 0x701   : > { %6266 = vmatpush.bf16.msrb.mxu1 %v16036_v53  ;;  %v5580_v55 = vpop.f32.mrf.mxu2 }
 0x702   : > { %6254 = vmatpush.bf16.msrb.mxu0 %v16039_v51  ;;  %v16076_v55 = vld [vmem:[#allocation174_spill] sm:$0xff] }
 0x703   : > { %6292 = vmatpush.bf16.msrb.mxu3 %v16038_v63  ;;  %6280 = vmatpush.bf16.msrb.mxu2 %v16041_v16  ;;  %v16069_v16 = vld [vmem:[#allocation167_spill] sm:$0xff] }
 0x705   : > { %6267 = vmatpush.bf16.msrb.mxu1 %v16040_v8  ;;  %v5593_v60 = vpop.f32.mrf.mxu3  ;;  %v16068_v8 = vld [vmem:[#allocation166_spill] sm:$0xff] }
 0x706   : > { %6255 = vmatpush.bf16.msrb.mxu0 %v16043_v17  ;;  %v16071_v17 = vld [vmem:[#allocation169_spill] sm:$0xff]  ;;  %v16077_v60 = vld [vmem:[#allocation175_spill] sm:$0xff] }
 0x707   : > { %6293 = vmatpush.bf16.msrb.mxu3 %v16042_v14  ;;  %6281 = vmatpush.bf16.msrb.mxu2 %v16045_v2 }
 0x709   : > { %6268 = vmatpush.bf16.msrb.mxu1 %v16044_v45 }
 0x70a   : > { %6256 = vmatpush.bf16.msrb.mxu0 %v16047_v48 }
 0x70b   : > { %6294 = vmatpush.bf16.msrb.mxu3 %v16046_v39  ;;  %6282 = vmatpush.bf16.msrb.mxu2 %v16049_v57 }
 0x70d   : > { %6269 = vmatpush.bf16.msrb.mxu1 %v16048_v29  ;;  %v16075_v29 = vld [vmem:[#allocation173_spill] sm:$0xff] }
 0x70e   : > { %6257 = vmatpush.bf16.msrb.mxu0 %v16051_v18  ;;  %v16080_v18 = vld [vmem:[#allocation178_spill] sm:$0xff] }
 0x70f   : > { %6295 = vmatpush.bf16.msrb.mxu3 %v16050_v44  ;;  %6283 = vmatpush.bf16.msrb.mxu2 %v16053_v35 }
 0x711   : > { %6270 = vmatpush.bf16.msrb.mxu1 %v16052_v28 }
 0x712   : > { %6258 = vmatpush.bf16.msrb.mxu0 %v16055_v56  ;;  %v5812_v53 = vpop.f32.mrf.mxu0  ;;  %v16084_v56 = vld [vmem:[#allocation182_spill] sm:$0xff] }
 0x713   : > { %6296 = vmatpush.bf16.msrb.mxu3 %v16054_v7  ;;  %6284 = vmatpush.bf16.msrb.mxu2 %v16057_v9  ;;  %v5855_v63 = vadd.f32 %v5812_v53, %v5595_v20  ;;  %v16083_v7 = vld [vmem:[#allocation181_spill] sm:$0xff]  ;;  %v16086_v9 = vld [vmem:[#allocation184_spill] sm:$0xff]  ;;  %v16095_v20 = vld [vmem:[#allocation290_spill] sm:$0xff] }
 0x714   : > { %v16099_v53 = vld [vmem:[#allocation196_spill] sm:$0xff] }
 0x715   : > { %6271 = vmatpush.bf16.msrb.mxu1 %v16056_v30  ;;  %6259 = vmatmul.bf16.vlgmr.msrb.gmra.mxu0 %v6249_v19  ;;  %v5825_v51 = vpop.f32.mrf.mxu1  ;;  %v6364_v30 = vld.sshfl [vmem:[#allocation1] sm:$0xff pattern:$0x73625140] }
 0x716   : > { %6307 = vmatpush.bf16.msra.mxu0 %v16059_v32  ;;  %6285 = vmatmul.bf16.vlgmr.msrb.gmra.mxu2 %v6249_v19  ;;  %v5856_v14 = vadd.f32 %v5825_v51, %v5596_v46  ;;  %6428 = vst [vmem:[#allocation1] ss:$4 sm:$0xff] %v14744_v27  ;;  %v16088_v32 = vld [vmem:[#allocation186_spill] sm:$0xff]  ;;  %v16096_v27 = vld [vmem:[#allocation193_spill] sm:$0xff]  ;;  %v16098_v46 = vld [vmem:[#allocation195_spill] sm:$0xff] }
 0x717   : > { %6297 = vmatpush.bf16.msrb.mxu3 %v16058_v25  ;;  %6333 = vmatpush.bf16.msra.mxu2 %v16061_v22  ;;  %v16087_v25 = vld [vmem:[#allocation185_spill] sm:$0xff]  ;;  %v16090_v22 = vld [vmem:[#allocation188_spill] sm:$0xff] }
 0x718   : > { %6272 = vmatmul.bf16.vlgmr.msrb.gmra.mxu1 %v6249_v19  ;;  %v16100_v51 = vld [vmem:[#allocation197_spill] sm:$0xff] }
 0x719   : > { %6320 = vmatpush.bf16.msra.mxu1 %v16060_v49  ;;  %v5838_v45 = vpop.f32.mrf.mxu2  ;;  %v16089_v49 = vld [vmem:[#allocation187_spill] sm:$0xff] }
 0x71a   : > { %6298 = vmatmul.bf16.vlgmr.msrb.gmra.mxu3 %v6249_v19  ;;  %6308 = vmatpush.bf16.msra.mxu0 %v16063_v50  ;;  %v5857_v2 = vadd.f32 %v5838_v45, %v5597_v59  ;;  %v5814_v48 = vpop.f32.mrf.mxu0  ;;  %v16085_v19 = vld [vmem:[#allocation183_spill] sm:$0xff]  ;;  %v16092_v50 = vld [vmem:[#allocation190_spill] sm:$0xff]  ;;  %v16107_v45 = vld [vmem:[#allocation204_spill] sm:$0xff] }
 0x71b   : > { %6346 = vmatpush.bf16.msra.mxu3 %v16062_v58  ;;  %6334 = vmatpush.bf16.msra.mxu2 %v16065_v42  ;;  %v16091_v58 = vld [vmem:[#allocation189_spill] sm:$0xff]  ;;  %v16094_v42 = vld [vmem:[#allocation192_spill] sm:$0xff] }
 0x71d   : > { %6321 = vmatpush.bf16.msra.mxu1 %v16064_v6  ;;  %v5851_v39 = vpop.f32.mrf.mxu3  ;;  %v5827_v44 = vpop.f32.mrf.mxu1  ;;  %v16093_v6 = vld [vmem:[#allocation191_spill] sm:$0xff] }
 0x71e   : > { %6309 = vmatpush.bf16.msra.mxu0 %v16067_v62  ;;  %v5858_v57 = vadd.f32 %v5851_v39, %v5598_v5  ;;  %v16105_v5 = vld [vmem:[#allocation202_spill] sm:$0xff]  ;;  %v16108_v44 = vld [vmem:[#allocation205_spill] sm:$0xff] }
 0x71f   : > { %6347 = vmatpush.bf16.msra.mxu3 %v16066_v47  ;;  %6335 = vmatpush.bf16.msra.mxu2 %v16069_v16  ;;  %v16097_v47 = vld [vmem:[#allocation194_spill] sm:$0xff] }
 0x721   : > { %6322 = vmatpush.bf16.msra.mxu1 %v16068_v8  ;;  %v5840_v28 = vpop.f32.mrf.mxu2 }
 0x722   : > { %6310 = vmatpush.bf16.msra.mxu0 %v16071_v17  ;;  %v16102_v17 = vld [vmem:[#allocation199_spill] sm:$0xff]  ;;  %v16115_v28 = vld [vmem:[#allocation212_spill] sm:$0xff] }
 0x723   : > { %6348 = vmatpush.bf16.msra.mxu3 %v16070_v13  ;;  %6336 = vmatpush.bf16.msra.mxu2 %v16073_v41  ;;  %v16101_v13 = vld [vmem:[#allocation198_spill] sm:$0xff]  ;;  %v16104_v41 = vld [vmem:[#allocation201_spill] sm:$0xff] }
 0x725   : > { %6323 = vmatpush.bf16.msra.mxu1 %v16072_v21  ;;  %v5853_v35 = vpop.f32.mrf.mxu3  ;;  %v16103_v21 = vld [vmem:[#allocation200_spill] sm:$0xff] }
 0x726   : > { %6311 = vmatpush.bf16.msra.mxu0 %v16075_v29 }
 0x727   : > { %6349 = vmatpush.bf16.msra.mxu3 %v16074_v0  ;;  %6337 = vmatpush.bf16.msra.mxu2 %v16077_v60  ;;  %v16106_v0 = vld [vmem:[#allocation203_spill] sm:$0xff]  ;;  %v16109_v60 = vld [vmem:[#allocation206_spill] sm:$0xff] }
 0x729   : > { %6324 = vmatpush.bf16.msra.mxu1 %v16076_v55 }
 0x72a   : > { %6312 = vmatpush.bf16.msra.mxu0 %v16079_v11  ;;  %v16111_v11 = vld [vmem:[#allocation208_spill] sm:$0xff] }
 0x72b   : > { %6350 = vmatpush.bf16.msra.mxu3 %v16078_v43  ;;  %6338 = vmatpush.bf16.msra.mxu2 %v16081_v36  ;;  %v16110_v43 = vld [vmem:[#allocation207_spill] sm:$0xff]  ;;  %v6367_v36 = vshll.u32 %v6364_v30, 16 }
 0x72d   : > { %6325 = vmatpush.bf16.msra.mxu1 %v16080_v18  ;;  %v16112_v18 = vld [vmem:[#allocation209_spill] sm:$0xff] }
 0x72e   : > { %6313 = vmatpush.bf16.msra.mxu0 %v16083_v7 }
 0x72f   : > { %6351 = vmatpush.bf16.msra.mxu3 %v16082_v54  ;;  %6339 = vmatpush.bf16.msra.mxu2 %v16085_v19  ;;  %v16113_v54 = vld [vmem:[#allocation210_spill] sm:$0xff]  ;;  %v6369_v19 = vrot.slane %v6367_v36, 1 }
 0x730   : > { %v16144_v36 = vld [vmem:[#allocation242_spill] sm:$0xff] }
 0x731   : > { %6326 = vmatpush.bf16.msra.mxu1 %v16084_v56  ;;  %v6365_v56 = vshrl.u32 %v6364_v30, 16  ;;  %v16126_v30 = vld [vmem:[#allocation223_spill] sm:$0xff] }
 0x732   : > { %6314 = vmatpush.bf16.msra.mxu0 %v16087_v25  ;;  %v6068_v62 = vpop.f32.mrf.mxu0  ;;  %v16118_v25 = vld [vmem:[#allocation215_spill] sm:$0xff] }
 0x733   : > { %6352 = vmatpush.bf16.msra.mxu3 %v16086_v9  ;;  %6340 = vmatpush.bf16.msra.mxu2 %v16089_v49  ;;  %v15035_v8 = vadd.f32 %v6068_v62, %v5855_v63  ;;  %v16117_v9 = vld [vmem:[#allocation214_spill] sm:$0xff]  ;;  %v16120_v49 = vld [vmem:[#allocation217_spill] sm:$0xff] }
 0x734   : > { %v16131_v62 = vld [vmem:[#allocation229_spill] sm:$0xff] }
 0x735   : > { %6327 = vmatpush.bf16.msra.mxu1 %v16088_v32  ;;  %6315 = vmatmul.bf16.vlgmr.msra.gmra.mxu0 %v16095_v20  ;;  %v6081_v16 = vpop.f32.mrf.mxu1  ;;  %v16119_v32 = vld [vmem:[#allocation216_spill] sm:$0xff] }
 0x736   : > { %6372 = vmatpush.bf16.msrb.mxu0 %v16091_v58  ;;  %6341 = vmatmul.bf16.vlgmr.msra.gmra.mxu2 %v16095_v20  ;;  %v15039_v59 = vadd.f32 %v6081_v16, %v5856_v14  ;;  %v16121_v58 = vld [vmem:[#allocation218_spill] sm:$0xff] }
 0x737   : > { %6353 = vmatpush.bf16.msra.mxu3 %v16090_v22  ;;  %6398 = vmatpush.bf16.msrb.mxu2 %v16093_v6  ;;  %v6370_v22 = vor.u32 %v6369_v19, %v6365_v56  ;;  %v16123_v6 = vld [vmem:[#allocation220_spill] sm:$0xff]  ;;  %v16149_v56 = vld [vmem:[#allocation247_spill] sm:$0xff] }
 0x738   : > { %6328 = vmatmul.bf16.vlgmr.msra.gmra.mxu1 %v16095_v20  ;;  %v16150_v19 = vld [vmem:[#allocation248_spill] sm:$0xff] }
 0x739   : > { %6385 = vmatpush.bf16.msrb.mxu1 %v16092_v50  ;;  %v6094_v39 = vpop.f32.mrf.mxu2  ;;  %v16122_v50 = vld [vmem:[#allocation219_spill] sm:$0xff] }
 0x73a   : > { %6354 = vmatmul.bf16.vlgmr.msra.gmra.mxu3 %v16095_v20  ;;  %6373 = vmatpush.bf16.msrb.mxu0 %v16096_v27  ;;  %v15046_v63 = vadd.f32 %v6094_v39, %v5857_v2  ;;  %v6070_v29 = vpop.f32.mrf.mxu0  ;;  %v16114_v2 = vld [vmem:[#allocation211_spill] sm:$0xff]  ;;  %v16125_v20 = vld [vmem:[#allocation222_spill] sm:$0xff]  ;;  %v16127_v27 = vld [vmem:[#allocation224_spill] sm:$0xff] }
 0x73b   : > { %6411 = vmatpush.bf16.msrb.mxu3 %v16094_v42  ;;  %6399 = vmatpush.bf16.msrb.mxu2 %v16098_v46  ;;  %v16124_v42 = vld [vmem:[#allocation221_spill] sm:$0xff]  ;;  %v16129_v46 = vld [vmem:[#allocation227_spill] sm:$0xff] }
 0x73d   : > { %6386 = vmatpush.bf16.msrb.mxu1 %v16097_v47  ;;  %v6107_v48 = vpop.f32.mrf.mxu3  ;;  %v6083_v14 = vpop.f32.mrf.mxu1  ;;  %v16128_v47 = vld [vmem:[#allocation225_spill] sm:$0xff] }
 0x73e   : > { %6374 = vmatpush.bf16.msrb.mxu0 %v16100_v51  ;;  %v15049_v55 = vadd.f32 %v6107_v48, %v5858_v57  ;;  %v16116_v57 = vld [vmem:[#allocation213_spill] sm:$0xff]  ;;  %v16132_v51 = vld [vmem:[#allocation230_spill] sm:$0xff] }
 0x73f   : > { %6412 = vmatpush.bf16.msrb.mxu3 %v16099_v53  ;;  %6400 = vmatpush.bf16.msrb.mxu2 %v16102_v17  ;;  %v16130_v53 = vld [vmem:[#allocation228_spill] sm:$0xff]  ;;  %v16139_v48 = vld [vmem:[#allocation237_spill] sm:$0xff] }
 0x740   : > { %v16134_v17 = vld [vmem:[#allocation232_spill] sm:$0xff] }
 0x741   : > { %6387 = vmatpush.bf16.msrb.mxu1 %v16101_v13  ;;  %v6096_v35 = vpop.f32.mrf.mxu2  ;;  %v16133_v13 = vld [vmem:[#allocation231_spill] sm:$0xff] }
 0x742   : > { %6375 = vmatpush.bf16.msrb.mxu0 %v16104_v41  ;;  %v16135_v41 = vld [vmem:[#allocation233_spill] sm:$0xff] }
 0x743   : > { %6413 = vmatpush.bf16.msrb.mxu3 %v16103_v21  ;;  %6401 = vmatpush.bf16.msrb.mxu2 %v16106_v0  ;;  %v16137_v0 = vld [vmem:[#allocation235_spill] sm:$0xff]  ;;  %v16147_v35 = vld [vmem:[#allocation245_spill] sm:$0xff] }
 0x745   : > { %6388 = vmatpush.bf16.msrb.mxu1 %v16105_v5  ;;  %v6109_v7 = vpop.f32.mrf.mxu3  ;;  %v16136_v5 = vld [vmem:[#allocation234_spill] sm:$0xff] }
 0x746   : > { %6376 = vmatpush.bf16.msrb.mxu0 %v16108_v44  ;;  %v16140_v44 = vld [vmem:[#allocation238_spill] sm:$0xff] }
 0x747   : > { %6414 = vmatpush.bf16.msrb.mxu3 %v16107_v45  ;;  %6402 = vmatpush.bf16.msrb.mxu2 %v16110_v43  ;;  %v16138_v45 = vld [vmem:[#allocation236_spill] sm:$0xff] }
 0x748   : > { %v16142_v43 = vld [vmem:[#allocation240_spill] sm:$0xff] }
 0x749   : > { %6389 = vmatpush.bf16.msrb.mxu1 %v16109_v60  ;;  %v16141_v60 = vld [vmem:[#allocation239_spill] sm:$0xff] }
 0x74a   : > { %6377 = vmatpush.bf16.msrb.mxu0 %v16112_v18  ;;  %v16143_v18 = vld [vmem:[#allocation241_spill] sm:$0xff] }
 0x74b   : > { %6415 = vmatpush.bf16.msrb.mxu3 %v16111_v11  ;;  %6403 = vmatpush.bf16.msrb.mxu2 %v16114_v2  ;;  %v16146_v2 = vld [vmem:[#allocation244_spill] sm:$0xff] }
 0x74d   : > { %6390 = vmatpush.bf16.msrb.mxu1 %v16113_v54  ;;  %v16145_v54 = vld [vmem:[#allocation243_spill] sm:$0xff] }
 0x74e   : > { %6378 = vmatpush.bf16.msrb.mxu0 %v16116_v57  ;;  %v16148_v57 = vld [vmem:[#allocation246_spill] sm:$0xff] }
 0x74f   : > { %6416 = vmatpush.bf16.msrb.mxu3 %v16115_v28  ;;  %6404 = vmatpush.bf16.msrb.mxu2 %v16118_v25  ;;  %v16151_v25 = vld [vmem:[#allocation249_spill] sm:$0xff] }
 0x751   : > { %6391 = vmatpush.bf16.msrb.mxu1 %v16117_v9  ;;  %v6429_v9 = vld.sshfl [vmem:[#allocation1] sm:$0xff pattern:$0x73625140] }
 0x752   : > { %6379 = vmatpush.bf16.msrb.mxu0 %v16120_v49  ;;  %v6151_v16 = vpop.f32.mrf.mxu0  ;;  %v6431_v49 = vrot.slane %v6429_v9, 1 }
 0x753   : > { %6417 = vmatpush.bf16.msrb.mxu3 %v16119_v32  ;;  %6405 = vmatpush.bf16.msrb.mxu2 %v16122_v50  ;;  %v16152_v32 = vld [vmem:[#allocation250_spill] sm:$0xff]  ;;  %v16155_v50 = vld [vmem:[#allocation253_spill] sm:$0xff] }
 0x755   : > { %6392 = vmatpush.bf16.msrb.mxu1 %v16121_v58  ;;  %6380 = vmatmul.bf16.vlgmr.msrb.gmra.mxu0 %v6370_v22  ;;  %v6164_v21 = vpop.f32.mrf.mxu1  ;;  %v16154_v58 = vld [vmem:[#allocation252_spill] sm:$0xff] }
 0x756   : > { %6433 = vmatpush.bf16.msra.mxu0 %v16124_v42  ;;  %6406 = vmatmul.bf16.vlgmr.msrb.gmra.mxu2 %v6370_v22  ;;  %v16157_v42 = vld [vmem:[#allocation255_spill] sm:$0xff] }
 0x757   : > { %6418 = vmatpush.bf16.msrb.mxu3 %v16123_v6  ;;  %6459 = vmatpush.bf16.msra.mxu2 %v16126_v30  ;;  %v16156_v6 = vld [vmem:[#allocation254_spill] sm:$0xff]  ;;  %v16159_v30 = vld [vmem:[#allocation257_spill] sm:$0xff] }
 0x758   : > { %6393 = vmatmul.bf16.vlgmr.msrb.gmra.mxu1 %v6370_v22 }
 0x759   : > { %6446 = vmatpush.bf16.msra.mxu1 %v16125_v20  ;;  %v6177_v39 = vpop.f32.mrf.mxu2  ;;  %v16158_v20 = vld [vmem:[#allocation256_spill] sm:$0xff] }
 0x75a   : > { %6419 = vmatmul.bf16.vlgmr.msrb.gmra.mxu3 %v6370_v22  ;;  %6434 = vmatpush.bf16.msra.mxu0 %v16128_v47  ;;  %v6153_v14 = vpop.f32.mrf.mxu0  ;;  %v16153_v22 = vld [vmem:[#allocation251_spill] sm:$0xff] }
 0x75b   : > { %6472 = vmatpush.bf16.msra.mxu3 %v16127_v27  ;;  %6460 = vmatpush.bf16.msra.mxu2 %v16130_v53  ;;  %v16160_v27 = vld [vmem:[#allocation258_spill] sm:$0xff]  ;;  %v16161_v47 = vld [vmem:[#allocation259_spill] sm:$0xff]  ;;  %v16163_v53 = vld [vmem:[#allocation261_spill] sm:$0xff] }
 0x75c   : > { %v16170_v14 = vld [vmem:[#allocation268_spill] sm:$0xff] }
 0x75d   : > { %6447 = vmatpush.bf16.msra.mxu1 %v16129_v46  ;;  %v6190_v29 = vpop.f32.mrf.mxu3  ;;  %v6166_v11 = vpop.f32.mrf.mxu1  ;;  %v16162_v46 = vld [vmem:[#allocation260_spill] sm:$0xff] }
 0x75e   : > { %6435 = vmatpush.bf16.msra.mxu0 %v16132_v51 }
 0x75f   : > { %6473 = vmatpush.bf16.msra.mxu3 %v16131_v62  ;;  %6461 = vmatpush.bf16.msra.mxu2 %v16134_v17  ;;  %v16164_v62 = vld [vmem:[#allocation262_spill] sm:$0xff]  ;;  %v16166_v17 = vld [vmem:[#allocation264_spill] sm:$0xff] }
 0x761   : > { %6448 = vmatpush.bf16.msra.mxu1 %v16133_v13  ;;  %v6179_v28 = vpop.f32.mrf.mxu2  ;;  %v16165_v13 = vld [vmem:[#allocation263_spill] sm:$0xff] }
 0x762   : > { %6436 = vmatpush.bf16.msra.mxu0 %v16136_v5  ;;  %v16174_v28 = vld [vmem:[#allocation272_spill] sm:$0xff] }
 0x763   : > { %6474 = vmatpush.bf16.msra.mxu3 %v16135_v41  ;;  %6462 = vmatpush.bf16.msra.mxu2 %v16138_v45 }
 0x765   : > { %6449 = vmatpush.bf16.msra.mxu1 %v16137_v0  ;;  %v6192_v7 = vpop.f32.mrf.mxu3  ;;  %v16167_v0 = vld [vmem:[#allocation265_spill] sm:$0xff] }
 0x766   : > { %6437 = vmatpush.bf16.msra.mxu0 %v16140_v44  ;;  %v16169_v44 = vld [vmem:[#allocation267_spill] sm:$0xff]  ;;  %v16175_v7 = vld [vmem:[#allocation273_spill] sm:$0xff] }
 0x767   : > { %6475 = vmatpush.bf16.msra.mxu3 %v16139_v48  ;;  %6463 = vmatpush.bf16.msra.mxu2 %v16142_v43  ;;  %v16168_v48 = vld [vmem:[#allocation266_spill] sm:$0xff]  ;;  %v16171_v43 = vld [vmem:[#allocation269_spill] sm:$0xff] }
 0x769   : > { %6450 = vmatpush.bf16.msra.mxu1 %v16141_v60 }
 0x76a   : > { %6438 = vmatpush.bf16.msra.mxu0 %v16144_v36 }
 0x76b   : > { %6476 = vmatpush.bf16.msra.mxu3 %v16143_v18  ;;  %6464 = vmatpush.bf16.msra.mxu2 %v16146_v2 }
 0x76d   : > { %6451 = vmatpush.bf16.msra.mxu1 %v16145_v54  ;;  %v16172_v54 = vld [vmem:[#allocation270_spill] sm:$0xff] }
 0x76e   : > { %6439 = vmatpush.bf16.msra.mxu0 %v16148_v57  ;;  %v16176_v57 = vld [vmem:[#allocation274_spill] sm:$0xff] }
 0x76f   : > { %6477 = vmatpush.bf16.msra.mxu3 %v16147_v35  ;;  %6465 = vmatpush.bf16.msra.mxu2 %v16150_v19  ;;  %v6547_v35 = vld [vmem:[#allocation4 + $0x6] sm:$0x3]  ;;  %v16178_v19 = vld [vmem:[#allocation276_spill] sm:$0xff] }
 0x770   : > { %6549 = vst [vmem:[#allocation1] ss:$4 sm:$0xff] %v6547_v35 }
 0x771   : > { %6452 = vmatpush.bf16.msra.mxu1 %v16149_v56  ;;  %v16177_v56 = vld [vmem:[#allocation275_spill] sm:$0xff] }
 0x772   : > { %6440 = vmatpush.bf16.msra.mxu0 %v16152_v32  ;;  %v6203_v51 = vpop.f32.mrf.mxu0  ;;  %v16181_v32 = vld [vmem:[#allocation279_spill] sm:$0xff] }
 0x773   : > { %6478 = vmatpush.bf16.msra.mxu3 %v16151_v25  ;;  %6466 = vmatpush.bf16.msra.mxu2 %v16154_v58  ;;  %v6204_v41 = vadd.f32 %v6203_v51, %v6151_v16  ;;  %v16173_v16 = vld [vmem:[#allocation271_spill] sm:$0xff]  ;;  %v16180_v25 = vld [vmem:[#allocation278_spill] sm:$0xff]  ;;  %v16194_v51 = vld [vmem:[#allocation293_spill] sm:$0xff] }
 0x774   : > { %v16184_v58 = vld [vmem:[#allocation282_spill] sm:$0xff] }
 0x775   : > { %6453 = vmatpush.bf16.msra.mxu1 %v16153_v22  ;;  %6441 = vmatmul.bf16.vlgmr.msra.gmra.mxu0 %v6431_v49  ;;  %v6216_v5 = vpop.f32.mrf.mxu1  ;;  %v16183_v22 = vld [vmem:[#allocation281_spill] sm:$0xff] }
 0x776   : > { %6491 = vmatpush.bf16.msrb.mxu0 %v16156_v6  ;;  %6467 = vmatmul.bf16.vlgmr.msra.gmra.mxu2 %v6431_v49  ;;  %v6217_v45 = vadd.f32 %v6216_v5, %v6164_v21  ;;  %v16186_v6 = vld [vmem:[#allocation284_spill] sm:$0xff]  ;;  %v16196_v5 = vld [vmem:[#allocation295_spill] sm:$0xff] }
 0x777   : > { %6479 = vmatpush.bf16.msra.mxu3 %v16155_v50  ;;  %6517 = vmatpush.bf16.msrb.mxu2 %v16158_v20  ;;  %v16185_v50 = vld [vmem:[#allocation283_spill] sm:$0xff]  ;;  %v16187_v20 = vld [vmem:[#allocation285_spill] sm:$0xff] }
 0x778   : > { %6454 = vmatmul.bf16.vlgmr.msra.gmra.mxu1 %v6431_v49 }
 0x779   : > { %6504 = vmatpush.bf16.msrb.mxu1 %v16157_v42  ;;  %v6229_v60 = vpop.f32.mrf.mxu2  ;;  %v6490_v42 = vld [vmem:[#allocation4 + $0x6] sm:$0x1] }
 0x77a   : > { %6480 = vmatmul.bf16.vlgmr.msra.gmra.mxu3 %v6431_v49  ;;  %6492 = vmatpush.bf16.msrb.mxu0 %v16160_v27  ;;  %v6230_v11 = vadd.f32 %v6229_v60, %v6177_v39  ;;  %v6205_v2 = vpop.f32.mrf.mxu0  ;;  %v16182_v49 = vld [vmem:[#allocation280_spill] sm:$0xff]  ;;  %v16189_v27 = vld [vmem:[#allocation287_spill] sm:$0xff] }
 0x77b   : > { %6530 = vmatpush.bf16.msrb.mxu3 %v16159_v30  ;;  %6518 = vmatpush.bf16.msrb.mxu2 %v16162_v46  ;;  %v16188_v30 = vld [vmem:[#allocation286_spill] sm:$0xff]  ;;  %v16191_v46 = vld [vmem:[#allocation289_spill] sm:$0xff] }
 0x77c   : > { %v16202_v2 = vld [vmem:[#allocation301_spill] sm:$0xff] }
 0x77d   : > { %6505 = vmatpush.bf16.msrb.mxu1 %v16161_v47  ;;  %v6242_v18 = vpop.f32.mrf.mxu3  ;;  %v6218_v21 = vpop.f32.mrf.mxu1  ;;  %v16190_v47 = vld [vmem:[#allocation288_spill] sm:$0xff] }
 0x77e   : > { %6493 = vmatpush.bf16.msrb.mxu0 %v16164_v62  ;;  %v6243_v36 = vadd.f32 %v6242_v18, %v6190_v29  ;;  %v16179_v29 = vld [vmem:[#allocation277_spill] sm:$0xff]  ;;  %v16193_v62 = vld [vmem:[#allocation292_spill] sm:$0xff]  ;;  %v16200_v18 = vld [vmem:[#allocation299_spill] sm:$0xff] }
 0x77f   : > { %6531 = vmatpush.bf16.msrb.mxu3 %v16163_v53  ;;  %6519 = vmatpush.bf16.msrb.mxu2 %v16166_v17  ;;  %v16192_v53 = vld [vmem:[#allocation291_spill] sm:$0xff] }
 0x781   : > { %6506 = vmatpush.bf16.msrb.mxu1 %v16165_v13  ;;  %v6231_v39 = vpop.f32.mrf.mxu2  ;;  %v16195_v13 = vld [vmem:[#allocation294_spill] sm:$0xff] }
 0x782   : > { %6494 = vmatpush.bf16.msrb.mxu0 %v16168_v48  ;;  %v6550_v39 = vld.sshfl [vmem:[#allocation1] sm:$0xff pattern:$0x73625140] }
 0x783   : > { %6532 = vmatpush.bf16.msrb.mxu3 %v16167_v0  ;;  %6520 = vmatpush.bf16.msrb.mxu2 %v16170_v14  ;;  %v16198_v14 = vld [vmem:[#allocation297_spill] sm:$0xff] }
 0x785   : > { %6507 = vmatpush.bf16.msrb.mxu1 %v16169_v44  ;;  %v6244_v9 = vpop.f32.mrf.mxu3  ;;  %v16197_v44 = vld [vmem:[#allocation296_spill] sm:$0xff] }
 0x786   : > { %6495 = vmatpush.bf16.msrb.mxu0 %v16172_v54  ;;  %v16201_v54 = vld [vmem:[#allocation300_spill] sm:$0xff]  ;;  %v16208_v9 = vld [vmem:[#allocation307_spill] sm:$0xff] }
 0x787   : > { %6533 = vmatpush.bf16.msrb.mxu3 %v16171_v43  ;;  %6521 = vmatpush.bf16.msrb.mxu2 %v16174_v28  ;;  %v16199_v43 = vld [vmem:[#allocation298_spill] sm:$0xff] }
 0x789   : > { %6508 = vmatpush.bf16.msrb.mxu1 %v16173_v16  ;;  %v16203_v16 = vld [vmem:[#allocation302_spill] sm:$0xff] }
 0x78a   : > { %6496 = vmatpush.bf16.msrb.mxu0 %v16176_v57 }
 0x78b   : > { %6534 = vmatpush.bf16.msrb.mxu3 %v16175_v7  ;;  %6522 = vmatpush.bf16.msrb.mxu2 %v16178_v19  ;;  %v16204_v7 = vld [vmem:[#allocation303_spill] sm:$0xff]  ;;  %v16205_v19 = vld [vmem:[#allocation304_spill] sm:$0xff] }
 0x78d   : > { %6509 = vmatpush.bf16.msrb.mxu1 %v16177_v56 }
 0x78e   : > { %6497 = vmatpush.bf16.msrb.mxu0 %v16180_v25  ;;  %v6553_v25 = vshll.u32 %v6550_v39, 16 }
 0x78f   : > { %6535 = vmatpush.bf16.msrb.mxu3 %v16179_v29  ;;  %6523 = vmatpush.bf16.msrb.mxu2 %v16182_v49  ;;  %v16207_v29 = vld [vmem:[#allocation306_spill] sm:$0xff]  ;;  %v16209_v49 = vld [vmem:[#allocation308_spill] sm:$0xff] }
 0x791   : > { %6510 = vmatpush.bf16.msrb.mxu1 %v16181_v32  ;;  %v6614_v32 = vld [vmem:[#allocation4 + $0x6] sm:$0x2] }
 0x792   : > { %6498 = vmatpush.bf16.msrb.mxu0 %v16184_v58  ;;  %v6260_v17 = vpop.f32.mrf.mxu0  ;;  %6616 = vst [vmem:[#allocation1] ss:$4 sm:$0xff] %v6614_v32  ;;  %v16211_v58 = vld [vmem:[#allocation310_spill] sm:$0xff] }
 0x793   : > { %6536 = vmatpush.bf16.msrb.mxu3 %v16183_v22  ;;  %6524 = vmatpush.bf16.msrb.mxu2 %v16186_v6  ;;  %v6303_v0 = vadd.f32 %v6260_v17, %v6204_v41  ;;  %v6555_v6 = vrot.slane %v6553_v25, 1  ;;  %v16224_v17 = vld [vmem:[#allocation323_spill] sm:$0xff] }
 0x795   : > { %6511 = vmatpush.bf16.msrb.mxu1 %v16185_v50  ;;  %6499 = vmatmul.bf16.vlgmr.msrb.gmra.mxu0 %v6490_v42  ;;  %v6273_v48 = vpop.f32.mrf.mxu1  ;;  %v6551_v50 = vshrl.u32 %v6550_v39, 16 }
 0x796   : > { %6558 = vmatpush.bf16.msra.mxu0 %v16188_v30  ;;  %6525 = vmatmul.bf16.vlgmr.msrb.gmra.mxu2 %v6490_v42  ;;  %v6304_v60 = vadd.f32 %v6273_v48, %v6217_v45  ;;  %v16206_v45 = vld [vmem:[#allocation305_spill] sm:$0xff] }
 0x797   : > { %6537 = vmatpush.bf16.msrb.mxu3 %v16187_v20  ;;  %6584 = vmatpush.bf16.msra.mxu2 %v16190_v47  ;;  %v16213_v20 = vld [vmem:[#allocation312_spill] sm:$0xff]  ;;  %v6556_v30 = vor.u32 %v6555_v6, %v6551_v50  ;;  %v16216_v47 = vld [vmem:[#allocation315_spill] sm:$0xff]  ;;  %v16226_v48 = vld [vmem:[#allocation325_spill] sm:$0xff] }
 0x798   : > { %6512 = vmatmul.bf16.vlgmr.msrb.gmra.mxu1 %v6490_v42 }
 0x799   : > { %6571 = vmatpush.bf16.msra.mxu1 %v16189_v27  ;;  %v6286_v28 = vpop.f32.mrf.mxu2  ;;  %v16215_v27 = vld [vmem:[#allocation314_spill] sm:$0xff] }
 0x79a   : > { %6538 = vmatmul.bf16.vlgmr.msrb.gmra.mxu3 %v6490_v42  ;;  %6559 = vmatpush.bf16.msra.mxu0 %v16192_v53  ;;  %v6305_v21 = vadd.f32 %v6286_v28, %v6230_v11  ;;  %v6262_v41 = vpop.f32.mrf.mxu0  ;;  %v16210_v11 = vld [vmem:[#allocation309_spill] sm:$0xff]  ;;  %v16212_v42 = vld [vmem:[#allocation311_spill] sm:$0xff] }
 0x79b   : > { %6597 = vmatpush.bf16.msra.mxu3 %v16191_v46  ;;  %6585 = vmatpush.bf16.msra.mxu2 %v16194_v51  ;;  %v16223_v51 = vld [vmem:[#allocation322_spill] sm:$0xff]  ;;  %v16232_v41 = vld [vmem:[#allocation331_spill] sm:$0xff] }
 0x79d   : > { %6572 = vmatpush.bf16.msra.mxu1 %v16193_v62  ;;  %v6299_v35 = vpop.f32.mrf.mxu3  ;;  %v6275_v56 = vpop.f32.mrf.mxu1  ;;  %v16222_v62 = vld [vmem:[#allocation321_spill] sm:$0xff] }
 0x79e   : > { %6560 = vmatpush.bf16.msra.mxu0 %v16196_v5  ;;  %v6306_v57 = vadd.f32 %v6299_v35, %v6243_v36  ;;  %v16225_v5 = vld [vmem:[#allocation324_spill] sm:$0xff]  ;;  %v16230_v35 = vld [vmem:[#allocation329_spill] sm:$0xff] }
 0x79f   : > { %6598 = vmatpush.bf16.msra.mxu3 %v16195_v13  ;;  %6586 = vmatpush.bf16.msra.mxu2 %v16198_v14  ;;  %v16228_v14 = vld [vmem:[#allocation327_spill] sm:$0xff]  ;;  %v16234_v56 = vld [vmem:[#allocation333_spill] sm:$0xff] }
 0x7a1   : > { %6573 = vmatpush.bf16.msra.mxu1 %v16197_v44  ;;  %v6288_v36 = vpop.f32.mrf.mxu2  ;;  %v16227_v44 = vld [vmem:[#allocation326_spill] sm:$0xff] }
 0x7a2   : > { %6561 = vmatpush.bf16.msra.mxu0 %v16200_v18 }
 0x7a3   : > { %6599 = vmatpush.bf16.msra.mxu3 %v16199_v43  ;;  %6587 = vmatpush.bf16.msra.mxu2 %v16202_v2  ;;  %v16229_v2 = vld [vmem:[#allocation328_spill] sm:$0xff] }
 0x7a5   : > { %6574 = vmatpush.bf16.msra.mxu1 %v16201_v54  ;;  %v6301_v22 = vpop.f32.mrf.mxu3 }
 0x7a6   : > { %6562 = vmatpush.bf16.msra.mxu0 %v16204_v7  ;;  %v16233_v7 = vld [vmem:[#allocation332_spill] sm:$0xff] }
 0x7a7   : > { %6600 = vmatpush.bf16.msra.mxu3 %v16203_v16  ;;  %6588 = vmatpush.bf16.msra.mxu2 %v16206_v45 }
 0x7a9   : > { %6575 = vmatpush.bf16.msra.mxu1 %v16205_v19 }
 0x7aa   : > { %6563 = vmatpush.bf16.msra.mxu0 %v16208_v9 }
 0x7ab   : > { %6601 = vmatpush.bf16.msra.mxu3 %v16207_v29  ;;  %6589 = vmatpush.bf16.msra.mxu2 %v14727_v3  ;;  %v16214_v3 = vld [vmem:[#allocation313_spill] sm:$0xff] }
 0x7ad   : > { %6576 = vmatpush.bf16.msra.mxu1 %v16209_v49 }
 0x7ae   : > { %6564 = vmatpush.bf16.msra.mxu0 %v16211_v58 }
 0x7af   : > { %6602 = vmatpush.bf16.msra.mxu3 %v16210_v11  ;;  %6590 = vmatpush.bf16.msra.mxu2 %v16213_v20 }
 0x7b1   : > { %6577 = vmatpush.bf16.msra.mxu1 %v16212_v42 }
 0x7b2   : > { %6565 = vmatpush.bf16.msra.mxu0 %v14747_v23  ;;  %v16218_v23 = vld [vmem:[#allocation317_spill] sm:$0xff] }
 0x7b3   : > { %6603 = vmatpush.bf16.msra.mxu3 %v14742_v38  ;;  %6591 = vmatpush.bf16.msra.mxu2 %v14754_v37  ;;  %v16217_v38 = vld [vmem:[#allocation316_spill] sm:$0xff]  ;;  %v16220_v37 = vld [vmem:[#allocation319_spill] sm:$0xff] }
 0x7b5   : > { %6578 = vmatpush.bf16.msra.mxu1 %v14752_v26  ;;  %6566 = vmatmul.bf16.vlgmr.msra.gmra.mxu0 %v6556_v30  ;;  %v16219_v26 = vld [vmem:[#allocation318_spill] sm:$0xff]  ;;  %v6329_v53 = vpop.f32.mrf.mxu1 }
 0x7b6   : > { %6621 = vmatpush.bf16.msrb.mxu0 %v14759_v15  ;;  %6592 = vmatmul.bf16.vlgmr.msra.gmra.mxu2 %v6556_v30  ;;  %v16221_v15 = vld [vmem:[#allocation320_spill] sm:$0xff]  ;;  %v6360_v13 = vadd.f32 %v6329_v53, %v6304_v60  ;;  %v16231_v60 = vld [vmem:[#allocation330_spill] sm:$0xff] }
 0x7b7   : > { %6604 = vmatpush.bf16.msra.mxu3 %v14757_v10  ;;  %6647 = vmatpush.bf16.msrb.mxu2 %v16215_v27  ;;  %v6316_v10 = vpop.f32.mrf.mxu0 }
 0x7b8   : > { %6579 = vmatmul.bf16.vlgmr.msra.gmra.mxu1 %v6556_v30  ;;  %v6359_v46 = vadd.f32 %v6316_v10, %v6303_v0 }
 0x7b9   : > { %6634 = vmatpush.bf16.msrb.mxu1 %v16214_v3  ;;  %v6342_v43 = vpop.f32.mrf.mxu2 }
 0x7ba   : > { %6605 = vmatmul.bf16.vlgmr.msra.gmra.mxu3 %v6556_v30  ;;  %6622 = vmatpush.bf16.msrb.mxu0 %v16217_v38  ;;  %v6361_v18 = vadd.f32 %v6342_v43, %v6305_v21 }
 0x7bb   : > { %6660 = vmatpush.bf16.msrb.mxu3 %v16216_v47  ;;  %6648 = vmatpush.bf16.msrb.mxu2 %v16219_v26 }
 0x7bd   : > { %6635 = vmatpush.bf16.msrb.mxu1 %v16218_v23  ;;  %v6355_v54 = vpop.f32.mrf.mxu3  ;;  %v6331_v28 = vpop.f32.mrf.mxu1 }
 0x7be   : > { %6623 = vmatpush.bf16.msrb.mxu0 %v16221_v15  ;;  %v6362_v16 = vadd.f32 %v6355_v54, %v6306_v57  ;;  %v6617_v57 = vld.sshfl [vmem:[#allocation1] sm:$0xff pattern:$0x73625140] }
 0x7bf   : > { %6661 = vmatpush.bf16.msrb.mxu3 %v16220_v37  ;;  %6649 = vmatpush.bf16.msrb.mxu2 %v16223_v51  ;;  %v6318_v0 = vpop.f32.mrf.mxu0  ;;  %v6619_v45 = vrot.slane %v6617_v57, 1 }
 0x7c1   : > { %6636 = vmatpush.bf16.msrb.mxu1 %v16222_v62  ;;  %v6344_v21 = vpop.f32.mrf.mxu2 }
 0x7c2   : > { %6624 = vmatpush.bf16.msrb.mxu0 %v16225_v5  ;;  %v6115_v5 = vld [vmem:[#allocation18] sm:$0xf] }
 0x7c3   : > { %6662 = vmatpush.bf16.msrb.mxu3 %v16224_v17  ;;  %6650 = vmatpush.bf16.msrb.mxu2 %v16227_v44 }
 0x7c5   : > { %6637 = vmatpush.bf16.msrb.mxu1 %v16226_v48  ;;  %v6357_v19 = vpop.f32.mrf.mxu3  ;;  %v6117_v48 = vperm.slane %v6115_v5, 0 }
 0x7c6   : > { %6625 = vmatpush.bf16.msrb.mxu0 %v16229_v2 }
 0x7c7   : > { %6663 = vmatpush.bf16.msrb.mxu3 %v16228_v14  ;;  %6651 = vmatpush.bf16.msrb.mxu2 %v16231_v60  ;;  %v6118_v14 = vperm.slane %v6115_v5, 1  ;;  %v6125_v2 = vadd.f32 %v6117_v48, %v15035_v8  ;;  %v11854_v8 = vld [vmem:[#allocation20 + $0x1ec] sm:$0xf0] }
 0x7c9   : > { %6638 = vmatpush.bf16.msrb.mxu1 %v16230_v35  ;;  %v6126_v35 = vadd.f32 %v6118_v14, %v15039_v59  ;;  %v6129_v57 = vmax.f32 %v6125_v2, 0.0  ;;  %v10843_v2 = vld [vmem:[#allocation20 + $0x1a0] sm:$0xf] }
 0x7ca   : > { %6626 = vmatpush.bf16.msrb.mxu0 %v16233_v7 }
 0x7cb   : > { %6664 = vmatpush.bf16.msrb.mxu3 %v16232_v41  ;;  %6652 = vmatpush.bf16.msrb.mxu2 %v14841_v33  ;;  %v6119_v41 = vperm.slane %v6115_v5, 2 }
 0x7cd   : > { %6639 = vmatpush.bf16.msrb.mxu1 %v16234_v56  ;;  %v6120_v56 = vperm.slane %v6115_v5, 3 }
 0x7ce   : > { %6627 = vmatpush.bf16.msrb.mxu0 %v14847_v52 }
 0x7cf   : > { %6665 = vmatpush.bf16.msrb.mxu3 %v14844_v4  ;;  %6653 = vmatpush.bf16.msrb.mxu2 %v14853_v24 }
 0x7d1   : > { %6640 = vmatpush.bf16.msrb.mxu1 %v14851_v1 }
 0x7d2   : > { %6628 = vmatpush.bf16.msrb.mxu0 %v14859_v34  ;;  %v6381_v52 = vpop.f32.mrf.mxu0 }
 0x7d3   : > { %6666 = vmatpush.bf16.msrb.mxu3 %v14856_v61  ;;  %6654 = vmatpush.bf16.msrb.mxu2 %v14865_v40  ;;  %v6424_v33 = vadd.f32 %v6381_v52, %v6359_v46 }
 0x7d5   : > { %6641 = vmatpush.bf16.msrb.mxu1 %v14863_v12  ;;  %6629 = vmatmul.bf16.vlgmr.msrb.gmra.mxu0 %v6619_v45  ;;  %v6394_v4 = vpop.f32.mrf.mxu1 }
 0x7d6   : > { %6655 = vmatmul.bf16.vlgmr.msrb.gmra.mxu2 %v6619_v45  ;;  %v6425_v1 = vadd.f32 %v6394_v4, %v6360_v13  ;;  %v11822_v4 = vld [vmem:[#allocation20 + $0xec] sm:$0xf0] }
 0x7d7   : > { %6667 = vmatpush.bf16.msrb.mxu3 %v14868_v31 }
 0x7d8   : > { %6642 = vmatmul.bf16.vlgmr.msrb.gmra.mxu1 %v6619_v45 }
 0x7d9   : > { %v6407_v24 = vpop.f32.mrf.mxu2 }
 0x7da   : > { %6668 = vmatmul.bf16.vlgmr.msrb.gmra.mxu3 %v6619_v45  ;;  %v6426_v39 = vadd.f32 %v6407_v24, %v6361_v18  ;;  %v6383_v29 = vpop.f32.mrf.mxu0 }
 0x7db   : > { %v6127_v29 = vadd.f32 %v6119_v41, %v15046_v63 }
 0x7dd   : > { %v6420_v61 = vpop.f32.mrf.mxu3  ;;  %v6396_v34 = vpop.f32.mrf.mxu1 }
 0x7de   : > { %v6427_v9 = vadd.f32 %v6420_v61, %v6362_v16  ;;  %v10875_v61 = vld [vmem:[#allocation20 + $0x1e0] sm:$0xf] }
 0x7e1   : > { %v6409_v25 = vpop.f32.mrf.mxu2 }
 0x7e5   : > { %v6422_v12 = vpop.f32.mrf.mxu3 }
 0x7f2   : > { %v6442_v32 = vpop.f32.mrf.mxu0 }
 0x7f3   : > { %v6485_v40 = vadd.f32 %v6442_v32, %v6424_v33  ;;  %v10747_v33 = vld [vmem:[#allocation20 + $0xe0] sm:$0xf] }
 0x7f5   : > { %v6455_v49 = vpop.f32.mrf.mxu1 }
 0x7f6   : > { %v6486_v31 = vadd.f32 %v6455_v49, %v6425_v1  ;;  %v6130_v1 = vmax.f32 %v6126_v35, 0.0  ;;  %v10748_v49 = vor.u32 %v11822_v4, %v10747_v33  ;;  %v10699_v35 = vld [vmem:[#allocation20 + $0x80] sm:$0xf]  ;;  %v11842_v33 = vld [vmem:[#allocation20 + $0x18c] sm:$0xf0] }
 0x7f9   : > { %v6468_v11 = vpop.f32.mrf.mxu2 }
 0x7fa   : > { %v6487_v36 = vadd.f32 %v6468_v11, %v6426_v39  ;;  %v6444_v58 = vpop.f32.mrf.mxu0 }
 0x7fb   : > { %v10731_v58 = vld [vmem:[#allocation20 + $0xc0] sm:$0xf] }
 0x7fd   : > { %v6481_v22 = vpop.f32.mrf.mxu3  ;;  %v6457_v6 = vpop.f32.mrf.mxu1 }
 0x7fe   : > { %v6488_v50 = vadd.f32 %v6481_v22, %v6427_v9  ;;  %v10876_v22 = vor.u32 %v11854_v8, %v10875_v61  ;;  %v10955_v61 = vld [vmem:[#allocation20 + $0x280] sm:$0xf]  ;;  %v11874_v8 = vld [vmem:[#allocation20 + $0x28c] sm:$0xf0] }
 0x801   : > { %v6470_v42 = vpop.f32.mrf.mxu2 }
 0x802   : > { %v16235_v42 = vld [vmem:[#allocation40_spill] sm:$0xff] }
 0x805   : > { %v6483_v20 = vpop.f32.mrf.mxu3 }
 0x806   : > { %v6131_v20 = vmax.f32 %v6127_v29, 0.0 }
 0x812   : > { %v6500_v30 = vpop.f32.mrf.mxu0 }
 0x813   : > { %v6543_v44 = vadd.f32 %v6500_v30, %v6485_v40  ;;  %v11003_v30 = vld [vmem:[#allocation20 + $0x2e0] sm:$0xf] }
 0x815   : > { %v6513_v3 = vpop.f32.mrf.mxu1 }
 0x816   : > { %v6544_v43 = vadd.f32 %v6513_v3, %v6486_v31  ;;  %v6128_v31 = vadd.f32 %v6120_v56, %v15049_v55 }
 0x819   : > { %v6526_v27 = vpop.f32.mrf.mxu2 }
 0x81a   : > { %v6502_v38 = vpop.f32.mrf.mxu0  ;;  %v6545_v21 = vadd.f32 %v6526_v27, %v6487_v36  ;;  %v6132_v27 = vmax.f32 %v6128_v31, 0.0  ;;  %v11870_v31 = vld [vmem:[#allocation20 + $0x26c] sm:$0xf0] }
 0x81b   : > { %v11886_v38 = vld [vmem:[#allocation20 + $0x2ec] sm:$0xf0] }
 0x81d   : > { %v6539_v47 = vpop.f32.mrf.mxu3  ;;  %v6515_v23 = vpop.f32.mrf.mxu1 }
 0x81e   : > { %v6546_v45 = vadd.f32 %v6539_v47, %v6488_v50  ;;  %v11818_v50 = vld [vmem:[#allocation20 + $0xcc] sm:$0xf0]  ;;  %v11131_v23 = vld [vmem:[#allocation20 + $0x3e0] sm:$0xf] }
 0x81f   : > { %v10732_v3 = vor.u32 %v11818_v50, %v10731_v58 }
 0x821   : > { %v6528_v26 = vpop.f32.mrf.mxu2 }
 0x825   : > { %v6541_v37 = vpop.f32.mrf.mxu3 }
 0x826   : > { %v11918_v37 = vld [vmem:[#allocation20 + $0x3ec] sm:$0xf0] }
 0x827   : > { %v11132_v5 = vor.u32 %v11918_v37, %v11131_v23  ;;  %v11898_v23 = vld [vmem:[#allocation20 + $0x34c] sm:$0xf0]  ;;  %v10651_v37 = vld [vmem:[#allocation20 + $0x20] sm:$0xf] }
 0x832   : > { %v6567_v10 = vpop.f32.mrf.mxu0 }
 0x833   : > { %v6610_v18 = vadd.f32 %v6567_v10, %v6543_v44  ;;  %v10859_v10 = vld [vmem:[#allocation20 + $0x1c0] sm:$0xf] }
 0x834   : > { %v10987_v44 = vld [vmem:[#allocation20 + $0x2c0] sm:$0xf] }
 0x835   : > { %v6580_v15 = vpop.f32.mrf.mxu1 }
 0x836   : > { %v6611_v54 = vadd.f32 %v6580_v15, %v6544_v43  ;;  %v11850_v15 = vld [vmem:[#allocation20 + $0x1cc] sm:$0xf0]  ;;  %v11115_v43 = vld [vmem:[#allocation20 + $0x3c0] sm:$0xf] }
 0x839   : > { %v6593_v46 = vpop.f32.mrf.mxu2 }
 0x83a   : > { %v6569_v62 = vpop.f32.mrf.mxu0  ;;  %v6612_v24 = vadd.f32 %v6593_v46, %v6545_v21 }
 0x83b   : > { %v10715_v62 = vld [vmem:[#allocation20 + $0xa0] sm:$0xf] }
 0x83d   : > { %v6606_v53 = vpop.f32.mrf.mxu3  ;;  %v6582_v51 = vpop.f32.mrf.mxu1 }
 0x83e   : > { %v6613_v9 = vadd.f32 %v6606_v53, %v6546_v45  ;;  %v11814_v51 = vld [vmem:[#allocation20 + $0xac] sm:$0xf0] }
 0x841   : > { %v6595_v13 = vpop.f32.mrf.mxu2 }
 0x845   : > { %v6608_v17 = vpop.f32.mrf.mxu3 }
 0x846   : > { %v11004_v17 = vor.u32 %v11886_v38, %v11003_v30  ;;  %v10923_v30 = vld [vmem:[#allocation20 + $0x240] sm:$0xf] }
 0x847   : > { %v11051_v38 = vld [vmem:[#allocation20 + $0x340] sm:$0xf] }
 0x852   : > { %v6630_v0 = vpop.f32.mrf.mxu0 }
 0x853   : > { %v6673_v16 = vadd.f32 %v6630_v0, %v6610_v18  ;;  %v11914_v18 = vld [vmem:[#allocation20 + $0x3cc] sm:$0xf0] }
 0x854   : > { %v16236_v0 = vld [vmem:[#allocation41_spill] sm:$0xff] }
 0x855   : > { %v6643_v28 = vpop.f32.mrf.mxu1  ;;  %v6677_v7 = vadd.f32 %v6673_v16, %v6117_v48  ;;  %v10860_v48 = vor.u32 %v11850_v15, %v10859_v10  ;;  %v11846_v16 = vld [vmem:[#allocation20 + $0x1ac] sm:$0xf0]  ;;  %v10779_v15 = vld [vmem:[#allocation20 + $0x120] sm:$0xf] }
 0x856   : > { %v6674_v60 = vadd.f32 %v6643_v28, %v6611_v54  ;;  %v10716_v54 = vor.u32 %v11814_v51, %v10715_v62  ;;  %v10844_v21 = vor.u32 %v11846_v16, %v10843_v2  ;;  %v11798_v10 = vld [vmem:[#allocation20 + $0x2c] sm:$0xf0]  ;;  %v10907_v62 = vld [vmem:[#allocation20 + $0x220] sm:$0xf] }
 0x857   : > { %v6681_v52 = vmax.f32 %v6677_v7, 0.0  ;;  %v10971_v7 = vld [vmem:[#allocation20 + $0x2a0] sm:$0xf]  ;;  %v11862_v51 = vld [vmem:[#allocation20 + $0x22c] sm:$0xf0] }
 0x858   : > { %v6678_v19 = vadd.f32 %v6674_v60, %v6118_v14  ;;  %v11882_v14 = vld [vmem:[#allocation20 + $0x2cc] sm:$0xf0]  ;;  %v10891_v2 = vld [vmem:[#allocation20 + $0x200] sm:$0xf] }
 0x859   : > { %v6685_v59 = vmax.f32 %v6129_v57, %v6681_v52  ;;  %v6656_v34 = vpop.f32.mrf.mxu2  ;;  %v10988_v28 = vor.u32 %v11882_v14, %v10987_v44  ;;  %v11810_v60 = vld [vmem:[#allocation20 + $0x8c] sm:$0xf0]  ;;  %v10827_v52 = vld [vmem:[#allocation20 + $0x180] sm:$0xf] }
 0x85a   : > { %v6682_v39 = vmax.f32 %v6678_v19, 0.0  ;;  %v6675_v12 = vadd.f32 %v6656_v34, %v6612_v24  ;;  %v6632_v40 = vpop.f32.mrf.mxu0  ;;  %v11099_v19 = vld [vmem:[#allocation20 + $0x3a0] sm:$0xf]  ;;  %v11910_v57 = vld [vmem:[#allocation20 + $0x3ac] sm:$0xf0]  ;;  %v10700_v45 = vor.u32 %v11810_v60, %v10699_v35  ;;  %v10828_v29 = vor.u32 %v11842_v33, %v10827_v52 }
 0x85b   : > { %10617 = vmatpush.msk.msra.mxu0 %vm3805_vm0, %v6685_v59  ;;  %v11806_v24 = vld [vmem:[#allocation20 + $0x6c] sm:$0xf0]  ;;  %v10635_v14 = vld [vmem:[#allocation20] sm:$0xf]  ;;  %v11884_v33 = vld [vmem:[#allocation20 + $0x2e4] sm:$0xf] }
 0x85c   : > { %v6686_v25 = vmax.f32 %v6130_v1, %v6682_v39  ;;  %v6679_v6 = vadd.f32 %v6675_v12, %v6119_v41  ;;  %10618 = vmatmul.msk.f32.vlgmr.msra.gmra.mxu0 %vm6689_vm3, %v16235_v42  ;;  %v11116_v41 = vor.u32 %v11914_v18, %v11115_v43  ;;  %v10683_v1 = vld [vmem:[#allocation20 + $0x60] sm:$0xf]  ;;  %v11100_v39 = vor.u32 %v11910_v57, %v11099_v19  ;;  %v11838_v12 = vld [vmem:[#allocation20 + $0x16c] sm:$0xf0]  ;;  %v11852_v19 = vld [vmem:[#allocation20 + $0x1e4] sm:$0xf] }
 0x85d   : > { %v6669_v32 = vpop.f32.mrf.mxu3  ;;  %v6645_v36 = vpop.f32.mrf.mxu1  ;;  %10625 = vmatpush.msk.msrb.mxu0 %vm3805_vm0, %v6685_v59  ;;  %v11906_v59 = vld [vmem:[#allocation20 + $0x38c] sm:$0xf0]  ;;  %v10684_v34 = vor.u32 %v11806_v24, %v10683_v1  ;;  %v10763_v18 = vld [vmem:[#allocation20 + $0x100] sm:$0xf]  ;;  %v10877_v57 = vld [vmem:[#allocation20 + $0x1f0] sm:$0xf0] }
 0x85e   : > { %v6676_v11 = vadd.f32 %v6669_v32, %v6613_v9  ;;  %10619 = vmatpush.msk.msra.mxu1 %vm3805_vm0, %v6686_v25  ;;  %v6683_v55 = vmax.f32 %v6679_v6, 0.0  ;;  %v11083_v9 = vld [vmem:[#allocation20 + $0x380] sm:$0xf]  ;;  %v10956_v32 = vor.u32 %v11874_v8, %v10955_v61  ;;  %v11794_v43 = vld [vmem:[#allocation20 + $0xc] sm:$0xf0]  ;;  %v10880_v52 = vor.u32 %v11852_v19, %v10877_v57 }
 0x85f   : > { %10620 = vmatmul.msk.f32.vlgmr.msra.gmra.mxu1 %vm6689_vm3, %v16235_v42  ;;  %7697 = vmatpush.bf16.msra.mxu0 %v10748_v49  ;;  %v11084_v40 = vor.u32 %v11906_v59, %v11083_v9  ;;  %v10939_v49 = vld [vmem:[#allocation20 + $0x260] sm:$0xf]  ;;  %v11858_v16 = vld [vmem:[#allocation20 + $0x20c] sm:$0xf0]  ;;  %v11916_v1 = vld [vmem:[#allocation20 + $0x3e4] sm:$0xf] }
 0x860   : > { %v6680_v63 = vadd.f32 %v6676_v11, %v6120_v56  ;;  %10627 = vmatpush.msk.msrb.mxu1 %vm3805_vm0, %v6686_v25  ;;  %v6687_v26 = vmax.f32 %v6131_v20, %v6683_v55  ;;  %v11878_v56 = vld [vmem:[#allocation20 + $0x2ac] sm:$0xf0]  ;;  %v10811_v25 = vld [vmem:[#allocation20 + $0x160] sm:$0xf]  ;;  %v10940_v58 = vor.u32 %v11870_v31, %v10939_v49  ;;  %v10892_v35 = vor.u32 %v11858_v16, %v10891_v2  ;;  %v11816_v61 = vld [vmem:[#allocation20 + $0xc4] sm:$0xf] }
 0x861   : > { %v6658_v53 = vpop.f32.mrf.mxu2  ;;  %v10972_v4 = vor.u32 %v11878_v56, %v10971_v7  ;;  %v10812_v11 = vor.u32 %v11838_v12, %v10811_v25  ;;  %v11067_v36 = vld [vmem:[#allocation20 + $0x360] sm:$0xf]  ;;  %v11834_v55 = vld [vmem:[#allocation20 + $0x14c] sm:$0xf0]  ;;  %v11820_v7 = vld [vmem:[#allocation20 + $0xe4] sm:$0xf] }
 0x862   : > { %v6684_v47 = vmax.f32 %v6680_v63, 0.0  ;;  %7710 = vmatpush.bf16.msra.mxu1 %v10876_v22  ;;  %10621 = vmatpush.msk.msra.mxu2 %vm3805_vm0, %v6687_v26  ;;  %v11902_v22 = vld [vmem:[#allocation20 + $0x36c] sm:$0xf0]  ;;  %v10667_v6 = vld [vmem:[#allocation20 + $0x40] sm:$0xf] }
 0x863   : > { %7698 = vmatpush.bf16.msra.mxu0 %v10732_v3  ;;  %10622 = vmatmul.msk.f32.vlgmr.msra.gmra.mxu2 %vm6689_vm3, %v16235_v42  ;;  %v11068_v50 = vor.u32 %v11902_v22, %v11067_v36  ;;  %v11802_v63 = vld [vmem:[#allocation20 + $0x4c] sm:$0xf0]  ;;  %v11019_v60 = vld [vmem:[#allocation20 + $0x300] sm:$0xf]  ;;  %v10733_v8 = vld [vmem:[#allocation20 + $0xd0] sm:$0xf0] }
 0x864   : > { %v6688_v46 = vmax.f32 %v6132_v27, %v6684_v47  ;;  %10629 = vmatpush.msk.msrb.mxu2 %vm3805_vm0, %v6687_v26  ;;  %10626 = vmatmul.msk.f32.vlgmr.msrb.gmra.mxu0 %vm6689_vm3, %v16236_v0  ;;  %v10668_v20 = vor.u32 %v11802_v63, %v10667_v6  ;;  %v11866_v3 = vld [vmem:[#allocation20 + $0x24c] sm:$0xf0]  ;;  %v11052_v26 = vor.u32 %v11898_v23, %v11051_v38  ;;  %v11848_v59 = vld [vmem:[#allocation20 + $0x1c4] sm:$0xf]  ;;  %v11117_v49 = vld [vmem:[#allocation20 + $0x3d0] sm:$0xf0] }
 0x865   : > { %v6671_v13 = vpop.f32.mrf.mxu3  ;;  %v10924_v47 = vor.u32 %v11866_v3, %v10923_v30  ;;  %v11830_v53 = vld [vmem:[#allocation20 + $0x12c] sm:$0xf0]  ;;  %v10736_v9 = vor.u32 %v11816_v61, %v10733_v8  ;;  %v11880_v25 = vld [vmem:[#allocation20 + $0x2c4] sm:$0xf]  ;;  %v10717_v22 = vld [vmem:[#allocation20 + $0xb0] sm:$0xf0] }
 0x866   : > { %10623 = vmatpush.msk.msra.mxu3 %vm3805_vm0, %v6688_v46  ;;  %7723 = vmatpush.bf16.msra.mxu2 %v11004_v17  ;;  %v10780_v13 = vor.u32 %v11830_v53, %v10779_v15  ;;  %v10908_v17 = vor.u32 %v11862_v51, %v10907_v62  ;;  %v11812_v36 = vld [vmem:[#allocation20 + $0xa4] sm:$0xf]  ;;  %v10845_v6 = vld [vmem:[#allocation20 + $0x1b0] sm:$0xf0] }
 0x867   : > { %10624 = vmatmul.msk.f32.vlgmr.msra.gmra.mxu3 %vm6689_vm3, %v16235_v42  ;;  %10628 = vmatmul.msk.f32.vlgmr.msrb.gmra.mxu1 %vm6689_vm3, %v16236_v0  ;;  %v10795_v42 = vld [vmem:[#allocation20 + $0x140] sm:$0xf]  ;;  %v11876_v63 = vld [vmem:[#allocation20 + $0x2a4] sm:$0xf]  ;;  %v11101_v3 = vld [vmem:[#allocation20 + $0x3b0] sm:$0xf0] }
 0x868   : > { %10631 = vmatpush.msk.msrb.mxu3 %vm3805_vm0, %v6688_v46  ;;  %7711 = vmatpush.bf16.msra.mxu1 %v10860_v48  ;;  %v10796_v27 = vor.u32 %v11834_v55, %v10795_v42  ;;  %v10652_v46 = vor.u32 %v11798_v10, %v10651_v37  ;;  %v11894_v48 = vld [vmem:[#allocation20 + $0x32c] sm:$0xf0]  ;;  %v10973_v42 = vld [vmem:[#allocation20 + $0x2b0] sm:$0xf0]  ;;  %v11908_v55 = vld [vmem:[#allocation20 + $0x3a4] sm:$0xf] }
 0x869   : > { %7699 = vmatpush.bf16.msra.mxu0 %v10716_v54  ;;  %v10636_v54 = vor.u32 %v11794_v43, %v10635_v14  ;;  %v10976_v30 = vor.u32 %v11876_v63, %v10973_v42  ;;  %v10701_v38 = vld [vmem:[#allocation20 + $0x90] sm:$0xf0]  ;;  %v11872_v15 = vld [vmem:[#allocation20 + $0x284] sm:$0xf] }
 0x86a   : > { %7736 = vmatpush.bf16.msra.mxu3 %v11132_v5  ;;  %7724 = vmatpush.bf16.msra.mxu2 %v10988_v28  ;;  %v11035_v5 = vld [vmem:[#allocation20 + $0x320] sm:$0xf]  ;;  %v10829_v37 = vld [vmem:[#allocation20 + $0x190] sm:$0xf0]  ;;  %v11904_v62 = vld [vmem:[#allocation20 + $0x384] sm:$0xf] }
 0x86b   : > { %10630 = vmatmul.msk.f32.vlgmr.msrb.gmra.mxu2 %vm6689_vm3, %v16236_v0  ;;  %v11036_v44 = vor.u32 %v11894_v48, %v11035_v5  ;;  %v11085_v51 = vld [vmem:[#allocation20 + $0x390] sm:$0xf0]  ;;  %v11836_v48 = vld [vmem:[#allocation20 + $0x164] sm:$0xf] }
 0x86c   : > { %7712 = vmatpush.bf16.msra.mxu1 %v10844_v21  ;;  %v10749_v21 = vld [vmem:[#allocation20 + $0xf0] sm:$0xf0]  ;;  %v11864_v57 = vld [vmem:[#allocation20 + $0x244] sm:$0xf] }
 0x86d   : > { %7700 = vmatpush.bf16.msra.mxu0 %v10700_v45  ;;  %v10752_v45 = vor.u32 %v11820_v7, %v10749_v21  ;;  %v10685_v5 = vld [vmem:[#allocation20 + $0x70] sm:$0xf0]  ;;  %v11828_v8 = vld [vmem:[#allocation20 + $0x124] sm:$0xf] }
 0x86e   : > { %7737 = vmatpush.bf16.msra.mxu3 %v11116_v41  ;;  %7725 = vmatpush.bf16.msra.mxu2 %v10972_v4  ;;  %v11890_v41 = vld [vmem:[#allocation20 + $0x30c] sm:$0xf0]  ;;  %v11005_v4 = vld [vmem:[#allocation20 + $0x2f0] sm:$0xf0]  ;;  %v11888_v42 = vld [vmem:[#allocation20 + $0x304] sm:$0xf] }
 0x86f   : > { %10632 = vmatmul.msk.f32.vlgmr.msrb.gmra.mxu3 %vm6689_vm3, %v16236_v0  ;;  %v11826_v0 = vld [vmem:[#allocation20 + $0x10c] sm:$0xf0]  ;;  %v11020_v56 = vor.u32 %v11890_v41, %v11019_v60  ;;  %v11008_v24 = vor.u32 %v11884_v33, %v11005_v4  ;;  %v10813_v43 = vld [vmem:[#allocation20 + $0x170] sm:$0xf0]  ;;  %v11800_v41 = vld [vmem:[#allocation20 + $0x44] sm:$0xf] }
 0x870   : > { %7713 = vmatpush.bf16.msra.mxu1 %v10828_v29  ;;  %v10764_v28 = vor.u32 %v11826_v0, %v10763_v18  ;;  %v11868_v18 = vld [vmem:[#allocation20 + $0x264] sm:$0xf]  ;;  %v10816_v2 = vor.u32 %v11836_v48, %v10813_v43  ;;  %v10669_v7 = vld [vmem:[#allocation20 + $0x50] sm:$0xf0] }
 0x871   : > { %7701 = vmatpush.bf16.msra.mxu0 %v10684_v34  ;;  %v10861_v34 = vld [vmem:[#allocation20 + $0x1d0] sm:$0xf0]  ;;  %v10672_v21 = vor.u32 %v11800_v41, %v10669_v7  ;;  %v11896_v4 = vld [vmem:[#allocation20 + $0x344] sm:$0xf]  ;;  %v11887_v41 = vld [vmem:[#allocation20 + $0x2f4] sm:$0xf0] }
 0x872   : > { %7738 = vmatpush.bf16.msra.mxu3 %v11100_v39  ;;  %7726 = vmatpush.bf16.msra.mxu2 %v10956_v32  ;;  %v11133_v39 = vld [vmem:[#allocation20 + $0x3f0] sm:$0xf0]  ;;  %v10864_v12 = vor.u32 %v11848_v59, %v10861_v34  ;;  %v11139_v7 = vld [vmem:[#allocation20 + $0x3e8] sm:$0xf] }
 0x873   : > { %v11136_v29 = vor.u32 %v11916_v1, %v11133_v39  ;;  %v10989_v32 = vld [vmem:[#allocation20 + $0x2d0] sm:$0xf0]  ;;  %v11796_v39 = vld [vmem:[#allocation20 + $0x24] sm:$0xf] }
 0x874   : > { %7714 = vmatpush.bf16.msra.mxu1 %v10812_v11  ;;  %v10992_v31 = vor.u32 %v11880_v25, %v10989_v32  ;;  %v10797_v19 = vld [vmem:[#allocation20 + $0x150] sm:$0xf0] }
 0x875   : > { %7702 = vmatpush.bf16.msra.mxu0 %v10668_v20  ;;  %v11053_v1 = vld [vmem:[#allocation20 + $0x350] sm:$0xf0] }
 0x876   : > { %7739 = vmatpush.bf16.msra.mxu3 %v11084_v40  ;;  %7727 = vmatpush.bf16.msra.mxu2 %v10940_v58  ;;  %v11912_v40 = vld [vmem:[#allocation20 + $0x3c4] sm:$0xf]  ;;  %v10653_v61 = vld [vmem:[#allocation20 + $0x30] sm:$0xf0] }
 0x877   : > { %v11120_v11 = vor.u32 %v11912_v40, %v11117_v49  ;;  %v11844_v58 = vld [vmem:[#allocation20 + $0x1a4] sm:$0xf]  ;;  %v10909_v59 = vld [vmem:[#allocation20 + $0x230] sm:$0xf0]  ;;  %v10656_v34 = vor.u32 %v11796_v39, %v10653_v61 }
 0x878   : > { %7715 = vmatpush.bf16.msra.mxu1 %v10796_v27  ;;  %v10848_v20 = vor.u32 %v11844_v58, %v10845_v6  ;;  %v11104_v27 = vor.u32 %v11908_v55, %v11101_v3  ;;  %v11037_v32 = vld [vmem:[#allocation20 + $0x330] sm:$0xf0]  ;;  %v11792_v40 = vld [vmem:[#allocation20 + $0x4] sm:$0xf] }
 0x879   : > { %7703 = vmatpush.bf16.msra.mxu0 %v10652_v46  ;;  %v10957_v46 = vld [vmem:[#allocation20 + $0x290] sm:$0xf0]  ;;  %v11856_v58 = vld [vmem:[#allocation20 + $0x204] sm:$0xf] }
 0x87a   : > { %7740 = vmatpush.bf16.msra.mxu3 %v11068_v50  ;;  %7728 = vmatpush.bf16.msra.mxu2 %v10924_v47  ;;  %v10720_v50 = vor.u32 %v11812_v36, %v10717_v22  ;;  %v11808_v47 = vld [vmem:[#allocation20 + $0x84] sm:$0xf]  ;;  %v10960_v53 = vor.u32 %v11872_v15, %v10957_v46  ;;  %v10765_v36 = vld [vmem:[#allocation20 + $0x110] sm:$0xf0] }
 0x87b   : > { %v10704_v23 = vor.u32 %v11808_v47, %v10701_v38 }
 0x87c   : > { %7716 = vmatpush.bf16.msra.mxu1 %v10780_v13  ;;  %v11088_v13 = vor.u32 %v11904_v62, %v11085_v51 }
 0x87d   : > { %7704 = vmatpush.bf16.msra.mxu0 %v10636_v54  ;;  %v10941_v54 = vld [vmem:[#allocation20 + $0x270] sm:$0xf0] }
 0x87e   : > { %7741 = vmatpush.bf16.msra.mxu3 %v11052_v26  ;;  %7729 = vmatpush.bf16.msra.mxu2 %v10908_v17  ;;  %v11840_v26 = vld [vmem:[#allocation20 + $0x184] sm:$0xf]  ;;  %v10944_v16 = vor.u32 %v11868_v18, %v10941_v54 }
 0x87f   : > { %v10832_v10 = vor.u32 %v11840_v26, %v10829_v37  ;;  %v11804_v17 = vld [vmem:[#allocation20 + $0x64] sm:$0xf]  ;;  %v11907_v37 = vld [vmem:[#allocation20 + $0x394] sm:$0xf0] }
 0x880   : > { %7717 = vmatpush.bf16.msra.mxu1 %v10764_v28  ;;  %v10688_v14 = vor.u32 %v11804_v17, %v10685_v5  ;;  %v11900_v28 = vld [vmem:[#allocation20 + $0x364] sm:$0xf] }
 0x881   : > { %7749 = vmatpush.bf16.msrb.mxu0 %v10752_v45  ;;  %v10925_v45 = vld [vmem:[#allocation20 + $0x250] sm:$0xf0] }
 0x882   : > { %7742 = vmatpush.bf16.msra.mxu3 %v11036_v44  ;;  %7730 = vmatpush.bf16.msra.mxu2 %v10892_v35  ;;  %v11069_v35 = vld [vmem:[#allocation20 + $0x370] sm:$0xf0]  ;;  %v10928_v33 = vor.u32 %v11864_v57, %v10925_v45  ;;  %v10867_v57 = vld [vmem:[#allocation20 + $0x1c8] sm:$0xf] }
 0x883   : > { %v11072_v60 = vor.u32 %v11900_v28, %v11069_v35  ;;  %v10883_v28 = vld [vmem:[#allocation20 + $0x1e8] sm:$0xf]  ;;  %v11855_v35 = vld [vmem:[#allocation20 + $0x1f4] sm:$0xf0] }
 0x884   : > { %7762 = vmatpush.bf16.msrb.mxu1 %v10880_v52 }
 0x885   : > { %7750 = vmatpush.bf16.msrb.mxu0 %v10736_v9  ;;  %v11860_v9 = vld [vmem:[#allocation20 + $0x224] sm:$0xf] }
 0x886   : > { %7743 = vmatpush.bf16.msra.mxu3 %v11020_v56  ;;  %7775 = vmatpush.bf16.msrb.mxu2 %v11008_v24  ;;  %v11832_v56 = vld [vmem:[#allocation20 + $0x144] sm:$0xf]  ;;  %v11056_v24 = vor.u32 %v11896_v4, %v11053_v1  ;;  %v10912_v49 = vor.u32 %v11860_v9, %v10909_v59  ;;  %v10995_v4 = vld [vmem:[#allocation20 + $0x2c8] sm:$0xf]  ;;  %v11883_v1 = vld [vmem:[#allocation20 + $0x2d4] sm:$0xf0] }
 0x887   : > { %v10800_v52 = vor.u32 %v11832_v56, %v10797_v19  ;;  %v11919_v56 = vld [vmem:[#allocation20 + $0x3f4] sm:$0xf0]  ;;  %v11123_v59 = vld [vmem:[#allocation20 + $0x3c8] sm:$0xf] }
 0x888   : > { %7763 = vmatpush.bf16.msrb.mxu1 %v10864_v12  ;;  %v11892_v12 = vld [vmem:[#allocation20 + $0x324] sm:$0xf]  ;;  %v11819_v19 = vld [vmem:[#allocation20 + $0xd4] sm:$0xf0] }
 0x889   : > { %7751 = vmatpush.bf16.msrb.mxu0 %v10720_v50  ;;  %v11040_v22 = vor.u32 %v11892_v12, %v11037_v32  ;;  %v10893_v50 = vld [vmem:[#allocation20 + $0x210] sm:$0xf0]  ;;  %v10723_v32 = vld [vmem:[#allocation20 + $0xa8] sm:$0xf] }
 0x88a   : > { %7788 = vmatpush.bf16.msrb.mxu3 %v11136_v29  ;;  %7776 = vmatpush.bf16.msrb.mxu2 %v10992_v31  ;;  %v10781_v29 = vld [vmem:[#allocation20 + $0x130] sm:$0xf0]  ;;  %v10896_v47 = vor.u32 %v11856_v58, %v10893_v50  ;;  %v11879_v58 = vld [vmem:[#allocation20 + $0x2b4] sm:$0xf0]  ;;  %v11107_v50 = vld [vmem:[#allocation20 + $0x3a8] sm:$0xf] }
 0x88b   : > { %v10784_v25 = vor.u32 %v11828_v8, %v10781_v29  ;;  %v10637_v31 = vld [vmem:[#allocation20 + $0x10] sm:$0xf0]  ;;  %v11140_v29 = vor.u32 %v11919_v56, %v11139_v7  ;;  %v11059_v7 = vld [vmem:[#allocation20 + $0x348] sm:$0xf]  ;;  %v11899_v56 = vld [vmem:[#allocation20 + $0x354] sm:$0xf0] }
 0x88c   : > { %7764 = vmatpush.bf16.msrb.mxu1 %v10848_v20  ;;  %v11021_v20 = vld [vmem:[#allocation20 + $0x310] sm:$0xf0]  ;;  %v10640_v3 = vor.u32 %v11792_v40, %v10637_v31  ;;  %v11815_v40 = vld [vmem:[#allocation20 + $0xb4] sm:$0xf0] }
 0x88d   : > { %7752 = vmatpush.bf16.msrb.mxu0 %v10704_v23  ;;  %v11024_v38 = vor.u32 %v11888_v42, %v11021_v20  ;;  %v10707_v20 = vld [vmem:[#allocation20 + $0x88] sm:$0xf] }
 0x88e   : > { %7789 = vmatpush.bf16.msrb.mxu3 %v11120_v11  ;;  %7777 = vmatpush.bf16.msrb.mxu2 %v10976_v30  ;;  %v11824_v11 = vld [vmem:[#allocation20 + $0x104] sm:$0xf] }
 0x890   : > { %7765 = vmatpush.bf16.msrb.mxu1 %v10832_v10 }
 0x891   : > { %7753 = vmatpush.bf16.msrb.mxu0 %v10688_v14 }
 0x892   : > { %7790 = vmatpush.bf16.msrb.mxu3 %v11104_v27  ;;  %7778 = vmatpush.bf16.msrb.mxu2 %v10960_v53  ;;  %v10768_v27 = vor.u32 %v11824_v11, %v10765_v36  ;;  %v10851_v11 = vld [vmem:[#allocation20 + $0x1a8] sm:$0xf]  ;;  %v11847_v36 = vld [vmem:[#allocation20 + $0x1b4] sm:$0xf0] }
 0x893   : > { %v10852_v42 = vor.u32 %v11847_v36, %v10851_v11 }
 0x894   : > { %7766 = vmatpush.bf16.msrb.mxu1 %v10816_v2  ;;  %v10755_v2 = vld [vmem:[#allocation20 + $0xe8] sm:$0xf] }
 0x895   : > { %7754 = vmatpush.bf16.msrb.mxu0 %v10672_v21  ;;  %v10739_v21 = vld [vmem:[#allocation20 + $0xc8] sm:$0xf] }
 0x896   : > { %7791 = vmatpush.bf16.msrb.mxu3 %v11088_v13  ;;  %7779 = vmatpush.bf16.msrb.mxu2 %v10944_v16  ;;  %v11823_v16 = vld [vmem:[#allocation20 + $0xf4] sm:$0xf0] }
 0x897   : > { %v10756_v45 = vor.u32 %v11823_v16, %v10755_v2 }
 0x898   : > { %7767 = vmatpush.bf16.msrb.mxu1 %v10800_v52  ;;  %v10884_v52 = vor.u32 %v11855_v35, %v10883_v28  ;;  %v10803_v28 = vld [vmem:[#allocation20 + $0x148] sm:$0xf]  ;;  %v11835_v35 = vld [vmem:[#allocation20 + $0x154] sm:$0xf0] }
 0x899   : > { %7755 = vmatpush.bf16.msrb.mxu0 %v10656_v34  ;;  %v11915_v34 = vld [vmem:[#allocation20 + $0x3d4] sm:$0xf0] }
 0x89a   : > { %7792 = vmatpush.bf16.msrb.mxu3 %v11072_v60  ;;  %7780 = vmatpush.bf16.msrb.mxu2 %v10928_v33  ;;  %v11011_v60 = vld [vmem:[#allocation20 + $0x2e8] sm:$0xf]  ;;  %v11851_v33 = vld [vmem:[#allocation20 + $0x1d4] sm:$0xf0]  ;;  %v11124_v31 = vor.u32 %v11915_v34, %v11123_v59 }
 0x89b   : > { %v11012_v8 = vor.u32 %v11887_v41, %v11011_v60  ;;  %v10868_v12 = vor.u32 %v11851_v33, %v10867_v57  ;;  %v10931_v60 = vld [vmem:[#allocation20 + $0x248] sm:$0xf]  ;;  %v11867_v41 = vld [vmem:[#allocation20 + $0x254] sm:$0xf0]  ;;  %v11060_v33 = vor.u32 %v11899_v56, %v11059_v7  ;;  %v11909_v7 = vld [vmem:[#allocation20 + $0x3ac] sm:$0xf] }
 0x89c   : > { %7768 = vmatpush.bf16.msrb.mxu1 %v10784_v25  ;;  %v10740_v25 = vor.u32 %v11819_v19, %v10739_v21  ;;  %v10804_v19 = vor.u32 %v11835_v35, %v10803_v28  ;;  %v10659_v57 = vld [vmem:[#allocation20 + $0x28] sm:$0xf]  ;;  %v11895_v34 = vld [vmem:[#allocation20 + $0x334] sm:$0xf0]  ;;  %v11845_v28 = vld [vmem:[#allocation20 + $0x1ac] sm:$0xf] }
 0x89d   : > { %7756 = vmatpush.bf16.msrb.mxu0 %v10640_v3  ;;  %v11043_v59 = vld [vmem:[#allocation20 + $0x328] sm:$0xf]  ;;  %v10853_v35 = vld [vmem:[#allocation20 + $0x1b8] sm:$0xf0] }
 0x89e   : > { %7793 = vmatpush.bf16.msrb.mxu3 %v11056_v24  ;;  %7781 = vmatpush.bf16.msrb.mxu2 %v10912_v49  ;;  %v10996_v49 = vor.u32 %v11883_v1, %v10995_v4  ;;  %v10787_v4 = vld [vmem:[#allocation20 + $0x128] sm:$0xf]  ;;  %v11831_v1 = vld [vmem:[#allocation20 + $0x134] sm:$0xf0]  ;;  %v11044_v36 = vor.u32 %v11895_v34, %v11043_v59  ;;  %v11109_v56 = vld [vmem:[#allocation20 + $0x3b8] sm:$0xf0] }
 0x89f   : > { %v11905_v59 = vld [vmem:[#allocation20 + $0x38c] sm:$0xf]  ;;  %v11093_v34 = vld [vmem:[#allocation20 + $0x398] sm:$0xf0] }
 0x8a0   : > { %7769 = vmatpush.bf16.msrb.mxu1 %v10768_v27  ;;  %v10835_v27 = vld [vmem:[#allocation20 + $0x188] sm:$0xf] }
 0x8a2   : > { %7794 = vmatpush.bf16.msrb.mxu3 %v11040_v22  ;;  %7782 = vmatpush.bf16.msrb.mxu2 %v10896_v47  ;;  %v10979_v22 = vld [vmem:[#allocation20 + $0x2a8] sm:$0xf]  ;;  %v11843_v47 = vld [vmem:[#allocation20 + $0x194] sm:$0xf0] }
 0x8a6   : > { %7795 = vmatpush.bf16.msrb.mxu3 %v11024_v38  ;;  %v10963_v38 = vld [vmem:[#allocation20 + $0x288] sm:$0xf] }
 0x8d9   : > { %v15222_v44 = vpop.f32.mrf.mxu0 }
 0x8dc   : > { %v15224_v0 = vpop.f32.mrf.mxu1 }
 0x8e1   : > { %v6806_v63 = vpop.f32.mrf.mxu0 }
 0x8e2   : > { %v6869_v23 = vmax.f32 %v15222_v44, %v6806_v63  ;;  %v6905_v44 = vld [vmem:[#allocation5] sm:$0xf]  ;;  %v10724_v63 = vor.u32 %v11815_v40, %v10723_v32  ;;  %v10788_v32 = vor.u32 %v11831_v1, %v10787_v4  ;;  %v11795_v40 = vld [vmem:[#allocation20 + $0x14] sm:$0xf0]  ;;  %v11841_v4 = vld [vmem:[#allocation20 + $0x18c] sm:$0xf] }
 0x8e3   : > { %v10837_v1 = vld [vmem:[#allocation20 + $0x198] sm:$0xf0] }
 0x8e4   : > { %v6826_v30 = vpop.f32.mrf.mxu1 }
 0x8e5   : > { %v6870_v26 = vmax.f32 %v15224_v0, %v6826_v30  ;;  %v10980_v30 = vor.u32 %v11879_v58, %v10979_v22  ;;  %v10899_v22 = vld [vmem:[#allocation20 + $0x208] sm:$0xf]  ;;  %v11859_v58 = vld [vmem:[#allocation20 + $0x214] sm:$0xf0] }
 0x8e6   : > { %v6763_v6 = vpop.f32.mrf.mxu2 }
 0x8e7   : > { %v6873_v15 = vpack.c.bf16 %v6870_v26, %v6869_v23  ;;  %v11875_v23 = vld [vmem:[#allocation20 + $0x294] sm:$0xf0]  ;;  %v11091_v26 = vld [vmem:[#allocation20 + $0x388] sm:$0xf] }
 0x8e9   : > { %v6877_v13 = vrot.slane %v6873_v15, 3 }
 0x8ea   : > { %v6783_v55 = vpop.f32.mrf.mxu3 }
 0x8eb   : > { %v6883_v14 = vsel %vm1792_vm7, %v6873_v15, %v6877_v13  ;;  %v10836_v15 = vor.u32 %v11843_v47, %v10835_v27  ;;  %v10819_v13 = vld [vmem:[#allocation20 + $0x168] sm:$0xf]  ;;  %v11013_v47 = vld [vmem:[#allocation20 + $0x2f8] sm:$0xf0] }
 0x8ee   : > { %v6846_v46 = vpop.f32.mrf.mxu2 }
 0x8ef   : > { %v6871_v53 = vmax.f32 %v6763_v6, %v6846_v46  ;;  %v11911_v6 = vld [vmem:[#allocation20 + $0x3b4] sm:$0xf0]  ;;  %v10691_v46 = vld [vmem:[#allocation20 + $0x68] sm:$0xf] }
 0x8f0   : > { %v11108_v3 = vor.u32 %v11911_v6, %v11107_v50  ;;  %v11027_v50 = vld [vmem:[#allocation20 + $0x308] sm:$0xf]  ;;  %v11891_v6 = vld [vmem:[#allocation20 + $0x314] sm:$0xf0] }
 0x8f2   : > { %v6866_v62 = vpop.f32.mrf.mxu3 }
 0x8f3   : > { %v6872_v51 = vmax.f32 %v6783_v55, %v6866_v62  ;;  %v11811_v55 = vld [vmem:[#allocation20 + $0x94] sm:$0xf0]  ;;  %v10964_v62 = vor.u32 %v11875_v23, %v10963_v38  ;;  %v11917_v38 = vld [vmem:[#allocation20 + $0x3ec] sm:$0xf]  ;;  %v11141_v23 = vld [vmem:[#allocation20 + $0x3f8] sm:$0xf0] }
 0x8f4   : > { %v10708_v10 = vor.u32 %v11811_v55, %v10707_v20  ;;  %v11853_v20 = vld [vmem:[#allocation20 + $0x1ec] sm:$0xf]  ;;  %v10885_v55 = vld [vmem:[#allocation20 + $0x1f8] sm:$0xf0] }
 0x8f5   : > { %v6874_v17 = vpack.c.bf16 %v6872_v51, %v6871_v53  ;;  %v11807_v53 = vld [vmem:[#allocation20 + $0x74] sm:$0xf0]  ;;  %v11092_v51 = vor.u32 %v11907_v37, %v11091_v26  ;;  %v10900_v26 = vor.u32 %v11859_v58, %v10899_v22  ;;  %v11028_v37 = vor.u32 %v11891_v6, %v11027_v50  ;;  %v11869_v22 = vld [vmem:[#allocation20 + $0x26c] sm:$0xf]  ;;  %v10949_v58 = vld [vmem:[#allocation20 + $0x278] sm:$0xf0] }
 0x8f6   : > { %v11901_v50 = vld [vmem:[#allocation20 + $0x36c] sm:$0xf]  ;;  %v11077_v6 = vld [vmem:[#allocation20 + $0x378] sm:$0xf0] }
 0x8f7   : > { %v6878_v5 = vrot.slane %v6874_v17, 6  ;;  %v6879_v48 = vrot.slane %v6874_v17, 1  ;;  %v11839_v17 = vld [vmem:[#allocation20 + $0x174] sm:$0xf0] }
 0x8f9   : > { %v6887_v43 = vsel %vm6884_vm8, %v6878_v5, %v6879_v48  ;;  %v10947_v5 = vld [vmem:[#allocation20 + $0x268] sm:$0xf]  ;;  %v11871_v48 = vld [vmem:[#allocation20 + $0x274] sm:$0xf0] }
 0x8fa   : > { %v6888_v18 = vsel %vm3805_vm0, %v6883_v14, %v6887_v43  ;;  %v11903_v14 = vld [vmem:[#allocation20 + $0x374] sm:$0xf0]  ;;  %v10692_v43 = vor.u32 %v11807_v53, %v10691_v46  ;;  %v10948_v2 = vor.u32 %v11871_v48, %v10947_v5  ;;  %v11817_v46 = vld [vmem:[#allocation20 + $0xcc] sm:$0xf]  ;;  %v10741_v53 = vld [vmem:[#allocation20 + $0xd8] sm:$0xf0] }
 0x8fb   : > { %v6906_v54 = vsel %vm6904_vm2, %v6888_v18, %v6905_v44  ;;  %v11075_v44 = vld [vmem:[#allocation20 + $0x368] sm:$0xf]  ;;  %v10820_v18 = vor.u32 %v11839_v17, %v10819_v13  ;;  %v11849_v13 = vld [vmem:[#allocation20 + $0x1cc] sm:$0xf]  ;;  %v10869_v17 = vld [vmem:[#allocation20 + $0x1d8] sm:$0xf0] }
 0x8fc   : > { %6907 = vst [vmem:[#allocation5] sm:$0xf] %v6906_v54  ;;  %v10675_v54 = vld [vmem:[#allocation20 + $0x48] sm:$0xf]  ;;  %v11076_v16 = vor.u32 %v11903_v14, %v11075_v44  ;;  %v11881_v5 = vld [vmem:[#allocation20 + $0x2cc] sm:$0xf] }
 0x8fd   : > { %v10997_v48 = vld [vmem:[#allocation20 + $0x2d8] sm:$0xf0]  ;;  %v11913_v44 = vld [vmem:[#allocation20 + $0x3cc] sm:$0xf] }
 0x8fe   : > { %v11125_v14 = vld [vmem:[#allocation20 + $0x3d8] sm:$0xf0] }
 0x903   : > { %v6908_v0 = vld [vmem:[#allocation5] sm:$0xf] }
 0x904   : > { %7039 = vst [vmem:[#allocation1] ss:$9 sm:$0xff] %v6908_v0  ;;  %v11803_v0 = vld [vmem:[#allocation20 + $0x54] sm:$0xf0] }
 0x905   : > { %v10676_v21 = vor.u32 %v11803_v0, %v10675_v54  ;;  %v11813_v54 = vld [vmem:[#allocation20 + $0xac] sm:$0xf]  ;;  %v10725_v0 = vld [vmem:[#allocation20 + $0xb8] sm:$0xf0] }
 0x90b   : > { %v15240_v24 = vld [vmem:[#allocation1] sm:$0xff]  ;;  %v15242_v39 = vld [vmem:[#allocation1 + $0x9] sm:$0xff]  ;;  %v15244_v61 = vld [vmem:[#allocation1 + $0x12] sm:$0xff] }
 0x90c   : > { %7705 = vmatmul.bf16.vlgmr.msra.gmra.mxu0 %v15240_v24  ;;  %7718 = vmatmul.bf16.vlgmr.msra.gmra.mxu1 %v15242_v39  ;;  %v15248_v9 = vld [vmem:[#allocation1 + $0x1b] sm:$0xff] }
 0x90d   : > { %7731 = vmatmul.bf16.vlgmr.msra.gmra.mxu2 %v15244_v61  ;;  %7744 = vmatmul.bf16.vlgmr.msra.gmra.mxu3 %v15248_v9 }
 0x90e   : > { %7801 = vmatpush.bf16.msra.mxu0 %v10756_v45  ;;  %7814 = vmatpush.bf16.msra.mxu1 %v10884_v52  ;;  %v11799_v45 = vld [vmem:[#allocation20 + $0x34] sm:$0xf0]  ;;  %v10932_v52 = vor.u32 %v11867_v41, %v10931_v60  ;;  %v11877_v60 = vld [vmem:[#allocation20 + $0x2ac] sm:$0xf]  ;;  %v10981_v41 = vld [vmem:[#allocation20 + $0x2b8] sm:$0xf0] }
 0x90f   : > { %7827 = vmatpush.bf16.msra.mxu2 %v11012_v8  ;;  %7840 = vmatpush.bf16.msra.mxu3 %v11140_v29  ;;  %v10915_v8 = vld [vmem:[#allocation20 + $0x228] sm:$0xf]  ;;  %v11863_v29 = vld [vmem:[#allocation20 + $0x234] sm:$0xf0] }
 0x910   : > { %v10916_v11 = vor.u32 %v11863_v29, %v10915_v8  ;;  %v11873_v8 = vld [vmem:[#allocation20 + $0x28c] sm:$0xf]  ;;  %v10965_v29 = vld [vmem:[#allocation20 + $0x298] sm:$0xf0] }
 0x912   : > { %7802 = vmatpush.bf16.msra.mxu0 %v10740_v25  ;;  %7815 = vmatpush.bf16.msra.mxu1 %v10868_v12  ;;  %v10643_v25 = vld [vmem:[#allocation20 + $0x8] sm:$0xf]  ;;  %v10660_v12 = vor.u32 %v11799_v45, %v10659_v57  ;;  %v11809_v57 = vld [vmem:[#allocation20 + $0x8c] sm:$0xf]  ;;  %v10709_v45 = vld [vmem:[#allocation20 + $0x98] sm:$0xf0] }
 0x913   : > { %7828 = vmatpush.bf16.msra.mxu2 %v10996_v49  ;;  %7841 = vmatpush.bf16.msra.mxu3 %v11124_v31  ;;  %v10771_v49 = vld [vmem:[#allocation20 + $0x108] sm:$0xf]  ;;  %v11827_v31 = vld [vmem:[#allocation20 + $0x114] sm:$0xf0] }
 0x914   : > { %v10772_v27 = vor.u32 %v11827_v31, %v10771_v49  ;;  %v10968_v49 = vor.u32 %v11873_v8, %v10965_v29  ;;  %v11096_v31 = vor.u32 %v11905_v59, %v11093_v34  ;;  %v11923_v8 = vld [vmem:[#allocation23 + $0x18] sm:$0xff]  ;;  %v11922_v59 = vld [vmem:[#allocation23 + $0x10] sm:$0xff] }
 0x915   : > { %v11935_v29 = vld [vmem:[#allocation23 + $0x78] sm:$0xff]  ;;  %v11934_v34 = vld [vmem:[#allocation23 + $0x70] sm:$0xff] }
 0x916   : > { %7803 = vmatpush.bf16.msra.mxu0 %v10724_v63  ;;  %7816 = vmatpush.bf16.msra.mxu1 %v10852_v42  ;;  %v11821_v63 = vld [vmem:[#allocation20 + $0xec] sm:$0xf]  ;;  %v10757_v42 = vld [vmem:[#allocation20 + $0xf8] sm:$0xf0] }
 0x917   : > { %7829 = vmatpush.bf16.msra.mxu2 %v10980_v30  ;;  %7842 = vmatpush.bf16.msra.mxu3 %v11108_v3  ;;  %v11885_v30 = vld [vmem:[#allocation20 + $0x2ec] sm:$0xf]  ;;  %v10644_v3 = vor.u32 %v11795_v40, %v10643_v25  ;;  %v10712_v25 = vor.u32 %v11809_v57, %v10709_v45  ;;  %v10693_v40 = vld [vmem:[#allocation20 + $0x78] sm:$0xf0] }
 0x91a   : > { %7804 = vmatpush.bf16.msra.mxu0 %v10708_v10  ;;  %7817 = vmatpush.bf16.msra.mxu1 %v10836_v15  ;;  %v10760_v10 = vor.u32 %v11821_v63, %v10757_v42  ;;  %v10888_v15 = vor.u32 %v11853_v20, %v10885_v55  ;;  %v11801_v20 = vld [vmem:[#allocation20 + $0x4c] sm:$0xf]  ;;  %v10677_v55 = vld [vmem:[#allocation20 + $0x58] sm:$0xf0] }
 0x91b   : > { %7830 = vmatpush.bf16.msra.mxu2 %v10964_v62  ;;  %7843 = vmatpush.bf16.msra.mxu3 %v11092_v51  ;;  %v11016_v62 = vor.u32 %v11885_v30, %v11013_v47  ;;  %v11144_v51 = vor.u32 %v11917_v38, %v11141_v23  ;;  %v10952_v30 = vor.u32 %v11869_v22, %v10949_v58  ;;  %v10805_v47 = vld [vmem:[#allocation20 + $0x158] sm:$0xf0]  ;;  %v11865_v38 = vld [vmem:[#allocation20 + $0x24c] sm:$0xf]  ;;  %v11928_v22 = vld [vmem:[#allocation23 + $0x40] sm:$0xff] }
 0x91c   : > { %7757 = vmatmul.bf16.vlgmr.msrb.gmra.mxu0 %v15240_v24  ;;  %7770 = vmatmul.bf16.vlgmr.msrb.gmra.mxu1 %v15242_v39  ;;  %v10933_v23 = vld [vmem:[#allocation20 + $0x258] sm:$0xf0]  ;;  %v11940_v58 = vld [vmem:[#allocation23 + $0xa0] sm:$0xff] }
 0x91d   : > { %7783 = vmatmul.bf16.vlgmr.msrb.gmra.mxu2 %v15244_v61  ;;  %7796 = vmatmul.bf16.vlgmr.msrb.gmra.mxu3 %v15248_v9 }
 0x91e   : > { %7805 = vmatpush.bf16.msra.mxu0 %v10692_v43  ;;  %7818 = vmatpush.bf16.msra.mxu1 %v10820_v18  ;;  %v10744_v43 = vor.u32 %v11817_v46, %v10741_v53  ;;  %v10872_v18 = vor.u32 %v11849_v13, %v10869_v17  ;;  %v11797_v46 = vld [vmem:[#allocation20 + $0x2c] sm:$0xf]  ;;  %v10661_v53 = vld [vmem:[#allocation20 + $0x38] sm:$0xf0] }
 0x91f   : > { %7831 = vmatpush.bf16.msra.mxu2 %v10948_v2  ;;  %7844 = vmatpush.bf16.msra.mxu3 %v11076_v16  ;;  %v11000_v2 = vor.u32 %v11881_v5, %v10997_v48  ;;  %v11128_v16 = vor.u32 %v11913_v44, %v11125_v14  ;;  %v11829_v13 = vld [vmem:[#allocation20 + $0x12c] sm:$0xf]  ;;  %v10789_v17 = vld [vmem:[#allocation20 + $0x138] sm:$0xf0] }
 0x920   : > { %v11861_v5 = vld [vmem:[#allocation20 + $0x22c] sm:$0xf]  ;;  %v10917_v48 = vld [vmem:[#allocation20 + $0x238] sm:$0xf0] }
 0x921   : > { %v11893_v44 = vld [vmem:[#allocation20 + $0x32c] sm:$0xf]  ;;  %v11045_v14 = vld [vmem:[#allocation20 + $0x338] sm:$0xf0] }
 0x922   : > { %7806 = vmatpush.bf16.msra.mxu0 %v10676_v21  ;;  %7819 = vmatpush.bf16.msra.mxu1 %v10804_v19  ;;  %v10728_v21 = vor.u32 %v11813_v54, %v10725_v0  ;;  %v10856_v19 = vor.u32 %v11845_v28, %v10853_v35  ;;  %v11793_v54 = vld [vmem:[#allocation20 + $0xc] sm:$0xf]  ;;  %v10645_v0 = vld [vmem:[#allocation20 + $0x18] sm:$0xf0] }
 0x923   : > { %7832 = vmatpush.bf16.msra.mxu2 %v10932_v52  ;;  %7845 = vmatpush.bf16.msra.mxu3 %v11060_v33  ;;  %v10984_v52 = vor.u32 %v11877_v60, %v10981_v41  ;;  %v11112_v33 = vor.u32 %v11909_v7, %v11109_v56  ;;  %v11825_v28 = vld [vmem:[#allocation20 + $0x10c] sm:$0xf]  ;;  %v10773_v35 = vld [vmem:[#allocation20 + $0x118] sm:$0xf0] }
 0x924   : > { %v11857_v60 = vld [vmem:[#allocation20 + $0x20c] sm:$0xf]  ;;  %v10901_v41 = vld [vmem:[#allocation20 + $0x218] sm:$0xf0] }
 0x925   : > { %v11889_v7 = vld [vmem:[#allocation20 + $0x30c] sm:$0xf]  ;;  %v11029_v56 = vld [vmem:[#allocation20 + $0x318] sm:$0xf0]  ;;  %v10904_v57 = vor.u32 %v11857_v60, %v10901_v41 }
 0x926   : > { %7807 = vmatpush.bf16.msra.mxu0 %v10660_v12  ;;  %7820 = vmatpush.bf16.msra.mxu1 %v10788_v32  ;;  %v10840_v12 = vor.u32 %v11841_v4, %v10837_v1  ;;  %v11805_v32 = vld [vmem:[#allocation20 + $0x6c] sm:$0xf]  ;;  %v11032_v45 = vor.u32 %v11889_v7, %v11029_v56  ;;  %v11924_v1 = vld [vmem:[#allocation23 + $0x20] sm:$0xff]  ;;  %v11947_v41 = vld [vmem:[#allocation23 + $0xd8] sm:$0xff] }
 0x927   : > { %7833 = vmatpush.bf16.msra.mxu2 %v10916_v11  ;;  %7846 = vmatpush.bf16.msra.mxu3 %v11044_v36  ;;  %v11837_v11 = vld [vmem:[#allocation20 + $0x16c] sm:$0xf]  ;;  %v10821_v36 = vld [vmem:[#allocation20 + $0x178] sm:$0xf0]  ;;  %v10696_v63 = vor.u32 %v11805_v32, %v10693_v40  ;;  %v11930_v32 = vld [vmem:[#allocation23 + $0x50] sm:$0xff] }
 0x928   : > { %v10824_v42 = vor.u32 %v11837_v11, %v10821_v36  ;;  %v11925_v4 = vld [vmem:[#allocation23 + $0x28] sm:$0xff]  ;;  %v11942_v40 = vld [vmem:[#allocation23 + $0xb0] sm:$0xff]  ;;  %v15264_v11 = vld [vmem:[#allocation21] sm:$0xf] }
 0x929   : > { %v7689_v36 = vperm.slane %v15264_v11, 0 }
 0x92a   : > { %7808 = vmatpush.bf16.msra.mxu0 %v10644_v3  ;;  %7821 = vmatpush.bf16.msra.mxu1 %v10772_v27  ;;  %v11080_v3 = vor.u32 %v11901_v50, %v11077_v6  ;;  %v11833_v27 = vld [vmem:[#allocation20 + $0x14c] sm:$0xf] }
 0x92b   : > { %7834 = vmatpush.bf16.msra.mxu2 %v10900_v26  ;;  %7847 = vmatpush.bf16.msra.mxu3 %v11028_v37  ;;  %v11897_v26 = vld [vmem:[#allocation20 + $0x34c] sm:$0xf]  ;;  %v11061_v37 = vld [vmem:[#allocation20 + $0x358] sm:$0xf0] }
 0x92d   : > { %7809 = vmatmul.bf16.vlgmr.msra.gmra.mxu0 %v15240_v24  ;;  %7822 = vmatmul.bf16.vlgmr.msra.gmra.mxu1 %v15242_v39 }
 0x92e   : > { %7853 = vmatpush.bf16.msrb.mxu0 %v10760_v10  ;;  %7866 = vmatpush.bf16.msrb.mxu1 %v10888_v15  ;;  %v10680_v10 = vor.u32 %v11801_v20, %v10677_v55  ;;  %v10808_v15 = vor.u32 %v11833_v27, %v10805_v47  ;;  %v11938_v20 = vld [vmem:[#allocation23 + $0x90] sm:$0xff] }
 0x92f   : > { %7879 = vmatpush.bf16.msrb.mxu2 %v11016_v62  ;;  %7892 = vmatpush.bf16.msrb.mxu3 %v11144_v51  ;;  %v10936_v62 = vor.u32 %v11865_v38, %v10933_v23  ;;  %v11064_v51 = vor.u32 %v11897_v26, %v11061_v37  ;;  %v11937_v26 = vld [vmem:[#allocation23 + $0x88] sm:$0xff] }
 0x930   : > { %7835 = vmatmul.bf16.vlgmr.msra.gmra.mxu2 %v15244_v61  ;;  %7848 = vmatmul.bf16.vlgmr.msra.gmra.mxu3 %v15248_v9 }
 0x932   : > { %7854 = vmatpush.bf16.msrb.mxu0 %v10744_v43  ;;  %7867 = vmatpush.bf16.msrb.mxu1 %v10872_v18  ;;  %v10664_v43 = vor.u32 %v11797_v46, %v10661_v53  ;;  %v10792_v18 = vor.u32 %v11829_v13, %v10789_v17  ;;  %v11936_v46 = vld [vmem:[#allocation23 + $0x80] sm:$0xff]  ;;  %v11951_v53 = vld [vmem:[#allocation23 + $0xf8] sm:$0xff] }
 0x933   : > { %7880 = vmatpush.bf16.msrb.mxu2 %v11000_v2  ;;  %7893 = vmatpush.bf16.msrb.mxu3 %v11128_v16  ;;  %v10920_v2 = vor.u32 %v11861_v5, %v10917_v48  ;;  %v11048_v16 = vor.u32 %v11893_v44, %v11045_v14  ;;  %v11950_v48 = vld [vmem:[#allocation23 + $0xf0] sm:$0xff]  ;;  %v11949_v44 = vld [vmem:[#allocation23 + $0xe8] sm:$0xff] }
 0x936   : > { %7855 = vmatpush.bf16.msrb.mxu0 %v10728_v21  ;;  %7868 = vmatpush.bf16.msrb.mxu1 %v10856_v19  ;;  %v10648_v21 = vor.u32 %v11793_v54, %v10645_v0  ;;  %v10776_v19 = vor.u32 %v11825_v28, %v10773_v35 }
 0x937   : > { %7881 = vmatpush.bf16.msrb.mxu2 %v10984_v52  ;;  %7894 = vmatpush.bf16.msrb.mxu3 %v11112_v33  ;;  %v11927_v52 = vld [vmem:[#allocation23 + $0x38] sm:$0xff]  ;;  %v11926_v33 = vld [vmem:[#allocation23 + $0x30] sm:$0xff] }
 0x93a   : > { %7856 = vmatpush.bf16.msrb.mxu0 %v10712_v25  ;;  %7869 = vmatpush.bf16.msrb.mxu1 %v10840_v12  ;;  %v11933_v25 = vld [vmem:[#allocation23 + $0x68] sm:$0xff]  ;;  %v11943_v12 = vld [vmem:[#allocation23 + $0xb8] sm:$0xff] }
 0x93b   : > { %7882 = vmatpush.bf16.msrb.mxu2 %v10968_v49  ;;  %7895 = vmatpush.bf16.msrb.mxu3 %v11096_v31  ;;  %v11929_v49 = vld [vmem:[#allocation23 + $0x48] sm:$0xff] }
 0x93c   : > { %v11941_v31 = vld [vmem:[#allocation23 + $0xa8] sm:$0xff] }
 0x93e   : > { %7857 = vmatpush.bf16.msrb.mxu0 %v10696_v63  ;;  %7870 = vmatpush.bf16.msrb.mxu1 %v10824_v42  ;;  %v11939_v42 = vld [vmem:[#allocation23 + $0x98] sm:$0xff] }
 0x93f   : > { %7883 = vmatpush.bf16.msrb.mxu2 %v10952_v30  ;;  %7896 = vmatpush.bf16.msrb.mxu3 %v11080_v3 }
 0x942   : > { %7858 = vmatpush.bf16.msrb.mxu0 %v10680_v10  ;;  %7871 = vmatpush.bf16.msrb.mxu1 %v10808_v15  ;;  %v7690_v15 = vperm.slane %v15264_v11, 1 }
 0x943   : > { %7884 = vmatpush.bf16.msrb.mxu2 %v10936_v62  ;;  %7897 = vmatpush.bf16.msrb.mxu3 %v11064_v51 }
 0x946   : > { %7859 = vmatpush.bf16.msrb.mxu0 %v10664_v43  ;;  %7872 = vmatpush.bf16.msrb.mxu1 %v10792_v18 }
 0x947   : > { %7885 = vmatpush.bf16.msrb.mxu2 %v10920_v2  ;;  %7898 = vmatpush.bf16.msrb.mxu3 %v11048_v16  ;;  %v11948_v16 = vld [vmem:[#allocation23 + $0xe0] sm:$0xff] }
 0x94a   : > { %7860 = vmatpush.bf16.msrb.mxu0 %v10648_v21  ;;  %7873 = vmatpush.bf16.msrb.mxu1 %v10776_v19  ;;  %v7691_v21 = vperm.slane %v15264_v11, 2 }
 0x94b   : > { %7886 = vmatpush.bf16.msrb.mxu2 %v10904_v57  ;;  %7899 = vmatpush.bf16.msrb.mxu3 %v11032_v45  ;;  %v11946_v45 = vld [vmem:[#allocation23 + $0xd0] sm:$0xff] }
 0x94d   : > { %7861 = vmatmul.bf16.vlgmr.msrb.gmra.mxu0 %v15240_v24  ;;  %7874 = vmatmul.bf16.vlgmr.msrb.gmra.mxu1 %v15242_v39  ;;  %v11921_v24 = vld [vmem:[#allocation23 + $0x8] sm:$0xff]  ;;  %v11920_v39 = vld [vmem:[#allocation23] sm:$0xff] }
 0x94e   : > { %8170 = vmatpush.bf16.msra.mxu0 %v11927_v52  ;;  %7887 = vmatmul.bf16.vlgmr.msrb.gmra.mxu2 %v15244_v61  ;;  %v11932_v61 = vld [vmem:[#allocation23 + $0x60] sm:$0xff] }
 0x94f   : > { %7900 = vmatmul.bf16.vlgmr.msrb.gmra.mxu3 %v15248_v9  ;;  %8183 = vmatpush.bf16.msra.mxu1 %v11935_v29  ;;  %v11931_v9 = vld [vmem:[#allocation23 + $0x58] sm:$0xff] }
 0x950   : > { %8196 = vmatpush.bf16.msra.mxu2 %v11943_v12  ;;  %8209 = vmatpush.bf16.msra.mxu3 %v11951_v53 }
 0x952   : > { %8171 = vmatpush.bf16.msra.mxu0 %v11926_v33  ;;  %v11945_v33 = vld [vmem:[#allocation23 + $0xc8] sm:$0xff] }
 0x953   : > { %8184 = vmatpush.bf16.msra.mxu1 %v11934_v34 }
 0x954   : > { %8197 = vmatpush.bf16.msra.mxu2 %v11942_v40  ;;  %8210 = vmatpush.bf16.msra.mxu3 %v11950_v48 }
 0x956   : > { %8172 = vmatpush.bf16.msra.mxu0 %v11925_v4 }
 0x957   : > { %8185 = vmatpush.bf16.msra.mxu1 %v11933_v25 }
 0x958   : > { %8198 = vmatpush.bf16.msra.mxu2 %v11941_v31  ;;  %8211 = vmatpush.bf16.msra.mxu3 %v11949_v44 }
 0x95a   : > { %8173 = vmatpush.bf16.msra.mxu0 %v11924_v1 }
 0x95b   : > { %8186 = vmatpush.bf16.msra.mxu1 %v11932_v61 }
 0x95c   : > { %8199 = vmatpush.bf16.msra.mxu2 %v11940_v58  ;;  %8212 = vmatpush.bf16.msra.mxu3 %v11948_v16 }
 0x95e   : > { %8174 = vmatpush.bf16.msra.mxu0 %v11923_v8 }
 0x95f   : > { %8187 = vmatpush.bf16.msra.mxu1 %v11931_v9 }
 0x960   : > { %8200 = vmatpush.bf16.msra.mxu2 %v11939_v42  ;;  %8213 = vmatpush.bf16.msra.mxu3 %v11947_v41 }
 0x962   : > { %8175 = vmatpush.bf16.msra.mxu0 %v11922_v59 }
 0x963   : > { %8188 = vmatpush.bf16.msra.mxu1 %v11930_v32  ;;  %v7692_v32 = vperm.slane %v15264_v11, 3 }
 0x964   : > { %8201 = vmatpush.bf16.msra.mxu2 %v11938_v20  ;;  %8214 = vmatpush.bf16.msra.mxu3 %v11946_v45 }
 0x966   : > { %8176 = vmatpush.bf16.msra.mxu0 %v11921_v24  ;;  %v11944_v24 = vld [vmem:[#allocation23 + $0xc0] sm:$0xff] }
 0x967   : > { %8189 = vmatpush.bf16.msra.mxu1 %v11929_v49 }
 0x968   : > { %8202 = vmatpush.bf16.msra.mxu2 %v11937_v26  ;;  %8215 = vmatpush.bf16.msra.mxu3 %v11945_v33 }
 0x96a   : > { %8177 = vmatpush.bf16.msra.mxu0 %v11920_v39 }
 0x96b   : > { %8190 = vmatpush.bf16.msra.mxu1 %v11928_v22 }
 0x96c   : > { %8203 = vmatpush.bf16.msra.mxu2 %v11936_v46  ;;  %8216 = vmatpush.bf16.msra.mxu3 %v11944_v24 }
 0x989   : > { %v7706_v50 = vpop.f32.mrf.mxu0  ;;  %v7719_v6 = vpop.f32.mrf.mxu1 }
 0x98a   : > { %v7707_v63 = vadd.f32 %v7706_v50, %v7689_v36 }
 0x98c   : > { %v7720_v55 = vadd.f32 %v7719_v6, %v7707_v63 }
 0x990   : > { %v7732_v30 = vpop.f32.mrf.mxu2  ;;  %v7745_v3 = vpop.f32.mrf.mxu3 }
 0x991   : > { %v7733_v27 = vadd.f32 %v7732_v30, %v7720_v55  ;;  %v7708_v47 = vpop.f32.mrf.mxu0  ;;  %v7721_v38 = vpop.f32.mrf.mxu1 }
 0x993   : > { %v7746_v23 = vadd.f32 %v7745_v3, %v7733_v27 }
 0x995   : > { %v7905_v37 = vmax.f32 %v7746_v23, 0.0 }
 0x997   : > { %v7909_v10 = vpack.c.bf16 %v7905_v37, %v7905_v37  ;;  %v7977_v37 = vld [vmem:[#allocation24] sm:$0x1] }
 0x998   : > { %v7734_v62 = vpop.f32.mrf.mxu2  ;;  %v7747_v51 = vpop.f32.mrf.mxu3 }
 0x999   : > { %8178 = vmatmul.bf16.vlgmr.msra.gmra.mxu0 %v7909_v10  ;;  %v7758_v13 = vpop.f32.mrf.mxu0  ;;  %v7771_v17 = vpop.f32.mrf.mxu1 }
 0x99a   : > { %v7759_v5 = vadd.f32 %v7758_v13, %v7690_v15 }
 0x99c   : > { %v7772_v14 = vadd.f32 %v7771_v17, %v7759_v5 }
 0x9a0   : > { %v7784_v43 = vpop.f32.mrf.mxu2  ;;  %v7797_v18 = vpop.f32.mrf.mxu3 }
 0x9a1   : > { %v7785_v54 = vadd.f32 %v7784_v43, %v7772_v14  ;;  %v7760_v0 = vpop.f32.mrf.mxu0  ;;  %v7773_v2 = vpop.f32.mrf.mxu1 }
 0x9a3   : > { %v7798_v28 = vadd.f32 %v7797_v18, %v7785_v54 }
 0x9a5   : > { %v7906_v35 = vmax.f32 %v7798_v28, 0.0 }
 0x9a7   : > { %v7910_v60 = vpack.c.bf16 %v7906_v35, %v7906_v35 }
 0x9a8   : > { %v7786_v7 = vpop.f32.mrf.mxu2  ;;  %v7799_v56 = vpop.f32.mrf.mxu3 }
 0x9a9   : > { %8191 = vmatmul.bf16.vlgmr.msra.gmra.mxu1 %v7910_v60 }
 0x9aa   : > { %v7810_v19 = vpop.f32.mrf.mxu0  ;;  %v7823_v57 = vpop.f32.mrf.mxu1 }
 0x9ab   : > { %v7811_v52 = vadd.f32 %v7810_v19, %v7691_v21 }
 0x9ad   : > { %v7824_v4 = vadd.f32 %v7823_v57, %v7811_v52 }
 0x9b2   : > { %v7812_v59 = vpop.f32.mrf.mxu0  ;;  %v7825_v34 = vpop.f32.mrf.mxu1 }
 0x9b3   : > { %v7836_v1 = vpop.f32.mrf.mxu2  ;;  %v7849_v8 = vpop.f32.mrf.mxu3 }
 0x9b4   : > { %v7837_v29 = vadd.f32 %v7836_v1, %v7824_v4 }
 0x9b6   : > { %v7850_v25 = vadd.f32 %v7849_v8, %v7837_v29 }
 0x9b8   : > { %v7907_v39 = vmax.f32 %v7850_v25, 0.0 }
 0x9ba   : > { %v7911_v61 = vpack.c.bf16 %v7907_v39, %v7907_v39 }
 0x9bb   : > { %v7838_v9 = vpop.f32.mrf.mxu2  ;;  %v7851_v12 = vpop.f32.mrf.mxu3 }
 0x9bc   : > { %8204 = vmatmul.bf16.vlgmr.msra.gmra.mxu2 %v7911_v61 }
 0x9ca   : > { %v7862_v40 = vpop.f32.mrf.mxu0  ;;  %v7875_v49 = vpop.f32.mrf.mxu1 }
 0x9cb   : > { %v7863_v31 = vadd.f32 %v7862_v40, %v7692_v32 }
 0x9cd   : > { %v7876_v36 = vadd.f32 %v7875_v49, %v7863_v31 }
 0x9d1   : > { %v7888_v22 = vpop.f32.mrf.mxu2 }
 0x9d2   : > { %v7901_v58 = vpop.f32.mrf.mxu3  ;;  %v7889_v50 = vadd.f32 %v7888_v22, %v7876_v36  ;;  %v7864_v6 = vpop.f32.mrf.mxu0 }
 0x9d3   : > { %v7877_v63 = vpop.f32.mrf.mxu1 }
 0x9d4   : > { %v7902_v42 = vadd.f32 %v7901_v58, %v7889_v50 }
 0x9d6   : > { %v7908_v20 = vmax.f32 %v7902_v42, 0.0 }
 0x9d8   : > { %v7912_v55 = vpack.c.bf16 %v7908_v20, %v7908_v20 }
 0x9d9   : > { %v7890_v30 = vpop.f32.mrf.mxu2 }
 0x9da   : > { %v7903_v3 = vpop.f32.mrf.mxu3  ;;  %8217 = vmatmul.bf16.vlgmr.msra.gmra.mxu3 %v7912_v55 }
 0xa16   : > { %v8179_v27 = vpop.f32.mrf.mxu0 }
 0xa17   : > { %v8180_v10 = vadd.f32 %v8179_v27, %v7977_v37 }
 0xa1e   : > { %v8181_v47 = vpop.f32.mrf.mxu0 }
 0xa26   : > { %v8192_v11 = vpop.f32.mrf.mxu1 }
 0xa27   : > { %v8193_v15 = vadd.f32 %v8192_v11, %v8180_v10 }
 0xa2e   : > { %v8194_v38 = vpop.f32.mrf.mxu1 }
 0xa3f   : > { %v8205_v23 = vpop.f32.mrf.mxu2 }
 0xa40   : > { %v8206_v46 = vadd.f32 %v8205_v23, %v8193_v15 }
 0xa47   : > { %v8207_v26 = vpop.f32.mrf.mxu2 }
 0xa5d   : > { %v8218_v53 = vpop.f32.mrf.mxu3 }
 0xa5e   : > { %v8219_v62 = vadd.f32 %v8218_v53, %v8206_v46 }
 0xa60   : > { %8222 = vst [vmem:[%s12909_s30] sm:$0x1] %v8219_v62 }
 0xa61   : > { %12555 = shalt.err (!%p12552_p11)
}
 0xa62   : > { %12016 = dma.vmem_to_hbm [thread:$0]  (%p12770_p5), %s8235_s25, 16, %s8237_s19, %s8224_s15  }
 0xa65   : > { %v8220_v51 = vpop.f32.mrf.mxu3 }
 0xa66 PF: > { %s16240_s3 = sld [smem:[#allocation35_spill]]  ;;  %p12083_p12 = scmp.ge.s32.totalorder %s12630_s28, 2 }
 0xa68   : > { %p12056_p13 = pnand %p12083_p12, %p12774_p6 }
 0xa6a   : > { %p12057_p0 = pneg %p12056_p13 }
 0xa6c   : > { %s8248_s27 = sand.u32 1, %s16240_s3  }
 0xa6d   : > { %s8249_s20 = scalar_lea.sflag [#allocation8], %s8248_s27 }
 0xa6e   : > { %12613 = dma.done.wait (%p12057_p0), %s8249_s20, 16  }
 0xa6f   : > { %12615 = vsyncadd (%p12057_p0), %s8249_s20, 4294967280  ;;  %s16242_s28 = sld [smem:[#allocation37_spill]]  ;;  %s16245_s25 = smov %s12622_s26 }
 0xa70   : > { %s16243_s6 = sld [smem:[#allocation36_spill]] }
 0xa71   : > { %s16244_s27 = sld [smem:[#allocation38_spill]] }
 0xa75   : > { %p30_p1 = scmp.ge.s32.totalorder %s16242_s28, 4  }
 0xa76   : > { %s16246_s26 = smov %s16243_s6 }
 0xa77   :  { %32 = sbr.rel (!%p30_p1) target bundleno = 16 (0x10), region = 260 }
 0xa7c   :  { %8254 = vsyncpa [#allocation7], 1 }
 0xa7d   :  { %8256 = vsyncpa [#allocation7 + $0x1], 1 }
 0xa7e   :  { %8257 = vsyncpa [#allocation10], 1 }
 0xa7f   :  { %8258 = vsyncpa [#allocation13], 1 }
 0xa80   :  { %8259 = vsyncpa [#allocation16], 1 }
 0xa81   :  { %8260 = vsyncpa [#allocation19], 1 }
 0xa82   :  { %8261 = vsyncpa [#allocation22], 1 }
 0xa83   :  { %8262 = vsyncpa [#allocation25], 1 }
 0xa84   :  { %8263 = vsyncpa [#allocation8], 1 }
 0xa85   :  { %8265 = vsyncpa [#allocation8 + $0x1], 1 }

</bundles_post_ra>
